<compile_context>
chip_gen: v6e
topology: v6e:2x2x1
jax: 0.10.0
libtpu: 0.0.40
codegen_flags: <defaults>
</compile_context>

<pallas_src>
import functools

import jax
import jax.numpy as jnp
from jax import lax
from jax.experimental import pallas as pl
from jax.experimental.pallas import tpu as pltpu


# ----------------------------------------------------------------------------
# Kernel helpers
# ----------------------------------------------------------------------------
def _instance_norm_f32(y, eps):
    # y: (H*W, C) float32 -> per-channel normalization over the spatial axis.
    # Matches nn.InstanceNorm2d defaults (affine=False, biased variance).
    mean = jnp.mean(y, axis=0, keepdims=True)
    d = y - mean
    var = jnp.mean(d * d, axis=0, keepdims=True)
    return d * lax.rsqrt(var + eps)


def _conv3x3_same(pad_ref, a_f32, w_ref, b_ref, blk, H, W, C):
    """3x3 / stride 1 / zero-pad 1 conv on one sample.

    a_f32  : (H*W, C) float32 activations
    w_ref  : (num_blocks, 9, C, C) bf16 VMEM ref, layout (kh*kw, C_in, C_out)
    b_ref  : (num_blocks, C) float32 VMEM ref
    pad_ref: (H+2, W+2, C) float32 VMEM scratch whose border is zero.
    """
    pad_ref[1:H + 1, 1:W + 1, :] = a_f32.reshape(H, W, C)
    acc = jnp.zeros((H * W, C), jnp.float32)
    k = 0
    for dh in range(3):
        for dw in range(3):
            patch = pad_ref[dh:dh + H, dw:dw + W, :].reshape(H * W, C)
            acc = acc + jnp.dot(patch.astype(jnp.bfloat16), w_ref[blk, k],
                                preferred_element_type=jnp.float32)
            k += 1
    return acc + b_ref[blk:blk + 1, :]


def _resblocks_kernel(x_ref, w1_ref, b1_ref, w2_ref, b2_ref, o_ref, pad_ref,
                      *, eps):
    H, W, C = x_ref.shape
    num_blocks = w1_ref.shape[0]

    # Zero the padded scratch every grid step (cheap, and safe under megacore
    # partitioning where a core may never see program_id == 0).  Only the
    # interior is rewritten per conv, so the 1-pixel border stays zero.
    pad_ref[...] = jnp.zeros_like(pad_ref)

    h = x_ref[...].reshape(H * W, C).astype(jnp.float32)

    for blk in range(num_blocks):          # static unroll over ResBlocks
        residual = h
        # Conv2dBlock(dim, dim, 3, 1, 1, norm='in', activation='relu')
        y = _conv3x3_same(pad_ref, h, w1_ref, b1_ref, blk, H, W, C)
        y = _instance_norm_f32(y, eps)
        y = jnp.maximum(y, 0.0)
        # Conv2dBlock(dim, dim, 3, 1, 1, norm='in', activation='none')
        y = _conv3x3_same(pad_ref, y, w2_ref, b2_ref, blk, H, W, C)
        y = _instance_norm_f32(y, eps)
        h = residual + y                   # residual connection

    o_ref[...] = h.reshape(H, W, C).astype(o_ref.dtype)


# ----------------------------------------------------------------------------
# Wrapper
# ----------------------------------------------------------------------------
def resblocks_forward(params, x_nchw, *, eps=1e-5):
    """params = (w1, b1, w2, b2), stacked over blocks:
         w1, w2: (num_blocks, 9, C, C)   (kh*kw, C_in, C_out)
         b1, b2: (num_blocks, C)
       x_nchw : (B, C, H, W) float32, exactly like the PyTorch module."""
    w1, b1, w2, b2 = params
    B, C, H, W = x_nchw.shape
    num_blocks = w1.shape[0]

    x = jnp.transpose(x_nchw, (0, 2, 3, 1))          # NHWC: C on the lane axis
    w1 = w1.astype(jnp.bfloat16)
    w2 = w2.astype(jnp.bfloat16)
    b1 = b1.astype(jnp.float32)
    b2 = b2.astype(jnp.float32)

    kernel = functools.partial(_resblocks_kernel, eps=eps)

    flops = 2 * B * num_blocks * 2 * (H * W) * 9 * C * C
    bytes_accessed = (x.size * 4 + w1.size * 2 + w2.size * 2
                      + b1.size * 4 + b2.size * 4 + B * H * W * C * 4)

    out_nhwc = pl.pallas_call(
        kernel,
        out_shape=jax.ShapeDtypeStruct((B, H, W, C), jnp.float32),
        grid=(B,),
        in_specs=[
            pl.BlockSpec((None, H, W, C), lambda b: (b, 0, 0, 0)),
            pl.BlockSpec((num_blocks, 9, C, C), lambda b: (0, 0, 0, 0)),
            pl.BlockSpec((num_blocks, C), lambda b: (0, 0)),
            pl.BlockSpec((num_blocks, 9, C, C), lambda b: (0, 0, 0, 0)),
            pl.BlockSpec((num_blocks, C), lambda b: (0, 0)),
        ],
        out_specs=pl.BlockSpec((None, H, W, C), lambda b: (b, 0, 0, 0)),
        scratch_shapes=[pltpu.VMEM((H + 2, W + 2, C), jnp.float32)],
        compiler_params=pltpu.CompilerParams(
            dimension_semantics=("parallel",),
            vmem_limit_bytes=32 * 1024 * 1024,
        ),
        cost_estimate=pl.CostEstimate(
            flops=flops,
            transcendentals=B * num_blocks * 2 * C,
            bytes_accessed=bytes_accessed,
        ),
    )(x, w1, b1, w2, b2)

    return jnp.transpose(out_nhwc, (0, 3, 1, 2))     # back to NCHW


# ----------------------------------------------------------------------------
# Parameter init (mirrors PyTorch Conv2d default init, then converts the
# (C_out, C_in, 3, 3) weight to the (9, C_in, C_out) matmul layout).
# ----------------------------------------------------------------------------
def init_resblocks_params(key, num_blocks, dim, dtype=jnp.float32):
    fan_in = dim * 3 * 3
    bound = 1.0 / (fan_in ** 0.5)
    w1s, b1s, w2s, b2s = [], [], [], []
    for _ in range(num_blocks):
        key, k1, k2, k3, k4 = jax.random.split(key, 5)
        w1 = jax.random.uniform(k1, (dim, dim, 3, 3), dtype, -bound, bound)
        b1 = jax.random.uniform(k2, (dim,), dtype, -bound, bound)
        w2 = jax.random.uniform(k3, (dim, dim, 3, 3), dtype, -bound, bound)
        b2 = jax.random.uniform(k4, (dim,), dtype, -bound, bound)
        w1s.append(jnp.transpose(w1, (2, 3, 1, 0)).reshape(9, dim, dim))
        w2s.append(jnp.transpose(w2, (2, 3, 1, 0)).reshape(9, dim, dim))
        b1s.append(b1)
        b2s.append(b2)
    return (jnp.stack(w1s), jnp.stack(b1s), jnp.stack(w2s), jnp.stack(b2s))


# ----------------------------------------------------------------------------
# Pure-JAX reference (same bf16-matmul / f32-epilogue numerics)
# ----------------------------------------------------------------------------
def _conv3x3_ref(h, w, b):
    B, H, W, C = h.shape
    hp = jnp.pad(h.astype(jnp.bfloat16), ((0, 0), (1, 1), (1, 1), (0, 0)))
    w = w.astype(jnp.bfloat16)
    acc = jnp.zeros((B, H, W, w.shape[-1]), jnp.float32)
    k = 0
    for dh in range(3):
        for dw in range(3):
            patch = hp[:, dh:dh + H, dw:dw + W, :]
            acc = acc + jnp.einsum('bhwc,cd->bhwd', patch, w[k],
                                   preferred_element_type=jnp.float32)
            k += 1
    return acc + b.astype(jnp.float32)


def _instance_norm_ref(y, eps):
    mean = jnp.mean(y, axis=(1, 2), keepdims=True)
    d = y - mean
    var = jnp.mean(d * d, axis=(1, 2), keepdims=True)
    return d * lax.rsqrt(var + eps)


def resblocks_reference(params, x_nchw, eps=1e-5):
    w1, b1, w2, b2 = params
    h = jnp.transpose(x_nchw, (0, 2, 3, 1)).astype(jnp.float32)
    for blk in range(w1.shape[0]):
        residual = h
        y = _conv3x3_ref(h, w1[blk], b1[blk])
        y = _instance_norm_ref(y, eps)
        y = jnp.maximum(y, 0.0)
        y = _conv3x3_ref(y, w2[blk], b2[blk])
        y = _instance_norm_ref(y, eps)
        h = residual + y
    return jnp.transpose(h, (0, 3, 1, 2))


# TODO(synk): only the ResBlocks defaults (norm='in', activation='relu',
# pad_type='zero') are implemented; 'bn'/'ln'/'adain'/'sn' norms, reflect /
# replicate padding and other activations are not translated.

if __name__ == "__main__":
    key = jax.random.PRNGKey(0)
    kx, kp = jax.random.split(key)

    # ResBlocks(num_blocks=2, dim=64) applied to a (B, dim, H, W) feature map.
    B, dim, H, W = 2, 64, 16, 16
    num_blocks = 2

    x = jax.random.normal(kx, (B, dim, H, W), jnp.float32)
    params = init_resblocks_params(kp, num_blocks, dim)

    out = jax.block_until_ready(resblocks_forward(params, x))
    ref = resblocks_reference(params, x)

    assert out.shape == (B, dim, H, W), out.shape
    max_err = float(jnp.max(jnp.abs(out - ref)))
    assert jnp.allclose(out, ref, atol=2e-3, rtol=2e-3), max_err

    print("KERNEL_OK")
</pallas_src>

<mosaic_0001>
module attributes {stable_mosaic.version = 11 : i64} {
  func.func @_resblocks_kernel(%arg0: i32, %arg1: memref<1x16x16x64xf32, #tpu.memory_space<vmem>>, %arg2: memref<2x9x64x64xbf16, #tpu.memory_space<vmem>>, %arg3: memref<2x64xf32, #tpu.memory_space<vmem>>, %arg4: memref<2x9x64x64xbf16, #tpu.memory_space<vmem>>, %arg5: memref<2x64xf32, #tpu.memory_space<vmem>>, %arg6: memref<1x16x16x64xf32, #tpu.memory_space<vmem>>, %arg7: memref<18x18x64xf32, #tpu.memory_space<vmem>>) attributes {dimension_semantics = [#tpu.dimension_semantics<parallel>], iteration_bounds = array<i64: 2>, scalar_prefetch = 0 : i64, scratch_operands = 1 : i64, tpu.core_type = #tpu.core_type<tc>, window_params = [{transform_indices = @transform_0, window_bounds = array<i64: 1, 16, 16, 64>}, {pipeline_mode = #tpu.pipeline_mode<synchronous>, transform_indices = @transform_1, window_bounds = array<i64: 2, 9, 64, 64>}, {pipeline_mode = #tpu.pipeline_mode<synchronous>, transform_indices = @transform_2, window_bounds = array<i64: 2, 64>}, {pipeline_mode = #tpu.pipeline_mode<synchronous>, transform_indices = @transform_3, window_bounds = array<i64: 2, 9, 64, 64>}, {pipeline_mode = #tpu.pipeline_mode<synchronous>, transform_indices = @transform_4, window_bounds = array<i64: 2, 64>}, {transform_indices = @transform_5, window_bounds = array<i64: 1, 16, 16, 64>}]} {
    %cst = arith.constant 0.000000e+00 : f32
    %0 = vector.broadcast %cst : f32 to vector<18x18x64xf32>
    %c0 = arith.constant 0 : index
    %c0_0 = arith.constant 0 : index
    %c0_1 = arith.constant 0 : index
    %1 = vector.load %arg7[%c0, %c0_0, %c0_1] : memref<18x18x64xf32, #tpu.memory_space<vmem>>, vector<18x18x64xf32>
    tpu.vector_store %arg7[%c0, %c0_0, %c0_1], %0 {strides = array<i32>} : memref<18x18x64xf32, #tpu.memory_space<vmem>>, vector<18x18x64xf32>,
    %c0_2 = arith.constant 0 : index
    %c0_3 = arith.constant 0 : index
    %c0_4 = arith.constant 0 : index
    %c0_5 = arith.constant 0 : index
    %2 = vector.load %arg1[%c0_2, %c0_3, %c0_4, %c0_5] : memref<1x16x16x64xf32, #tpu.memory_space<vmem>>, vector<1x16x16x64xf32>
    %3 = vector.shape_cast %2 : vector<1x16x16x64xf32> to vector<16x16x64xf32>
    %4 = vector.shape_cast %3 : vector<16x16x64xf32> to vector<256x64xf32>
    %5 = vector.shape_cast %4 : vector<256x64xf32> to vector<16x16x64xf32>
    %c1 = arith.constant 1 : index
    %c1_6 = arith.constant 1 : index
    %c0_7 = arith.constant 0 : index
    %6 = vector.load %arg7[%c1, %c1_6, %c0_7] : memref<18x18x64xf32, #tpu.memory_space<vmem>>, vector<16x16x64xf32>
    tpu.vector_store %arg7[%c1, %c1_6, %c0_7], %5 {strides = array<i32>} : memref<18x18x64xf32, #tpu.memory_space<vmem>>, vector<16x16x64xf32>,
    %cst_8 = arith.constant 0.000000e+00 : f32
    %7 = vector.broadcast %cst_8 : f32 to vector<256x64xf32>
    %c0_9 = arith.constant 0 : index
    %c0_10 = arith.constant 0 : index
    %c0_11 = arith.constant 0 : index
    %8 = vector.load %arg7[%c0_9, %c0_10, %c0_11] : memref<18x18x64xf32, #tpu.memory_space<vmem>>, vector<16x16x64xf32>
    %9 = vector.shape_cast %8 : vector<16x16x64xf32> to vector<256x64xf32>
    %10 = arith.truncf %9 : vector<256x64xf32> to vector<256x64xbf16>
    %c0_12 = arith.constant 0 : index
    %c0_13 = arith.constant 0 : index
    %c0_14 = arith.constant 0 : index
    %c0_15 = arith.constant 0 : index
    %11 = vector.load %arg2[%c0_12, %c0_13, %c0_14, %c0_15] : memref<2x9x64x64xbf16, #tpu.memory_space<vmem>>, vector<1x1x64x64xbf16>
    %12 = vector.shape_cast %11 : vector<1x1x64x64xbf16> to vector<64x64xbf16>
    %cst_16 = arith.constant dense<0.000000e+00> : vector<256x64xf32>
    %13 = tpu.matmul %10, %12, %cst_16 {dimension_numbers = #tpu.dot_dimension_numbers<[1], [0], [0], [1], [0, 0, 1, 1], [], []>} : vector<256x64xbf16>, vector<64x64xbf16>, vector<256x64xf32> -> vector<256x64xf32>
    %14 = arith.addf %7, %13 : vector<256x64xf32>
    %c0_17 = arith.constant 0 : index
    %c1_18 = arith.constant 1 : index
    %c0_19 = arith.constant 0 : index
    %15 = vector.load %arg7[%c0_17, %c1_18, %c0_19] : memref<18x18x64xf32, #tpu.memory_space<vmem>>, vector<16x16x64xf32>
    %16 = vector.shape_cast %15 : vector<16x16x64xf32> to vector<256x64xf32>
    %17 = arith.truncf %16 : vector<256x64xf32> to vector<256x64xbf16>
    %c0_20 = arith.constant 0 : index
    %c1_21 = arith.constant 1 : index
    %c0_22 = arith.constant 0 : index
    %c0_23 = arith.constant 0 : index
    %18 = vector.load %arg2[%c0_20, %c1_21, %c0_22, %c0_23] : memref<2x9x64x64xbf16, #tpu.memory_space<vmem>>, vector<1x1x64x64xbf16>
    %19 = vector.shape_cast %18 : vector<1x1x64x64xbf16> to vector<64x64xbf16>
    %cst_24 = arith.constant dense<0.000000e+00> : vector<256x64xf32>
    %20 = tpu.matmul %17, %19, %cst_24 {dimension_numbers = #tpu.dot_dimension_numbers<[1], [0], [0], [1], [0, 0, 1, 1], [], []>} : vector<256x64xbf16>, vector<64x64xbf16>, vector<256x64xf32> -> vector<256x64xf32>
    %21 = arith.addf %14, %20 : vector<256x64xf32>
    %c0_25 = arith.constant 0 : index
    %c2 = arith.constant 2 : index
    %c0_26 = arith.constant 0 : index
    %22 = vector.load %arg7[%c0_25, %c2, %c0_26] : memref<18x18x64xf32, #tpu.memory_space<vmem>>, vector<16x16x64xf32>
    %23 = vector.shape_cast %22 : vector<16x16x64xf32> to vector<256x64xf32>
    %24 = arith.truncf %23 : vector<256x64xf32> to vector<256x64xbf16>
    %c0_27 = arith.constant 0 : index
    %c2_28 = arith.constant 2 : index
    %c0_29 = arith.constant 0 : index
    %c0_30 = arith.constant 0 : index
    %25 = vector.load %arg2[%c0_27, %c2_28, %c0_29, %c0_30] : memref<2x9x64x64xbf16, #tpu.memory_space<vmem>>, vector<1x1x64x64xbf16>
    %26 = vector.shape_cast %25 : vector<1x1x64x64xbf16> to vector<64x64xbf16>
    %cst_31 = arith.constant dense<0.000000e+00> : vector<256x64xf32>
    %27 = tpu.matmul %24, %26, %cst_31 {dimension_numbers = #tpu.dot_dimension_numbers<[1], [0], [0], [1], [0, 0, 1, 1], [], []>} : vector<256x64xbf16>, vector<64x64xbf16>, vector<256x64xf32> -> vector<256x64xf32>
    %28 = arith.addf %21, %27 : vector<256x64xf32>
    %c1_32 = arith.constant 1 : index
    %c0_33 = arith.constant 0 : index
    %c0_34 = arith.constant 0 : index
    %29 = vector.load %arg7[%c1_32, %c0_33, %c0_34] : memref<18x18x64xf32, #tpu.memory_space<vmem>>, vector<16x16x64xf32>
    %30 = vector.shape_cast %29 : vector<16x16x64xf32> to vector<256x64xf32>
    %31 = arith.truncf %30 : vector<256x64xf32> to vector<256x64xbf16>
    %c0_35 = arith.constant 0 : index
    %c3 = arith.constant 3 : index
    %c0_36 = arith.constant 0 : index
    %c0_37 = arith.constant 0 : index
    %32 = vector.load %arg2[%c0_35, %c3, %c0_36, %c0_37] : memref<2x9x64x64xbf16, #tpu.memory_space<vmem>>, vector<1x1x64x64xbf16>
    %33 = vector.shape_cast %32 : vector<1x1x64x64xbf16> to vector<64x64xbf16>
    %cst_38 = arith.constant dense<0.000000e+00> : vector<256x64xf32>
    %34 = tpu.matmul %31, %33, %cst_38 {dimension_numbers = #tpu.dot_dimension_numbers<[1], [0], [0], [1], [0, 0, 1, 1], [], []>} : vector<256x64xbf16>, vector<64x64xbf16>, vector<256x64xf32> -> vector<256x64xf32>
    %35 = arith.addf %28, %34 : vector<256x64xf32>
    %c1_39 = arith.constant 1 : index
    %c1_40 = arith.constant 1 : index
    %c0_41 = arith.constant 0 : index
    %36 = vector.load %arg7[%c1_39, %c1_40, %c0_41] : memref<18x18x64xf32, #tpu.memory_space<vmem>>, vector<16x16x64xf32>
    %37 = vector.shape_cast %36 : vector<16x16x64xf32> to vector<256x64xf32>
    %38 = arith.truncf %37 : vector<256x64xf32> to vector<256x64xbf16>
    %c0_42 = arith.constant 0 : index
    %c4 = arith.constant 4 : index
    %c0_43 = arith.constant 0 : index
    %c0_44 = arith.constant 0 : index
    %39 = vector.load %arg2[%c0_42, %c4, %c0_43, %c0_44] : memref<2x9x64x64xbf16, #tpu.memory_space<vmem>>, vector<1x1x64x64xbf16>
    %40 = vector.shape_cast %39 : vector<1x1x64x64xbf16> to vector<64x64xbf16>
    %cst_45 = arith.constant dense<0.000000e+00> : vector<256x64xf32>
    %41 = tpu.matmul %38, %40, %cst_45 {dimension_numbers = #tpu.dot_dimension_numbers<[1], [0], [0], [1], [0, 0, 1, 1], [], []>} : vector<256x64xbf16>, vector<64x64xbf16>, vector<256x64xf32> -> vector<256x64xf32>
    %42 = arith.addf %35, %41 : vector<256x64xf32>
    %c1_46 = arith.constant 1 : index
    %c2_47 = arith.constant 2 : index
    %c0_48 = arith.constant 0 : index
    %43 = vector.load %arg7[%c1_46, %c2_47, %c0_48] : memref<18x18x64xf32, #tpu.memory_space<vmem>>, vector<16x16x64xf32>
    %44 = vector.shape_cast %43 : vector<16x16x64xf32> to vector<256x64xf32>
    %45 = arith.truncf %44 : vector<256x64xf32> to vector<256x64xbf16>
    %c0_49 = arith.constant 0 : index
    %c5 = arith.constant 5 : index
    %c0_50 = arith.constant 0 : index
    %c0_51 = arith.constant 0 : index
    %46 = vector.load %arg2[%c0_49, %c5, %c0_50, %c0_51] : memref<2x9x64x64xbf16, #tpu.memory_space<vmem>>, vector<1x1x64x64xbf16>
    %47 = vector.shape_cast %46 : vector<1x1x64x64xbf16> to vector<64x64xbf16>
    %cst_52 = arith.constant dense<0.000000e+00> : vector<256x64xf32>
    %48 = tpu.matmul %45, %47, %cst_52 {dimension_numbers = #tpu.dot_dimension_numbers<[1], [0], [0], [1], [0, 0, 1, 1], [], []>} : vector<256x64xbf16>, vector<64x64xbf16>, vector<256x64xf32> -> vector<256x64xf32>
    %49 = arith.addf %42, %48 : vector<256x64xf32>
    %c2_53 = arith.constant 2 : index
    %c0_54 = arith.constant 0 : index
    %c0_55 = arith.constant 0 : index
    %50 = vector.load %arg7[%c2_53, %c0_54, %c0_55] : memref<18x18x64xf32, #tpu.memory_space<vmem>>, vector<16x16x64xf32>
    %51 = vector.shape_cast %50 : vector<16x16x64xf32> to vector<256x64xf32>
    %52 = arith.truncf %51 : vector<256x64xf32> to vector<256x64xbf16>
    %c0_56 = arith.constant 0 : index
    %c6 = arith.constant 6 : index
    %c0_57 = arith.constant 0 : index
    %c0_58 = arith.constant 0 : index
    %53 = vector.load %arg2[%c0_56, %c6, %c0_57, %c0_58] : memref<2x9x64x64xbf16, #tpu.memory_space<vmem>>, vector<1x1x64x64xbf16>
    %54 = vector.shape_cast %53 : vector<1x1x64x64xbf16> to vector<64x64xbf16>
    %cst_59 = arith.constant dense<0.000000e+00> : vector<256x64xf32>
    %55 = tpu.matmul %52, %54, %cst_59 {dimension_numbers = #tpu.dot_dimension_numbers<[1], [0], [0], [1], [0, 0, 1, 1], [], []>} : vector<256x64xbf16>, vector<64x64xbf16>, vector<256x64xf32> -> vector<256x64xf32>
    %56 = arith.addf %49, %55 : vector<256x64xf32>
    %c2_60 = arith.constant 2 : index
    %c1_61 = arith.constant 1 : index
    %c0_62 = arith.constant 0 : index
    %57 = vector.load %arg7[%c2_60, %c1_61, %c0_62] : memref<18x18x64xf32, #tpu.memory_space<vmem>>, vector<16x16x64xf32>
    %58 = vector.shape_cast %57 : vector<16x16x64xf32> to vector<256x64xf32>
    %59 = arith.truncf %58 : vector<256x64xf32> to vector<256x64xbf16>
    %c0_63 = arith.constant 0 : index
    %c7 = arith.constant 7 : index
    %c0_64 = arith.constant 0 : index
    %c0_65 = arith.constant 0 : index
    %60 = vector.load %arg2[%c0_63, %c7, %c0_64, %c0_65] : memref<2x9x64x64xbf16, #tpu.memory_space<vmem>>, vector<1x1x64x64xbf16>
    %61 = vector.shape_cast %60 : vector<1x1x64x64xbf16> to vector<64x64xbf16>
    %cst_66 = arith.constant dense<0.000000e+00> : vector<256x64xf32>
    %62 = tpu.matmul %59, %61, %cst_66 {dimension_numbers = #tpu.dot_dimension_numbers<[1], [0], [0], [1], [0, 0, 1, 1], [], []>} : vector<256x64xbf16>, vector<64x64xbf16>, vector<256x64xf32> -> vector<256x64xf32>
    %63 = arith.addf %56, %62 : vector<256x64xf32>
    %c2_67 = arith.constant 2 : index
    %c2_68 = arith.constant 2 : index
    %c0_69 = arith.constant 0 : index
    %64 = vector.load %arg7[%c2_67, %c2_68, %c0_69] : memref<18x18x64xf32, #tpu.memory_space<vmem>>, vector<16x16x64xf32>
    %65 = vector.shape_cast %64 : vector<16x16x64xf32> to vector<256x64xf32>
    %66 = arith.truncf %65 : vector<256x64xf32> to vector<256x64xbf16>
    %c0_70 = arith.constant 0 : index
    %c8 = arith.constant 8 : index
    %c0_71 = arith.constant 0 : index
    %c0_72 = arith.constant 0 : index
    %67 = vector.load %arg2[%c0_70, %c8, %c0_71, %c0_72] : memref<2x9x64x64xbf16, #tpu.memory_space<vmem>>, vector<1x1x64x64xbf16>
    %68 = vector.shape_cast %67 : vector<1x1x64x64xbf16> to vector<64x64xbf16>
    %cst_73 = arith.constant dense<0.000000e+00> : vector<256x64xf32>
    %69 = tpu.matmul %66, %68, %cst_73 {dimension_numbers = #tpu.dot_dimension_numbers<[1], [0], [0], [1], [0, 0, 1, 1], [], []>} : vector<256x64xbf16>, vector<64x64xbf16>, vector<256x64xf32> -> vector<256x64xf32>
    %70 = arith.addf %63, %69 : vector<256x64xf32>
    %c0_74 = arith.constant 0 : index
    %c0_75 = arith.constant 0 : index
    %71 = vector.load %arg3[%c0_74, %c0_75] : memref<2x64xf32, #tpu.memory_space<vmem>>, vector<1x64xf32>
    %72 = vector.broadcast %71 : vector<1x64xf32> to vector<256x64xf32>
    %73 = arith.addf %70, %72 : vector<256x64xf32>
    %cst_76 = arith.constant dense<0.000000e+00> : vector<64xf32>
    %74 = vector.multi_reduction <add>, %73, %cst_76 [0] : vector<256x64xf32> to vector<64xf32>
    %75 = vector.shape_cast %74 : vector<64xf32> to vector<1x64xf32>
    %cst_77 = arith.constant 2.560000e+02 : f32
    %76 = vector.broadcast %cst_77 : f32 to vector<1x64xf32>
    %77 = arith.divf %75, %76 : vector<1x64xf32>
    %78 = vector.broadcast %77 : vector<1x64xf32> to vector<256x64xf32>
    %79 = arith.subf %73, %78 : vector<256x64xf32>
    %80 = arith.mulf %79, %79 : vector<256x64xf32>
    %cst_78 = arith.constant dense<0.000000e+00> : vector<64xf32>
    %81 = vector.multi_reduction <add>, %80, %cst_78 [0] : vector<256x64xf32> to vector<64xf32>
    %82 = vector.shape_cast %81 : vector<64xf32> to vector<1x64xf32>
    %cst_79 = arith.constant 2.560000e+02 : f32
    %83 = vector.broadcast %cst_79 : f32 to vector<1x64xf32>
    %84 = arith.divf %82, %83 : vector<1x64xf32>
    %cst_80 = arith.constant 9.99999974E-6 : f32
    %85 = vector.broadcast %cst_80 : f32 to vector<1x64xf32>
    %86 = arith.addf %84, %85 : vector<1x64xf32>
    %87 = math.rsqrt %86 : vector<1x64xf32>
    %88 = vector.broadcast %87 : vector<1x64xf32> to vector<256x64xf32>
    %89 = arith.mulf %79, %88 : vector<256x64xf32>
    %cst_81 = arith.constant 0.000000e+00 : f32
    %90 = vector.broadcast %cst_81 : f32 to vector<256x64xf32>
    %91 = arith.maximumf %89, %90 : vector<256x64xf32>
    %92 = vector.shape_cast %91 : vector<256x64xf32> to vector<16x16x64xf32>
    %c1_82 = arith.constant 1 : index
    %c1_83 = arith.constant 1 : index
    %c0_84 = arith.constant 0 : index
    %93 = vector.load %arg7[%c1_82, %c1_83, %c0_84] : memref<18x18x64xf32, #tpu.memory_space<vmem>>, vector<16x16x64xf32>
    tpu.vector_store %arg7[%c1_82, %c1_83, %c0_84], %92 {strides = array<i32>} : memref<18x18x64xf32, #tpu.memory_space<vmem>>, vector<16x16x64xf32>,
    %cst_85 = arith.constant 0.000000e+00 : f32
    %94 = vector.broadcast %cst_85 : f32 to vector<256x64xf32>
    %c0_86 = arith.constant 0 : index
    %c0_87 = arith.constant 0 : index
    %c0_88 = arith.constant 0 : index
    %95 = vector.load %arg7[%c0_86, %c0_87, %c0_88] : memref<18x18x64xf32, #tpu.memory_space<vmem>>, vector<16x16x64xf32>
    %96 = vector.shape_cast %95 : vector<16x16x64xf32> to vector<256x64xf32>
    %97 = arith.truncf %96 : vector<256x64xf32> to vector<256x64xbf16>
    %c0_89 = arith.constant 0 : index
    %c0_90 = arith.constant 0 : index
    %c0_91 = arith.constant 0 : index
    %c0_92 = arith.constant 0 : index
    %98 = vector.load %arg4[%c0_89, %c0_90, %c0_91, %c0_92] : memref<2x9x64x64xbf16, #tpu.memory_space<vmem>>, vector<1x1x64x64xbf16>
    %99 = vector.shape_cast %98 : vector<1x1x64x64xbf16> to vector<64x64xbf16>
    %cst_93 = arith.constant dense<0.000000e+00> : vector<256x64xf32>
    %100 = tpu.matmul %97, %99, %cst_93 {dimension_numbers = #tpu.dot_dimension_numbers<[1], [0], [0], [1], [0, 0, 1, 1], [], []>} : vector<256x64xbf16>, vector<64x64xbf16>, vector<256x64xf32> -> vector<256x64xf32>
    %101 = arith.addf %94, %100 : vector<256x64xf32>
    %c0_94 = arith.constant 0 : index
    %c1_95 = arith.constant 1 : index
    %c0_96 = arith.constant 0 : index
    %102 = vector.load %arg7[%c0_94, %c1_95, %c0_96] : memref<18x18x64xf32, #tpu.memory_space<vmem>>, vector<16x16x64xf32>
    %103 = vector.shape_cast %102 : vector<16x16x64xf32> to vector<256x64xf32>
    %104 = arith.truncf %103 : vector<256x64xf32> to vector<256x64xbf16>
    %c0_97 = arith.constant 0 : index
    %c1_98 = arith.constant 1 : index
    %c0_99 = arith.constant 0 : index
    %c0_100 = arith.constant 0 : index
    %105 = vector.load %arg4[%c0_97, %c1_98, %c0_99, %c0_100] : memref<2x9x64x64xbf16, #tpu.memory_space<vmem>>, vector<1x1x64x64xbf16>
    %106 = vector.shape_cast %105 : vector<1x1x64x64xbf16> to vector<64x64xbf16>
    %cst_101 = arith.constant dense<0.000000e+00> : vector<256x64xf32>
    %107 = tpu.matmul %104, %106, %cst_101 {dimension_numbers = #tpu.dot_dimension_numbers<[1], [0], [0], [1], [0, 0, 1, 1], [], []>} : vector<256x64xbf16>, vector<64x64xbf16>, vector<256x64xf32> -> vector<256x64xf32>
    %108 = arith.addf %101, %107 : vector<256x64xf32>
    %c0_102 = arith.constant 0 : index
    %c2_103 = arith.constant 2 : index
    %c0_104 = arith.constant 0 : index
    %109 = vector.load %arg7[%c0_102, %c2_103, %c0_104] : memref<18x18x64xf32, #tpu.memory_space<vmem>>, vector<16x16x64xf32>
    %110 = vector.shape_cast %109 : vector<16x16x64xf32> to vector<256x64xf32>
    %111 = arith.truncf %110 : vector<256x64xf32> to vector<256x64xbf16>
    %c0_105 = arith.constant 0 : index
    %c2_106 = arith.constant 2 : index
    %c0_107 = arith.constant 0 : index
    %c0_108 = arith.constant 0 : index
    %112 = vector.load %arg4[%c0_105, %c2_106, %c0_107, %c0_108] : memref<2x9x64x64xbf16, #tpu.memory_space<vmem>>, vector<1x1x64x64xbf16>
    %113 = vector.shape_cast %112 : vector<1x1x64x64xbf16> to vector<64x64xbf16>
    %cst_109 = arith.constant dense<0.000000e+00> : vector<256x64xf32>
    %114 = tpu.matmul %111, %113, %cst_109 {dimension_numbers = #tpu.dot_dimension_numbers<[1], [0], [0], [1], [0, 0, 1, 1], [], []>} : vector<256x64xbf16>, vector<64x64xbf16>, vector<256x64xf32> -> vector<256x64xf32>
    %115 = arith.addf %108, %114 : vector<256x64xf32>
    %c1_110 = arith.constant 1 : index
    %c0_111 = arith.constant 0 : index
    %c0_112 = arith.constant 0 : index
    %116 = vector.load %arg7[%c1_110, %c0_111, %c0_112] : memref<18x18x64xf32, #tpu.memory_space<vmem>>, vector<16x16x64xf32>
    %117 = vector.shape_cast %116 : vector<16x16x64xf32> to vector<256x64xf32>
    %118 = arith.truncf %117 : vector<256x64xf32> to vector<256x64xbf16>
    %c0_113 = arith.constant 0 : index
    %c3_114 = arith.constant 3 : index
    %c0_115 = arith.constant 0 : index
    %c0_116 = arith.constant 0 : index
    %119 = vector.load %arg4[%c0_113, %c3_114, %c0_115, %c0_116] : memref<2x9x64x64xbf16, #tpu.memory_space<vmem>>, vector<1x1x64x64xbf16>
    %120 = vector.shape_cast %119 : vector<1x1x64x64xbf16> to vector<64x64xbf16>
    %cst_117 = arith.constant dense<0.000000e+00> : vector<256x64xf32>
    %121 = tpu.matmul %118, %120, %cst_117 {dimension_numbers = #tpu.dot_dimension_numbers<[1], [0], [0], [1], [0, 0, 1, 1], [], []>} : vector<256x64xbf16>, vector<64x64xbf16>, vector<256x64xf32> -> vector<256x64xf32>
    %122 = arith.addf %115, %121 : vector<256x64xf32>
    %c1_118 = arith.constant 1 : index
    %c1_119 = arith.constant 1 : index
    %c0_120 = arith.constant 0 : index
    %123 = vector.load %arg7[%c1_118, %c1_119, %c0_120] : memref<18x18x64xf32, #tpu.memory_space<vmem>>, vector<16x16x64xf32>
    %124 = vector.shape_cast %123 : vector<16x16x64xf32> to vector<256x64xf32>
    %125 = arith.truncf %124 : vector<256x64xf32> to vector<256x64xbf16>
    %c0_121 = arith.constant 0 : index
    %c4_122 = arith.constant 4 : index
    %c0_123 = arith.constant 0 : index
    %c0_124 = arith.constant 0 : index
    %126 = vector.load %arg4[%c0_121, %c4_122, %c0_123, %c0_124] : memref<2x9x64x64xbf16, #tpu.memory_space<vmem>>, vector<1x1x64x64xbf16>
    %127 = vector.shape_cast %126 : vector<1x1x64x64xbf16> to vector<64x64xbf16>
    %cst_125 = arith.constant dense<0.000000e+00> : vector<256x64xf32>
    %128 = tpu.matmul %125, %127, %cst_125 {dimension_numbers = #tpu.dot_dimension_numbers<[1], [0], [0], [1], [0, 0, 1, 1], [], []>} : vector<256x64xbf16>, vector<64x64xbf16>, vector<256x64xf32> -> vector<256x64xf32>
    %129 = arith.addf %122, %128 : vector<256x64xf32>
    %c1_126 = arith.constant 1 : index
    %c2_127 = arith.constant 2 : index
    %c0_128 = arith.constant 0 : index
    %130 = vector.load %arg7[%c1_126, %c2_127, %c0_128] : memref<18x18x64xf32, #tpu.memory_space<vmem>>, vector<16x16x64xf32>
    %131 = vector.shape_cast %130 : vector<16x16x64xf32> to vector<256x64xf32>
    %132 = arith.truncf %131 : vector<256x64xf32> to vector<256x64xbf16>
    %c0_129 = arith.constant 0 : index
    %c5_130 = arith.constant 5 : index
    %c0_131 = arith.constant 0 : index
    %c0_132 = arith.constant 0 : index
    %133 = vector.load %arg4[%c0_129, %c5_130, %c0_131, %c0_132] : memref<2x9x64x64xbf16, #tpu.memory_space<vmem>>, vector<1x1x64x64xbf16>
    %134 = vector.shape_cast %133 : vector<1x1x64x64xbf16> to vector<64x64xbf16>
    %cst_133 = arith.constant dense<0.000000e+00> : vector<256x64xf32>
    %135 = tpu.matmul %132, %134, %cst_133 {dimension_numbers = #tpu.dot_dimension_numbers<[1], [0], [0], [1], [0, 0, 1, 1], [], []>} : vector<256x64xbf16>, vector<64x64xbf16>, vector<256x64xf32> -> vector<256x64xf32>
    %136 = arith.addf %129, %135 : vector<256x64xf32>
    %c2_134 = arith.constant 2 : index
    %c0_135 = arith.constant 0 : index
    %c0_136 = arith.constant 0 : index
    %137 = vector.load %arg7[%c2_134, %c0_135, %c0_136] : memref<18x18x64xf32, #tpu.memory_space<vmem>>, vector<16x16x64xf32>
    %138 = vector.shape_cast %137 : vector<16x16x64xf32> to vector<256x64xf32>
    %139 = arith.truncf %138 : vector<256x64xf32> to vector<256x64xbf16>
    %c0_137 = arith.constant 0 : index
    %c6_138 = arith.constant 6 : index
    %c0_139 = arith.constant 0 : index
    %c0_140 = arith.constant 0 : index
    %140 = vector.load %arg4[%c0_137, %c6_138, %c0_139, %c0_140] : memref<2x9x64x64xbf16, #tpu.memory_space<vmem>>, vector<1x1x64x64xbf16>
    %141 = vector.shape_cast %140 : vector<1x1x64x64xbf16> to vector<64x64xbf16>
    %cst_141 = arith.constant dense<0.000000e+00> : vector<256x64xf32>
    %142 = tpu.matmul %139, %141, %cst_141 {dimension_numbers = #tpu.dot_dimension_numbers<[1], [0], [0], [1], [0, 0, 1, 1], [], []>} : vector<256x64xbf16>, vector<64x64xbf16>, vector<256x64xf32> -> vector<256x64xf32>
    %143 = arith.addf %136, %142 : vector<256x64xf32>
    %c2_142 = arith.constant 2 : index
    %c1_143 = arith.constant 1 : index
    %c0_144 = arith.constant 0 : index
    %144 = vector.load %arg7[%c2_142, %c1_143, %c0_144] : memref<18x18x64xf32, #tpu.memory_space<vmem>>, vector<16x16x64xf32>
    %145 = vector.shape_cast %144 : vector<16x16x64xf32> to vector<256x64xf32>
    %146 = arith.truncf %145 : vector<256x64xf32> to vector<256x64xbf16>
    %c0_145 = arith.constant 0 : index
    %c7_146 = arith.constant 7 : index
    %c0_147 = arith.constant 0 : index
    %c0_148 = arith.constant 0 : index
    %147 = vector.load %arg4[%c0_145, %c7_146, %c0_147, %c0_148] : memref<2x9x64x64xbf16, #tpu.memory_space<vmem>>, vector<1x1x64x64xbf16>
    %148 = vector.shape_cast %147 : vector<1x1x64x64xbf16> to vector<64x64xbf16>
    %cst_149 = arith.constant dense<0.000000e+00> : vector<256x64xf32>
    %149 = tpu.matmul %146, %148, %cst_149 {dimension_numbers = #tpu.dot_dimension_numbers<[1], [0], [0], [1], [0, 0, 1, 1], [], []>} : vector<256x64xbf16>, vector<64x64xbf16>, vector<256x64xf32> -> vector<256x64xf32>
    %150 = arith.addf %143, %149 : vector<256x64xf32>
    %c2_150 = arith.constant 2 : index
    %c2_151 = arith.constant 2 : index
    %c0_152 = arith.constant 0 : index
    %151 = vector.load %arg7[%c2_150, %c2_151, %c0_152] : memref<18x18x64xf32, #tpu.memory_space<vmem>>, vector<16x16x64xf32>
    %152 = vector.shape_cast %151 : vector<16x16x64xf32> to vector<256x64xf32>
    %153 = arith.truncf %152 : vector<256x64xf32> to vector<256x64xbf16>
    %c0_153 = arith.constant 0 : index
    %c8_154 = arith.constant 8 : index
    %c0_155 = arith.constant 0 : index
    %c0_156 = arith.constant 0 : index
    %154 = vector.load %arg4[%c0_153, %c8_154, %c0_155, %c0_156] : memref<2x9x64x64xbf16, #tpu.memory_space<vmem>>, vector<1x1x64x64xbf16>
    %155 = vector.shape_cast %154 : vector<1x1x64x64xbf16> to vector<64x64xbf16>
    %cst_157 = arith.constant dense<0.000000e+00> : vector<256x64xf32>
    %156 = tpu.matmul %153, %155, %cst_157 {dimension_numbers = #tpu.dot_dimension_numbers<[1], [0], [0], [1], [0, 0, 1, 1], [], []>} : vector<256x64xbf16>, vector<64x64xbf16>, vector<256x64xf32> -> vector<256x64xf32>
    %157 = arith.addf %150, %156 : vector<256x64xf32>
    %c0_158 = arith.constant 0 : index
    %c0_159 = arith.constant 0 : index
    %158 = vector.load %arg5[%c0_158, %c0_159] : memref<2x64xf32, #tpu.memory_space<vmem>>, vector<1x64xf32>
    %159 = vector.broadcast %158 : vector<1x64xf32> to vector<256x64xf32>
    %160 = arith.addf %157, %159 : vector<256x64xf32>
    %cst_160 = arith.constant dense<0.000000e+00> : vector<64xf32>
    %161 = vector.multi_reduction <add>, %160, %cst_160 [0] : vector<256x64xf32> to vector<64xf32>
    %162 = vector.shape_cast %161 : vector<64xf32> to vector<1x64xf32>
    %cst_161 = arith.constant 2.560000e+02 : f32
    %163 = vector.broadcast %cst_161 : f32 to vector<1x64xf32>
    %164 = arith.divf %162, %163 : vector<1x64xf32>
    %165 = vector.broadcast %164 : vector<1x64xf32> to vector<256x64xf32>
    %166 = arith.subf %160, %165 : vector<256x64xf32>
    %167 = arith.mulf %166, %166 : vector<256x64xf32>
    %cst_162 = arith.constant dense<0.000000e+00> : vector<64xf32>
    %168 = vector.multi_reduction <add>, %167, %cst_162 [0] : vector<256x64xf32> to vector<64xf32>
    %169 = vector.shape_cast %168 : vector<64xf32> to vector<1x64xf32>
    %cst_163 = arith.constant 2.560000e+02 : f32
    %170 = vector.broadcast %cst_163 : f32 to vector<1x64xf32>
    %171 = arith.divf %169, %170 : vector<1x64xf32>
    %cst_164 = arith.constant 9.99999974E-6 : f32
    %172 = vector.broadcast %cst_164 : f32 to vector<1x64xf32>
    %173 = arith.addf %171, %172 : vector<1x64xf32>
    %174 = math.rsqrt %173 : vector<1x64xf32>
    %175 = vector.broadcast %174 : vector<1x64xf32> to vector<256x64xf32>
    %176 = arith.mulf %166, %175 : vector<256x64xf32>
    %177 = arith.addf %4, %176 : vector<256x64xf32>
    %178 = vector.shape_cast %177 : vector<256x64xf32> to vector<16x16x64xf32>
    %c1_165 = arith.constant 1 : index
    %c1_166 = arith.constant 1 : index
    %c0_167 = arith.constant 0 : index
    %179 = vector.load %arg7[%c1_165, %c1_166, %c0_167] : memref<18x18x64xf32, #tpu.memory_space<vmem>>, vector<16x16x64xf32>
    tpu.vector_store %arg7[%c1_165, %c1_166, %c0_167], %178 {strides = array<i32>} : memref<18x18x64xf32, #tpu.memory_space<vmem>>, vector<16x16x64xf32>,
    %cst_168 = arith.constant 0.000000e+00 : f32
    %180 = vector.broadcast %cst_168 : f32 to vector<256x64xf32>
    %c0_169 = arith.constant 0 : index
    %c0_170 = arith.constant 0 : index
    %c0_171 = arith.constant 0 : index
    %181 = vector.load %arg7[%c0_169, %c0_170, %c0_171] : memref<18x18x64xf32, #tpu.memory_space<vmem>>, vector<16x16x64xf32>
    %182 = vector.shape_cast %181 : vector<16x16x64xf32> to vector<256x64xf32>
    %183 = arith.truncf %182 : vector<256x64xf32> to vector<256x64xbf16>
    %c1_172 = arith.constant 1 : index
    %c0_173 = arith.constant 0 : index
    %c0_174 = arith.constant 0 : index
    %c0_175 = arith.constant 0 : index
    %184 = vector.load %arg2[%c1_172, %c0_173, %c0_174, %c0_175] : memref<2x9x64x64xbf16, #tpu.memory_space<vmem>>, vector<1x1x64x64xbf16>
    %185 = vector.shape_cast %184 : vector<1x1x64x64xbf16> to vector<64x64xbf16>
    %cst_176 = arith.constant dense<0.000000e+00> : vector<256x64xf32>
    %186 = tpu.matmul %183, %185, %cst_176 {dimension_numbers = #tpu.dot_dimension_numbers<[1], [0], [0], [1], [0, 0, 1, 1], [], []>} : vector<256x64xbf16>, vector<64x64xbf16>, vector<256x64xf32> -> vector<256x64xf32>
    %187 = arith.addf %180, %186 : vector<256x64xf32>
    %c0_177 = arith.constant 0 : index
    %c1_178 = arith.constant 1 : index
    %c0_179 = arith.constant 0 : index
    %188 = vector.load %arg7[%c0_177, %c1_178, %c0_179] : memref<18x18x64xf32, #tpu.memory_space<vmem>>, vector<16x16x64xf32>
    %189 = vector.shape_cast %188 : vector<16x16x64xf32> to vector<256x64xf32>
    %190 = arith.truncf %189 : vector<256x64xf32> to vector<256x64xbf16>
    %c1_180 = arith.constant 1 : index
    %c1_181 = arith.constant 1 : index
    %c0_182 = arith.constant 0 : index
    %c0_183 = arith.constant 0 : index
    %191 = vector.load %arg2[%c1_180, %c1_181, %c0_182, %c0_183] : memref<2x9x64x64xbf16, #tpu.memory_space<vmem>>, vector<1x1x64x64xbf16>
    %192 = vector.shape_cast %191 : vector<1x1x64x64xbf16> to vector<64x64xbf16>
    %cst_184 = arith.constant dense<0.000000e+00> : vector<256x64xf32>
    %193 = tpu.matmul %190, %192, %cst_184 {dimension_numbers = #tpu.dot_dimension_numbers<[1], [0], [0], [1], [0, 0, 1, 1], [], []>} : vector<256x64xbf16>, vector<64x64xbf16>, vector<256x64xf32> -> vector<256x64xf32>
    %194 = arith.addf %187, %193 : vector<256x64xf32>
    %c0_185 = arith.constant 0 : index
    %c2_186 = arith.constant 2 : index
    %c0_187 = arith.constant 0 : index
    %195 = vector.load %arg7[%c0_185, %c2_186, %c0_187] : memref<18x18x64xf32, #tpu.memory_space<vmem>>, vector<16x16x64xf32>
    %196 = vector.shape_cast %195 : vector<16x16x64xf32> to vector<256x64xf32>
    %197 = arith.truncf %196 : vector<256x64xf32> to vector<256x64xbf16>
    %c1_188 = arith.constant 1 : index
    %c2_189 = arith.constant 2 : index
    %c0_190 = arith.constant 0 : index
    %c0_191 = arith.constant 0 : index
    %198 = vector.load %arg2[%c1_188, %c2_189, %c0_190, %c0_191] : memref<2x9x64x64xbf16, #tpu.memory_space<vmem>>, vector<1x1x64x64xbf16>
    %199 = vector.shape_cast %198 : vector<1x1x64x64xbf16> to vector<64x64xbf16>
    %cst_192 = arith.constant dense<0.000000e+00> : vector<256x64xf32>
    %200 = tpu.matmul %197, %199, %cst_192 {dimension_numbers = #tpu.dot_dimension_numbers<[1], [0], [0], [1], [0, 0, 1, 1], [], []>} : vector<256x64xbf16>, vector<64x64xbf16>, vector<256x64xf32> -> vector<256x64xf32>
    %201 = arith.addf %194, %200 : vector<256x64xf32>
    %c1_193 = arith.constant 1 : index
    %c0_194 = arith.constant 0 : index
    %c0_195 = arith.constant 0 : index
    %202 = vector.load %arg7[%c1_193, %c0_194, %c0_195] : memref<18x18x64xf32, #tpu.memory_space<vmem>>, vector<16x16x64xf32>
    %203 = vector.shape_cast %202 : vector<16x16x64xf32> to vector<256x64xf32>
    %204 = arith.truncf %203 : vector<256x64xf32> to vector<256x64xbf16>
    %c1_196 = arith.constant 1 : index
    %c3_197 = arith.constant 3 : index
    %c0_198 = arith.constant 0 : index
    %c0_199 = arith.constant 0 : index
    %205 = vector.load %arg2[%c1_196, %c3_197, %c0_198, %c0_199] : memref<2x9x64x64xbf16, #tpu.memory_space<vmem>>, vector<1x1x64x64xbf16>
    %206 = vector.shape_cast %205 : vector<1x1x64x64xbf16> to vector<64x64xbf16>
    %cst_200 = arith.constant dense<0.000000e+00> : vector<256x64xf32>
    %207 = tpu.matmul %204, %206, %cst_200 {dimension_numbers = #tpu.dot_dimension_numbers<[1], [0], [0], [1], [0, 0, 1, 1], [], []>} : vector<256x64xbf16>, vector<64x64xbf16>, vector<256x64xf32> -> vector<256x64xf32>
    %208 = arith.addf %201, %207 : vector<256x64xf32>
    %c1_201 = arith.constant 1 : index
    %c1_202 = arith.constant 1 : index
    %c0_203 = arith.constant 0 : index
    %209 = vector.load %arg7[%c1_201, %c1_202, %c0_203] : memref<18x18x64xf32, #tpu.memory_space<vmem>>, vector<16x16x64xf32>
    %210 = vector.shape_cast %209 : vector<16x16x64xf32> to vector<256x64xf32>
    %211 = arith.truncf %210 : vector<256x64xf32> to vector<256x64xbf16>
    %c1_204 = arith.constant 1 : index
    %c4_205 = arith.constant 4 : index
    %c0_206 = arith.constant 0 : index
    %c0_207 = arith.constant 0 : index
    %212 = vector.load %arg2[%c1_204, %c4_205, %c0_206, %c0_207] : memref<2x9x64x64xbf16, #tpu.memory_space<vmem>>, vector<1x1x64x64xbf16>
    %213 = vector.shape_cast %212 : vector<1x1x64x64xbf16> to vector<64x64xbf16>
    %cst_208 = arith.constant dense<0.000000e+00> : vector<256x64xf32>
    %214 = tpu.matmul %211, %213, %cst_208 {dimension_numbers = #tpu.dot_dimension_numbers<[1], [0], [0], [1], [0, 0, 1, 1], [], []>} : vector<256x64xbf16>, vector<64x64xbf16>, vector<256x64xf32> -> vector<256x64xf32>
    %215 = arith.addf %208, %214 : vector<256x64xf32>
    %c1_209 = arith.constant 1 : index
    %c2_210 = arith.constant 2 : index
    %c0_211 = arith.constant 0 : index
    %216 = vector.load %arg7[%c1_209, %c2_210, %c0_211] : memref<18x18x64xf32, #tpu.memory_space<vmem>>, vector<16x16x64xf32>
    %217 = vector.shape_cast %216 : vector<16x16x64xf32> to vector<256x64xf32>
    %218 = arith.truncf %217 : vector<256x64xf32> to vector<256x64xbf16>
    %c1_212 = arith.constant 1 : index
    %c5_213 = arith.constant 5 : index
    %c0_214 = arith.constant 0 : index
    %c0_215 = arith.constant 0 : index
    %219 = vector.load %arg2[%c1_212, %c5_213, %c0_214, %c0_215] : memref<2x9x64x64xbf16, #tpu.memory_space<vmem>>, vector<1x1x64x64xbf16>
    %220 = vector.shape_cast %219 : vector<1x1x64x64xbf16> to vector<64x64xbf16>
    %cst_216 = arith.constant dense<0.000000e+00> : vector<256x64xf32>
    %221 = tpu.matmul %218, %220, %cst_216 {dimension_numbers = #tpu.dot_dimension_numbers<[1], [0], [0], [1], [0, 0, 1, 1], [], []>} : vector<256x64xbf16>, vector<64x64xbf16>, vector<256x64xf32> -> vector<256x64xf32>
    %222 = arith.addf %215, %221 : vector<256x64xf32>
    %c2_217 = arith.constant 2 : index
    %c0_218 = arith.constant 0 : index
    %c0_219 = arith.constant 0 : index
    %223 = vector.load %arg7[%c2_217, %c0_218, %c0_219] : memref<18x18x64xf32, #tpu.memory_space<vmem>>, vector<16x16x64xf32>
    %224 = vector.shape_cast %223 : vector<16x16x64xf32> to vector<256x64xf32>
    %225 = arith.truncf %224 : vector<256x64xf32> to vector<256x64xbf16>
    %c1_220 = arith.constant 1 : index
    %c6_221 = arith.constant 6 : index
    %c0_222 = arith.constant 0 : index
    %c0_223 = arith.constant 0 : index
    %226 = vector.load %arg2[%c1_220, %c6_221, %c0_222, %c0_223] : memref<2x9x64x64xbf16, #tpu.memory_space<vmem>>, vector<1x1x64x64xbf16>
    %227 = vector.shape_cast %226 : vector<1x1x64x64xbf16> to vector<64x64xbf16>
    %cst_224 = arith.constant dense<0.000000e+00> : vector<256x64xf32>
    %228 = tpu.matmul %225, %227, %cst_224 {dimension_numbers = #tpu.dot_dimension_numbers<[1], [0], [0], [1], [0, 0, 1, 1], [], []>} : vector<256x64xbf16>, vector<64x64xbf16>, vector<256x64xf32> -> vector<256x64xf32>
    %229 = arith.addf %222, %228 : vector<256x64xf32>
    %c2_225 = arith.constant 2 : index
    %c1_226 = arith.constant 1 : index
    %c0_227 = arith.constant 0 : index
    %230 = vector.load %arg7[%c2_225, %c1_226, %c0_227] : memref<18x18x64xf32, #tpu.memory_space<vmem>>, vector<16x16x64xf32>
    %231 = vector.shape_cast %230 : vector<16x16x64xf32> to vector<256x64xf32>
    %232 = arith.truncf %231 : vector<256x64xf32> to vector<256x64xbf16>
    %c1_228 = arith.constant 1 : index
    %c7_229 = arith.constant 7 : index
    %c0_230 = arith.constant 0 : index
    %c0_231 = arith.constant 0 : index
    %233 = vector.load %arg2[%c1_228, %c7_229, %c0_230, %c0_231] : memref<2x9x64x64xbf16, #tpu.memory_space<vmem>>, vector<1x1x64x64xbf16>
    %234 = vector.shape_cast %233 : vector<1x1x64x64xbf16> to vector<64x64xbf16>
    %cst_232 = arith.constant dense<0.000000e+00> : vector<256x64xf32>
    %235 = tpu.matmul %232, %234, %cst_232 {dimension_numbers = #tpu.dot_dimension_numbers<[1], [0], [0], [1], [0, 0, 1, 1], [], []>} : vector<256x64xbf16>, vector<64x64xbf16>, vector<256x64xf32> -> vector<256x64xf32>
    %236 = arith.addf %229, %235 : vector<256x64xf32>
    %c2_233 = arith.constant 2 : index
    %c2_234 = arith.constant 2 : index
    %c0_235 = arith.constant 0 : index
    %237 = vector.load %arg7[%c2_233, %c2_234, %c0_235] : memref<18x18x64xf32, #tpu.memory_space<vmem>>, vector<16x16x64xf32>
    %238 = vector.shape_cast %237 : vector<16x16x64xf32> to vector<256x64xf32>
    %239 = arith.truncf %238 : vector<256x64xf32> to vector<256x64xbf16>
    %c1_236 = arith.constant 1 : index
    %c8_237 = arith.constant 8 : index
    %c0_238 = arith.constant 0 : index
    %c0_239 = arith.constant 0 : index
    %240 = vector.load %arg2[%c1_236, %c8_237, %c0_238, %c0_239] : memref<2x9x64x64xbf16, #tpu.memory_space<vmem>>, vector<1x1x64x64xbf16>
    %241 = vector.shape_cast %240 : vector<1x1x64x64xbf16> to vector<64x64xbf16>
    %cst_240 = arith.constant dense<0.000000e+00> : vector<256x64xf32>
    %242 = tpu.matmul %239, %241, %cst_240 {dimension_numbers = #tpu.dot_dimension_numbers<[1], [0], [0], [1], [0, 0, 1, 1], [], []>} : vector<256x64xbf16>, vector<64x64xbf16>, vector<256x64xf32> -> vector<256x64xf32>
    %243 = arith.addf %236, %242 : vector<256x64xf32>
    %c1_241 = arith.constant 1 : index
    %c0_242 = arith.constant 0 : index
    %244 = vector.load %arg3[%c1_241, %c0_242] : memref<2x64xf32, #tpu.memory_space<vmem>>, vector<1x64xf32>
    %245 = vector.broadcast %244 : vector<1x64xf32> to vector<256x64xf32>
    %246 = arith.addf %243, %245 : vector<256x64xf32>
    %cst_243 = arith.constant dense<0.000000e+00> : vector<64xf32>
    %247 = vector.multi_reduction <add>, %246, %cst_243 [0] : vector<256x64xf32> to vector<64xf32>
    %248 = vector.shape_cast %247 : vector<64xf32> to vector<1x64xf32>
    %cst_244 = arith.constant 2.560000e+02 : f32
    %249 = vector.broadcast %cst_244 : f32 to vector<1x64xf32>
    %250 = arith.divf %248, %249 : vector<1x64xf32>
    %251 = vector.broadcast %250 : vector<1x64xf32> to vector<256x64xf32>
    %252 = arith.subf %246, %251 : vector<256x64xf32>
    %253 = arith.mulf %252, %252 : vector<256x64xf32>
    %cst_245 = arith.constant dense<0.000000e+00> : vector<64xf32>
    %254 = vector.multi_reduction <add>, %253, %cst_245 [0] : vector<256x64xf32> to vector<64xf32>
    %255 = vector.shape_cast %254 : vector<64xf32> to vector<1x64xf32>
    %cst_246 = arith.constant 2.560000e+02 : f32
    %256 = vector.broadcast %cst_246 : f32 to vector<1x64xf32>
    %257 = arith.divf %255, %256 : vector<1x64xf32>
    %cst_247 = arith.constant 9.99999974E-6 : f32
    %258 = vector.broadcast %cst_247 : f32 to vector<1x64xf32>
    %259 = arith.addf %257, %258 : vector<1x64xf32>
    %260 = math.rsqrt %259 : vector<1x64xf32>
    %261 = vector.broadcast %260 : vector<1x64xf32> to vector<256x64xf32>
    %262 = arith.mulf %252, %261 : vector<256x64xf32>
    %cst_248 = arith.constant 0.000000e+00 : f32
    %263 = vector.broadcast %cst_248 : f32 to vector<256x64xf32>
    %264 = arith.maximumf %262, %263 : vector<256x64xf32>
    %265 = vector.shape_cast %264 : vector<256x64xf32> to vector<16x16x64xf32>
    %c1_249 = arith.constant 1 : index
    %c1_250 = arith.constant 1 : index
    %c0_251 = arith.constant 0 : index
    %266 = vector.load %arg7[%c1_249, %c1_250, %c0_251] : memref<18x18x64xf32, #tpu.memory_space<vmem>>, vector<16x16x64xf32>
    tpu.vector_store %arg7[%c1_249, %c1_250, %c0_251], %265 {strides = array<i32>} : memref<18x18x64xf32, #tpu.memory_space<vmem>>, vector<16x16x64xf32>,
    %cst_252 = arith.constant 0.000000e+00 : f32
    %267 = vector.broadcast %cst_252 : f32 to vector<256x64xf32>
    %c0_253 = arith.constant 0 : index
    %c0_254 = arith.constant 0 : index
    %c0_255 = arith.constant 0 : index
    %268 = vector.load %arg7[%c0_253, %c0_254, %c0_255] : memref<18x18x64xf32, #tpu.memory_space<vmem>>, vector<16x16x64xf32>
    %269 = vector.shape_cast %268 : vector<16x16x64xf32> to vector<256x64xf32>
    %270 = arith.truncf %269 : vector<256x64xf32> to vector<256x64xbf16>
    %c1_256 = arith.constant 1 : index
    %c0_257 = arith.constant 0 : index
    %c0_258 = arith.constant 0 : index
    %c0_259 = arith.constant 0 : index
    %271 = vector.load %arg4[%c1_256, %c0_257, %c0_258, %c0_259] : memref<2x9x64x64xbf16, #tpu.memory_space<vmem>>, vector<1x1x64x64xbf16>
    %272 = vector.shape_cast %271 : vector<1x1x64x64xbf16> to vector<64x64xbf16>
    %cst_260 = arith.constant dense<0.000000e+00> : vector<256x64xf32>
    %273 = tpu.matmul %270, %272, %cst_260 {dimension_numbers = #tpu.dot_dimension_numbers<[1], [0], [0], [1], [0, 0, 1, 1], [], []>} : vector<256x64xbf16>, vector<64x64xbf16>, vector<256x64xf32> -> vector<256x64xf32>
    %274 = arith.addf %267, %273 : vector<256x64xf32>
    %c0_261 = arith.constant 0 : index
    %c1_262 = arith.constant 1 : index
    %c0_263 = arith.constant 0 : index
    %275 = vector.load %arg7[%c0_261, %c1_262, %c0_263] : memref<18x18x64xf32, #tpu.memory_space<vmem>>, vector<16x16x64xf32>
    %276 = vector.shape_cast %275 : vector<16x16x64xf32> to vector<256x64xf32>
    %277 = arith.truncf %276 : vector<256x64xf32> to vector<256x64xbf16>
    %c1_264 = arith.constant 1 : index
    %c1_265 = arith.constant 1 : index
    %c0_266 = arith.constant 0 : index
    %c0_267 = arith.constant 0 : index
    %278 = vector.load %arg4[%c1_264, %c1_265, %c0_266, %c0_267] : memref<2x9x64x64xbf16, #tpu.memory_space<vmem>>, vector<1x1x64x64xbf16>
    %279 = vector.shape_cast %278 : vector<1x1x64x64xbf16> to vector<64x64xbf16>
    %cst_268 = arith.constant dense<0.000000e+00> : vector<256x64xf32>
    %280 = tpu.matmul %277, %279, %cst_268 {dimension_numbers = #tpu.dot_dimension_numbers<[1], [0], [0], [1], [0, 0, 1, 1], [], []>} : vector<256x64xbf16>, vector<64x64xbf16>, vector<256x64xf32> -> vector<256x64xf32>
    %281 = arith.addf %274, %280 : vector<256x64xf32>
    %c0_269 = arith.constant 0 : index
    %c2_270 = arith.constant 2 : index
    %c0_271 = arith.constant 0 : index
    %282 = vector.load %arg7[%c0_269, %c2_270, %c0_271] : memref<18x18x64xf32, #tpu.memory_space<vmem>>, vector<16x16x64xf32>
    %283 = vector.shape_cast %282 : vector<16x16x64xf32> to vector<256x64xf32>
    %284 = arith.truncf %283 : vector<256x64xf32> to vector<256x64xbf16>
    %c1_272 = arith.constant 1 : index
    %c2_273 = arith.constant 2 : index
    %c0_274 = arith.constant 0 : index
    %c0_275 = arith.constant 0 : index
    %285 = vector.load %arg4[%c1_272, %c2_273, %c0_274, %c0_275] : memref<2x9x64x64xbf16, #tpu.memory_space<vmem>>, vector<1x1x64x64xbf16>
    %286 = vector.shape_cast %285 : vector<1x1x64x64xbf16> to vector<64x64xbf16>
    %cst_276 = arith.constant dense<0.000000e+00> : vector<256x64xf32>
    %287 = tpu.matmul %284, %286, %cst_276 {dimension_numbers = #tpu.dot_dimension_numbers<[1], [0], [0], [1], [0, 0, 1, 1], [], []>} : vector<256x64xbf16>, vector<64x64xbf16>, vector<256x64xf32> -> vector<256x64xf32>
    %288 = arith.addf %281, %287 : vector<256x64xf32>
    %c1_277 = arith.constant 1 : index
    %c0_278 = arith.constant 0 : index
    %c0_279 = arith.constant 0 : index
    %289 = vector.load %arg7[%c1_277, %c0_278, %c0_279] : memref<18x18x64xf32, #tpu.memory_space<vmem>>, vector<16x16x64xf32>
    %290 = vector.shape_cast %289 : vector<16x16x64xf32> to vector<256x64xf32>
    %291 = arith.truncf %290 : vector<256x64xf32> to vector<256x64xbf16>
    %c1_280 = arith.constant 1 : index
    %c3_281 = arith.constant 3 : index
    %c0_282 = arith.constant 0 : index
    %c0_283 = arith.constant 0 : index
    %292 = vector.load %arg4[%c1_280, %c3_281, %c0_282, %c0_283] : memref<2x9x64x64xbf16, #tpu.memory_space<vmem>>, vector<1x1x64x64xbf16>
    %293 = vector.shape_cast %292 : vector<1x1x64x64xbf16> to vector<64x64xbf16>
    %cst_284 = arith.constant dense<0.000000e+00> : vector<256x64xf32>
    %294 = tpu.matmul %291, %293, %cst_284 {dimension_numbers = #tpu.dot_dimension_numbers<[1], [0], [0], [1], [0, 0, 1, 1], [], []>} : vector<256x64xbf16>, vector<64x64xbf16>, vector<256x64xf32> -> vector<256x64xf32>
    %295 = arith.addf %288, %294 : vector<256x64xf32>
    %c1_285 = arith.constant 1 : index
    %c1_286 = arith.constant 1 : index
    %c0_287 = arith.constant 0 : index
    %296 = vector.load %arg7[%c1_285, %c1_286, %c0_287] : memref<18x18x64xf32, #tpu.memory_space<vmem>>, vector<16x16x64xf32>
    %297 = vector.shape_cast %296 : vector<16x16x64xf32> to vector<256x64xf32>
    %298 = arith.truncf %297 : vector<256x64xf32> to vector<256x64xbf16>
    %c1_288 = arith.constant 1 : index
    %c4_289 = arith.constant 4 : index
    %c0_290 = arith.constant 0 : index
    %c0_291 = arith.constant 0 : index
    %299 = vector.load %arg4[%c1_288, %c4_289, %c0_290, %c0_291] : memref<2x9x64x64xbf16, #tpu.memory_space<vmem>>, vector<1x1x64x64xbf16>
    %300 = vector.shape_cast %299 : vector<1x1x64x64xbf16> to vector<64x64xbf16>
    %cst_292 = arith.constant dense<0.000000e+00> : vector<256x64xf32>
    %301 = tpu.matmul %298, %300, %cst_292 {dimension_numbers = #tpu.dot_dimension_numbers<[1], [0], [0], [1], [0, 0, 1, 1], [], []>} : vector<256x64xbf16>, vector<64x64xbf16>, vector<256x64xf32> -> vector<256x64xf32>
    %302 = arith.addf %295, %301 : vector<256x64xf32>
    %c1_293 = arith.constant 1 : index
    %c2_294 = arith.constant 2 : index
    %c0_295 = arith.constant 0 : index
    %303 = vector.load %arg7[%c1_293, %c2_294, %c0_295] : memref<18x18x64xf32, #tpu.memory_space<vmem>>, vector<16x16x64xf32>
    %304 = vector.shape_cast %303 : vector<16x16x64xf32> to vector<256x64xf32>
    %305 = arith.truncf %304 : vector<256x64xf32> to vector<256x64xbf16>
    %c1_296 = arith.constant 1 : index
    %c5_297 = arith.constant 5 : index
    %c0_298 = arith.constant 0 : index
    %c0_299 = arith.constant 0 : index
    %306 = vector.load %arg4[%c1_296, %c5_297, %c0_298, %c0_299] : memref<2x9x64x64xbf16, #tpu.memory_space<vmem>>, vector<1x1x64x64xbf16>
    %307 = vector.shape_cast %306 : vector<1x1x64x64xbf16> to vector<64x64xbf16>
    %cst_300 = arith.constant dense<0.000000e+00> : vector<256x64xf32>
    %308 = tpu.matmul %305, %307, %cst_300 {dimension_numbers = #tpu.dot_dimension_numbers<[1], [0], [0], [1], [0, 0, 1, 1], [], []>} : vector<256x64xbf16>, vector<64x64xbf16>, vector<256x64xf32> -> vector<256x64xf32>
    %309 = arith.addf %302, %308 : vector<256x64xf32>
    %c2_301 = arith.constant 2 : index
    %c0_302 = arith.constant 0 : index
    %c0_303 = arith.constant 0 : index
    %310 = vector.load %arg7[%c2_301, %c0_302, %c0_303] : memref<18x18x64xf32, #tpu.memory_space<vmem>>, vector<16x16x64xf32>
    %311 = vector.shape_cast %310 : vector<16x16x64xf32> to vector<256x64xf32>
    %312 = arith.truncf %311 : vector<256x64xf32> to vector<256x64xbf16>
    %c1_304 = arith.constant 1 : index
    %c6_305 = arith.constant 6 : index
    %c0_306 = arith.constant 0 : index
    %c0_307 = arith.constant 0 : index
    %313 = vector.load %arg4[%c1_304, %c6_305, %c0_306, %c0_307] : memref<2x9x64x64xbf16, #tpu.memory_space<vmem>>, vector<1x1x64x64xbf16>
    %314 = vector.shape_cast %313 : vector<1x1x64x64xbf16> to vector<64x64xbf16>
    %cst_308 = arith.constant dense<0.000000e+00> : vector<256x64xf32>
    %315 = tpu.matmul %312, %314, %cst_308 {dimension_numbers = #tpu.dot_dimension_numbers<[1], [0], [0], [1], [0, 0, 1, 1], [], []>} : vector<256x64xbf16>, vector<64x64xbf16>, vector<256x64xf32> -> vector<256x64xf32>
    %316 = arith.addf %309, %315 : vector<256x64xf32>
    %c2_309 = arith.constant 2 : index
    %c1_310 = arith.constant 1 : index
    %c0_311 = arith.constant 0 : index
    %317 = vector.load %arg7[%c2_309, %c1_310, %c0_311] : memref<18x18x64xf32, #tpu.memory_space<vmem>>, vector<16x16x64xf32>
    %318 = vector.shape_cast %317 : vector<16x16x64xf32> to vector<256x64xf32>
    %319 = arith.truncf %318 : vector<256x64xf32> to vector<256x64xbf16>
    %c1_312 = arith.constant 1 : index
    %c7_313 = arith.constant 7 : index
    %c0_314 = arith.constant 0 : index
    %c0_315 = arith.constant 0 : index
    %320 = vector.load %arg4[%c1_312, %c7_313, %c0_314, %c0_315] : memref<2x9x64x64xbf16, #tpu.memory_space<vmem>>, vector<1x1x64x64xbf16>
    %321 = vector.shape_cast %320 : vector<1x1x64x64xbf16> to vector<64x64xbf16>
    %cst_316 = arith.constant dense<0.000000e+00> : vector<256x64xf32>
    %322 = tpu.matmul %319, %321, %cst_316 {dimension_numbers = #tpu.dot_dimension_numbers<[1], [0], [0], [1], [0, 0, 1, 1], [], []>} : vector<256x64xbf16>, vector<64x64xbf16>, vector<256x64xf32> -> vector<256x64xf32>
    %323 = arith.addf %316, %322 : vector<256x64xf32>
    %c2_317 = arith.constant 2 : index
    %c2_318 = arith.constant 2 : index
    %c0_319 = arith.constant 0 : index
    %324 = vector.load %arg7[%c2_317, %c2_318, %c0_319] : memref<18x18x64xf32, #tpu.memory_space<vmem>>, vector<16x16x64xf32>
    %325 = vector.shape_cast %324 : vector<16x16x64xf32> to vector<256x64xf32>
    %326 = arith.truncf %325 : vector<256x64xf32> to vector<256x64xbf16>
    %c1_320 = arith.constant 1 : index
    %c8_321 = arith.constant 8 : index
    %c0_322 = arith.constant 0 : index
    %c0_323 = arith.constant 0 : index
    %327 = vector.load %arg4[%c1_320, %c8_321, %c0_322, %c0_323] : memref<2x9x64x64xbf16, #tpu.memory_space<vmem>>, vector<1x1x64x64xbf16>
    %328 = vector.shape_cast %327 : vector<1x1x64x64xbf16> to vector<64x64xbf16>
    %cst_324 = arith.constant dense<0.000000e+00> : vector<256x64xf32>
    %329 = tpu.matmul %326, %328, %cst_324 {dimension_numbers = #tpu.dot_dimension_numbers<[1], [0], [0], [1], [0, 0, 1, 1], [], []>} : vector<256x64xbf16>, vector<64x64xbf16>, vector<256x64xf32> -> vector<256x64xf32>
    %330 = arith.addf %323, %329 : vector<256x64xf32>
    %c1_325 = arith.constant 1 : index
    %c0_326 = arith.constant 0 : index
    %331 = vector.load %arg5[%c1_325, %c0_326] : memref<2x64xf32, #tpu.memory_space<vmem>>, vector<1x64xf32>
    %332 = vector.broadcast %331 : vector<1x64xf32> to vector<256x64xf32>
    %333 = arith.addf %330, %332 : vector<256x64xf32>
    %cst_327 = arith.constant dense<0.000000e+00> : vector<64xf32>
    %334 = vector.multi_reduction <add>, %333, %cst_327 [0] : vector<256x64xf32> to vector<64xf32>
    %335 = vector.shape_cast %334 : vector<64xf32> to vector<1x64xf32>
    %cst_328 = arith.constant 2.560000e+02 : f32
    %336 = vector.broadcast %cst_328 : f32 to vector<1x64xf32>
    %337 = arith.divf %335, %336 : vector<1x64xf32>
    %338 = vector.broadcast %337 : vector<1x64xf32> to vector<256x64xf32>
    %339 = arith.subf %333, %338 : vector<256x64xf32>
    %340 = arith.mulf %339, %339 : vector<256x64xf32>
    %cst_329 = arith.constant dense<0.000000e+00> : vector<64xf32>
    %341 = vector.multi_reduction <add>, %340, %cst_329 [0] : vector<256x64xf32> to vector<64xf32>
    %342 = vector.shape_cast %341 : vector<64xf32> to vector<1x64xf32>
    %cst_330 = arith.constant 2.560000e+02 : f32
    %343 = vector.broadcast %cst_330 : f32 to vector<1x64xf32>
    %344 = arith.divf %342, %343 : vector<1x64xf32>
    %cst_331 = arith.constant 9.99999974E-6 : f32
    %345 = vector.broadcast %cst_331 : f32 to vector<1x64xf32>
    %346 = arith.addf %344, %345 : vector<1x64xf32>
    %347 = math.rsqrt %346 : vector<1x64xf32>
    %348 = vector.broadcast %347 : vector<1x64xf32> to vector<256x64xf32>
    %349 = arith.mulf %339, %348 : vector<256x64xf32>
    %350 = arith.addf %177, %349 : vector<256x64xf32>
    %351 = vector.shape_cast %350 : vector<256x64xf32> to vector<16x16x64xf32>
    %c0_332 = arith.constant 0 : index
    %c0_333 = arith.constant 0 : index
    %c0_334 = arith.constant 0 : index
    %c0_335 = arith.constant 0 : index
    %352 = vector.load %arg6[%c0_332, %c0_333, %c0_334, %c0_335] : memref<1x16x16x64xf32, #tpu.memory_space<vmem>>, vector<1x16x16x64xf32>
    %353 = vector.shape_cast %352 : vector<1x16x16x64xf32> to vector<16x16x64xf32>
    %354 = vector.shape_cast %351 : vector<16x16x64xf32> to vector<1x16x16x64xf32>
    tpu.vector_store %arg6[%c0_332, %c0_333, %c0_334, %c0_335], %354 {strides = array<i32>} : memref<1x16x16x64xf32, #tpu.memory_space<vmem>>, vector<1x16x16x64xf32>,
    return
  }
  func.func @transform_0(%arg0: i32) -> (i32, i32, i32, i32) {
    %c0_i32 = arith.constant 0 : i32
    %c0_i32_0 = arith.constant 0 : i32
    %c0_i32_1 = arith.constant 0 : i32
    %c0_i32_2 = arith.constant 0 : i32
    return %arg0, %c0_i32, %c0_i32_0, %c0_i32_1 : i32, i32, i32, i32
  }
  func.func @transform_1(%arg0: i32) -> (i32, i32, i32, i32) {
    %c0_i32 = arith.constant 0 : i32
    %c0_i32_0 = arith.constant 0 : i32
    %c0_i32_1 = arith.constant 0 : i32
    %c0_i32_2 = arith.constant 0 : i32
    %c0_i32_3 = arith.constant 0 : i32
    return %c0_i32, %c0_i32_0, %c0_i32_1, %c0_i32_2 : i32, i32, i32, i32
  }
  func.func @transform_2(%arg0: i32) -> (i32, i32) {
    %c0_i32 = arith.constant 0 : i32
    %c0_i32_0 = arith.constant 0 : i32
    %c0_i32_1 = arith.constant 0 : i32
    return %c0_i32, %c0_i32_0 : i32, i32
  }
  func.func @transform_3(%arg0: i32) -> (i32, i32, i32, i32) {
    %c0_i32 = arith.constant 0 : i32
    %c0_i32_0 = arith.constant 0 : i32
    %c0_i32_1 = arith.constant 0 : i32
    %c0_i32_2 = arith.constant 0 : i32
    %c0_i32_3 = arith.constant 0 : i32
    return %c0_i32, %c0_i32_0, %c0_i32_1, %c0_i32_2 : i32, i32, i32, i32
  }
  func.func @transform_4(%arg0: i32) -> (i32, i32) {
    %c0_i32 = arith.constant 0 : i32
    %c0_i32_0 = arith.constant 0 : i32
    %c0_i32_1 = arith.constant 0 : i32
    return %c0_i32, %c0_i32_0 : i32, i32
  }
  func.func @transform_5(%arg0: i32) -> (i32, i32, i32, i32) {
    %c0_i32 = arith.constant 0 : i32
    %c0_i32_0 = arith.constant 0 : i32
    %c0_i32_1 = arith.constant 0 : i32
    %c0_i32_2 = arith.constant 0 : i32
    return %arg0, %c0_i32, %c0_i32_0, %c0_i32_1 : i32, i32, i32, i32
  }
}

</mosaic_0001>

<bundles_post_ra>
// kernel: tpu_custom_call.1
= control target key start
LH: loop header
LB: loop body
LE: loop exit
PB: predicated region body
PF: predicated region fallthrough
CT: control target
= control target key end

     0   :  { %10 = vsyncpa [#allocation4], 0  ;;  %s22439_s0 = inlined_call_operand.hbm [shape: f32[2,16,16,64], index: 0, kind: input, shape index: {}]   ;;  %s22440_s1 = inlined_call_operand.hbm [shape: bf16[2,9,64,64], index: 1, kind: input, shape index: {}]   ;;  %s22441_s2 = inlined_call_operand.vmem [shape: f32[2,64], index: 2, kind: input, shape index: {}]   ;;  %s22442_s3 = inlined_call_operand.hbm [shape: bf16[2,9,64,64], index: 3, kind: input, shape index: {}]   ;;  %s22443_s4 = inlined_call_operand.vmem [shape: f32[2,64], index: 4, kind: input, shape index: {}]   ;;  %s22444_s5 = inlined_call_operand.hbm [shape: f32[2,16,16,64], index: 5, kind: output, shape index: {}]  }
   0x1   :  { %12 = vsyncpa [#allocation4 + $0x1], 0 }
   0x2   :  { %13 = vsyncpa [#allocation7], 0 }
   0x3   :  { %14 = vsyncpa [#allocation5], 0 }
   0x4   :  { %16 = vsyncpa [#allocation5 + $0x1], 0  ;;  %s16513_s18 = smov 0   ;;  %s16515_s19 = smov 0  }
   0x5   :  { %s16517_s20 = smov 0   ;;  %s16519_s21 = smov 0  }
   0x6 LB: > { %s16534_s22 = sadd.s32 4294967295, %s16470_s21   ;;  %s13192_s23 = sadd.s32 4294967294, %s16470_s21   ;;  %s16470_s21 = sphi %s16519_s21, %s22992_s21   ;;  %s16466_s20 = sphi %s16517_s20, %s22991_s20   ;;  %s16462_s19 = sphi %s16515_s19, %s22990_s19   ;;  %s16458_s18 = sphi %s16513_s18, %s22989_s18  }
   0x7   : > { %p42_p0 = scmp.ne.s32.totalorder %s16462_s19, %s16458_s18  ;;  %p22445_p1 = scmp.eq.s32.totalorder %s16534_s22, 0 }
   0x8   : > { %p156_p3 = scmp.eq.s32.totalorder %s13192_s23, 1  ;;  %p13193_p5 = scmp.ge.s32.totalorder %s16470_s21, 1 }
   0x9   : > { %p16543_p4 = por %p22445_p1, %p42_p0  ;;  %p163_p7 = scmp.lt.s32.totalorder %s16470_s21, 3 }
   0xa   : > { %p16548_p6 = por %p156_p3, %p42_p0  ;;  %s16472_s27 = smov [#allocation6]  }
   0xb   : > { %s22513_s24 = scalar_select %p16543_p4, 1, 0 }
   0xc   : > { %s22514_s25 = scalar_select %p16548_p6, 1, 0 }
   0xd   : > { %p16553_p8 = pnand %p13193_p5, %p163_p7  ;;  %s175_s28 = sshll.u32 %s16472_s27, 4  ;;  %s176_s28 = int_to_ptr.vmem [resolvable:$true] %s175_s28 }
   0xe   : > { %s16473_s30 = smov [#allocation8]   ;;  %s16333_s7 = scalar_lea.vmem %s176_s28, 9216 }
   0xf   : > { %s22515_s26 = scalar_select %p16553_p8, 1, 0 }
  0x10   : > { %p16108_p9 = pneg %p16553_p8  ;;  %s191_s6 = sshll.u32 %s16473_s30, 4  ;;  %s192_s6 = int_to_ptr.vmem [resolvable:$true] %s191_s6 }
  0x11   : > { %p16334_p13 = scmp.ne.s32.totalorder %s176_s28, %s16333_s7  ;;  %p16341_p5 = scmp.lt.s32.totalorder %s176_s28, %s176_s28 }
  0x12   : > { %p16562_p11 = pnand %p16108_p9, %p22445_p1  ;;  %p16342_p7 = scmp.lt.s32.totalorder %s16333_s7, %s16333_s7 }
  0x14   : > { %p16324_p12 = pneg %p16562_p11  ;;  %p16343_p10 = por %p16342_p7, %p16341_p5 }
  0x16   : > { %p16336_p0 = pnand %p16334_p13, %p16324_p12 }
  0x18   : > { %p16337_p3 = pneg %p16336_p0 }
  0x1a   : > { %p16344_p9 = pnand %p16343_p10, %p16337_p3 }
  0x1c   : > { %16347 = shalt.err (!%p16344_p9)
}
  0x1d   : > { %s16474_s8 = smov 64   ;;  %s16475_s9 = smov 4  }
  0x1e   : > { %16111 = dma.hbm_to_vmem [thread:$0]  (!%p16562_p11), %s22440_s1, 9216, %s176_s28, [#allocation7], %s16474_s8, %s16474_s8, %s16475_s9  }
  0x1f   : > { %s16359_s12 = scalar_lea.vmem %s192_s6, 9216  ;;  %p16367_p2 = scmp.lt.s32.totalorder %s192_s6, %s192_s6 }
  0x20   : > { %p16360_p1 = scmp.ne.s32.totalorder %s192_s6, %s16359_s12  ;;  %p16368_p6 = scmp.lt.s32.totalorder %s16359_s12, %s16359_s12 }
  0x22   : > { %p16362_p13 = pnand %p16360_p1, %p16324_p12  ;;  %p16369_p5 = por %p16368_p6, %p16367_p2 }
  0x24   : > { %p16363_p0 = pneg %p16362_p13 }
  0x26   : > { %p16370_p10 = pnand %p16369_p5, %p16363_p0 }
  0x28   : > { %16373 = shalt.err (!%p16370_p10)
}
  0x29   : > { %16114 = dma.hbm_to_vmem [thread:$0]  (!%p16562_p11), %s22442_s3, 9216, %s192_s6, [#allocation7], %s16474_s8, %s16474_s8, %s16475_s9  }
  0x2a   : > { %s16585_s15 = sadd.s32 1, %s16470_s21   ;;  %s29_s16 = sadd.s32 1, %s16466_s20 }
  0x2b   : > { %s26_s17 = ssub.s32 %s16470_s21, %s16585_s15  ;;  %p36_p1 = scmp.ne.s32.totalorder %s16466_s20, %s16462_s19 }
  0x2c   : > { %p27_p2 = scmp.eq.s32.totalorder %s26_s17, 0  ;;  %p37_p6 = scmp.eq.s32.totalorder %s16470_s21, 0 }
  0x2d   : > { %p22517_p12 = scmp.eq.s32.totalorder %s16534_s22, 1  ;;  %p16125_p7 = scmp.lt.s32.totalorder %s16470_s21, 2 }
  0x2e   : > { %s16601_s27 = scalar_select %p27_p2, %s16466_s20, %s29_s16  }
  0x2f   : > { %p16595_p3 = por %p22517_p12, %p36_p1  ;;  %p38_p9 = por %p37_p6, %p36_p1 }
  0x30   : > { %s208_s28 = sand.u32 1, %s16466_s20   ;;  %s13934_s30 = sshll.u32 %s16470_s21, 12 }
  0x31   : > { %s22518_s23 = scalar_select %p16595_p3, 1, 0 }
  0x32   : > { %s13197_s29 = sshll.u32 %s208_s28, 8  ;;  %s16608_s8 = scalar_lea.hbm %s22439_s0, %s13934_s30 }
  0x33   : > { %s212_s9 = scalar_lea.vmem [#allocation3], %s13197_s29  ;;  %p16612_p11 = pnand %p16125_p7, %p38_p9 }
  0x34   : > { %s219_s10 = sshll.u32 %s212_s9, 4  ;;  %s16616_s12 = scalar_lea.sflag [#allocation4], %s208_s28  ;;  %s16610_s10 = int_to_ptr.vmem [resolvable:$true] %s219_s10 }
  0x35   : > { %s16374_s13 = scalar_lea.hbm %s16608_s8, 4096  ;;  %p16376_p0 = pneg %p16612_p11 }
  0x36   : > { %p16375_p13 = scmp.ne.s32.totalorder %s16608_s8, %s16374_s13  ;;  %s16379_s17 = scalar_lea.hbm %s22439_s0, 8192 }
  0x37   : > { %p16380_p1 = scmp.lt.s32.totalorder %s16608_s8, %s22439_s0  ;;  %p16381_p2 = scmp.lt.s32.totalorder %s16379_s17, %s16374_s13 }
  0x38   : > { %p16377_p5 = pnand %p16376_p0, %p16375_p13 }
  0x39   : > { %p16382_p6 = por %p16381_p2, %p16380_p1 }
  0x3a   : > { %p16378_p10 = pneg %p16377_p5 }
  0x3c   : > { %p16383_p12 = pnand %p16382_p6, %p16378_p10 }
  0x3e   : > { %16386 = shalt.err (!%p16383_p12)
}
  0x3f   : > { %s16387_s28 = scalar_lea.vmem %s16610_s10, 4096  ;;  %s16476_s6 = smov [#allocation3]  }
  0x40   : > { %p16388_p7 = scmp.ne.s32.totalorder %s16610_s10, %s16387_s28  ;;  %s16392_s7 = sshll.u32 %s16476_s6, 4  ;;  %s16393_s7 = int_to_ptr.vmem [resolvable:$false] %s16392_s7 }
  0x41   : > { %s16394_s9 = scalar_lea.vmem %s16393_s7, 8192  ;;  %p16395_p5 = scmp.lt.s32.totalorder %s16610_s10, %s16393_s7 }
  0x42   : > { %p16390_p9 = pnand %p16388_p7, %p16376_p0  ;;  %p16396_p3 = scmp.lt.s32.totalorder %s16394_s9, %s16387_s28 }
  0x44   : > { %p16391_p13 = pneg %p16390_p9  ;;  %p16397_p4 = por %p16396_p3, %p16395_p5 }
  0x46   : > { %p16398_p8 = pnand %p16397_p4, %p16391_p13 }
  0x48   : > { %16401 = shalt.err (!%p16398_p8)
}
  0x49   : > { %s16477_s13 = smov 128   ;;  %s16478_s14 = smov 8  }
  0x4a   : > { %16118 = dma.hbm_to_vmem [thread:$0]  (!%p16612_p11), %s16608_s8, 4096, %s16610_s10, %s16616_s12, %s16477_s13, %s16477_s13, %s16478_s14  }
  0x4b   : > { %p22520_p0 = scmp.ne.s32.totalorder %s22515_s26, 0 }
  0x4d   : > { %231 = sbr.rel (%p22520_p0) target bundleno = 2786 (0xae2), region = 40 }
  0x52   : > { %s16640_s16 = sand.u32 1, %s16462_s19   ;;  %p22521_p4 = scmp.ne.s32.totalorder %s22513_s24, 0 }
  0x53   : > { %s13201_s17 = sshll.u32 %s16640_s16, 8  ;;  %s234_s29 = scalar_lea.sflag [#allocation4], %s16640_s16 }
  0x54   : > { %s16646_s30 = scalar_lea.vmem [#allocation3], %s13201_s17 }
  0x55   : > { %16445 = dma.done.wait (%p22521_p4), %s234_s29, 4096  }
  0x56   : > { %16447 = vsyncadd (%p22521_p4), %s234_s29, 4294963200  ;;  %p22522_p8 = scmp.eq.s32.totalorder %s16534_s22, 0 }
  0x58   : > { %16449 = dma.done.wait (%p22522_p8), [#allocation7], 18432   ;;  %p22523_p3 = pmov %p22522_p8 }
  0x59   : > { %vm273_vm0 = vcmask 523264   ;;  %vm276_vm1 = vcmask 517120   ;;  %v16479_v0 = vmov 0.0   ;;  %v16170_v1 = vld [vmem:[#allocation6 + $0x38] sm:$0xff]   ;;  %v16172_v3 = vld [vmem:[#allocation6 + $0x30] sm:$0xff]   ;;  %v16174_v5 = vld [vmem:[#allocation6 + $0x28] sm:$0xff]  }
  0x5a   : > { %16451 = vsyncadd (%p22523_p3), [#allocation7], 4294948864  ;;  %274 = vst.msk [vmem:[#allocation2] sm:$0xff] %vm273_vm0, %v16479_v0  ;;  %v16171_v2 = vld [vmem:[#allocation6 + $0x18] sm:$0xff]   ;;  %14656 = vmatprep.subr.bf16.mxu0 %v16170_v1  ;;  %v16173_v4 = vld [vmem:[#allocation6 + $0x10] sm:$0xff]   ;;  %s22275_s7 = scalar_lea.vmem [#allocation9], %s13201_s17 }
  0x5b   : > { %275 = vst.msk [vmem:[#allocation2 + $0x8] sm:$0xff] %vm273_vm0, %v16479_v0  ;;  %278 = vst.msk [vmem:[#allocation2 + $0x18] sm:$0xff] %vm273_vm0, %v16479_v0  ;;  %14696 = vmatprep.subr.bf16.mxu1 %v16171_v2  ;;  %14657 = vmatpush3.bf16.msra.mxu0 %v16170_v1  ;;  %v16175_v6 = vld [vmem:[#allocation6 + $0x8] sm:$0xff]   ;;  %v16176_v7 = vld [vmem:[#allocation6 + $0x20] sm:$0xff]   ;;  %s13935_s9 = sshll.u32 %s16534_s22, 12  ;;  %s13100_s13 = sshll.u32 %s22275_s7, 4  ;;  %s22368_s13 = int_to_ptr.vmem [resolvable:$true] %s13100_s13 }
  0x5c   : > { %277 = vst.msk [vmem:[#allocation2 + $0x10] sm:$0x3] %vm276_vm1, %v16479_v0  ;;  %280 = vst.msk [vmem:[#allocation2 + $0x28] sm:$0x3] %vm276_vm1, %v16479_v0  ;;  %14697 = vmatpush3.bf16.msra.mxu1 %v16171_v2  ;;  %14658 = vmatprep.subr.bf16.mxu0 %v16172_v3  ;;  %v16177_v8 = vld [vmem:[#allocation6] sm:$0xff]   ;;  %v16714_v15 = vld [vmem:[%s16646_s30 + $0x8] sm:$0xff]  ;;  %s22366_s17 = scalar_lea.hbm %s22444_s5, %s13935_s9 }
  0x5d   : > { %279 = vst.msk [vmem:[#allocation2 + $0x20] sm:$0xff] %vm273_vm0, %v16479_v0  ;;  %281 = vst.msk [vmem:[#allocation2 + $0x30] sm:$0xff] %vm273_vm0, %v16479_v0  ;;  %14698 = vmatprep.subr.bf16.mxu1 %v16173_v4  ;;  %v16711_v14 = vld [vmem:[%s16646_s30] sm:$0xff]  ;;  %v16178_v17 = vld [vmem:[#allocation6 + $0x58] sm:$0xff]   ;;  %s13087_s29 = scalar_lea.sflag [#allocation5], %s16640_s16  ;;  %p22986_p10 = scmp.ne.s32.totalorder %s22518_s23, 0 }
  0x5e   : > { %282 = vst.msk [vmem:[#allocation2 + $0x38] sm:$0xff] %vm273_vm0, %v16479_v0  ;;  %284 = vst.msk [vmem:[#allocation2 + $0x48] sm:$0xff] %vm273_vm0, %v16479_v0  ;;  %v16722_v18 = vld [vmem:[%s16646_s30 + $0x10] sm:$0xff]  ;;  %v16725_v19 = vld [vmem:[%s16646_s30 + $0x18] sm:$0xff]  ;;  %s16480_s24 = smov [#allocation9]  }
  0x5f   : > { %283 = vst.msk [vmem:[#allocation2 + $0x40] sm:$0x3] %vm276_vm1, %v16479_v0  ;;  %286 = vst.msk [vmem:[#allocation2 + $0x58] sm:$0x3] %vm276_vm1, %v16479_v0  ;;  %14659 = vmatpush3.bf16.msra.mxu0 %v16172_v3  ;;  %v16728_v20 = vld [vmem:[%s16646_s30 + $0x20] sm:$0xff]  ;;  %v16735_v21 = vld [vmem:[%s16646_s30 + $0x28] sm:$0xff] }
  0x60   : > { %285 = vst.msk [vmem:[#allocation2 + $0x50] sm:$0xff] %vm273_vm0, %v16479_v0  ;;  %287 = vst.msk [vmem:[#allocation2 + $0x60] sm:$0xff] %vm273_vm0, %v16479_v0  ;;  %14699 = vmatpush3.bf16.msra.mxu1 %v16173_v4  ;;  %14660 = vmatprep.subr.bf16.mxu0 %v16174_v5  ;;  %v16740_v22 = vld [vmem:[%s16646_s30 + $0x30] sm:$0xff]  ;;  %v16743_v23 = vld [vmem:[%s16646_s30 + $0x38] sm:$0xff]  ;;  %s16406_s26 = sshll.u32 %s16480_s24, 4  ;;  %s16407_s26 = int_to_ptr.vmem [resolvable:$false] %s16406_s26 }
  0x61   : > { %288 = vst.msk [vmem:[#allocation2 + $0x68] sm:$0xff] %vm273_vm0, %v16479_v0  ;;  %290 = vst.msk [vmem:[#allocation2 + $0x78] sm:$0xff] %vm273_vm0, %v16479_v0  ;;  %v394_v11 = vld [vmem:[#allocation2] sm:$0xff]  ;;  %14700 = vmatprep.subr.bf16.mxu1 %v16175_v6  ;;  %v16753_v24 = vld [vmem:[%s16646_s30 + $0x40] sm:$0xff]  ;;  %s16408_s8 = scalar_lea.vmem %s16407_s26, 8192  ;;  %p16409_p6 = scmp.lt.s32.totalorder %s22368_s13, %s16407_s26 }
  0x62   : > { %289 = vst.msk [vmem:[#allocation2 + $0x70] sm:$0x3] %vm276_vm1, %v16479_v0  ;;  %292 = vst.msk [vmem:[#allocation2 + $0x88] sm:$0x3] %vm276_vm1, %v16479_v0  ;;  %v450_v9 = vld [vmem:[#allocation2 + $0x1] sm:$0xff]  ;;  %v16756_v25 = vld [vmem:[%s16646_s30 + $0x48] sm:$0xff] }
  0x63   : > { %291 = vst.msk [vmem:[#allocation2 + $0x80] sm:$0xff] %vm273_vm0, %v16479_v0  ;;  %293 = vst.msk [vmem:[#allocation2 + $0x90] sm:$0xff] %vm273_vm0, %v16479_v0  ;;  %v451_v10 = vld [vmem:[#allocation2 + $0x9] sm:$0xff]  ;;  %14661 = vmatpush3.bf16.msra.mxu0 %v16174_v5  ;;  %v16763_v26 = vld [vmem:[%s16646_s30 + $0x50] sm:$0xff] }
  0x64   : > { %294 = vst.msk [vmem:[#allocation2 + $0x98] sm:$0xff] %vm273_vm0, %v16479_v0  ;;  %296 = vst.msk [vmem:[#allocation2 + $0xa8] sm:$0xff] %vm273_vm0, %v16479_v0  ;;  %v482_v12 = vpack.c.bf16 %v451_v10, %v450_v9  ;;  %v395_v13 = vld [vmem:[#allocation2 + $0x8] sm:$0xff]  ;;  %14701 = vmatpush3.bf16.msra.mxu1 %v16175_v6  ;;  %14662 = vmatprep.subr.bf16.mxu0 %v16176_v7  ;;  %v16771_v28 = vld [vmem:[%s16646_s30 + $0x60] sm:$0xff] }
  0x65   : > { %295 = vst.msk [vmem:[#allocation2 + $0xa0] sm:$0x3] %vm276_vm1, %v16479_v0  ;;  %298 = vst.msk [vmem:[#allocation2 + $0xb8] sm:$0x3] %vm276_vm1, %v16479_v0  ;;  %v426_v16 = vpack.c.bf16 %v395_v13, %v394_v11  ;;  %14702 = vmatprep.subr.bf16.mxu1 %v16177_v8  ;;  %v16766_v27 = vld [vmem:[%s16646_s30 + $0x58] sm:$0xff]  ;;  %v16774_v29 = vld [vmem:[%s16646_s30 + $0x68] sm:$0xff] }
  0x66   : > { %297 = vst.msk [vmem:[#allocation2 + $0xb0] sm:$0xff] %vm273_vm0, %v16479_v0  ;;  %299 = vst.msk [vmem:[#allocation2 + $0xc0] sm:$0xff] %vm273_vm0, %v16479_v0  ;;  %14664 = vmatprep.mubr.msk.bf16.mxu0 %vm273_vm0, %v482_v12  ;;  %v16179_v30 = vld [vmem:[#allocation6 + $0x50] sm:$0xff]   ;;  %v16786_v32 = vld [vmem:[%s16646_s30 + $0x78] sm:$0xff] }
  0x67   : > { %300 = vst.msk [vmem:[#allocation2 + $0xc8] sm:$0xff] %vm273_vm0, %v16479_v0  ;;  %302 = vst.msk [vmem:[#allocation2 + $0xd8] sm:$0xff] %vm273_vm0, %v16479_v0  ;;  %14704 = vmatprep.mubr.msk.bf16.mxu1 %vm273_vm0, %v426_v16  ;;  %14663 = vmatpush3.bf16.msra.mxu0 %v16176_v7  ;;  %v16783_v31 = vld [vmem:[%s16646_s30 + $0x70] sm:$0xff]  ;;  %v16789_v33 = vld [vmem:[%s16646_s30 + $0x80] sm:$0xff] }
  0x68   : > { %301 = vst.msk [vmem:[#allocation2 + $0xd0] sm:$0x3] %vm276_vm1, %v16479_v0  ;;  %304 = vst.msk [vmem:[#allocation2 + $0xe8] sm:$0x3] %vm276_vm1, %v16479_v0  ;;  %14703 = vmatpush3.bf16.msra.mxu1 %v16177_v8  ;;  %14736 = vmatprep.subr.bf16.mxu0 %v16178_v17  ;;  %v16800_v39 = vld [vmem:[%s16646_s30 + $0x88] sm:$0xff]  ;;  %v16835_v4 = vld [vmem:[%s16646_s30 + $0x90] sm:$0xff] }
  0x69   : > { %303 = vst.msk [vmem:[#allocation2 + $0xe0] sm:$0xff] %vm273_vm0, %v16479_v0  ;;  %305 = vst.msk [vmem:[#allocation2 + $0xf0] sm:$0xff] %vm273_vm0, %v16479_v0  ;;  %v16180_v3 = vld [vmem:[#allocation6 + $0x48] sm:$0xff]   ;;  %v16838_v5 = vld [vmem:[%s16646_s30 + $0x98] sm:$0xff] }
  0x6a   : > { %306 = vst.msk [vmem:[#allocation2 + $0xf8] sm:$0xff] %vm273_vm0, %v16479_v0  ;;  %308 = vst.msk [vmem:[#allocation2 + $0x108] sm:$0xff] %vm273_vm0, %v16479_v0  ;;  %v16845_v6 = vld [vmem:[%s16646_s30 + $0xa0] sm:$0xff]  ;;  %v16848_v7 = vld [vmem:[%s16646_s30 + $0xa8] sm:$0xff] }
  0x6b   : > { %307 = vst.msk [vmem:[#allocation2 + $0x100] sm:$0x3] %vm276_vm1, %v16479_v0  ;;  %310 = vst.msk [vmem:[#allocation2 + $0x118] sm:$0x3] %vm276_vm1, %v16479_v0  ;;  %v16851_v8 = vld [vmem:[%s16646_s30 + $0xb0] sm:$0xff]  ;;  %v16860_v10 = vld [vmem:[%s16646_s30 + $0xb8] sm:$0xff] }
  0x6c   : > { %309 = vst.msk [vmem:[#allocation2 + $0x110] sm:$0xff] %vm273_vm0, %v16479_v0  ;;  %311 = vst.msk [vmem:[#allocation2 + $0x120] sm:$0xff] %vm273_vm0, %v16479_v0  ;;  %v16865_v11 = vld [vmem:[%s16646_s30 + $0xc0] sm:$0xff]  ;;  %v16868_v12 = vld [vmem:[%s16646_s30 + $0xc8] sm:$0xff] }
  0x6d   : > { %312 = vst.msk [vmem:[#allocation2 + $0x128] sm:$0xff] %vm273_vm0, %v16479_v0  ;;  %314 = vst.msk [vmem:[#allocation2 + $0x138] sm:$0xff] %vm273_vm0, %v16479_v0 }
  0x6e   : > { %313 = vst.msk [vmem:[#allocation2 + $0x130] sm:$0x3] %vm276_vm1, %v16479_v0  ;;  %316 = vst.msk [vmem:[#allocation2 + $0x148] sm:$0x3] %vm276_vm1, %v16479_v0 }
  0x6f   : > { %315 = vst.msk [vmem:[#allocation2 + $0x140] sm:$0xff] %vm273_vm0, %v16479_v0  ;;  %317 = vst.msk [vmem:[#allocation2 + $0x150] sm:$0xff] %vm273_vm0, %v16479_v0 }
  0x70   : > { %318 = vst.msk [vmem:[#allocation2 + $0x158] sm:$0xff] %vm273_vm0, %v16479_v0  ;;  %320 = vst.msk [vmem:[#allocation2 + $0x168] sm:$0xff] %vm273_vm0, %v16479_v0 }
  0x71   : > { %319 = vst.msk [vmem:[#allocation2 + $0x160] sm:$0x3] %vm276_vm1, %v16479_v0  ;;  %322 = vst.msk [vmem:[#allocation2 + $0x178] sm:$0x3] %vm276_vm1, %v16479_v0 }
  0x72   : > { %321 = vst.msk [vmem:[#allocation2 + $0x170] sm:$0xff] %vm273_vm0, %v16479_v0  ;;  %323 = vst.msk [vmem:[#allocation2 + $0x180] sm:$0xff] %vm273_vm0, %v16479_v0 }
  0x73   : > { %324 = vst.msk [vmem:[#allocation2 + $0x188] sm:$0xff] %vm273_vm0, %v16479_v0  ;;  %326 = vst.msk [vmem:[#allocation2 + $0x198] sm:$0xff] %vm273_vm0, %v16479_v0 }
  0x74   : > { %325 = vst.msk [vmem:[#allocation2 + $0x190] sm:$0x3] %vm276_vm1, %v16479_v0  ;;  %328 = vst.msk [vmem:[#allocation2 + $0x1a8] sm:$0x3] %vm276_vm1, %v16479_v0 }
  0x75   : > { %327 = vst.msk [vmem:[#allocation2 + $0x1a0] sm:$0xff] %vm273_vm0, %v16479_v0  ;;  %22524 = vst [vmem:[#allocation13_spill] sm:$0xff] %v16711_v14 }
  0x76   : > { %22525 = vst [vmem:[#allocation14_spill] sm:$0xff] %v16714_v15  ;;  %362 = vst.msk [vmem:[#allocation2 + $0x19] sm:$0xff] %vm273_vm0, %v16711_v14 }
  0x77   : > { %363 = vst.msk [vmem:[#allocation2 + $0x21] sm:$0xff] %vm273_vm0, %v16714_v15  ;;  %22526 = vst [vmem:[#allocation15_spill] sm:$0xff] %v16722_v18 }
  0x78   : > { %22527 = vst [vmem:[#allocation16_spill] sm:$0xff] %v16725_v19  ;;  %22528 = vst [vmem:[#allocation17_spill] sm:$0xff] %v16728_v20 }
  0x79   : > { %364 = vst.msk [vmem:[#allocation2 + $0x31] sm:$0xff] %vm273_vm0, %v16722_v18  ;;  %365 = vst.msk [vmem:[#allocation2 + $0x39] sm:$0xff] %vm273_vm0, %v16725_v19 }
  0x7a   : > { %22529 = vst [vmem:[#allocation18_spill] sm:$0xff] %v16735_v21  ;;  %366 = vst.msk [vmem:[#allocation2 + $0x49] sm:$0xff] %vm273_vm0, %v16728_v20 }
  0x7b   : > { %22530 = vst [vmem:[#allocation19_spill] sm:$0xff] %v16740_v22  ;;  %22531 = vst [vmem:[#allocation20_spill] sm:$0xff] %v16743_v23 }
  0x7c   : > { %367 = vst.msk [vmem:[#allocation2 + $0x51] sm:$0xff] %vm273_vm0, %v16735_v21  ;;  %368 = vst.msk [vmem:[#allocation2 + $0x61] sm:$0xff] %vm273_vm0, %v16740_v22 }
  0x7d   : > { %369 = vst.msk [vmem:[#allocation2 + $0x69] sm:$0xff] %vm273_vm0, %v16743_v23  ;;  %22532 = vst [vmem:[#allocation21_spill] sm:$0xff] %v16753_v24  ;;  %v452_v34 = vld [vmem:[#allocation2 + $0x19] sm:$0xff] }
  0x7e   : > { %22533 = vst [vmem:[#allocation22_spill] sm:$0xff] %v16756_v25  ;;  %370 = vst.msk [vmem:[#allocation2 + $0x79] sm:$0xff] %vm273_vm0, %v16753_v24  ;;  %v453_v35 = vld [vmem:[#allocation2 + $0x21] sm:$0xff]  ;;  %v396_v36 = vld [vmem:[#allocation2 + $0x18] sm:$0xff] }
  0x7f   : > { %371 = vst.msk [vmem:[#allocation2 + $0x81] sm:$0xff] %vm273_vm0, %v16756_v25  ;;  %22534 = vst [vmem:[#allocation23_spill] sm:$0xff] %v16763_v26  ;;  %v16797_v37 = vpack.c.bf16 %v453_v35, %v452_v34  ;;  %v397_v38 = vld [vmem:[#allocation2 + $0x20] sm:$0xff]  ;;  %v16182_v34 = vld [vmem:[#allocation6 + $0x78] sm:$0xff]  }
  0x80   : > { %22535 = vst [vmem:[#allocation24_spill] sm:$0xff] %v16766_v27  ;;  %372 = vst.msk [vmem:[#allocation2 + $0x91] sm:$0xff] %vm273_vm0, %v16763_v26  ;;  %v16802_v40 = vpack.c.bf16 %v397_v38, %v396_v36  ;;  %v454_v41 = vld [vmem:[#allocation2 + $0x31] sm:$0xff]  ;;  %v455_v42 = vld [vmem:[#allocation2 + $0x39] sm:$0xff]  ;;  %14776 = vmatprep.subr.bf16.mxu1 %v16182_v34 }
  0x81   : > { %22536 = vst [vmem:[#allocation25_spill] sm:$0xff] %v16771_v28  ;;  %22537 = vst [vmem:[#allocation26_spill] sm:$0xff] %v16774_v29  ;;  %v398_v43 = vld [vmem:[#allocation2 + $0x30] sm:$0xff]  ;;  %14665 = vmatmul.mubr.msk.bf16.vlgmr.msra.gmra.mxu0 %vm273_vm0, %v16797_v37  ;;  %v16808_v44 = vpack.c.bf16 %v455_v42, %v454_v41  ;;  %v399_v45 = vld [vmem:[#allocation2 + $0x38] sm:$0xff] }
  0x82   : > { %373 = vst.msk [vmem:[#allocation2 + $0x99] sm:$0xff] %vm273_vm0, %v16766_v27  ;;  %374 = vst.msk [vmem:[#allocation2 + $0xa9] sm:$0xff] %vm273_vm0, %v16771_v28  ;;  %14705 = vmatmul.mubr.msk.bf16.vlgmr.msra.gmra.mxu1 %vm273_vm0, %v16802_v40  ;;  %14737 = vmatpush3.bf16.msra.mxu0 %v16178_v17  ;;  %v16812_v46 = vpack.c.bf16 %v399_v45, %v398_v43  ;;  %v456_v47 = vld [vmem:[#allocation2 + $0x49] sm:$0xff]  ;;  %v16183_v38 = vld [vmem:[#allocation6 + $0x70] sm:$0xff]  }
  0x83   : > { %375 = vst.msk [vmem:[#allocation2 + $0xb1] sm:$0xff] %vm273_vm0, %v16774_v29  ;;  %22538 = vst [vmem:[#allocation27_spill] sm:$0xff] %v16783_v31  ;;  %v457_v48 = vld [vmem:[#allocation2 + $0x51] sm:$0xff]  ;;  %v400_v49 = vld [vmem:[#allocation2 + $0x48] sm:$0xff]  ;;  %14668 = vmatprep.mubr.msk.bf16.mxu0 %vm273_vm0, %v16808_v44  ;;  %14738 = vmatprep.subr.bf16.mxu0 %v16179_v30 }
  0x84   : > { %22539 = vst [vmem:[#allocation28_spill] sm:$0xff] %v16786_v32  ;;  %22540 = vst [vmem:[#allocation29_spill] sm:$0xff] %v16789_v33  ;;  %v401_v50 = vld [vmem:[#allocation2 + $0x50] sm:$0xff]  ;;  %v458_v51 = vld [vmem:[#allocation2 + $0x61] sm:$0xff]  ;;  %14708 = vmatprep.mubr.msk.bf16.mxu1 %vm273_vm0, %v16812_v46  ;;  %v16818_v55 = vpack.c.bf16 %v457_v48, %v456_v47  ;;  %14777 = vmatpush3.bf16.msra.mxu1 %v16182_v34 }
  0x85   : > { %376 = vst.msk [vmem:[#allocation2 + $0xc1] sm:$0xff] %vm273_vm0, %v16783_v31  ;;  %377 = vst.msk [vmem:[#allocation2 + $0xc9] sm:$0xff] %vm273_vm0, %v16786_v32  ;;  %v459_v52 = vld [vmem:[#allocation2 + $0x69] sm:$0xff]  ;;  %v402_v53 = vld [vmem:[#allocation2 + $0x60] sm:$0xff]  ;;  %v16820_v56 = vpack.c.bf16 %v401_v50, %v400_v49  ;;  %14778 = vmatprep.subr.bf16.mxu1 %v16183_v38 }
  0x86   : > { %378 = vst.msk [vmem:[#allocation2 + $0xd9] sm:$0xff] %vm273_vm0, %v16789_v33  ;;  %22541 = vst [vmem:[#allocation30_spill] sm:$0xff] %v16800_v39  ;;  %v403_v54 = vld [vmem:[#allocation2 + $0x68] sm:$0xff]  ;;  %v16822_v57 = vpack.c.bf16 %v459_v52, %v458_v51  ;;  %14739 = vmatpush3.bf16.msra.mxu0 %v16179_v30  ;;  %v460_v59 = vld [vmem:[#allocation2 + $0x79] sm:$0xff] }
  0x87   : > { %379 = vst.msk [vmem:[#allocation2 + $0xe1] sm:$0xff] %vm273_vm0, %v16800_v39  ;;  %v16824_v58 = vpack.c.bf16 %v403_v54, %v402_v53  ;;  %v461_v60 = vld [vmem:[#allocation2 + $0x81] sm:$0xff]  ;;  %v404_v61 = vld [vmem:[#allocation2 + $0x78] sm:$0xff]  ;;  %v406_v1 = vld [vmem:[#allocation2 + $0x90] sm:$0xff]  ;;  %14740 = vmatprep.subr.bf16.mxu0 %v16180_v3 }
  0x88   : > { %v405_v62 = vld [vmem:[#allocation2 + $0x80] sm:$0xff]  ;;  %v462_v63 = vld [vmem:[#allocation2 + $0x91] sm:$0xff]  ;;  %22542 = vst [vmem:[#allocation31_spill] sm:$0xff] %v16835_v4  ;;  %22543 = vst [vmem:[#allocation32_spill] sm:$0xff] %v16838_v5  ;;  %v16853_v9 = vpack.c.bf16 %v461_v60, %v460_v59  ;;  %14779 = vmatpush3.bf16.msra.mxu1 %v16183_v38 }
  0x89   : > { %14669 = vmatmul.mubr.msk.bf16.gmra.mxu0 %vm273_vm0, %v16818_v55  ;;  %v463_v0 = vld [vmem:[#allocation2 + $0x99] sm:$0xff]  ;;  %380 = vst.msk [vmem:[#allocation2 + $0xf1] sm:$0xff] %vm273_vm0, %v16835_v4  ;;  %381 = vst.msk [vmem:[#allocation2 + $0xf9] sm:$0xff] %vm273_vm0, %v16838_v5  ;;  %v16870_v13 = vpack.c.bf16 %v405_v62, %v404_v61  ;;  %v16181_v17 = vld [vmem:[#allocation6 + $0x40] sm:$0xff]  }
  0x8a   : > { %14709 = vmatmul.mubr.msk.bf16.gmra.mxu1 %vm273_vm0, %v16820_v56  ;;  %14672 = vmatprep.mubr.msk.bf16.mxu0 %vm273_vm0, %v16822_v57  ;;  %v407_v2 = vld [vmem:[#allocation2 + $0x98] sm:$0xff]  ;;  %22544 = vst [vmem:[#allocation33_spill] sm:$0xff] %v16845_v6  ;;  %22545 = vst [vmem:[#allocation34_spill] sm:$0xff] %v16848_v7  ;;  %v16872_v16 = vpack.c.bf16 %v463_v0, %v462_v63  ;;  %v464_v35 = vld [vmem:[#allocation2 + $0xa9] sm:$0xff] }
  0x8b   : > { %14712 = vmatprep.mubr.msk.bf16.mxu1 %vm273_vm0, %v16824_v58  ;;  %22546 = vst [vmem:[#allocation35_spill] sm:$0xff] %v16851_v8  ;;  %382 = vst.msk [vmem:[#allocation2 + $0x109] sm:$0xff] %vm273_vm0, %v16845_v6  ;;  %14741 = vmatpush3.bf16.msra.mxu0 %v16180_v3  ;;  %v16880_v30 = vpack.c.bf16 %v407_v2, %v406_v1  ;;  %v465_v36 = vld [vmem:[#allocation2 + $0xb1] sm:$0xff]  ;;  %v408_v41 = vld [vmem:[#allocation2 + $0xa8] sm:$0xff] }
  0x8c   : > { %383 = vst.msk [vmem:[#allocation2 + $0x111] sm:$0xff] %vm273_vm0, %v16848_v7  ;;  %22547 = vst [vmem:[#allocation36_spill] sm:$0xff] %v16860_v10  ;;  %14742 = vmatprep.subr.bf16.mxu0 %v16181_v17  ;;  %v16885_v42 = vld [vmem:[%s16646_s30 + $0xd0] sm:$0xff]  ;;  %v16888_v43 = vld [vmem:[%s16646_s30 + $0xd8] sm:$0xff]  ;;  %v16910_v53 = vpack.c.bf16 %v465_v36, %v464_v35 }
  0x8d   : > { %384 = vst.msk [vmem:[#allocation2 + $0x121] sm:$0xff] %vm273_vm0, %v16851_v8  ;;  %22548 = vst [vmem:[#allocation37_spill] sm:$0xff] %v16865_v11  ;;  %v16891_v45 = vld [vmem:[%s16646_s30 + $0xe0] sm:$0xff]  ;;  %v16902_v47 = vld [vmem:[%s16646_s30 + $0xe8] sm:$0xff] }
  0x8e   : > { %22549 = vst [vmem:[#allocation38_spill] sm:$0xff] %v16868_v12  ;;  %385 = vst.msk [vmem:[#allocation2 + $0x129] sm:$0xff] %vm273_vm0, %v16860_v10  ;;  %v409_v48 = vld [vmem:[#allocation2 + $0xb0] sm:$0xff]  ;;  %v466_v49 = vld [vmem:[#allocation2 + $0xc1] sm:$0xff] }
  0x8f   : > { %386 = vst.msk [vmem:[#allocation2 + $0x139] sm:$0xff] %vm273_vm0, %v16865_v11  ;;  %387 = vst.msk [vmem:[#allocation2 + $0x141] sm:$0xff] %vm273_vm0, %v16868_v12  ;;  %v467_v50 = vld [vmem:[#allocation2 + $0xc9] sm:$0xff]  ;;  %14743 = vmatpush3.bf16.msra.mxu0 %v16181_v17  ;;  %v410_v51 = vld [vmem:[#allocation2 + $0xc0] sm:$0xff]  ;;  %v16912_v54 = vpack.c.bf16 %v409_v48, %v408_v41 }
  0x90   : > { %22550 = vst [vmem:[#allocation39_spill] sm:$0xff] %v16885_v42  ;;  %22551 = vst [vmem:[#allocation40_spill] sm:$0xff] %v16888_v43  ;;  %v411_v52 = vld [vmem:[#allocation2 + $0xc8] sm:$0xff]  ;;  %v16914_v59 = vpack.c.bf16 %v467_v50, %v466_v49  ;;  %v16184_v61 = vld [vmem:[#allocation6 + $0x68] sm:$0xff]  }
  0x91   : > { %14673 = vmatmul.mubr.msk.bf16.gmra.mxu0 %vm273_vm0, %v16853_v9  ;;  %22552 = vst [vmem:[#allocation41_spill] sm:$0xff] %v16891_v45  ;;  %388 = vst.msk [vmem:[#allocation2 + $0x151] sm:$0xff] %vm273_vm0, %v16885_v42  ;;  %v16916_v60 = vpack.c.bf16 %v411_v52, %v410_v51  ;;  %v468_v62 = vld [vmem:[#allocation2 + $0xd9] sm:$0xff]  ;;  %v469_v63 = vld [vmem:[#allocation2 + $0xe1] sm:$0xff]  ;;  %14780 = vmatprep.subr.bf16.mxu1 %v16184_v61 }
  0x92   : > { %14713 = vmatmul.mubr.msk.bf16.gmra.mxu1 %vm273_vm0, %v16870_v13  ;;  %14676 = vmatprep.mubr.msk.bf16.mxu0 %vm273_vm0, %v16872_v16  ;;  %389 = vst.msk [vmem:[#allocation2 + $0x159] sm:$0xff] %vm273_vm0, %v16888_v43  ;;  %22553 = vst [vmem:[#allocation42_spill] sm:$0xff] %v16902_v47  ;;  %v412_v0 = vld [vmem:[#allocation2 + $0xd8] sm:$0xff]  ;;  %v413_v1 = vld [vmem:[#allocation2 + $0xe0] sm:$0xff]  ;;  %v16926_v36 = vpack.c.bf16 %v469_v63, %v468_v62 }
  0x93   : > { %390 = vst.msk [vmem:[#allocation2 + $0x169] sm:$0xff] %vm273_vm0, %v16891_v45  ;;  %14716 = vmatprep.mubr.msk.bf16.mxu1 %vm273_vm0, %v16880_v30  ;;  %391 = vst.msk [vmem:[#allocation2 + $0x171] sm:$0xff] %vm273_vm0, %v16902_v47  ;;  %v470_v2 = vld [vmem:[#allocation2 + $0xf1] sm:$0xff]  ;;  %v471_v3 = vld [vmem:[#allocation2 + $0xf9] sm:$0xff]  ;;  %14781 = vmatpush3.bf16.msra.mxu1 %v16184_v61  ;;  %v16928_v38 = vpack.c.bf16 %v413_v1, %v412_v0 }
  0x94   : > { %v414_v17 = vld [vmem:[#allocation2 + $0xf0] sm:$0xff]  ;;  %v415_v34 = vld [vmem:[#allocation2 + $0xf8] sm:$0xff]  ;;  %v16930_v41 = vpack.c.bf16 %v471_v3, %v470_v2  ;;  %v16932_v48 = vld [vmem:[#allocation6 + $0x98] sm:$0xff]  }
  0x95   : > { %v16185_v35 = vld [vmem:[#allocation6 + $0x60] sm:$0xff]   ;;  %v16934_v49 = vpack.c.bf16 %v415_v34, %v414_v17  ;;  %14816 = vmatprep.subr.bf16.mxu0 %v16932_v48  ;;  %v416_v52 = vld [vmem:[#allocation2 + $0x108] sm:$0xff]  ;;  %v418_v0 = vld [vmem:[#allocation2 + $0x120] sm:$0xff] }
  0x96   : > { %14782 = vmatprep.subr.bf16.mxu1 %v16185_v35  ;;  %v472_v50 = vld [vmem:[#allocation2 + $0x109] sm:$0xff]  ;;  %v473_v51 = vld [vmem:[#allocation2 + $0x111] sm:$0xff]  ;;  %v474_v62 = vld [vmem:[#allocation2 + $0x121] sm:$0xff] }
  0x97   : > { %14783 = vmatpush3.bf16.msra.mxu1 %v16185_v35  ;;  %v417_v61 = vld [vmem:[#allocation2 + $0x110] sm:$0xff]  ;;  %v419_v1 = vld [vmem:[#allocation2 + $0x128] sm:$0xff]  ;;  %v16945_v2 = vpack.c.bf16 %v473_v51, %v472_v50  ;;  %v476_v35 = vld [vmem:[#allocation2 + $0x139] sm:$0xff] }
  0x98   : > { %v475_v63 = vld [vmem:[#allocation2 + $0x129] sm:$0xff]  ;;  %v16947_v3 = vpack.c.bf16 %v417_v61, %v416_v52  ;;  %v16951_v34 = vpack.c.bf16 %v419_v1, %v418_v0  ;;  %v477_v45 = vld [vmem:[#allocation2 + $0x141] sm:$0xff]  ;;  %v420_v43 = vld [vmem:[#allocation2 + $0x138] sm:$0xff] }
  0x99   : > { %14677 = vmatmul.mubr.msk.bf16.gmra.mxu0 %vm273_vm0, %v16910_v53  ;;  %v16949_v17 = vpack.c.bf16 %v475_v63, %v474_v62  ;;  %v421_v42 = vld [vmem:[#allocation2 + $0x140] sm:$0xff]  ;;  %v16190_v50 = vld [vmem:[#allocation6 + $0xb8] sm:$0xff]   ;;  %v478_v51 = vld [vmem:[#allocation2 + $0x151] sm:$0xff]  ;;  %v16961_v63 = vpack.c.bf16 %v477_v45, %v476_v35 }
  0x9a   : > { %14717 = vmatmul.mubr.msk.bf16.gmra.mxu1 %vm273_vm0, %v16912_v54  ;;  %14680 = vmatprep.mubr.msk.bf16.mxu0 %vm273_vm0, %v16914_v59  ;;  %v479_v52 = vld [vmem:[#allocation2 + $0x159] sm:$0xff]  ;;  %v422_v61 = vld [vmem:[#allocation2 + $0x150] sm:$0xff]  ;;  %v16967_v1 = vld [vmem:[%s16646_s30 + $0xf8] sm:$0xff]  ;;  %v16969_v12 = vpack.c.bf16 %v421_v42, %v420_v43 }
  0x9b   : > { %14720 = vmatprep.mubr.msk.bf16.mxu1 %vm273_vm0, %v16916_v60  ;;  %v423_v62 = vld [vmem:[#allocation2 + $0x158] sm:$0xff]  ;;  %14856 = vmatprep.subr.bf16.mxu1 %v16190_v50  ;;  %v16964_v0 = vld [vmem:[%s16646_s30 + $0xf0] sm:$0xff]  ;;  %22555 = vst [vmem:[#allocation44_spill] sm:$0xff] %v16967_v1  ;;  %v16971_v11 = vpack.c.bf16 %v479_v52, %v478_v51  ;;  %393 = vst.msk [vmem:[#allocation2 + $0x189] sm:$0xff] %vm273_vm0, %v16967_v1  ;;  %s16402_s30 = scalar_lea.vmem %s22368_s13, 4096 }
  0x9c   : > { %22554 = vst [vmem:[#allocation43_spill] sm:$0xff] %v16964_v0  ;;  %392 = vst.msk [vmem:[#allocation2 + $0x181] sm:$0xff] %vm273_vm0, %v16964_v0  ;;  %v16977_v10 = vpack.c.bf16 %v423_v62, %v422_v61  ;;  %v480_v8 = vld [vmem:[#allocation2 + $0x169] sm:$0xff]  ;;  %v481_v7 = vld [vmem:[#allocation2 + $0x171] sm:$0xff]  ;;  %p16403_p11 = scmp.ne.s32.totalorder %s22368_s13, %s16402_s30  ;;  %p16410_p12 = scmp.lt.s32.totalorder %s16408_s8, %s16402_s30 }
  0x9d   : > { %v424_v45 = vld [vmem:[#allocation2 + $0x168] sm:$0xff]  ;;  %v425_v35 = vld [vmem:[#allocation2 + $0x170] sm:$0xff]  ;;  %v16987_v51 = vpack.c.bf16 %v481_v7, %v480_v8  ;;  %v975_v62 = vld [vmem:[#allocation2 + $0x1a] sm:$0xff] }
  0x9e   : > { %v973_v42 = vld [vmem:[#allocation2 + $0x2] sm:$0xff]  ;;  %v974_v43 = vld [vmem:[#allocation2 + $0xa] sm:$0xff]  ;;  %v16989_v52 = vpack.c.bf16 %v425_v35, %v424_v45  ;;  %v977_v0 = vld [vmem:[#allocation2 + $0x32] sm:$0xff]  ;;  %p16404_p1 = pnand %p16403_p11, %p22986_p10  ;;  %p16411_p7 = por %p16410_p12, %p16409_p6 }
  0x9f   : > { %v1005_v61 = vpack.c.bf16 %v974_v43, %v973_v42  ;;  %v976_v1 = vld [vmem:[#allocation2 + $0x22] sm:$0xff]  ;;  %v978_v6 = vld [vmem:[#allocation2 + $0x3a] sm:$0xff]  ;;  %v979_v45 = vld [vmem:[#allocation2 + $0x4a] sm:$0xff] }
  0xa0   : > { %v16998_v7 = vpack.c.bf16 %v976_v1, %v975_v62  ;;  %v17000_v8 = vpack.c.bf16 %v978_v6, %v977_v0  ;;  %v980_v35 = vld [vmem:[#allocation2 + $0x52] sm:$0xff]  ;;  %v16187_v42 = vld [vmem:[#allocation6 + $0x90] sm:$0xff]   ;;  %v982_v5 = vld [vmem:[#allocation2 + $0x6a] sm:$0xff]  ;;  %p16405_p2 = pneg %p16404_p1 }
  0xa1   : > { %14681 = vmatmul.mubr.msk.bf16.gmra.mxu0 %vm273_vm0, %v16926_v36  ;;  %v981_v43 = vld [vmem:[#allocation2 + $0x62] sm:$0xff]  ;;  %v17011_v6 = vpack.c.bf16 %v980_v35, %v979_v45  ;;  %v16189_v62 = vld [vmem:[#allocation6 + $0x80] sm:$0xff]   ;;  %v986_v39 = vld [vmem:[#allocation2 + $0x9a] sm:$0xff] }
  0xa2   : > { %14721 = vmatmul.mubr.msk.bf16.gmra.mxu1 %vm273_vm0, %v16928_v38  ;;  %14684 = vmatprep.mubr.msk.bf16.mxu0 %vm273_vm0, %v16930_v41  ;;  %v16191_v4 = vld [vmem:[#allocation6 + $0xb0] sm:$0xff]   ;;  %v17013_v0 = vpack.c.bf16 %v982_v5, %v981_v43  ;;  %v17021_v5 = vld [vmem:[#allocation6 + $0xd8] sm:$0xff]   ;;  %v988_v35 = vld [vmem:[#allocation2 + $0xb2] sm:$0xff]  ;;  %p16412_p9 = pnand %p16411_p7, %p16405_p2 }
  0xa3   : > { %14724 = vmatprep.mubr.msk.bf16.mxu1 %vm273_vm0, %v16934_v49  ;;  %v984_v1 = vld [vmem:[#allocation2 + $0x82] sm:$0xff] }
  0xa9   : > { %14685 = vmatmul.mubr.msk.bf16.gmra.mxu0 %vm273_vm0, %v16945_v2 }
  0xaa   : > { %14725 = vmatmul.mubr.msk.bf16.gmra.mxu1 %vm273_vm0, %v16947_v3  ;;  %14688 = vmatprep.mubr.msk.bf16.mxu0 %vm273_vm0, %v16949_v17 }
  0xab   : > { %14728 = vmatprep.mubr.msk.bf16.mxu1 %vm273_vm0, %v16951_v34 }
  0xb1   : > { %14689 = vmatmul.mubr.msk.bf16.gmra.mxu0 %vm273_vm0, %v16961_v63 }
  0xb2   : > { %14729 = vmatmul.mubr.msk.bf16.gmra.mxu1 %vm273_vm0, %v16969_v12  ;;  %14692 = vmatprep.mubr.msk.bf16.mxu0 %vm273_vm0, %v16971_v11 }
  0xb3   : > { %14732 = vmatprep.mubr.msk.bf16.mxu1 %vm273_vm0, %v16977_v10 }
  0xb9   : > { %14693 = vmatmul.mubr.msk.bf16.gmra.mxu0 %vm273_vm0, %v16987_v51 }
  0xba   : > { %14733 = vmatmul.mubr.msk.bf16.gmra.mxu1 %vm273_vm0, %v16989_v52  ;;  %14744 = vmatprep.mubr.msk.bf16.mxu0 %vm273_vm0, %v1005_v61  ;;  %v16188_v61 = vld [vmem:[#allocation6 + $0x88] sm:$0xff]  }
  0xbb   : > { %14784 = vmatprep.mubr.msk.bf16.mxu1 %vm273_vm0, %v16802_v40  ;;  %v16192_v40 = vld [vmem:[#allocation6 + $0xa8] sm:$0xff]  }
  0xc1   : > { %14745 = vmatmul.mubr.msk.bf16.vlgmr.msra.gmra.mxu0 %vm273_vm0, %v16998_v7 }
  0xc2   : > { %14817 = vmatpush3.bf16.msra.mxu0 %v16932_v48  ;;  %14785 = vmatmul.mubr.msk.bf16.vlgmr.msra.gmra.mxu1 %vm273_vm0, %v16812_v46  ;;  %v983_v48 = vld [vmem:[#allocation2 + $0x7a] sm:$0xff]  ;;  %v985_v46 = vld [vmem:[#allocation2 + $0x92] sm:$0xff] }
  0xc3   : > { %14748 = vmatprep.mubr.msk.bf16.mxu0 %vm273_vm0, %v17000_v8  ;;  %14788 = vmatprep.mubr.msk.bf16.mxu1 %vm273_vm0, %v16820_v56  ;;  %v16193_v56 = vld [vmem:[#allocation6 + $0xa0] sm:$0xff]   ;;  %v17029_v45 = vpack.c.bf16 %v986_v39, %v985_v46 }
  0xc4   : > { %14818 = vmatprep.subr.bf16.mxu0 %v16187_v42  ;;  %14857 = vmatpush3.bf16.msra.mxu1 %v16190_v50  ;;  %v17027_v50 = vpack.c.bf16 %v984_v1, %v983_v48  ;;  %v990_v39 = vld [vmem:[#allocation2 + $0xca] sm:$0xff]  ;;  %v993_v48 = vld [vmem:[#allocation2 + $0xf2] sm:$0xff]  ;;  %v994_v1 = vld [vmem:[#allocation2 + $0xfa] sm:$0xff] }
  0xc5   : > { %14858 = vmatprep.subr.bf16.mxu1 %v16191_v4  ;;  %v996_v46 = vld [vmem:[#allocation2 + $0x112] sm:$0xff] }
  0xc6   : > { %14819 = vmatpush3.bf16.msra.mxu0 %v16187_v42 }
  0xc7   : > { %14820 = vmatprep.subr.bf16.mxu0 %v16188_v61 }
  0xc8   : > { %14859 = vmatpush3.bf16.msra.mxu1 %v16191_v4  ;;  %v17025_v4 = vld [vmem:[#allocation6 + $0xf8] sm:$0xff]  }
  0xc9   : > { %14749 = vmatmul.mubr.msk.bf16.gmra.mxu0 %vm273_vm0, %v17011_v6  ;;  %14860 = vmatprep.subr.bf16.mxu1 %v16192_v40 }
  0xca   : > { %14789 = vmatmul.mubr.msk.bf16.gmra.mxu1 %vm273_vm0, %v16824_v58  ;;  %14752 = vmatprep.mubr.msk.bf16.mxu0 %vm273_vm0, %v17013_v0  ;;  %v987_v58 = vld [vmem:[#allocation2 + $0xaa] sm:$0xff] }
  0xcb   : > { %14792 = vmatprep.mubr.msk.bf16.mxu1 %vm273_vm0, %v16870_v13  ;;  %14821 = vmatpush3.bf16.msra.mxu0 %v16188_v61  ;;  %v989_v13 = vld [vmem:[#allocation2 + $0xc2] sm:$0xff]  ;;  %v17041_v42 = vpack.c.bf16 %v988_v35, %v987_v58  ;;  %v991_v61 = vld [vmem:[#allocation2 + $0xda] sm:$0xff] }
  0xcc   : > { %14822 = vmatprep.subr.bf16.mxu0 %v16189_v62  ;;  %14861 = vmatpush3.bf16.msra.mxu1 %v16192_v40  ;;  %v17043_v43 = vpack.c.bf16 %v990_v39, %v989_v13  ;;  %v992_v40 = vld [vmem:[#allocation2 + $0xe2] sm:$0xff]  ;;  %v999_v35 = vld [vmem:[#allocation2 + $0x13a] sm:$0xff]  ;;  %v1001_v39 = vld [vmem:[#allocation2 + $0x152] sm:$0xff] }
  0xcd   : > { %14862 = vmatprep.subr.bf16.mxu1 %v16193_v56  ;;  %v1000_v13 = vld [vmem:[#allocation2 + $0x142] sm:$0xff] }
  0xcf   : > { %14823 = vmatpush3.bf16.msra.mxu0 %v16189_v62  ;;  %v995_v62 = vld [vmem:[#allocation2 + $0x10a] sm:$0xff] }
  0xd0   : > { %14863 = vmatpush3.bf16.msra.mxu1 %v16193_v56  ;;  %14896 = vmatprep.subr.bf16.mxu0 %v17021_v5  ;;  %v997_v56 = vld [vmem:[#allocation2 + $0x122] sm:$0xff] }
  0xd1   : > { %14753 = vmatmul.mubr.msk.bf16.gmra.mxu0 %vm273_vm0, %v17027_v50  ;;  %14936 = vmatprep.subr.bf16.mxu1 %v17025_v4 }
  0xd2   : > { %14793 = vmatmul.mubr.msk.bf16.gmra.mxu1 %vm273_vm0, %v16880_v30  ;;  %14756 = vmatprep.mubr.msk.bf16.mxu0 %vm273_vm0, %v17029_v45  ;;  %v17053_v30 = vpack.c.bf16 %v992_v40, %v991_v61  ;;  %v1002_v61 = vld [vmem:[#allocation2 + $0x15a] sm:$0xff]  ;;  %v1003_v40 = vld [vmem:[#allocation2 + $0x16a] sm:$0xff] }
  0xd3   : > { %14796 = vmatprep.mubr.msk.bf16.mxu1 %vm273_vm0, %v16912_v54  ;;  %v17055_v54 = vpack.c.bf16 %v994_v1, %v993_v48  ;;  %v1004_v48 = vld [vmem:[#allocation2 + $0x172] sm:$0xff]  ;;  %v1325_v1 = vld [vmem:[#allocation2 + $0x180] sm:$0xff] }
  0xd9   : > { %14757 = vmatmul.mubr.msk.bf16.gmra.mxu0 %vm273_vm0, %v17041_v42 }
  0xda   : > { %14797 = vmatmul.mubr.msk.bf16.gmra.mxu1 %vm273_vm0, %v16916_v60  ;;  %14760 = vmatprep.mubr.msk.bf16.mxu0 %vm273_vm0, %v17043_v43  ;;  %v998_v60 = vld [vmem:[#allocation2 + $0x12a] sm:$0xff] }
  0xdb   : > { %14800 = vmatprep.mubr.msk.bf16.mxu1 %vm273_vm0, %v16928_v38  ;;  %v17065_v38 = vpack.c.bf16 %v996_v46, %v995_v62  ;;  %v17067_v58 = vpack.c.bf16 %v998_v60, %v997_v56  ;;  %v1020_v62 = vpack.c.bf16 %v1004_v48, %v1003_v40  ;;  %v16203_v60 = vld [vmem:[#allocation6 + $0x110] sm:$0xff]   ;;  %v2270_v40 = vld [vmem:[#allocation2 + $0x90] sm:$0xff]  ;;  %v2271_v48 = vld [vmem:[#allocation2 + $0x98] sm:$0xff] }
  0xe1   : > { %14761 = vmatmul.mubr.msk.bf16.gmra.mxu0 %vm273_vm0, %v17053_v30 }
  0xe2   : > { %14801 = vmatmul.mubr.msk.bf16.gmra.mxu1 %vm273_vm0, %v16934_v49  ;;  %14764 = vmatprep.mubr.msk.bf16.mxu0 %vm273_vm0, %v17055_v54  ;;  %v1018_v49 = vpack.c.bf16 %v1000_v13, %v999_v35  ;;  %v2269_v13 = vld [vmem:[#allocation2 + $0x80] sm:$0xff] }
  0xe3   : > { %14804 = vmatprep.mubr.msk.bf16.mxu1 %vm273_vm0, %v16947_v3  ;;  %v1019_v3 = vpack.c.bf16 %v1002_v61, %v1001_v39  ;;  %v2590_v39 = vld [vmem:[#allocation2 + $0x79] sm:$0xff]  ;;  %v2591_v61 = vld [vmem:[#allocation2 + $0x81] sm:$0xff] }
  0xe9   : > { %14765 = vmatmul.mubr.msk.bf16.gmra.mxu0 %vm273_vm0, %v17065_v38 }
  0xea   : > { %14805 = vmatmul.mubr.msk.bf16.gmra.mxu1 %vm273_vm0, %v16951_v34  ;;  %14768 = vmatprep.mubr.msk.bf16.mxu0 %vm273_vm0, %v17067_v58  ;;  %v1326_v34 = vld [vmem:[#allocation2 + $0x188] sm:$0xff] }
  0xeb   : > { %14808 = vmatprep.mubr.msk.bf16.mxu1 %vm273_vm0, %v16969_v12  ;;  %v17083_v46 = vpack.c.bf16 %v1326_v34, %v1325_v1  ;;  %v16199_v12 = vld [vmem:[#allocation6 + $0xf0] sm:$0xff]   ;;  %v16204_v1 = vld [vmem:[#allocation6 + $0x108] sm:$0xff]  }
  0xf1   : > { %14769 = vmatmul.mubr.msk.bf16.gmra.mxu0 %vm273_vm0, %v1018_v49 }
  0xf2   : > { %14809 = vmatmul.mubr.msk.bf16.gmra.mxu1 %vm273_vm0, %v16977_v10  ;;  %14772 = vmatprep.mubr.msk.bf16.mxu0 %vm273_vm0, %v1019_v3  ;;  %v16195_v10 = vld [vmem:[#allocation6 + $0xd0] sm:$0xff]  }
  0xf3   : > { %14812 = vmatprep.mubr.msk.bf16.mxu1 %vm273_vm0, %v16989_v52  ;;  %v16196_v52 = vld [vmem:[#allocation6 + $0xc8] sm:$0xff]  }
  0xf9   : > { %14773 = vmatmul.mubr.msk.bf16.gmra.mxu0 %vm273_vm0, %v1020_v62 }
  0xfa   : > { %14813 = vmatmul.mubr.msk.bf16.gmra.mxu1 %vm273_vm0, %v17083_v46  ;;  %14824 = vmatprep.mubr.msk.bf16.mxu0 %vm273_vm0, %v16797_v37  ;;  %v16200_v37 = vld [vmem:[#allocation6 + $0xe8] sm:$0xff]  }
  0xfb   : > { %14864 = vmatprep.mubr.msk.bf16.mxu1 %vm273_vm0, %v16998_v7  ;;  %v16201_v7 = vld [vmem:[#allocation6 + $0xe0] sm:$0xff]  }
 0x101   : > { %14825 = vmatmul.mubr.msk.bf16.vlgmr.msra.gmra.mxu0 %vm273_vm0, %v16808_v44  ;;  %v16197_v44 = vld [vmem:[#allocation6 + $0xc0] sm:$0xff]  }
 0x102   : > { %14897 = vmatpush3.bf16.msra.mxu0 %v17021_v5  ;;  %14865 = vmatmul.mubr.msk.bf16.vlgmr.msra.gmra.mxu1 %vm273_vm0, %v17000_v8  ;;  %v2587_v5 = vld [vmem:[#allocation2 + $0x51] sm:$0xff] }
 0x103   : > { %14828 = vmatprep.mubr.msk.bf16.mxu0 %vm273_vm0, %v16818_v55  ;;  %14868 = vmatprep.mubr.msk.bf16.mxu1 %vm273_vm0, %v17011_v6  ;;  %v16202_v55 = vld [vmem:[#allocation6 + $0x118] sm:$0xff]   ;;  %v2265_v6 = vld [vmem:[#allocation2 + $0x50] sm:$0xff] }
 0x104   : > { %14898 = vmatprep.subr.bf16.mxu0 %v16195_v10  ;;  %14937 = vmatpush3.bf16.msra.mxu1 %v17025_v4  ;;  %v2266_v4 = vld [vmem:[#allocation2 + $0x60] sm:$0xff] }
 0x105   : > { %14938 = vmatprep.subr.bf16.mxu1 %v16199_v12 }
 0x106   : > { %14899 = vmatpush3.bf16.msra.mxu0 %v16195_v10  ;;  %v2593_v10 = vld [vmem:[#allocation2 + $0x99] sm:$0xff] }
 0x107   : > { %14900 = vmatprep.subr.bf16.mxu0 %v16196_v52 }
 0x108   : > { %14939 = vmatpush3.bf16.msra.mxu1 %v16199_v12 }
 0x109   : > { %14829 = vmatmul.mubr.msk.bf16.gmra.mxu0 %vm273_vm0, %v16822_v57  ;;  %14940 = vmatprep.subr.bf16.mxu1 %v16200_v37  ;;  %v1647_v57 = vld [vmem:[#allocation2 + $0x181] sm:$0xff] }
 0x10a   : > { %14869 = vmatmul.mubr.msk.bf16.gmra.mxu1 %vm273_vm0, %v17013_v0  ;;  %14832 = vmatprep.mubr.msk.bf16.mxu0 %vm273_vm0, %v16853_v9  ;;  %v1648_v9 = vld [vmem:[#allocation2 + $0x189] sm:$0xff] }
 0x10b   : > { %14872 = vmatprep.mubr.msk.bf16.mxu1 %vm273_vm0, %v17027_v50  ;;  %14901 = vmatpush3.bf16.msra.mxu0 %v16196_v52  ;;  %v2586_v0 = vld [vmem:[#allocation2 + $0x49] sm:$0xff] }
 0x10c   : > { %14902 = vmatprep.subr.bf16.mxu0 %v16197_v44  ;;  %14941 = vmatpush3.bf16.msra.mxu1 %v16200_v37  ;;  %v2267_v50 = vld [vmem:[#allocation2 + $0x68] sm:$0xff] }
 0x10d   : > { %14942 = vmatprep.subr.bf16.mxu1 %v16201_v7 }
 0x10f   : > { %14903 = vmatpush3.bf16.msra.mxu0 %v16197_v44 }
 0x110   : > { %14943 = vmatpush3.bf16.msra.mxu1 %v16201_v7  ;;  %14976 = vmatprep.subr.bf16.mxu0 %v16202_v55  ;;  %v2619_v7 = vpack.c.bf16 %v2591_v61, %v2590_v39 }
 0x111   : > { %14833 = vmatmul.mubr.msk.bf16.gmra.mxu0 %vm273_vm0, %v16872_v16  ;;  %v1969_v16 = vld [vmem:[#allocation2 + $0x182] sm:$0xff] }
 0x112   : > { %14873 = vmatmul.mubr.msk.bf16.gmra.mxu1 %vm273_vm0, %v17029_v45  ;;  %14836 = vmatprep.mubr.msk.bf16.mxu0 %vm273_vm0, %v16910_v53  ;;  %v1970_v53 = vld [vmem:[#allocation2 + $0x18a] sm:$0xff]  ;;  %v2588_v45 = vld [vmem:[#allocation2 + $0x61] sm:$0xff] }
 0x113   : > { %14876 = vmatprep.mubr.msk.bf16.mxu1 %vm273_vm0, %v17041_v42  ;;  %v2589_v42 = vld [vmem:[#allocation2 + $0x69] sm:$0xff] }
 0x114   : > { %v2618_v56 = vpack.c.bf16 %v2589_v42, %v2588_v45  ;;  %v2596_v42 = vld [vmem:[#allocation2 + $0xc1] sm:$0xff] }
 0x119   : > { %14837 = vmatmul.mubr.msk.bf16.gmra.mxu0 %vm273_vm0, %v16914_v59  ;;  %v2262_v59 = vld [vmem:[#allocation2 + $0x30] sm:$0xff] }
 0x11a   : > { %14877 = vmatmul.mubr.msk.bf16.gmra.mxu1 %vm273_vm0, %v17043_v43  ;;  %14840 = vmatprep.mubr.msk.bf16.mxu0 %vm273_vm0, %v16926_v36  ;;  %v2263_v36 = vld [vmem:[#allocation2 + $0x38] sm:$0xff] }
 0x11b   : > { %14880 = vmatprep.mubr.msk.bf16.mxu1 %vm273_vm0, %v17053_v30  ;;  %v2617_v30 = vpack.c.bf16 %v2587_v5, %v2586_v0  ;;  %v2595_v5 = vld [vmem:[#allocation2 + $0xb1] sm:$0xff] }
 0x121   : > { %14841 = vmatmul.mubr.msk.bf16.gmra.mxu0 %vm273_vm0, %v16930_v41  ;;  %v2584_v41 = vld [vmem:[#allocation2 + $0x31] sm:$0xff] }
 0x122   : > { %14881 = vmatmul.mubr.msk.bf16.gmra.mxu1 %vm273_vm0, %v17055_v54  ;;  %14844 = vmatprep.mubr.msk.bf16.mxu0 %vm273_vm0, %v16945_v2  ;;  %v2585_v2 = vld [vmem:[#allocation2 + $0x39] sm:$0xff]  ;;  %v2296_v54 = vpack.c.bf16 %v2267_v50, %v2266_v4  ;;  %v2275_v50 = vld [vmem:[#allocation2 + $0xc8] sm:$0xff] }
 0x123   : > { %14884 = vmatprep.mubr.msk.bf16.mxu1 %vm273_vm0, %v17065_v38  ;;  %v2616_v8 = vpack.c.bf16 %v2585_v2, %v2584_v41  ;;  %v2274_v4 = vld [vmem:[#allocation2 + $0xc0] sm:$0xff] }
 0x129   : > { %14845 = vmatmul.mubr.msk.bf16.gmra.mxu0 %vm273_vm0, %v16949_v17  ;;  %v17147_v17 = vpack.c.bf16 %v1648_v9, %v1647_v57 }
 0x12a   : > { %14885 = vmatmul.mubr.msk.bf16.gmra.mxu1 %vm273_vm0, %v17067_v58  ;;  %14848 = vmatprep.mubr.msk.bf16.mxu0 %vm273_vm0, %v16961_v63  ;;  %v17149_v63 = vpack.c.bf16 %v1970_v53, %v1969_v16  ;;  %v2268_v58 = vld [vmem:[#allocation2 + $0x78] sm:$0xff] }
 0x12b   : > { %14888 = vmatprep.mubr.msk.bf16.mxu1 %vm273_vm0, %v1018_v49  ;;  %v2297_v37 = vpack.c.bf16 %v2269_v13, %v2268_v58  ;;  %v2300_v58 = vpack.c.bf16 %v2275_v50, %v2274_v4 }
 0x131   : > { %14849 = vmatmul.mubr.msk.bf16.gmra.mxu0 %vm273_vm0, %v16971_v11  ;;  %v2294_v11 = vpack.c.bf16 %v2263_v36, %v2262_v59  ;;  %v16205_v59 = vld [vmem:[#allocation6 + $0x100] sm:$0xff]  }
 0x132   : > { %14889 = vmatmul.mubr.msk.bf16.gmra.mxu1 %vm273_vm0, %v1019_v3  ;;  %14852 = vmatprep.mubr.msk.bf16.mxu0 %vm273_vm0, %v16987_v51  ;;  %v2264_v51 = vld [vmem:[#allocation2 + $0x48] sm:$0xff] }
 0x133   : > { %14892 = vmatprep.mubr.msk.bf16.mxu1 %vm273_vm0, %v1020_v62  ;;  %v2295_v43 = vpack.c.bf16 %v2265_v6, %v2264_v51  ;;  %v2592_v62 = vld [vmem:[#allocation2 + $0x91] sm:$0xff]  ;;  %v2594_v51 = vld [vmem:[#allocation2 + $0xa9] sm:$0xff] }
 0x134   : > { %v2620_v16 = vpack.c.bf16 %v2593_v10, %v2592_v62  ;;  %v2598_v62 = vld [vmem:[#allocation2 + $0xd9] sm:$0xff] }
 0x139   : > { %14853 = vmatmul.mubr.msk.bf16.gmra.mxu0 %vm273_vm0, %v17147_v17 }
 0x13a   : > { %14893 = vmatmul.mubr.msk.bf16.gmra.mxu1 %vm273_vm0, %v17149_v63  ;;  %14904 = vmatprep.mubr.msk.bf16.mxu0 %vm273_vm0, %v2294_v11  ;;  %v2272_v11 = vld [vmem:[#allocation2 + $0xa8] sm:$0xff] }
 0x13b   : > { %14944 = vmatprep.mubr.msk.bf16.mxu1 %vm273_vm0, %v2616_v8  ;;  %v2273_v8 = vld [vmem:[#allocation2 + $0xb0] sm:$0xff] }
 0x141   : > { %v14666_v38 = vpop.f32.mrf.mxu0  ;;  %14905 = vmatmul.mubr.msk.bf16.vlgmr.msra.gmra.mxu0 %vm273_vm0, %v2295_v43  ;;  %v2597_v43 = vld [vmem:[#allocation2 + $0xc9] sm:$0xff] }
 0x142   : > { %v14706_v35 = vpop.f32.mrf.mxu1  ;;  %14977 = vmatpush3.bf16.msra.mxu0 %v16202_v55  ;;  %14945 = vmatmul.mubr.msk.bf16.vlgmr.msra.gmra.mxu1 %vm273_vm0, %v2617_v30  ;;  %v2298_v55 = vpack.c.bf16 %v2271_v48, %v2270_v40  ;;  %v2622_v39 = vpack.c.bf16 %v2597_v43, %v2596_v42  ;;  %v2280_v43 = vld [vmem:[#allocation2 + $0x108] sm:$0xff] }
 0x143   : > { %v17159_v49 = vadd.f32 %v14706_v35, %v14666_v38  ;;  %v613_v3 = vpop.f32.mrf.mxu0  ;;  %14908 = vmatprep.mubr.msk.bf16.mxu0 %vm273_vm0, %v2296_v54  ;;  %14948 = vmatprep.mubr.msk.bf16.mxu1 %vm273_vm0, %v2618_v56  ;;  %v2299_v56 = vpack.c.bf16 %v2273_v8, %v2272_v11  ;;  %v2621_v38 = vpack.c.bf16 %v2595_v5, %v2594_v51 }
 0x144   : > { %v846_v34 = vpop.f32.mrf.mxu1  ;;  %14978 = vmatprep.subr.bf16.mxu0 %v16203_v60 }
 0x145   : > { %v17163_v12 = vadd.f32 %v846_v34, %v613_v3  ;;  %v14667_v52 = vpop.f32.mrf.mxu0  ;;  %v2277_v34 = vld [vmem:[#allocation2 + $0xe0] sm:$0xff] }
 0x146   : > { %v14707_v44 = vpop.f32.mrf.mxu1  ;;  %14979 = vmatpush3.bf16.msra.mxu0 %v16203_v60 }
 0x147   : > { %v17165_v57 = vadd.f32 %v14707_v44, %v14667_v52  ;;  %v616_v9 = vpop.f32.mrf.mxu0  ;;  %14980 = vmatprep.subr.bf16.mxu0 %v16204_v1  ;;  %v2278_v44 = vld [vmem:[#allocation2 + $0xf0] sm:$0xff] }
 0x148   : > { %v849_v53 = vpop.f32.mrf.mxu1 }
 0x149   : > { %v17167_v36 = vadd.f32 %v849_v53, %v616_v9  ;;  %v14670_v41 = vpop.f32.mrf.mxu0  ;;  %14909 = vmatmul.mubr.msk.bf16.gmra.mxu0 %vm273_vm0, %v2297_v37  ;;  %v2599_v37 = vld [vmem:[#allocation2 + $0xe1] sm:$0xff]  ;;  %v2600_v9 = vld [vmem:[#allocation2 + $0xf1] sm:$0xff] }
 0x14a   : > { %v14710_v2 = vpop.f32.mrf.mxu1  ;;  %14949 = vmatmul.mubr.msk.bf16.gmra.mxu1 %vm273_vm0, %v2619_v7  ;;  %14912 = vmatprep.mubr.msk.bf16.mxu0 %vm273_vm0, %v2298_v55  ;;  %v2279_v7 = vld [vmem:[#allocation2 + $0xf8] sm:$0xff]  ;;  %v2623_v11 = vpack.c.bf16 %v2599_v37, %v2598_v62 }
 0x14b   : > { %v17172_v6 = vadd.f32 %v14710_v2, %v14670_v41  ;;  %v629_v0 = vpop.f32.mrf.mxu0  ;;  %14952 = vmatprep.mubr.msk.bf16.mxu1 %vm273_vm0, %v2620_v16  ;;  %14981 = vmatpush3.bf16.msra.mxu0 %v16204_v1  ;;  %v2276_v1 = vld [vmem:[#allocation2 + $0xd8] sm:$0xff]  ;;  %v2302_v8 = vpack.c.bf16 %v2279_v7, %v2278_v44 }
 0x14c   : > { %v862_v45 = vpop.f32.mrf.mxu1  ;;  %14982 = vmatprep.subr.bf16.mxu0 %v16205_v59  ;;  %v2601_v16 = vld [vmem:[#allocation2 + $0xf9] sm:$0xff]  ;;  %v2301_v41 = vpack.c.bf16 %v2277_v34, %v2276_v1 }
 0x14d   : > { %v17175_v30 = vadd.f32 %v862_v45, %v629_v0  ;;  %v14671_v54 = vpop.f32.mrf.mxu0  ;;  %v2624_v5 = vpack.c.bf16 %v2601_v16, %v2600_v9 }
 0x14e   : > { %v14711_v60 = vpop.f32.mrf.mxu1 }
 0x14f   : > { %v17177_v35 = vadd.f32 %v14711_v60, %v14671_v54  ;;  %v632_v13 = vpop.f32.mrf.mxu0  ;;  %14983 = vmatpush3.bf16.msra.mxu0 %v16205_v59  ;;  %v2281_v54 = vld [vmem:[#allocation2 + $0x110] sm:$0xff] }
 0x150   : > { %v865_v61 = vpop.f32.mrf.mxu1  ;;  %v2303_v62 = vpack.c.bf16 %v2281_v54, %v2280_v43  ;;  %v2287_v43 = vld [vmem:[#allocation2 + $0x158] sm:$0xff] }
 0x151   : > { %v17179_v3 = vadd.f32 %v865_v61, %v632_v13  ;;  %v14674_v40 = vpop.f32.mrf.mxu0  ;;  %14913 = vmatmul.mubr.msk.bf16.gmra.mxu0 %vm273_vm0, %v2299_v56  ;;  %v2602_v56 = vld [vmem:[#allocation2 + $0x109] sm:$0xff]  ;;  %v2282_v13 = vld [vmem:[#allocation2 + $0x120] sm:$0xff] }
 0x152   : > { %v14714_v48 = vpop.f32.mrf.mxu1  ;;  %14953 = vmatmul.mubr.msk.bf16.gmra.mxu1 %vm273_vm0, %v2621_v38  ;;  %14916 = vmatprep.mubr.msk.bf16.mxu0 %vm273_vm0, %v2300_v58  ;;  %v2603_v58 = vld [vmem:[#allocation2 + $0x111] sm:$0xff] }
 0x153   : > { %v17184_v10 = vadd.f32 %v14714_v48, %v14674_v40  ;;  %v645_v52 = vpop.f32.mrf.mxu0  ;;  %14956 = vmatprep.mubr.msk.bf16.mxu1 %vm273_vm0, %v2622_v39  ;;  %v2283_v39 = vld [vmem:[#allocation2 + $0x128] sm:$0xff]  ;;  %v2625_v37 = vpack.c.bf16 %v2603_v58, %v2602_v56  ;;  %v2608_v56 = vld [vmem:[#allocation2 + $0x151] sm:$0xff] }
 0x154   : > { %v878_v55 = vpop.f32.mrf.mxu1  ;;  %v2604_v40 = vld [vmem:[#allocation2 + $0x121] sm:$0xff]  ;;  %v2605_v48 = vld [vmem:[#allocation2 + $0x129] sm:$0xff]  ;;  %v2304_v44 = vpack.c.bf16 %v2283_v39, %v2282_v13 }
 0x155   : > { %v17187_v53 = vadd.f32 %v878_v55, %v645_v52  ;;  %v14675_v59 = vpop.f32.mrf.mxu0  ;;  %v2626_v9 = vpack.c.bf16 %v2605_v48, %v2604_v40 }
 0x156   : > { %v14715_v2 = vpop.f32.mrf.mxu1 }
 0x157   : > { %v17189_v51 = vadd.f32 %v14715_v2, %v14675_v59  ;;  %v648_v0 = vpop.f32.mrf.mxu0 }
 0x158   : > { %v881_v4 = vpop.f32.mrf.mxu1 }
 0x159   : > { %v17191_v50 = vadd.f32 %v881_v4, %v648_v0  ;;  %v14678_v45 = vpop.f32.mrf.mxu0  ;;  %14917 = vmatmul.mubr.msk.bf16.gmra.mxu0 %vm273_vm0, %v2301_v41  ;;  %v2606_v0 = vld [vmem:[#allocation2 + $0x139] sm:$0xff] }
 0x15a   : > { %v14718_v42 = vpop.f32.mrf.mxu1  ;;  %14957 = vmatmul.mubr.msk.bf16.gmra.mxu1 %vm273_vm0, %v2623_v11  ;;  %14920 = vmatprep.mubr.msk.bf16.mxu0 %vm273_vm0, %v2302_v8  ;;  %v2284_v11 = vld [vmem:[#allocation2 + $0x138] sm:$0xff]  ;;  %v2285_v8 = vld [vmem:[#allocation2 + $0x140] sm:$0xff] }
 0x15b   : > { %v17196_v60 = vadd.f32 %v14718_v42, %v14678_v45  ;;  %v661_v38 = vpop.f32.mrf.mxu0  ;;  %14960 = vmatprep.mubr.msk.bf16.mxu1 %vm273_vm0, %v2624_v5  ;;  %v2607_v45 = vld [vmem:[#allocation2 + $0x141] sm:$0xff]  ;;  %v2286_v42 = vld [vmem:[#allocation2 + $0x150] sm:$0xff]  ;;  %v2305_v39 = vpack.c.bf16 %v2285_v8, %v2284_v11 }
 0x15c   : > { %v894_v61 = vpop.f32.mrf.mxu1  ;;  %v2627_v40 = vpack.c.bf16 %v2607_v45, %v2606_v0  ;;  %v2306_v48 = vpack.c.bf16 %v2287_v43, %v2286_v42  ;;  %v2610_v11 = vld [vmem:[#allocation2 + $0x169] sm:$0xff]  ;;  %v2611_v8 = vld [vmem:[#allocation2 + $0x171] sm:$0xff] }
 0x15d   : > { %v17199_v1 = vadd.f32 %v894_v61, %v661_v38  ;;  %v14679_v34 = vpop.f32.mrf.mxu0  ;;  %v2609_v38 = vld [vmem:[#allocation2 + $0x159] sm:$0xff] }
 0x15e   : > { %v14719_v52 = vpop.f32.mrf.mxu1 }
 0x15f   : > { %v17201_v7 = vadd.f32 %v14719_v52, %v14679_v34  ;;  %v664_v55 = vpop.f32.mrf.mxu0  ;;  %v2628_v52 = vpack.c.bf16 %v2609_v38, %v2608_v56 }
 0x160   : > { %v897_v16 = vpop.f32.mrf.mxu1 }
 0x161   : > { %v17203_v59 = vadd.f32 %v897_v16, %v664_v55  ;;  %v14682_v41 = vpop.f32.mrf.mxu0  ;;  %14921 = vmatmul.mubr.msk.bf16.gmra.mxu0 %vm273_vm0, %v2303_v62  ;;  %v2289_v16 = vld [vmem:[#allocation2 + $0x170] sm:$0xff] }
 0x162   : > { %v14722_v2 = vpop.f32.mrf.mxu1  ;;  %14961 = vmatmul.mubr.msk.bf16.gmra.mxu1 %vm273_vm0, %v2625_v37  ;;  %14924 = vmatprep.mubr.msk.bf16.mxu0 %vm273_vm0, %v2304_v44 }
 0x163   : > { %v17208_v5 = vadd.f32 %v14722_v2, %v14682_v41  ;;  %v677_v4 = vpop.f32.mrf.mxu0  ;;  %14964 = vmatprep.mubr.msk.bf16.mxu1 %vm273_vm0, %v2626_v9  ;;  %v2288_v9 = vld [vmem:[#allocation2 + $0x168] sm:$0xff] }
 0x164   : > { %v910_v54 = vpop.f32.mrf.mxu1  ;;  %v2307_v42 = vpack.c.bf16 %v2289_v16, %v2288_v9  ;;  %v2615_v9 = vld [vmem:[#allocation2 + $0x1a1] sm:$0xff]  ;;  %v2906_v16 = vld [vmem:[#allocation2 + $0x32] sm:$0xff] }
 0x165   : > { %v17211_v58 = vadd.f32 %v910_v54, %v677_v4  ;;  %v14683_v13 = vpop.f32.mrf.mxu0  ;;  %v2629_v54 = vpack.c.bf16 %v2611_v8, %v2610_v11 }
 0x166   : > { %v14723_v61 = vpop.f32.mrf.mxu1 }
 0x167   : > { %v17213_v34 = vadd.f32 %v14723_v61, %v14683_v13  ;;  %v17215_v62 = vpop.f32.mrf.mxu0 }
 0x168   : > { %v17217_v37 = vpop.f32.mrf.mxu1 }
 0x169   : > { %v14686_v44 = vpop.f32.mrf.mxu0  ;;  %14925 = vmatmul.mubr.msk.bf16.gmra.mxu0 %vm273_vm0, %v2305_v39 }
 0x16a   : > { %v14726_v55 = vpop.f32.mrf.mxu1  ;;  %14965 = vmatmul.mubr.msk.bf16.gmra.mxu1 %vm273_vm0, %v2627_v40  ;;  %14928 = vmatprep.mubr.msk.bf16.mxu0 %vm273_vm0, %v2306_v48  ;;  %v2292_v40 = vld [vmem:[#allocation2 + $0x198] sm:$0xff]  ;;  %v2293_v48 = vld [vmem:[#allocation2 + $0x1a0] sm:$0xff] }
 0x16b   : > { %v17222_v41 = vadd.f32 %v14726_v55, %v14686_v44  ;;  %v693_v2 = vpop.f32.mrf.mxu0  ;;  %14968 = vmatprep.mubr.msk.bf16.mxu1 %vm273_vm0, %v2628_v52  ;;  %v2614_v52 = vld [vmem:[#allocation2 + $0x199] sm:$0xff] }
 0x16c   : > { %v926_v0 = vpop.f32.mrf.mxu1 }
 0x16d   : > { %v17225_v4 = vadd.f32 %v926_v0, %v693_v2  ;;  %v14687_v45 = vpop.f32.mrf.mxu0  ;;  %v2907_v2 = vld [vmem:[#allocation2 + $0x3a] sm:$0xff] }
 0x16e   : > { %v14727_v43 = vpop.f32.mrf.mxu1 }
 0x16f   : > { %v17227_v56 = vadd.f32 %v14727_v43, %v14687_v45  ;;  %v17229_v38 = vpop.f32.mrf.mxu0  ;;  %v2309_v45 = vpack.c.bf16 %v2293_v48, %v2292_v40  ;;  %v2631_v43 = vpack.c.bf16 %v2615_v9, %v2614_v52  ;;  %v2910_v52 = vld [vmem:[#allocation2 + $0x62] sm:$0xff]  ;;  %v2911_v9 = vld [vmem:[#allocation2 + $0x6a] sm:$0xff] }
 0x170   : > { %22556 = vst [vmem:[#allocation45_spill] sm:$0xff] %v17229_v38  ;;  %v17231_v13 = vpop.f32.mrf.mxu1  ;;  %v2940_v31 = vpack.c.bf16 %v2911_v9, %v2910_v52 }
 0x171   : > { %22557 = vst [vmem:[#allocation46_spill] sm:$0xff] %v17231_v13  ;;  %v14690_v39 = vpop.f32.mrf.mxu0  ;;  %14929 = vmatmul.mubr.msk.bf16.gmra.mxu0 %vm273_vm0, %v2307_v42 }
 0x172   : > { %v14730_v61 = vpop.f32.mrf.mxu1  ;;  %14969 = vmatmul.mubr.msk.bf16.gmra.mxu1 %vm273_vm0, %v2629_v54  ;;  %14932 = vmatprep.mubr.msk.bf16.mxu0 %vm273_vm0, %v17083_v46  ;;  %v2938_v46 = vpack.c.bf16 %v2907_v2, %v2906_v16 }
 0x173   : > { %v17237_v44 = vadd.f32 %v14730_v61, %v14690_v39  ;;  %v709_v55 = vpop.f32.mrf.mxu0  ;;  %14972 = vmatprep.mubr.msk.bf16.mxu1 %vm273_vm0, %v17147_v17 }
 0x174   : > { %v942_v11 = vpop.f32.mrf.mxu1 }
 0x175   : > { %v17241_v8 = vadd.f32 %v942_v11, %v709_v55  ;;  %v14691_v0 = vpop.f32.mrf.mxu0  ;;  %v2908_v55 = vld [vmem:[#allocation2 + $0x4a] sm:$0xff]  ;;  %v2909_v11 = vld [vmem:[#allocation2 + $0x52] sm:$0xff] }
 0x176   : > { %v14731_v42 = vpop.f32.mrf.mxu1 }
 0x177   : > { %v17243_v54 = vadd.f32 %v14731_v42, %v14691_v0  ;;  %v17245_v33 = vpop.f32.mrf.mxu0  ;;  %v2939_v42 = vpack.c.bf16 %v2909_v11, %v2908_v55  ;;  %v2914_v55 = vld [vmem:[#allocation2 + $0x92] sm:$0xff]  ;;  %v2915_v11 = vld [vmem:[#allocation2 + $0x9a] sm:$0xff] }
 0x178   : > { %22558 = vst [vmem:[#allocation47_spill] sm:$0xff] %v17245_v33  ;;  %v17247_v39 = vpop.f32.mrf.mxu1 }
 0x179   : > { %22559 = vst [vmem:[#allocation48_spill] sm:$0xff] %v17247_v39  ;;  %v14694_v61 = vpop.f32.mrf.mxu0  ;;  %14933 = vmatmul.mubr.msk.bf16.gmra.mxu0 %vm273_vm0, %v2309_v45 }
 0x17a   : > { %v14734_v17 = vpop.f32.mrf.mxu1  ;;  %14973 = vmatmul.mubr.msk.bf16.gmra.mxu1 %vm273_vm0, %v2631_v43  ;;  %14984 = vmatprep.mubr.msk.bf16.mxu0 %vm273_vm0, %v2938_v46 }
 0x17b   : > { %v17252_v40 = vadd.f32 %v14734_v17, %v14694_v61  ;;  %v725_v48 = vpop.f32.mrf.mxu0 }
 0x17c   : > { %v958_v16 = vpop.f32.mrf.mxu1 }
 0x17d   : > { %v17254_v2 = vadd.f32 %v958_v16, %v725_v48  ;;  %v14695_v0 = vpop.f32.mrf.mxu0  ;;  %v2912_v48 = vld [vmem:[#allocation2 + $0x7a] sm:$0xff]  ;;  %v2913_v16 = vld [vmem:[#allocation2 + $0x82] sm:$0xff] }
 0x17e   : > { %v14735_v32 = vpop.f32.mrf.mxu1  ;;  %v2941_v27 = vpack.c.bf16 %v2913_v16, %v2912_v48  ;;  %v2918_v16 = vld [vmem:[#allocation2 + $0xc2] sm:$0xff] }
 0x17f   : > { %v17256_v45 = vadd.f32 %v14735_v32, %v14695_v0  ;;  %v17258_v29 = vpop.f32.mrf.mxu0 }
 0x180   : > { %22560 = vst [vmem:[#allocation49_spill] sm:$0xff] %v17258_v29  ;;  %v17260_v43 = vpop.f32.mrf.mxu1 }
 0x181   : > { %22561 = vst [vmem:[#allocation50_spill] sm:$0xff] %v17260_v43  ;;  %v14746_v46 = vpop.f32.mrf.mxu0  ;;  %14985 = vmatmul.mubr.msk.bf16.vlgmr.msra.gmra.mxu0 %vm273_vm0, %v2939_v42 }
 0x182   : > { %v1265_v61 = vadd.f32 %v14746_v46, %v17159_v49  ;;  %v14786_v17 = vpop.f32.mrf.mxu1  ;;  %14988 = vmatprep.mubr.msk.bf16.mxu0 %vm273_vm0, %v2940_v31  ;;  %v2942_v46 = vpack.c.bf16 %v2915_v11, %v2914_v55  ;;  %v2919_v55 = vld [vmem:[#allocation2 + $0xca] sm:$0xff] }
 0x183   : > { %v1136_v28 = vpop.f32.mrf.mxu0 }
 0x184   : > { %v1263_v32 = vadd.f32 %v1136_v28, %v17163_v12  ;;  %v17266_v52 = vadd.f32 %v14786_v17, %v1265_v61  ;;  %v1458_v9 = vpop.f32.mrf.mxu1  ;;  %v2917_v17 = vld [vmem:[#allocation2 + $0xb2] sm:$0xff] }
 0x185   : > { %v14747_v0 = vpop.f32.mrf.mxu0 }
 0x186   : > { %v1266_v26 = vadd.f32 %v14747_v0, %v17165_v57  ;;  %v17269_v42 = vadd.f32 %v1458_v9, %v1263_v32  ;;  %v14787_v49 = vpop.f32.mrf.mxu1  ;;  %v2916_v57 = vld [vmem:[#allocation2 + $0xaa] sm:$0xff]  ;;  %v2944_v0 = vpack.c.bf16 %v2919_v55, %v2918_v16  ;;  %v2923_v16 = vld [vmem:[#allocation2 + $0xfa] sm:$0xff] }
 0x187   : > { %v1139_v25 = vpop.f32.mrf.mxu0  ;;  %v2943_v32 = vpack.c.bf16 %v2917_v17, %v2916_v57  ;;  %v2921_v57 = vld [vmem:[#allocation2 + $0xe2] sm:$0xff] }
 0x188   : > { %v17272_v31 = vadd.f32 %v1139_v25, %v17167_v36  ;;  %v17274_v24 = vadd.f32 %v14787_v49, %v1266_v26  ;;  %v17276_v23 = vpop.f32.mrf.mxu1 }
 0x189   : > { %v14750_v28 = vpop.f32.mrf.mxu0  ;;  %14989 = vmatmul.mubr.msk.bf16.gmra.mxu0 %vm273_vm0, %v2941_v27 }
 0x18a   : > { %v1269_v12 = vadd.f32 %v14750_v28, %v17172_v6  ;;  %v14790_v61 = vpop.f32.mrf.mxu1  ;;  %14992 = vmatprep.mubr.msk.bf16.mxu0 %vm273_vm0, %v2942_v46 }
 0x18b   : > { %v1152_v48 = vpop.f32.mrf.mxu0 }
 0x18c   : > { %v1267_v25 = vadd.f32 %v1152_v48, %v17175_v30  ;;  %v17282_v36 = vadd.f32 %v14790_v61, %v1269_v12  ;;  %v1474_v26 = vpop.f32.mrf.mxu1  ;;  %v2922_v48 = vld [vmem:[#allocation2 + $0xf2] sm:$0xff] }
 0x18d   : > { %v14751_v11 = vpop.f32.mrf.mxu0 }
 0x18e   : > { %v1270_v9 = vadd.f32 %v14751_v11, %v17177_v35  ;;  %v17285_v27 = vadd.f32 %v1474_v26, %v1267_v25  ;;  %v14791_v6 = vpop.f32.mrf.mxu1  ;;  %v2920_v35 = vld [vmem:[#allocation2 + $0xda] sm:$0xff] }
 0x18f   : > { %v1155_v49 = vpop.f32.mrf.mxu0  ;;  %v2945_v11 = vpack.c.bf16 %v2921_v57, %v2920_v35  ;;  %v2925_v35 = vld [vmem:[#allocation2 + $0x112] sm:$0xff] }
 0x190   : > { %v17288_v46 = vadd.f32 %v1155_v49, %v17179_v3  ;;  %v17290_v28 = vadd.f32 %v14791_v6, %v1270_v9  ;;  %v17292_v22 = vpop.f32.mrf.mxu1  ;;  %v2946_v6 = vpack.c.bf16 %v2923_v16, %v2922_v48  ;;  %v2927_v48 = vld [vmem:[#allocation2 + $0x12a] sm:$0xff] }
 0x191   : > { %v14754_v30 = vpop.f32.mrf.mxu0  ;;  %14993 = vmatmul.mubr.msk.bf16.gmra.mxu0 %vm273_vm0, %v2943_v32 }
 0x192   : > { %v1273_v12 = vadd.f32 %v14754_v30, %v17184_v10  ;;  %v14794_v61 = vpop.f32.mrf.mxu1  ;;  %14996 = vmatprep.mubr.msk.bf16.mxu0 %vm273_vm0, %v2944_v0 }
 0x193   : > { %v1168_v17 = vpop.f32.mrf.mxu0 }
 0x194   : > { %v1271_v3 = vadd.f32 %v1168_v17, %v17187_v53  ;;  %v17298_v55 = vadd.f32 %v14794_v61, %v1273_v12  ;;  %v1490_v25 = vpop.f32.mrf.mxu1  ;;  %v2926_v17 = vld [vmem:[#allocation2 + $0x122] sm:$0xff] }
 0x195   : > { %v14755_v26 = vpop.f32.mrf.mxu0 }
 0x196   : > { %v1274_v9 = vadd.f32 %v14755_v26, %v17189_v51  ;;  %v17301_v32 = vadd.f32 %v1490_v25, %v1271_v3  ;;  %v14795_v10 = vpop.f32.mrf.mxu1  ;;  %v2924_v51 = vld [vmem:[#allocation2 + $0x10a] sm:$0xff] }
 0x197   : > { %v1171_v49 = vpop.f32.mrf.mxu0  ;;  %v2947_v26 = vpack.c.bf16 %v2925_v35, %v2924_v51  ;;  %v2929_v51 = vld [vmem:[#allocation2 + $0x142] sm:$0xff] }
 0x198   : > { %v17304_v0 = vadd.f32 %v1171_v49, %v17191_v50  ;;  %v17306_v30 = vadd.f32 %v14795_v10, %v1274_v9  ;;  %v17308_v21 = vpop.f32.mrf.mxu1  ;;  %v2948_v10 = vpack.c.bf16 %v2927_v48, %v2926_v17  ;;  %v2931_v17 = vld [vmem:[#allocation2 + $0x15a] sm:$0xff] }
 0x199   : > { %v14758_v53 = vpop.f32.mrf.mxu0  ;;  %14997 = vmatmul.mubr.msk.bf16.gmra.mxu0 %vm273_vm0, %v2945_v11 }
 0x19a   : > { %v1277_v12 = vadd.f32 %v14758_v53, %v17196_v60  ;;  %v14798_v61 = vpop.f32.mrf.mxu1  ;;  %15000 = vmatprep.mubr.msk.bf16.mxu0 %vm273_vm0, %v2946_v6 }
 0x19b   : > { %v1184_v57 = vpop.f32.mrf.mxu0 }
 0x19c   : > { %v1275_v50 = vadd.f32 %v1184_v57, %v17199_v1  ;;  %v17314_v16 = vadd.f32 %v14798_v61, %v1277_v12  ;;  %v1506_v3 = vpop.f32.mrf.mxu1  ;;  %v2930_v57 = vld [vmem:[#allocation2 + $0x152] sm:$0xff] }
 0x19d   : > { %v14759_v25 = vpop.f32.mrf.mxu0 }
 0x19e   : > { %v1278_v9 = vadd.f32 %v14759_v25, %v17201_v7  ;;  %v17317_v11 = vadd.f32 %v1506_v3, %v1275_v50  ;;  %v14799_v60 = vpop.f32.mrf.mxu1  ;;  %v2928_v7 = vld [vmem:[#allocation2 + $0x13a] sm:$0xff] }
 0x19f   : > { %v1187_v49 = vpop.f32.mrf.mxu0  ;;  %v2949_v25 = vpack.c.bf16 %v2929_v51, %v2928_v7 }
 0x1a0   : > { %v17320_v6 = vadd.f32 %v1187_v49, %v17203_v59  ;;  %v17322_v53 = vadd.f32 %v14799_v60, %v1278_v9  ;;  %v17324_v20 = vpop.f32.mrf.mxu1  ;;  %v2950_v60 = vpack.c.bf16 %v2931_v17, %v2930_v57 }
 0x1a1   : > { %v14762_v1 = vpop.f32.mrf.mxu0  ;;  %15001 = vmatmul.mubr.msk.bf16.gmra.mxu0 %vm273_vm0, %v2947_v26 }
 0x1a2   : > { %v1281_v12 = vadd.f32 %v14762_v1, %v17208_v5  ;;  %v14802_v61 = vpop.f32.mrf.mxu1  ;;  %15004 = vmatprep.mubr.msk.bf16.mxu0 %vm273_vm0, %v2948_v10 }
 0x1a3   : > { %v1200_v35 = vpop.f32.mrf.mxu0 }
 0x1a4   : > { %v1279_v59 = vadd.f32 %v1200_v35, %v17211_v58  ;;  %v17330_v48 = vadd.f32 %v14802_v61, %v1281_v12  ;;  %v1522_v50 = vpop.f32.mrf.mxu1  ;;  %v2932_v61 = vld [vmem:[#allocation2 + $0x16a] sm:$0xff] }
 0x1a5   : > { %v14763_v3 = vpop.f32.mrf.mxu0 }
 0x1a6   : > { %v1282_v9 = vadd.f32 %v14763_v3, %v17213_v34  ;;  %v17333_v26 = vadd.f32 %v1522_v50, %v1279_v59  ;;  %v14803_v5 = vpop.f32.mrf.mxu1  ;;  %v2933_v34 = vld [vmem:[#allocation2 + $0x172] sm:$0xff] }
 0x1a7   : > { %v17335_v49 = vpop.f32.mrf.mxu0  ;;  %v2951_v59 = vpack.c.bf16 %v2933_v34, %v2932_v61 }
 0x1a8   : > { %v17337_v10 = vadd.f32 %v14803_v5, %v1282_v9  ;;  %v17339_v1 = vpop.f32.mrf.mxu1 }
 0x1a9   : > { %22562 = vst [vmem:[#allocation51_spill] sm:$0xff] %v17339_v1  ;;  %v14766_v19 = vpop.f32.mrf.mxu0  ;;  %15005 = vmatmul.mubr.msk.bf16.gmra.mxu0 %vm273_vm0, %v2949_v25 }
 0x1aa   : > { %v1285_v58 = vadd.f32 %v14766_v19, %v17222_v41  ;;  %v14806_v12 = vpop.f32.mrf.mxu1  ;;  %15008 = vmatprep.mubr.msk.bf16.mxu0 %vm273_vm0, %v2950_v60 }
 0x1ab   : > { %v1216_v7 = vpop.f32.mrf.mxu0 }
 0x1ac   : > { %v1283_v51 = vadd.f32 %v1216_v7, %v17225_v4  ;;  %v17345_v35 = vadd.f32 %v14806_v12, %v1285_v58  ;;  %v1538_v57 = vpop.f32.mrf.mxu1  ;;  %v2936_v58 = vld [vmem:[#allocation2 + $0x19a] sm:$0xff] }
 0x1ad   : > { %v14767_v17 = vpop.f32.mrf.mxu0 }
 0x1ae   : > { %v1286_v50 = vadd.f32 %v14767_v17, %v17227_v56  ;;  %v17348_v3 = vadd.f32 %v1538_v57, %v1283_v51  ;;  %v14807_v25 = vpop.f32.mrf.mxu1  ;;  %v2937_v56 = vld [vmem:[#allocation2 + $0x1a2] sm:$0xff] }
 0x1af   : > { %v17350_v9 = vpop.f32.mrf.mxu0  ;;  %v2953_v57 = vpack.c.bf16 %v2937_v56, %v2936_v58 }
 0x1b0   : > { %22563 = vst [vmem:[#allocation52_spill] sm:$0xff] %v17350_v9  ;;  %v17352_v19 = vadd.f32 %v14807_v25, %v1286_v50  ;;  %v17354_v41 = vpop.f32.mrf.mxu1 }
 0x1b1   : > { %22564 = vst [vmem:[#allocation53_spill] sm:$0xff] %v17354_v41  ;;  %v14770_v5 = vpop.f32.mrf.mxu0  ;;  %15009 = vmatmul.mubr.msk.bf16.gmra.mxu0 %vm273_vm0, %v2951_v59 }
 0x1b2   : > { %v1289_v4 = vadd.f32 %v14770_v5, %v17237_v44  ;;  %v14810_v60 = vpop.f32.mrf.mxu1  ;;  %15012 = vmatprep.mubr.msk.bf16.mxu0 %vm273_vm0, %v17149_v63 }
 0x1b3   : > { %v1232_v12 = vpop.f32.mrf.mxu0 }
 0x1b4   : > { %v1287_v61 = vadd.f32 %v1232_v12, %v17241_v8  ;;  %v17361_v34 = vadd.f32 %v14810_v60, %v1289_v4  ;;  %v1554_v7 = vpop.f32.mrf.mxu1 }
 0x1b5   : > { %v14771_v51 = vpop.f32.mrf.mxu0 }
 0x1b6   : > { %v1290_v17 = vadd.f32 %v14771_v51, %v17243_v54  ;;  %v17364_v50 = vadd.f32 %v1554_v7, %v1287_v61  ;;  %v14811_v59 = vpop.f32.mrf.mxu1 }
 0x1b7   : > { %v17366_v44 = vpop.f32.mrf.mxu0 }
 0x1b8   : > { %22565 = vst [vmem:[#allocation54_spill] sm:$0xff] %v17366_v44  ;;  %v17368_v25 = vadd.f32 %v14811_v59, %v1290_v17  ;;  %v17370_v63 = vpop.f32.mrf.mxu1 }
 0x1b9   : > { %22566 = vst [vmem:[#allocation55_spill] sm:$0xff] %v17370_v63  ;;  %v14774_v5 = vpop.f32.mrf.mxu0  ;;  %15013 = vmatmul.mubr.msk.bf16.gmra.mxu0 %vm273_vm0, %v2953_v57 }
 0x1ba   : > { %v1293_v8 = vadd.f32 %v14774_v5, %v17252_v40  ;;  %v14814_v4 = vpop.f32.mrf.mxu1 }
 0x1bb   : > { %v1248_v60 = vpop.f32.mrf.mxu0 }
 0x1bc   : > { %v1291_v58 = vadd.f32 %v1248_v60, %v17254_v2  ;;  %v17375_v56 = vadd.f32 %v14814_v4, %v1293_v8  ;;  %v1570_v54 = vpop.f32.mrf.mxu1 }
 0x1bd   : > { %v14775_v12 = vpop.f32.mrf.mxu0 }
 0x1be   : > { %v1294_v61 = vadd.f32 %v14775_v12, %v17256_v45  ;;  %v17378_v7 = vadd.f32 %v1570_v54, %v1291_v58  ;;  %v14815_v51 = vpop.f32.mrf.mxu1 }
 0x1bf   : > { %v17380_v17 = vpop.f32.mrf.mxu0 }
 0x1c0   : > { %22567 = vst [vmem:[#allocation56_spill] sm:$0xff] %v17380_v17  ;;  %v17382_v59 = vadd.f32 %v14815_v51, %v1294_v61  ;;  %v17384_v57 = vpop.f32.mrf.mxu1 }
 0x1c1   : > { %22568 = vst [vmem:[#allocation57_spill] sm:$0xff] %v17384_v57  ;;  %v14826_v40 = vpop.f32.mrf.mxu0 }
 0x1c2   : > { %v1909_v5 = vadd.f32 %v14826_v40, %v17266_v52  ;;  %v14866_v18 = vpop.f32.mrf.mxu1 }
 0x1c3   : > { %v1780_v2 = vpop.f32.mrf.mxu0 }
 0x1c4   : > { %v1907_v8 = vadd.f32 %v1780_v2, %v17269_v42  ;;  %v17388_v4 = vadd.f32 %v14866_v18, %v1909_v5  ;;  %v2102_v60 = vpop.f32.mrf.mxu1 }
 0x1c5   : > { %v14827_v45 = vpop.f32.mrf.mxu0 }
 0x1c6   : > { %v1910_v58 = vadd.f32 %v14827_v45, %v17274_v24  ;;  %v17391_v54 = vadd.f32 %v2102_v60, %v1907_v8  ;;  %v14867_v12 = vpop.f32.mrf.mxu1 }
 0x1c7   : > { %v17393_v61 = vpop.f32.mrf.mxu0 }
 0x1c8   : > { %v17395_v51 = vadd.f32 %v14867_v12, %v1910_v58  ;;  %v17397_v15 = vpop.f32.mrf.mxu1 }
 0x1c9   : > { %v14830_v52 = vpop.f32.mrf.mxu0 }
 0x1ca   : > { %v1913_v40 = vadd.f32 %v14830_v52, %v17282_v36  ;;  %v14870_v14 = vpop.f32.mrf.mxu1 }
 0x1cb   : > { %v1796_v42 = vpop.f32.mrf.mxu0 }
 0x1cc   : > { %v17401_v18 = vadd.f32 %v1796_v42, %v17285_v27  ;;  %v17403_v5 = vadd.f32 %v14870_v14, %v1913_v40  ;;  %v17405_v24 = vpop.f32.mrf.mxu1 }
 0x1cd   : > { %v14831_v2 = vpop.f32.mrf.mxu0 }
 0x1ce   : > { %v1914_v8 = vadd.f32 %v14831_v2, %v17290_v28  ;;  %v14871_v60 = vpop.f32.mrf.mxu1 }
 0x1cf   : > { %v17408_v45 = vpop.f32.mrf.mxu0 }
 0x1d0   : > { %v17410_v58 = vadd.f32 %v14871_v60, %v1914_v8  ;;  %v17412_v12 = vpop.f32.mrf.mxu1 }
 0x1d1   : > { %v14834_v36 = vpop.f32.mrf.mxu0 }
 0x1d2   : > { %v1917_v52 = vadd.f32 %v14834_v36, %v17298_v55  ;;  %v14874_v47 = vpop.f32.mrf.mxu1 }
 0x1d3   : > { %v1812_v27 = vpop.f32.mrf.mxu0 }
 0x1d4   : > { %v17416_v14 = vadd.f32 %v1812_v27, %v17301_v32  ;;  %v17418_v40 = vadd.f32 %v14874_v47, %v1917_v52  ;;  %v17420_v42 = vpop.f32.mrf.mxu1 }
 0x1d5   : > { %v14835_v28 = vpop.f32.mrf.mxu0 }
 0x1d6   : > { %v1918_v2 = vadd.f32 %v14835_v28, %v17306_v30  ;;  %v14875_v57 = vpop.f32.mrf.mxu1 }
 0x1d7   : > { %v17423_v8 = vpop.f32.mrf.mxu0 }
 0x1d8   : > { %v17425_v60 = vadd.f32 %v14875_v57, %v1918_v2  ;;  %v17427_v17 = vpop.f32.mrf.mxu1 }
 0x1d9   : > { %v14838_v55 = vpop.f32.mrf.mxu0 }
 0x1da   : > { %v1921_v36 = vadd.f32 %v14838_v55, %v17314_v16  ;;  %v14878_v43 = vpop.f32.mrf.mxu1 }
 0x1db   : > { %v1828_v32 = vpop.f32.mrf.mxu0 }
 0x1dc   : > { %v17431_v47 = vadd.f32 %v1828_v32, %v17317_v11  ;;  %v17433_v52 = vadd.f32 %v14878_v43, %v1921_v36  ;;  %v17435_v27 = vpop.f32.mrf.mxu1 }
 0x1dd   : > { %v14839_v30 = vpop.f32.mrf.mxu0 }
 0x1de   : > { %v1922_v28 = vadd.f32 %v14839_v30, %v17322_v53  ;;  %v14879_v29 = vpop.f32.mrf.mxu1 }
 0x1df   : > { %v17438_v57 = vpop.f32.mrf.mxu0 }
 0x1e0   : > { %v17440_v2 = vadd.f32 %v14879_v29, %v1922_v28  ;;  %v17442_v63 = vpop.f32.mrf.mxu1 }
 0x1e1   : > { %22569 = vst [vmem:[#allocation58_spill] sm:$0xff] %v17442_v63  ;;  %v14842_v16 = vpop.f32.mrf.mxu0 }
 0x1e2   : > { %v1925_v55 = vadd.f32 %v14842_v16, %v17330_v48  ;;  %v14882_v44 = vpop.f32.mrf.mxu1 }
 0x1e3   : > { %v1844_v11 = vpop.f32.mrf.mxu0 }
 0x1e4   : > { %v17446_v43 = vadd.f32 %v1844_v11, %v17333_v26  ;;  %v17448_v36 = vadd.f32 %v14882_v44, %v1925_v55  ;;  %v17450_v32 = vpop.f32.mrf.mxu1 }
 0x1e5   : > { %22571 = vst [vmem:[#allocation60_spill] sm:$0xff] %v17450_v32  ;;  %v14843_v53 = vpop.f32.mrf.mxu0 }
 0x1e6   : > { %22570 = vst [vmem:[#allocation59_spill] sm:$0xff] %v17446_v43  ;;  %v1926_v30 = vadd.f32 %v14843_v53, %v17337_v10  ;;  %v14883_v39 = vpop.f32.mrf.mxu1 }
 0x1e7   : > { %v17453_v29 = vpop.f32.mrf.mxu0 }
 0x1e8   : > { %22572 = vst [vmem:[#allocation61_spill] sm:$0xff] %v17453_v29  ;;  %v17455_v28 = vadd.f32 %v14883_v39, %v1926_v30  ;;  %v17457_v33 = vpop.f32.mrf.mxu1 }
 0x1e9   : > { %22573 = vst [vmem:[#allocation62_spill] sm:$0xff] %v17457_v33  ;;  %v14846_v48 = vpop.f32.mrf.mxu0 }
 0x1ea   : > { %v1929_v16 = vadd.f32 %v14846_v48, %v17345_v35  ;;  %v14886_v41 = vpop.f32.mrf.mxu1 }
 0x1eb   : > { %v1860_v26 = vpop.f32.mrf.mxu0 }
 0x1ec   : > { %v17461_v44 = vadd.f32 %v1860_v26, %v17348_v3  ;;  %v17463_v55 = vadd.f32 %v14886_v41, %v1929_v16  ;;  %v17465_v11 = vpop.f32.mrf.mxu1 }
 0x1ed   : > { %22575 = vst [vmem:[#allocation64_spill] sm:$0xff] %v17465_v11  ;;  %v14847_v10 = vpop.f32.mrf.mxu0 }
 0x1ee   : > { %22574 = vst [vmem:[#allocation63_spill] sm:$0xff] %v17461_v44  ;;  %v1930_v53 = vadd.f32 %v14847_v10, %v17352_v19  ;;  %v14887_v9 = vpop.f32.mrf.mxu1 }
 0x1ef   : > { %v17468_v39 = vpop.f32.mrf.mxu0 }
 0x1f0   : > { %22576 = vst [vmem:[#allocation65_spill] sm:$0xff] %v17468_v39  ;;  %v17470_v30 = vadd.f32 %v14887_v9, %v1930_v53  ;;  %v17472_v33 = vpop.f32.mrf.mxu1 }
 0x1f1   : > { %22577 = vst [vmem:[#allocation66_spill] sm:$0xff] %v17472_v33  ;;  %v14850_v35 = vpop.f32.mrf.mxu0 }
 0x1f2   : > { %v1933_v48 = vadd.f32 %v14850_v35, %v17361_v34  ;;  %v14890_v29 = vpop.f32.mrf.mxu1 }
 0x1f3   : > { %v1876_v3 = vpop.f32.mrf.mxu0 }
 0x1f4   : > { %v17476_v41 = vadd.f32 %v1876_v3, %v17364_v50  ;;  %v17478_v16 = vadd.f32 %v14890_v29, %v1933_v48  ;;  %v17480_v26 = vpop.f32.mrf.mxu1 }
 0x1f5   : > { %22579 = vst [vmem:[#allocation68_spill] sm:$0xff] %v17480_v26  ;;  %v14851_v19 = vpop.f32.mrf.mxu0 }
 0x1f6   : > { %22578 = vst [vmem:[#allocation67_spill] sm:$0xff] %v17476_v41  ;;  %v1934_v10 = vadd.f32 %v14851_v19, %v17368_v25  ;;  %v14891_v39 = vpop.f32.mrf.mxu1 }
 0x1f7   : > { %v17483_v9 = vpop.f32.mrf.mxu0 }
 0x1f8   : > { %22580 = vst [vmem:[#allocation69_spill] sm:$0xff] %v17483_v9  ;;  %v17485_v53 = vadd.f32 %v14891_v39, %v1934_v10  ;;  %v17487_v33 = vpop.f32.mrf.mxu1 }
 0x1f9   : > { %22581 = vst [vmem:[#allocation70_spill] sm:$0xff] %v17487_v33  ;;  %v14854_v34 = vpop.f32.mrf.mxu0 }
 0x1fa   : > { %v1937_v35 = vadd.f32 %v14854_v34, %v17375_v56  ;;  %v14894_v11 = vpop.f32.mrf.mxu1 }
 0x1fb   : > { %v1892_v50 = vpop.f32.mrf.mxu0 }
 0x1fc   : > { %v17491_v29 = vadd.f32 %v1892_v50, %v17378_v7  ;;  %v17493_v48 = vadd.f32 %v14894_v11, %v1937_v35  ;;  %v17495_v3 = vpop.f32.mrf.mxu1 }
 0x1fd   : > { %22583 = vst [vmem:[#allocation72_spill] sm:$0xff] %v17495_v3  ;;  %v14855_v25 = vpop.f32.mrf.mxu0 }
 0x1fe   : > { %22582 = vst [vmem:[#allocation71_spill] sm:$0xff] %v17491_v29  ;;  %v1938_v19 = vadd.f32 %v14855_v25, %v17382_v59  ;;  %v14895_v9 = vpop.f32.mrf.mxu1 }
 0x1ff   : > { %v17498_v39 = vpop.f32.mrf.mxu0 }
 0x200   : > { %22584 = vst [vmem:[#allocation73_spill] sm:$0xff] %v17498_v39  ;;  %v17500_v10 = vadd.f32 %v14895_v9, %v1938_v19  ;;  %v17502_v33 = vpop.f32.mrf.mxu1 }
 0x201   : > { %22585 = vst [vmem:[#allocation74_spill] sm:$0xff] %v17502_v33  ;;  %v14906_v56 = vpop.f32.mrf.mxu0 }
 0x202   : > { %v17505_v34 = vadd.f32 %v14906_v56, %v17388_v4  ;;  %v17507_v7 = vpop.f32.mrf.mxu1 }
 0x203   : > { %v2425_v11 = vpop.f32.mrf.mxu0 }
 0x204   : > { %v17510_v35 = vadd.f32 %v2425_v11, %v17391_v54  ;;  %v17512_v50 = vpop.f32.mrf.mxu1 }
 0x205   : > { %v14907_v59 = vpop.f32.mrf.mxu0 }
 0x206   : > { %v17515_v25 = vadd.f32 %v14907_v59, %v17395_v51  ;;  %v17519_v19 = vpop.f32.mrf.mxu1 }
 0x207   : > { %v17517_v9 = vpop.f32.mrf.mxu0 }
 0x208   : > { %v17524_v56 = vpop.f32.mrf.mxu1 }
 0x209   : > { %v14910_v33 = vpop.f32.mrf.mxu0 }
 0x20a   : > { %v17522_v4 = vadd.f32 %v14910_v33, %v17403_v5  ;;  %v17531_v3 = vpop.f32.mrf.mxu1 }
 0x20b   : > { %v17526_v39 = vpop.f32.mrf.mxu0 }
 0x20c   : > { %v17538_v26 = vpop.f32.mrf.mxu1 }
 0x20d   : > { %v14911_v54 = vpop.f32.mrf.mxu0 }
 0x20e   : > { %v17529_v11 = vadd.f32 %v14911_v54, %v17410_v58  ;;  %v17545_v44 = vpop.f32.mrf.mxu1 }
 0x20f   : > { %v17533_v51 = vpop.f32.mrf.mxu0 }
 0x210   : > { %v17552_v43 = vpop.f32.mrf.mxu1 }
 0x211   : > { %v14914_v59 = vpop.f32.mrf.mxu0 }
 0x212   : > { %v17536_v29 = vadd.f32 %v14914_v59, %v17418_v40  ;;  %v17559_v38 = vpop.f32.mrf.mxu1 }
 0x213   : > { %v17540_v33 = vpop.f32.mrf.mxu0 }
 0x214   : > { %v17566_v63 = vpop.f32.mrf.mxu1 }
 0x215   : > { %v14915_v5 = vpop.f32.mrf.mxu0 }
 0x216   : > { %v17543_v41 = vadd.f32 %v14915_v5, %v17425_v60 }
 0x217   : > { %v17547_v58 = vpop.f32.mrf.mxu0 }
 0x219   : > { %v14918_v54 = vpop.f32.mrf.mxu0 }
 0x21a   : > { %v17550_v32 = vadd.f32 %v14918_v54, %v17433_v52 }
 0x21b   : > { %v17554_v40 = vpop.f32.mrf.mxu0 }
 0x21c   : > { %22586 = vst [vmem:[#allocation75_spill] sm:$0xff] %v17550_v32  ;;  %22587 = vst [vmem:[#allocation76_spill] sm:$0xff] %v17554_v40  ;;  %v17573_v40 = vpop.f32.mrf.mxu1 }
 0x21d   : > { %v14919_v59 = vpop.f32.mrf.mxu0 }
 0x21e   : > { %v17557_v13 = vadd.f32 %v14919_v59, %v17440_v2 }
 0x21f   : > { %v17561_v60 = vpop.f32.mrf.mxu0 }
 0x220   : > { %22588 = vst [vmem:[#allocation77_spill] sm:$0xff] %v17557_v13  ;;  %22589 = vst [vmem:[#allocation78_spill] sm:$0xff] %v17561_v60  ;;  %v17580_v60 = vpop.f32.mrf.mxu1 }
 0x221   : > { %v14922_v5 = vpop.f32.mrf.mxu0 }
 0x222   : > { %v17564_v1 = vadd.f32 %v14922_v5, %v17448_v36 }
 0x223   : > { %v17568_v52 = vpop.f32.mrf.mxu0 }
 0x224   : > { %22590 = vst [vmem:[#allocation79_spill] sm:$0xff] %v17564_v1  ;;  %22591 = vst [vmem:[#allocation80_spill] sm:$0xff] %v17568_v52  ;;  %v17587_v52 = vpop.f32.mrf.mxu1 }
 0x225   : > { %v14923_v54 = vpop.f32.mrf.mxu0 }
 0x226   : > { %v17571_v32 = vadd.f32 %v14923_v54, %v17455_v28 }
 0x227   : > { %v17575_v2 = vpop.f32.mrf.mxu0 }
 0x228   : > { %22592 = vst [vmem:[#allocation81_spill] sm:$0xff] %v17571_v32  ;;  %22593 = vst [vmem:[#allocation82_spill] sm:$0xff] %v17575_v2  ;;  %v17594_v2 = vpop.f32.mrf.mxu1 }
 0x229   : > { %v14926_v59 = vpop.f32.mrf.mxu0 }
 0x22a   : > { %v17578_v13 = vadd.f32 %v14926_v59, %v17463_v55 }
 0x22b   : > { %v17582_v36 = vpop.f32.mrf.mxu0 }
 0x22c   : > { %22594 = vst [vmem:[#allocation83_spill] sm:$0xff] %v17578_v13  ;;  %22595 = vst [vmem:[#allocation84_spill] sm:$0xff] %v17582_v36  ;;  %v17601_v36 = vpop.f32.mrf.mxu1 }
 0x22d   : > { %v14927_v5 = vpop.f32.mrf.mxu0 }
 0x22e   : > { %v17585_v1 = vadd.f32 %v14927_v5, %v17470_v30 }
 0x22f   : > { %v17589_v28 = vpop.f32.mrf.mxu0 }
 0x230   : > { %22596 = vst [vmem:[#allocation85_spill] sm:$0xff] %v17585_v1  ;;  %22597 = vst [vmem:[#allocation86_spill] sm:$0xff] %v17589_v28  ;;  %v1586_v1 = vadd.f32 %v17276_v23, %v17272_v31  ;;  %v1590_v31 = vadd.f32 %v17292_v22, %v17288_v46  ;;  %v2877_v22 = vadd.f32 %v17519_v19, %v17515_v25 }
 0x231   : > { %v14930_v54 = vpop.f32.mrf.mxu0  ;;  %v1594_v19 = vadd.f32 %v17308_v21, %v17304_v0 }
 0x232   : > { %v17592_v32 = vadd.f32 %v14930_v54, %v17478_v16  ;;  %v17610_v16 = vpop.f32.mrf.mxu1 }
 0x233   : > { %v17596_v55 = vpop.f32.mrf.mxu0 }
 0x234   : > { %22598 = vst [vmem:[#allocation87_spill] sm:$0xff] %v17592_v32  ;;  %22599 = vst [vmem:[#allocation88_spill] sm:$0xff] %v17596_v55  ;;  %v1908_v32 = vadd.f32 %v17393_v61, %v1586_v1 }
 0x235   : > { %v14931_v59 = vpop.f32.mrf.mxu0 }
 0x236   : > { %v17599_v13 = vadd.f32 %v14931_v59, %v17485_v53  ;;  %v17618_v59 = vpop.f32.mrf.mxu1 }
 0x237   : > { %v17603_v30 = vpop.f32.mrf.mxu0 }
 0x238   : > { %22600 = vst [vmem:[#allocation89_spill] sm:$0xff] %v17599_v13  ;;  %22601 = vst [vmem:[#allocation90_spill] sm:$0xff] %v17603_v30  ;;  %v2230_v30 = vadd.f32 %v17397_v15, %v1908_v32  ;;  %v17628_v1 = vpop.f32.mrf.mxu1  ;;  %v2876_v15 = vadd.f32 %v17507_v7, %v17505_v34 }
 0x239   : > { %v14934_v5 = vpop.f32.mrf.mxu0 }
 0x23a   : > { %v17608_v28 = vadd.f32 %v14934_v5, %v17493_v48  ;;  %v2874_v48 = vadd.f32 %v17512_v50, %v17510_v35  ;;  %v2553_v5 = vadd.f32 %v17517_v9, %v2230_v30  ;;  %v17639_v9 = vpop.f32.mrf.mxu1 }
 0x23b   : > { %v17612_v54 = vpop.f32.mrf.mxu0 }
 0x23c   : > { %v2875_v46 = vadd.f32 %v17524_v56, %v2553_v5  ;;  %v17665_v21 = vpop.f32.mrf.mxu1 }
 0x23d   : > { %v14935_v55 = vpop.f32.mrf.mxu0 }
 0x23e   : > { %v17616_v53 = vadd.f32 %v14935_v55, %v17500_v10  ;;  %v2233_v10 = vadd.f32 %v17405_v24, %v17401_v18  ;;  %v1912_v55 = vadd.f32 %v17408_v45, %v1590_v31  ;;  %v17644_v18 = vld [vmem:[%s22441_s2] ss:$0 sm:$0xff] }
 0x23f   : > { %v17620_v13 = vpop.f32.mrf.mxu0 }
 0x240   : > { %22602 = vst [vmem:[#allocation91_spill] sm:$0xff] %v17616_v53  ;;  %v2556_v35 = vadd.f32 %v17526_v39, %v2233_v10  ;;  %v2234_v45 = vadd.f32 %v17412_v12, %v1912_v55  ;;  %v2237_v12 = vadd.f32 %v17420_v42, %v17416_v14  ;;  %v2881_v14 = vadd.f32 %v17545_v44, %v17529_v11 }
 0x241   : > { %v14986_v23 = vpop.f32.mrf.mxu0 }
 0x242   : > { %v3198_v50 = vadd.f32 %v14986_v23, %v2876_v15  ;;  %v2878_v56 = vadd.f32 %v17538_v26, %v2556_v35  ;;  %v2557_v30 = vadd.f32 %v17533_v51, %v2234_v45  ;;  %v2560_v42 = vadd.f32 %v17540_v33, %v2237_v12 }
 0x243   : > { %v3069_v61 = vpop.f32.mrf.mxu0 }
 0x244   : > { %v3196_v32 = vadd.f32 %v3069_v61, %v2874_v48  ;;  %v17655_v23 = vadd.f32 %v17644_v18, %v3198_v50  ;;  %v2880_v48 = vadd.f32 %v17531_v3, %v17522_v4  ;;  %v2879_v4 = vadd.f32 %v17552_v43, %v2557_v30 }
 0x245   : > { %v14987_v53 = vpop.f32.mrf.mxu0  ;;  %v1598_v43 = vadd.f32 %v17324_v20, %v17320_v6  ;;  %v2882_v50 = vadd.f32 %v17566_v63, %v2560_v42  ;;  %v2241_v20 = vadd.f32 %v17435_v27, %v17431_v47  ;;  %v2884_v30 = vadd.f32 %v17559_v38, %v17536_v29  ;;  %v22603_v47 = vld [vmem:[#allocation76_spill] sm:$0xff]  ;;  %v22604_v42 = vld [vmem:[#allocation58_spill] sm:$0xff] }
 0x246   : > { %v17648_v34 = vadd.f32 %v17644_v18, %v3196_v32  ;;  %v3199_v7 = vadd.f32 %v14987_v53, %v2877_v22  ;;  %v1916_v53 = vadd.f32 %v17423_v8, %v1594_v19  ;;  %v3268_v10 = vsel %vm273_vm0, %v17655_v23, 0.0  ;;  %v17683_v32 = vpop.f32.mrf.mxu1 }
 0x247   : > { %v3072_v24 = vpop.f32.mrf.mxu0  ;;  %v1920_v6 = vadd.f32 %v17438_v57, %v1598_v43  ;;  %v2564_v27 = vadd.f32 %v22603_v47, %v2241_v20  ;;  %v22607_v43 = vld [vmem:[#allocation45_spill] sm:$0xff] }
 0x248   : > { %v3197_v25 = vadd.f32 %v3072_v24, %v2875_v46  ;;  %v3265_v26 = vsel %vm273_vm0, %v17648_v34, 0.0  ;;  %v17670_v51 = vadd.f32 %v17644_v18, %v3199_v7  ;;  %v2238_v35 = vadd.f32 %v17427_v17, %v1916_v53  ;;  %v17705_v63 = vpop.f32.mrf.mxu1 }
 0x249   : > { %v14990_v39 = vpop.f32.mrf.mxu0 }
 0x24a   : > { %v17658_v31 = vadd.f32 %v17644_v18, %v3197_v25  ;;  %v3202_v55 = vadd.f32 %v14990_v39, %v2880_v48  ;;  %v3270_v44 = vsel %vm273_vm0, %v17670_v51, 0.0  ;;  %v2561_v7 = vadd.f32 %v17547_v58, %v2238_v35 }
 0x24b   : > { %v3085_v0 = vpop.f32.mrf.mxu0  ;;  %v914_v39 = vadd.f32 %v17217_v37, %v17215_v62  ;;  %v2885_v37 = vadd.f32 %v17573_v40, %v17543_v41 }
 0x24c   : > { %v3266_v5 = vsel %vm273_vm0, %v17658_v31, 0.0  ;;  %v3200_v61 = vadd.f32 %v3085_v0, %v2878_v56  ;;  %v17693_v25 = vadd.f32 %v17644_v18, %v3202_v55 }
 0x24d   : > { %v3267_v8 = vadd.f32 %v3266_v5, %v3265_v26  ;;  %v14991_v3 = vpop.f32.mrf.mxu0  ;;  %v1280_v62 = vadd.f32 %v17335_v49, %v914_v39  ;;  %v2883_v26 = vadd.f32 %v17580_v60, %v2561_v7  ;;  %v22610_v7 = vld [vmem:[#allocation60_spill] sm:$0xff] }
 0x24e   : > { %v17681_v15 = vadd.f32 %v17644_v18, %v3200_v61  ;;  %v3203_v11 = vadd.f32 %v14991_v3, %v2881_v14  ;;  %v3276_v38 = vsel %vm273_vm0, %v17693_v25, 0.0  ;;  %v17724_v61 = vpop.f32.mrf.mxu1 }
 0x24f   : > { %v3269_v22 = vadd.f32 %v3268_v10, %v3267_v8  ;;  %v3088_v46 = vpop.f32.mrf.mxu0  ;;  %v2242_v8 = vadd.f32 %v22604_v42, %v1920_v6  ;;  %v2886_v10 = vadd.f32 %v17594_v2, %v2564_v27  ;;  %v22611_v2 = vld [vmem:[#allocation61_spill] sm:$0xff] }
 0x250   : > { %v3201_v33 = vadd.f32 %v3088_v46, %v2879_v4  ;;  %v3272_v17 = vsel %vm273_vm0, %v17681_v15, 0.0  ;;  %v17710_v12 = vadd.f32 %v17644_v18, %v3203_v11  ;;  %v22605_v4 = vld [vmem:[#allocation51_spill] sm:$0xff]  ;;  %v22606_v46 = vld [vmem:[#allocation78_spill] sm:$0xff]  ;;  %v17745_v20 = vpop.f32.mrf.mxu1  ;;  %v22614_v27 = vld [vmem:[#allocation77_spill] sm:$0xff] }
 0x251   : > { %v3271_v24 = vadd.f32 %v3270_v44, %v3269_v22  ;;  %v14994_v45 = vpop.f32.mrf.mxu0  ;;  %v1602_v60 = vadd.f32 %v22605_v4, %v1280_v62  ;;  %v2565_v35 = vadd.f32 %v22606_v46, %v2242_v8 }
 0x252   : > { %v17698_v19 = vadd.f32 %v17644_v18, %v3201_v33  ;;  %v3206_v29 = vadd.f32 %v14994_v45, %v2884_v30  ;;  %v3278_v41 = vsel %vm273_vm0, %v17710_v12, 0.0  ;;  %v22609_v45 = vld [vmem:[#allocation59_spill] sm:$0xff]  ;;  %v17764_v8 = vpop.f32.mrf.mxu1 }
 0x253   : > { %v3273_v58 = vadd.f32 %v3272_v17, %v3271_v24  ;;  %v3101_v56 = vpop.f32.mrf.mxu0  ;;  %v2245_v17 = vadd.f32 %v22610_v7, %v22609_v45  ;;  %v1924_v39 = vadd.f32 %v22611_v2, %v1602_v60  ;;  %v22619_v7 = vld [vmem:[#allocation47_spill] sm:$0xff] }
 0x254   : > { %v3274_v53 = vsel %vm273_vm0, %v17698_v19, 0.0  ;;  %v3204_v48 = vadd.f32 %v3101_v56, %v2882_v50  ;;  %v17733_v44 = vadd.f32 %v17644_v18, %v3206_v29  ;;  %v22608_v50 = vld [vmem:[#allocation46_spill] sm:$0xff]  ;;  %v22612_v56 = vld [vmem:[#allocation75_spill] sm:$0xff] }
 0x255   : > { %v3275_v57 = vadd.f32 %v3274_v53, %v3273_v58  ;;  %v14995_v0 = vpop.f32.mrf.mxu0  ;;  %v930_v24 = vadd.f32 %v22608_v50, %v22607_v43  ;;  %v2888_v30 = vadd.f32 %v17587_v52, %v22612_v56 }
 0x256   : > { %v17722_v5 = vadd.f32 %v17644_v18, %v3204_v48  ;;  %v3207_v40 = vadd.f32 %v14995_v0, %v2885_v37  ;;  %v22613_v37 = vld [vmem:[#allocation52_spill] sm:$0xff]  ;;  %v3284_v52 = vsel %vm273_vm0, %v17733_v44, 0.0 }
 0x257   : > { %v3277_v14 = vadd.f32 %v3276_v38, %v3275_v57  ;;  %v3104_v49 = vpop.f32.mrf.mxu0  ;;  %v1284_v47 = vadd.f32 %v22613_v37, %v930_v24  ;;  %v2889_v57 = vadd.f32 %v17601_v36, %v22614_v27  ;;  %v22615_v0 = vld [vmem:[#allocation80_spill] sm:$0xff]  ;;  %v22624_v37 = vld [vmem:[#allocation79_spill] sm:$0xff] }
 0x258   : > { %v3205_v3 = vadd.f32 %v3104_v49, %v2883_v26  ;;  %v3280_v11 = vsel %vm273_vm0, %v17722_v5, 0.0  ;;  %v17750_v53 = vadd.f32 %v17644_v18, %v3207_v40  ;;  %v2568_v26 = vadd.f32 %v22615_v0, %v2245_v17  ;;  %v22620_v17 = vld [vmem:[#allocation48_spill] sm:$0xff] }
 0x259   : > { %v3279_v55 = vadd.f32 %v3278_v41, %v3277_v14  ;;  %v14998_v22 = vpop.f32.mrf.mxu0  ;;  %v2887_v14 = vadd.f32 %v17610_v16, %v2565_v35  ;;  %v946_v2 = vadd.f32 %v22620_v17, %v22619_v7 }
 0x25a   : > { %v17738_v33 = vadd.f32 %v17644_v18, %v3205_v3  ;;  %v3210_v49 = vadd.f32 %v14998_v22, %v2888_v30  ;;  %v22616_v3 = vld [vmem:[#allocation62_spill] sm:$0xff]  ;;  %v3286_v36 = vsel %vm273_vm0, %v17750_v53, 0.0  ;;  %v2890_v46 = vadd.f32 %v17628_v1, %v2568_v26  ;;  %v22623_v1 = vld [vmem:[#allocation65_spill] sm:$0xff]  ;;  %v2843_v30 = vpop.f32.mrf.mxu1 }
 0x25b   : > { %v3281_v6 = vadd.f32 %v3280_v11, %v3279_v55  ;;  %v3117_v58 = vpop.f32.mrf.mxu0  ;;  %v2246_v4 = vadd.f32 %v22616_v3, %v1924_v39  ;;  %v22617_v55 = vld [vmem:[#allocation53_spill] sm:$0xff]  ;;  %v22618_v11 = vld [vmem:[#allocation82_spill] sm:$0xff]  ;;  %v22621_v39 = vld [vmem:[#allocation63_spill] sm:$0xff] }
 0x25c   : > { %v3282_v48 = vsel %vm273_vm0, %v17738_v33, 0.0  ;;  %v3208_v62 = vadd.f32 %v3117_v58, %v2886_v10  ;;  %v1606_v16 = vadd.f32 %v22617_v55, %v1284_v47  ;;  %v17773_v50 = vadd.f32 %v17644_v18, %v3210_v49  ;;  %v22625_v26 = vld [vmem:[#allocation54_spill] sm:$0xff] }
 0x25d   : > { %v3283_v38 = vadd.f32 %v3282_v48, %v3281_v6  ;;  %v14999_v29 = vpop.f32.mrf.mxu0  ;;  %v2569_v43 = vadd.f32 %v22618_v11, %v2246_v4  ;;  %v22622_v6 = vld [vmem:[#allocation64_spill] sm:$0xff]  ;;  %v2892_v47 = vadd.f32 %v17618_v59, %v22624_v37 }
 0x25e   : > { %v17762_v42 = vadd.f32 %v17644_v18, %v3208_v62  ;;  %v3211_v60 = vadd.f32 %v14999_v29, %v2889_v57  ;;  %v2249_v58 = vadd.f32 %v22622_v6, %v22621_v39  ;;  %v1928_v56 = vadd.f32 %v22623_v1, %v1606_v16  ;;  %v22626_v29 = vld [vmem:[#allocation81_spill] sm:$0xff]  ;;  %v22628_v16 = vld [vmem:[#allocation66_spill] sm:$0xff]  ;;  %v22634_v37 = vld [vmem:[#allocation68_spill] sm:$0xff] }
 0x25f   : > { %v3285_v41 = vadd.f32 %v3284_v52, %v3283_v38  ;;  %v3120_v40 = vpop.f32.mrf.mxu0  ;;  %v1288_v38 = vadd.f32 %v22625_v26, %v946_v2  ;;  %v22627_v52 = vld [vmem:[#allocation84_spill] sm:$0xff]  ;;  %v2891_v3 = vadd.f32 %v17665_v21, %v2569_v43  ;;  %v3292_v59 = vsel %vm273_vm0, %v17773_v50, 0.0  ;;  %v22631_v1 = vld [vmem:[#allocation49_spill] sm:$0xff] }
 0x260   : > { %v3209_v10 = vadd.f32 %v3120_v40, %v2887_v14  ;;  %v3288_v24 = vsel %vm273_vm0, %v17762_v42, 0.0  ;;  %v17788_v27 = vadd.f32 %v17644_v18, %v3211_v60  ;;  %v2893_v14 = vadd.f32 %v17639_v9, %v22626_v29  ;;  %v14971_v60 = vpop.f32.mrf.mxu1  ;;  %v22636_v29 = vld [vmem:[#allocation83_spill] sm:$0xff] }
 0x261   : > { %v3287_v35 = vadd.f32 %v3286_v36, %v3285_v41  ;;  %v15002_v22 = vpop.f32.mrf.mxu0  ;;  %v2572_v49 = vadd.f32 %v22627_v52, %v2249_v58 }
 0x262   : > { %v17778_v45 = vadd.f32 %v17644_v18, %v3209_v10  ;;  %v3214_v4 = vadd.f32 %v15002_v22, %v2892_v47  ;;  %v3294_v9 = vsel %vm273_vm0, %v17788_v27, 0.0  ;;  %v22630_v22 = vld [vmem:[#allocation86_spill] sm:$0xff] }
 0x263   : > { %v3289_v48 = vadd.f32 %v3288_v24, %v3287_v35  ;;  %v3133_v62 = vpop.f32.mrf.mxu0  ;;  %v22629_v24 = vld [vmem:[#allocation55_spill] sm:$0xff]  ;;  %v2894_v21 = vadd.f32 %v17705_v63, %v2572_v49  ;;  %v22635_v63 = vld [vmem:[#allocation69_spill] sm:$0xff] }
 0x264   : > { %v3290_v57 = vsel %vm273_vm0, %v17778_v45, 0.0  ;;  %v3212_v0 = vadd.f32 %v3133_v62, %v2890_v46  ;;  %v2250_v46 = vadd.f32 %v22628_v16, %v1928_v56  ;;  %v1610_v7 = vadd.f32 %v22629_v24, %v1288_v38  ;;  %v22632_v56 = vld [vmem:[#allocation50_spill] sm:$0xff]  ;;  %v22633_v62 = vld [vmem:[#allocation67_spill] sm:$0xff] }
 0x265   : > { %v3291_v41 = vadd.f32 %v3290_v57, %v3289_v48  ;;  %v15003_v40 = vpop.f32.mrf.mxu0  ;;  %v17809_v39 = vadd.f32 %v17644_v18, %v3214_v4  ;;  %v962_v48 = vadd.f32 %v22632_v56, %v22631_v1  ;;  %v2253_v47 = vadd.f32 %v22634_v37, %v22633_v62  ;;  %v22641_v56 = vld [vmem:[#allocation57_spill] sm:$0xff]  ;;  %v22642_v37 = vld [vmem:[#allocation90_spill] sm:$0xff] }
 0x266   : > { %v17800_v36 = vadd.f32 %v17644_v18, %v3212_v0  ;;  %v3215_v35 = vadd.f32 %v15003_v40, %v2893_v14  ;;  %v2573_v2 = vadd.f32 %v22630_v22, %v2250_v46  ;;  %v1932_v57 = vadd.f32 %v22635_v63, %v1610_v7  ;;  %v2846_v0 = vpop.f32.mrf.mxu1  ;;  %v22637_v40 = vld [vmem:[#allocation56_spill] sm:$0xff] }
 0x267   : > { %v3293_v10 = vadd.f32 %v3292_v59, %v3291_v41  ;;  %v3136_v55 = vpop.f32.mrf.mxu0  ;;  %v2896_v14 = vadd.f32 %v17683_v32, %v22636_v29  ;;  %v22638_v59 = vld [vmem:[#allocation85_spill] sm:$0xff]  ;;  %v3300_v32 = vsel %vm273_vm0, %v17809_v39, 0.0 }
 0x268   : > { %v3213_v11 = vadd.f32 %v3136_v55, %v2891_v3  ;;  %v3296_v6 = vsel %vm273_vm0, %v17800_v36, 0.0  ;;  %v17824_v52 = vadd.f32 %v17644_v18, %v3215_v35  ;;  %v1292_v3 = vadd.f32 %v22637_v40, %v962_v48  ;;  %v14974_v24 = vpop.f32.mrf.mxu1 }
 0x269   : > { %v3295_v43 = vadd.f32 %v3294_v9, %v3293_v10  ;;  %v15006_v17 = vpop.f32.mrf.mxu0  ;;  %v2897_v4 = vadd.f32 %v17724_v61, %v22638_v59  ;;  %v22639_v10 = vld [vmem:[#allocation88_spill] sm:$0xff]  ;;  %v2895_v9 = vadd.f32 %v17745_v20, %v2573_v2 }
 0x26a   : > { %v17814_v58 = vadd.f32 %v17644_v18, %v3213_v11  ;;  %v2576_v55 = vadd.f32 %v22639_v10, %v2253_v47  ;;  %v3218_v35 = vadd.f32 %v15006_v17, %v2896_v14  ;;  %v3302_v61 = vsel %vm273_vm0, %v17824_v52, 0.0  ;;  %v22645_v14 = vld [vmem:[#allocation73_spill] sm:$0xff] }
 0x26b   : > { %v3297_v26 = vadd.f32 %v3296_v6, %v3295_v43  ;;  %v3149_v38 = vpop.f32.mrf.mxu0  ;;  %v22640_v43 = vld [vmem:[#allocation70_spill] sm:$0xff]  ;;  %v1614_v48 = vadd.f32 %v22641_v56, %v1292_v3  ;;  %v22646_v3 = vld [vmem:[#allocation87_spill] sm:$0xff] }
 0x26c   : > { %v3298_v49 = vsel %vm273_vm0, %v17814_v58, 0.0  ;;  %v3216_v41 = vadd.f32 %v3149_v38, %v2894_v21  ;;  %v2254_v22 = vadd.f32 %v22640_v43, %v1932_v57  ;;  %v2898_v20 = vadd.f32 %v2843_v30, %v2576_v55  ;;  %v22644_v38 = vld [vmem:[#allocation72_spill] sm:$0xff] }
 0x26d   : > { %v3299_v16 = vadd.f32 %v3298_v49, %v3297_v26  ;;  %v15007_v46 = vpop.f32.mrf.mxu0  ;;  %v17844_v47 = vadd.f32 %v17644_v18, %v3218_v35  ;;  %v22643_v26 = vld [vmem:[#allocation71_spill] sm:$0xff]  ;;  %v1936_v49 = vadd.f32 %v22645_v14, %v1614_v48  ;;  %v2900_v59 = vadd.f32 %v17764_v8, %v22646_v3 }
 0x26e   : > { %v17836_v11 = vadd.f32 %v17644_v18, %v3216_v41  ;;  %v3219_v6 = vadd.f32 %v15007_v46, %v2897_v4  ;;  %v2577_v17 = vadd.f32 %v22642_v37, %v2254_v22  ;;  %v2257_v29 = vadd.f32 %v22644_v38, %v22643_v26  ;;  %v2859_v41 = vpop.f32.mrf.mxu1 }
 0x26f   : > { %v3301_v7 = vadd.f32 %v3300_v32, %v3299_v16  ;;  %v3152_v21 = vpop.f32.mrf.mxu0  ;;  %v22647_v16 = vld [vmem:[#allocation89_spill] sm:$0xff]  ;;  %v2904_v14 = vadd.f32 %v14974_v24, %v17608_v28 }
 0x270   : > { %v3217_v1 = vadd.f32 %v3152_v21, %v2895_v9  ;;  %v3304_v63 = vsel %vm273_vm0, %v17836_v11, 0.0  ;;  %v17857_v4 = vadd.f32 %v17644_v18, %v3219_v6  ;;  %v2901_v46 = vadd.f32 %v14971_v60, %v22647_v16  ;;  %v14975_v22 = vpop.f32.mrf.mxu1 }
 0x271   : > { %v3303_v2 = vadd.f32 %v3302_v61, %v3301_v7  ;;  %v15010_v62 = vpop.f32.mrf.mxu0  ;;  %v2580_v9 = vadd.f32 %v17612_v54, %v2257_v29  ;;  %v2899_v7 = vadd.f32 %v2846_v0, %v2577_v17  ;;  %v3308_v21 = vsel %vm273_vm0, %v17844_v47, 0.0 }
 0x272   : > { %v17849_v57 = vadd.f32 %v17644_v18, %v3217_v1  ;;  %v3222_v43 = vadd.f32 %v15010_v62, %v2900_v59  ;;  %v22648_v1 = vld [vmem:[#allocation74_spill] sm:$0xff]  ;;  %v3310_v60 = vsel %vm273_vm0, %v17857_v4, 0.0  ;;  %v2862_v26 = vpop.f32.mrf.mxu1 }
 0x273   : > { %v3305_v30 = vadd.f32 %v3304_v63, %v3303_v2  ;;  %v3165_v40 = vpop.f32.mrf.mxu0  ;;  %v2258_v56 = vadd.f32 %v22648_v1, %v1936_v49 }
 0x274   : > { %v3306_v10 = vsel %vm273_vm0, %v17849_v57, 0.0  ;;  %v3220_v55 = vadd.f32 %v3165_v40, %v2898_v20  ;;  %v2902_v20 = vadd.f32 %v2859_v41, %v2580_v9  ;;  %v17873_v62 = vadd.f32 %v17644_v18, %v3222_v43 }
 0x275   : > { %v3307_v32 = vadd.f32 %v3306_v10, %v3305_v30  ;;  %v15011_v35 = vpop.f32.mrf.mxu0  ;;  %v2581_v37 = vadd.f32 %v17620_v13, %v2258_v56  ;;  %v22649_v30 = vld [vmem:[#allocation91_spill] sm:$0xff] }
 0x276   : > { %v17866_v8 = vadd.f32 %v17644_v18, %v3220_v55  ;;  %v3223_v48 = vadd.f32 %v15011_v35, %v2901_v46  ;;  %v2905_v40 = vadd.f32 %v14975_v22, %v22649_v30  ;;  %v3316_v55 = vsel %vm273_vm0, %v17873_v62, 0.0  ;;  %v16208_v30 = vld [vmem:[#allocation8 + $0x28] sm:$0xff]  }
 0x277   : > { %v3309_v61 = vadd.f32 %v3308_v21, %v3307_v32  ;;  %v3168_v6 = vpop.f32.mrf.mxu0  ;;  %v2903_v10 = vadd.f32 %v2862_v26, %v2581_v37  ;;  %v16210_v26 = vld [vmem:[#allocation8 + $0x18] sm:$0xff]  }
 0x278   : > { %v3221_v54 = vadd.f32 %v3168_v6, %v2899_v7  ;;  %v3312_v17 = vsel %vm273_vm0, %v17866_v8, 0.0  ;;  %v17882_v49 = vadd.f32 %v17644_v18, %v3223_v48  ;;  %15056 = vmatprep.subr.bf16.mxu0 %v16210_v26 }
 0x279   : > { %v3311_v2 = vadd.f32 %v3310_v60, %v3309_v61  ;;  %v15014_v0 = vpop.f32.mrf.mxu0  ;;  %15057 = vmatpush3.bf16.msra.mxu0 %v16210_v26 }
 0x27a   : > { %v17878_v63 = vadd.f32 %v17644_v18, %v3221_v54  ;;  %v3226_v16 = vadd.f32 %v15014_v0, %v2904_v14  ;;  %v3318_v9 = vsel %vm273_vm0, %v17882_v49, 0.0  ;;  %v16211_v14 = vld [vmem:[#allocation8 + $0x10] sm:$0xff]  }
 0x27b   : > { %v3313_v38 = vadd.f32 %v3312_v17, %v3311_v2  ;;  %v3181_v29 = vpop.f32.mrf.mxu0  ;;  %v16206_v17 = vld [vmem:[#allocation8 + $0x38] sm:$0xff]   ;;  %15058 = vmatprep.subr.bf16.mxu0 %v16211_v14 }
 0x27c   : > { %v3314_v13 = vsel %vm273_vm0, %v17878_v63, 0.0  ;;  %v3224_v41 = vadd.f32 %v3181_v29, %v2902_v20  ;;  %v3263_v21 = vadd.f32 %v17644_v18, %v3226_v16  ;;  %15016 = vmatprep.subr.bf16.mxu1 %v16206_v17  ;;  %v16207_v29 = vld [vmem:[#allocation8 + $0x30] sm:$0xff]  }
 0x27d   : > { %v3315_v3 = vadd.f32 %v3314_v13, %v3313_v38  ;;  %v15015_v59 = vpop.f32.mrf.mxu0  ;;  %15017 = vmatpush3.bf16.msra.mxu1 %v16206_v17  ;;  %15059 = vmatpush3.bf16.msra.mxu0 %v16211_v14  ;;  %v3568_v17 = vld [vmem:[#allocation2] sm:$0xff] }
 0x27e   : > { %v17890_v46 = vadd.f32 %v17644_v18, %v3224_v41  ;;  %v3227_v32 = vadd.f32 %v15015_v59, %v2905_v40  ;;  %v3324_v60 = vsel %vm273_vm0, %v3263_v21, 0.0  ;;  %15018 = vmatprep.subr.bf16.mxu1 %v16207_v29  ;;  %v16209_v40 = vld [vmem:[#allocation8 + $0x20] sm:$0xff]  }
 0x27f   : > { %v3317_v28 = vadd.f32 %v3316_v55, %v3315_v3  ;;  %v3184_v24 = vpop.f32.mrf.mxu0  ;;  %v16212_v3 = vld [vmem:[#allocation8 + $0x8] sm:$0xff]  }
 0x280   : > { %v3225_v35 = vadd.f32 %v3184_v24, %v2903_v10  ;;  %v3320_v43 = vsel %vm273_vm0, %v17890_v46, 0.0  ;;  %v3264_v6 = vadd.f32 %v17644_v18, %v3227_v32  ;;  %v16213_v10 = vld [vmem:[#allocation8] sm:$0xff]   ;;  %15060 = vmatprep.subr.bf16.mxu0 %v16212_v3 }
 0x281   : > { %v3319_v7 = vadd.f32 %v3318_v9, %v3317_v28  ;;  %15019 = vmatpush3.bf16.msra.mxu1 %v16207_v29  ;;  %15061 = vmatpush3.bf16.msra.mxu0 %v16212_v3 }
 0x282   : > { %v3262_v22 = vadd.f32 %v17644_v18, %v3225_v35  ;;  %v3326_v54 = vsel %vm273_vm0, %v3264_v6, 0.0  ;;  %15020 = vmatprep.subr.bf16.mxu1 %v16208_v30  ;;  %15062 = vmatprep.subr.bf16.mxu0 %v16213_v10 }
 0x283   : > { %v3321_v61 = vadd.f32 %v3320_v43, %v3319_v7 }
 0x284   : > { %v3322_v1 = vsel %vm273_vm0, %v3262_v22, 0.0 }
 0x285   : > { %v3323_v56 = vadd.f32 %v3322_v1, %v3321_v61  ;;  %15021 = vmatpush3.bf16.msra.mxu1 %v16208_v30  ;;  %15063 = vmatpush3.bf16.msra.mxu0 %v16213_v10 }
 0x286   : > { %15022 = vmatprep.subr.bf16.mxu1 %v16209_v40 }
 0x287   : > { %v3325_v48 = vadd.f32 %v3324_v60, %v3323_v56 }
 0x289   : > { %v3327_v20 = vadd.f32 %v3326_v54, %v3325_v48  ;;  %15023 = vmatpush3.bf16.msra.mxu1 %v16209_v40 }
 0x28b   : > { %v3328_v2 = vrot.slane %v3327_v20, 4 }
 0x28d   : > { %v3329_v0 = vadd.f32 %v3328_v2, %v3327_v20  ;;  %v3624_v20 = vld [vmem:[#allocation2 + $0x1] sm:$0xff] }
 0x28f   : > { %v3330_v37 = vrot.slane %v3329_v0, 2 }
 0x291   : > { %v3331_v38 = vadd.f32 %v3330_v37, %v3329_v0  ;;  %v3625_v37 = vld [vmem:[#allocation2 + $0x9] sm:$0xff] }
 0x292   : > { %v3656_v14 = vpack.c.bf16 %v3625_v37, %v3624_v20 }
 0x293   : > { %v3332_v18 = vrot.slane %v3331_v38, 1 }
 0x294   : > { %15024 = vmatprep.mubr.msk.bf16.mxu1 %vm273_vm0, %v3656_v14 }
 0x295   : > { %v3333_v13 = vadd.f32 %v3332_v18, %v3331_v38 }
 0x297   : > { %v17902_v41 = vmul.f32 0.00390625, %v3333_v13 }
 0x299   : > { %v17906_v59 = vsub.f32 %v17738_v33, %v17902_v41  ;;  %v17910_v55 = vsub.f32 %v17762_v42, %v17902_v41  ;;  %v17914_v16 = vsub.f32 %v17778_v45, %v17902_v41  ;;  %v17918_v28 = vsub.f32 %v17773_v50, %v17902_v41  ;;  %v17924_v33 = vld [vmem:[#allocation8 + $0x58] sm:$0xff]  }
 0x29a   : > { %v17922_v24 = vsub.f32 %v17788_v27, %v17902_v41  ;;  %v17928_v9 = vsub.f32 %v17800_v36, %v17902_v41  ;;  %v17932_v42 = vsub.f32 %v17814_v58, %v17902_v41  ;;  %v17936_v45 = vsub.f32 %v17809_v39, %v17902_v41  ;;  %15096 = vmatprep.subr.bf16.mxu1 %v17924_v33 }
 0x29b   : > { %v17940_v50 = vsub.f32 %v17824_v52, %v17902_v41  ;;  %v17944_v27 = vsub.f32 %v17836_v11, %v17902_v41  ;;  %v17948_v36 = vsub.f32 %v17849_v57, %v17902_v41  ;;  %v17952_v58 = vsub.f32 %v17844_v47, %v17902_v41 }
 0x29c   : > { %v17956_v39 = vsub.f32 %v17857_v4, %v17902_v41  ;;  %v17960_v52 = vsub.f32 %v17866_v8, %v17902_v41  ;;  %v17964_v11 = vsub.f32 %v17878_v63, %v17902_v41  ;;  %v17968_v57 = vsub.f32 %v17873_v62, %v17902_v41 }
 0x29d   : > { %v17972_v47 = vsub.f32 %v17882_v49, %v17902_v41  ;;  %v17976_v4 = vsub.f32 %v17890_v46, %v17902_v41  ;;  %v17979_v8 = vsub.f32 %v3262_v22, %v17902_v41  ;;  %v17982_v32 = vsub.f32 %v3263_v21, %v17902_v41 }
 0x29e   : > { %v17985_v63 = vsub.f32 %v3264_v6, %v17902_v41  ;;  %v17990_v62 = vsub.f32 %v17648_v34, %v17902_v41  ;;  %v17994_v49 = vsub.f32 %v17658_v31, %v17902_v41  ;;  %v17998_v46 = vsub.f32 %v17655_v23, %v17902_v41 }
 0x29f   : > { %v18002_v35 = vsub.f32 %v17670_v51, %v17902_v41  ;;  %v18010_v21 = vsub.f32 %v17681_v15, %v17902_v41  ;;  %v18016_v23 = vsub.f32 %v17698_v19, %v17902_v41  ;;  %v18024_v6 = vsub.f32 %v17693_v25, %v17902_v41 }
 0x2a0   : > { %v3368_v7 = vmul.f32 %v17990_v62, %v17990_v62  ;;  %v3369_v34 = vmul.f32 %v17994_v49, %v17994_v49  ;;  %v3370_v31 = vmul.f32 %v17998_v46, %v17998_v46  ;;  %v18031_v19 = vsub.f32 %v17710_v12, %v17902_v41  ;;  %v3569_v12 = vld [vmem:[#allocation2 + $0x8] sm:$0xff] }
 0x2a1   : > { %v3371_v51 = vmul.f32 %v18002_v35, %v18002_v35  ;;  %v3372_v15 = vmul.f32 %v18010_v21, %v18010_v21  ;;  %v3373_v60 = vmul.f32 %v18016_v23, %v18016_v23  ;;  %v18038_v25 = vsub.f32 %v17722_v5, %v17902_v41 }
 0x2a2   : > { %v3400_v43 = vsel %vm273_vm0, %v3368_v7, 0.0  ;;  %v3401_v22 = vsel %vm273_vm0, %v3369_v34, 0.0  ;;  %v3403_v1 = vsel %vm273_vm0, %v3370_v31, 0.0  ;;  %v3374_v2 = vmul.f32 %v18024_v6, %v18024_v6 }
 0x2a3   : > { %v3402_v61 = vadd.f32 %v3401_v22, %v3400_v43  ;;  %v3405_v48 = vsel %vm273_vm0, %v3371_v51, 0.0  ;;  %v3407_v0 = vsel %vm273_vm0, %v3372_v15, 0.0  ;;  %v3375_v38 = vmul.f32 %v18031_v19, %v18031_v19 }
 0x2a4   : > { %v3409_v18 = vsel %vm273_vm0, %v3373_v60, 0.0  ;;  %v3600_v13 = vpack.c.bf16 %v3569_v12, %v3568_v17  ;;  %v18048_v5 = vsub.f32 %v17733_v44, %v17902_v41  ;;  %v3376_v30 = vmul.f32 %v18038_v25, %v18038_v25 }
 0x2a5   : > { %v3404_v56 = vadd.f32 %v3403_v1, %v3402_v61  ;;  %v3411_v40 = vsel %vm273_vm0, %v3374_v2, 0.0  ;;  %v18057_v10 = vsub.f32 %v17750_v53, %v17902_v41  ;;  %v3377_v7 = vmul.f32 %v17906_v59, %v17906_v59 }
 0x2a6   : > { %15064 = vmatprep.mubr.msk.bf16.mxu0 %vm273_vm0, %v3600_v13  ;;  %v3413_v44 = vsel %vm273_vm0, %v3375_v38, 0.0  ;;  %v3378_v31 = vmul.f32 %v18048_v5, %v18048_v5  ;;  %v3415_v51 = vsel %vm273_vm0, %v3376_v30, 0.0  ;;  %v3380_v53 = vmul.f32 %v17910_v55, %v17910_v55 }
 0x2a7   : > { %v3406_v54 = vadd.f32 %v3405_v48, %v3404_v56  ;;  %v3379_v22 = vmul.f32 %v18057_v10, %v18057_v10  ;;  %v3417_v61 = vsel %vm273_vm0, %v3377_v7, 0.0  ;;  %v3381_v56 = vmul.f32 %v17914_v16, %v17914_v16 }
 0x2a8   : > { %v3419_v41 = vsel %vm273_vm0, %v3378_v31, 0.0  ;;  %v3423_v20 = vsel %vm273_vm0, %v3380_v53, 0.0  ;;  %v3384_v12 = vmul.f32 %v17928_v9, %v17928_v9  ;;  %v3386_v13 = vmul.f32 %v17936_v45, %v17936_v45 }
 0x2a9   : > { %v3408_v26 = vadd.f32 %v3407_v0, %v3406_v54  ;;  %v3421_v60 = vsel %vm273_vm0, %v3379_v22, 0.0  ;;  %v3382_v54 = vmul.f32 %v17918_v28, %v17918_v28  ;;  %v3383_v0 = vmul.f32 %v17922_v24, %v17922_v24 }
 0x2aa   : > { %v3425_v37 = vsel %vm273_vm0, %v3381_v56, 0.0  ;;  %v3431_v30 = vsel %vm273_vm0, %v3384_v12, 0.0  ;;  %v3435_v31 = vsel %vm273_vm0, %v3386_v13, 0.0  ;;  %v3389_v22 = vmul.f32 %v17948_v36, %v17948_v36 }
 0x2ab   : > { %v3410_v29 = vadd.f32 %v3409_v18, %v3408_v26  ;;  %v3427_v26 = vsel %vm273_vm0, %v3382_v54, 0.0  ;;  %v3385_v18 = vmul.f32 %v17932_v42, %v17932_v42  ;;  %v3390_v53 = vmul.f32 %v17952_v58, %v17952_v58 }
 0x2ac   : > { %v3391_v56 = vmul.f32 %v17956_v39, %v17956_v39  ;;  %v3392_v54 = vmul.f32 %v17960_v52, %v17960_v52  ;;  %v3394_v12 = vmul.f32 %v17968_v57, %v17968_v57  ;;  %v3396_v13 = vmul.f32 %v17976_v4, %v17976_v4 }
 0x2ad   : > { %v3412_v3 = vadd.f32 %v3411_v40, %v3410_v29  ;;  %v3429_v29 = vsel %vm273_vm0, %v3383_v0, 0.0  ;;  %v3433_v7 = vsel %vm273_vm0, %v3385_v18, 0.0  ;;  %v3393_v0 = vmul.f32 %v17964_v11, %v17964_v11 }
 0x2ae   : > { %v3395_v18 = vmul.f32 %v17972_v47, %v17972_v47 }
 0x2af   : > { %v3414_v34 = vadd.f32 %v3413_v44, %v3412_v3  ;;  %v3387_v3 = vmul.f32 %v17940_v50, %v17940_v50 }
 0x2b1   : > { %v3416_v43 = vadd.f32 %v3415_v51, %v3414_v34  ;;  %v3388_v34 = vmul.f32 %v17944_v27, %v17944_v27  ;;  %v18095_v51 = vld [vmem:[#allocation8 + $0x78] sm:$0xff]  }
 0x2b2   : > { %15136 = vmatprep.subr.bf16.mxu0 %v18095_v51 }
 0x2b3   : > { %v3418_v15 = vadd.f32 %v3417_v61, %v3416_v43  ;;  %v3437_v61 = vsel %vm273_vm0, %v3387_v3, 0.0  ;;  %v3397_v3 = vmul.f32 %v17979_v8, %v17979_v8 }
 0x2b5   : > { %v3420_v1 = vadd.f32 %v3419_v41, %v3418_v15  ;;  %v3439_v41 = vsel %vm273_vm0, %v3388_v34, 0.0  ;;  %v3398_v34 = vmul.f32 %v17982_v32, %v17982_v32 }
 0x2b7   : > { %v3422_v48 = vadd.f32 %v3421_v60, %v3420_v1  ;;  %v3441_v60 = vsel %vm273_vm0, %v3389_v22, 0.0  ;;  %v3399_v22 = vmul.f32 %v17985_v63, %v17985_v63 }
 0x2b9   : > { %v3424_v2 = vadd.f32 %v3423_v20, %v3422_v48  ;;  %v3443_v20 = vsel %vm273_vm0, %v3390_v53, 0.0  ;;  %v3459_v53 = vsel %vm273_vm0, %v3398_v34, 0.0 }
 0x2bb   : > { %v3426_v17 = vadd.f32 %v3425_v37, %v3424_v2  ;;  %v3445_v37 = vsel %vm273_vm0, %v3391_v56, 0.0 }
 0x2bd   : > { %v3428_v38 = vadd.f32 %v3427_v26, %v3426_v17  ;;  %v3447_v26 = vsel %vm273_vm0, %v3392_v54, 0.0 }
 0x2bf   : > { %v3430_v14 = vadd.f32 %v3429_v29, %v3428_v38  ;;  %v3449_v29 = vsel %vm273_vm0, %v3393_v0, 0.0 }
 0x2c1   : > { %v3432_v40 = vadd.f32 %v3431_v30, %v3430_v14  ;;  %v3451_v30 = vsel %vm273_vm0, %v3394_v12, 0.0 }
 0x2c3   : > { %v3434_v44 = vadd.f32 %v3433_v7, %v3432_v40  ;;  %v3453_v7 = vsel %vm273_vm0, %v3395_v18, 0.0 }
 0x2c5   : > { %v3436_v43 = vadd.f32 %v3435_v31, %v3434_v44  ;;  %v3455_v31 = vsel %vm273_vm0, %v3396_v13, 0.0 }
 0x2c7   : > { %v3438_v15 = vadd.f32 %v3437_v61, %v3436_v43  ;;  %v3457_v61 = vsel %vm273_vm0, %v3397_v3, 0.0 }
 0x2c9   : > { %v3440_v1 = vadd.f32 %v3439_v41, %v3438_v15 }
 0x2cb   : > { %v3442_v48 = vadd.f32 %v3441_v60, %v3440_v1  ;;  %v3461_v1 = vsel %vm273_vm0, %v3399_v22, 0.0 }
 0x2cd   : > { %v3444_v2 = vadd.f32 %v3443_v20, %v3442_v48 }
 0x2cf   : > { %v3446_v17 = vadd.f32 %v3445_v37, %v3444_v2 }
 0x2d1   : > { %v3448_v38 = vadd.f32 %v3447_v26, %v3446_v17 }
 0x2d3   : > { %v3450_v14 = vadd.f32 %v3449_v29, %v3448_v38 }
 0x2d5   : > { %v3452_v40 = vadd.f32 %v3451_v30, %v3450_v14 }
 0x2d7   : > { %v3454_v44 = vadd.f32 %v3453_v7, %v3452_v40 }
 0x2d9   : > { %v3456_v43 = vadd.f32 %v3455_v31, %v3454_v44 }
 0x2db   : > { %v3458_v15 = vadd.f32 %v3457_v61, %v3456_v43 }
 0x2dd   : > { %v3460_v41 = vadd.f32 %v3459_v53, %v3458_v15 }
 0x2df   : > { %v3462_v56 = vadd.f32 %v3461_v1, %v3460_v41 }
 0x2e1   : > { %v3463_v60 = vrot.slane %v3462_v56, 4 }
 0x2e3   : > { %v3464_v48 = vadd.f32 %v3463_v60, %v3462_v56 }
 0x2e5   : > { %v3465_v54 = vrot.slane %v3464_v48, 2 }
 0x2e7   : > { %v3466_v20 = vadd.f32 %v3465_v54, %v3464_v48 }
 0x2e9   : > { %v3467_v2 = vrot.slane %v3466_v20, 1 }
 0x2eb   : > { %v3468_v0 = vadd.f32 %v3467_v2, %v3466_v20 }
 0x2ed   : > { %v3469_v37 = vmul.f32 0.00390625, %v3468_v0 }
 0x2ef   : > { %v3470_v17 = vadd.f32 1e-05, %v3469_v37 }
 0x2f1   : > { %16314 = vrsqrt.f32 %v3470_v17 }
 0x2fe   : > { %v16315_v12 = vpop.eup %16314 }
 0x2ff   : > { %v3501_v26 = vmul.f32 %v16315_v12, %v17979_v8  ;;  %v3472_v38 = vmul.f32 %v16315_v12, %v17990_v62  ;;  %v3473_v18 = vmul.f32 %v16315_v12, %v17994_v49  ;;  %v3474_v29 = vmul.f32 %v16315_v12, %v17998_v46 }
 0x300   : > { %v3475_v14 = vmul.f32 %v16315_v12, %v18002_v35  ;;  %v3476_v13 = vmul.f32 %v16315_v12, %v18010_v21  ;;  %v3477_v30 = vmul.f32 %v16315_v12, %v18016_v23  ;;  %v3478_v40 = vmul.f32 %v16315_v12, %v18024_v6 }
 0x301   : > { %v3533_v3 = vmax.f32 %v3501_v26, 0.0  ;;  %v3479_v7 = vmul.f32 %v16315_v12, %v18031_v19  ;;  %v3480_v44 = vmul.f32 %v16315_v12, %v18038_v25  ;;  %v3481_v8 = vmul.f32 %v16315_v12, %v17906_v59 }
 0x302   : > { %v3482_v62 = vmul.f32 %v16315_v12, %v18048_v5  ;;  %v3483_v49 = vmul.f32 %v16315_v12, %v18057_v10  ;;  %v3484_v46 = vmul.f32 %v16315_v12, %v17910_v55  ;;  %v3485_v35 = vmul.f32 %v16315_v12, %v17914_v16 }
 0x303   : > { %v3486_v21 = vmul.f32 %v16315_v12, %v17918_v28  ;;  %v3487_v23 = vmul.f32 %v16315_v12, %v17922_v24  ;;  %v3488_v6 = vmul.f32 %v16315_v12, %v17928_v9  ;;  %v3489_v19 = vmul.f32 %v16315_v12, %v17932_v42  ;;  %3565 = vst.msk [vmem:[#allocation2 + $0x171] sm:$0xff] %vm273_vm0, %v3533_v3 }
 0x304   : > { %v3490_v59 = vmul.f32 %v16315_v12, %v17936_v45  ;;  %v18155_v25 = vmul.f32 %v16315_v12, %v17940_v50  ;;  %v18158_v5 = vmul.f32 %v16315_v12, %v17944_v27  ;;  %v18161_v55 = vmul.f32 %v16315_v12, %v17948_v36 }
 0x305   : > { %v18164_v16 = vmul.f32 %v16315_v12, %v17952_v58  ;;  %v18167_v28 = vmul.f32 %v16315_v12, %v17956_v39  ;;  %v18170_v24 = vmul.f32 %v16315_v12, %v17960_v52  ;;  %v18173_v9 = vmul.f32 %v16315_v12, %v17964_v11 }
 0x306   : > { %v18176_v42 = vmul.f32 %v16315_v12, %v17968_v57  ;;  %v18179_v45 = vmul.f32 %v16315_v12, %v17972_v47  ;;  %v18182_v50 = vmul.f32 %v16315_v12, %v17976_v4  ;;  %v18185_v27 = vmul.f32 %v16315_v12, %v17982_v32 }
 0x307   : > { %v18188_v36 = vmul.f32 %v16315_v12, %v17985_v63  ;;  %v3504_v58 = vmax.f32 %v3472_v38, 0.0  ;;  %v3505_v39 = vmax.f32 %v3473_v18, 0.0  ;;  %v3506_v52 = vmax.f32 %v3474_v29, 0.0 }
 0x308   : > { %v3507_v11 = vmax.f32 %v3475_v14, 0.0  ;;  %v3508_v10 = vmax.f32 %v3476_v13, 0.0  ;;  %v3509_v34 = vmax.f32 %v3477_v30, 0.0  ;;  %v3510_v57 = vmax.f32 %v3478_v40, 0.0 }
 0x309   : > { %v3511_v31 = vmax.f32 %v3479_v7, 0.0  ;;  %v3512_v43 = vmax.f32 %v3480_v44, 0.0  ;;  %v3513_v47 = vmax.f32 %v3481_v8, 0.0  ;;  %v3514_v22 = vmax.f32 %v3482_v62, 0.0  ;;  %3536 = vst.msk [vmem:[#allocation2 + $0x19] sm:$0xff] %vm273_vm0, %v3504_v58  ;;  %3537 = vst.msk [vmem:[#allocation2 + $0x21] sm:$0xff] %vm273_vm0, %v3505_v39 }
 0x30a   : > { %3538 = vst.msk [vmem:[#allocation2 + $0x31] sm:$0xff] %vm273_vm0, %v3506_v52  ;;  %v3515_v4 = vmax.f32 %v3483_v49, 0.0  ;;  %v3516_v32 = vmax.f32 %v3484_v46, 0.0  ;;  %v3517_v63 = vmax.f32 %v3485_v35, 0.0  ;;  %v3518_v61 = vmax.f32 %v3486_v21, 0.0  ;;  %3539 = vst.msk [vmem:[#allocation2 + $0x39] sm:$0xff] %vm273_vm0, %v3507_v11 }
 0x30b   : > { %3540 = vst.msk [vmem:[#allocation2 + $0x49] sm:$0xff] %vm273_vm0, %v3508_v10  ;;  %3541 = vst.msk [vmem:[#allocation2 + $0x51] sm:$0xff] %vm273_vm0, %v3509_v34  ;;  %v3519_v15 = vmax.f32 %v3487_v23, 0.0  ;;  %v3520_v53 = vmax.f32 %v3488_v6, 0.0  ;;  %v3521_v41 = vmax.f32 %v3489_v19, 0.0  ;;  %v3522_v1 = vmax.f32 %v3490_v59, 0.0 }
 0x30c   : > { %3542 = vst.msk [vmem:[#allocation2 + $0x61] sm:$0xff] %vm273_vm0, %v3510_v57  ;;  %3543 = vst.msk [vmem:[#allocation2 + $0x69] sm:$0xff] %vm273_vm0, %v3511_v31  ;;  %v3523_v56 = vmax.f32 %v18155_v25, 0.0  ;;  %v3524_v60 = vmax.f32 %v18158_v5, 0.0  ;;  %v3525_v48 = vmax.f32 %v18161_v55, 0.0  ;;  %v3526_v54 = vmax.f32 %v18164_v16, 0.0 }
 0x30d   : > { %3544 = vst.msk [vmem:[#allocation2 + $0x79] sm:$0xff] %vm273_vm0, %v3512_v43  ;;  %3545 = vst.msk [vmem:[#allocation2 + $0x81] sm:$0xff] %vm273_vm0, %v3513_v47  ;;  %v3527_v20 = vmax.f32 %v18167_v28, 0.0  ;;  %v3528_v2 = vmax.f32 %v18170_v24, 0.0  ;;  %v3529_v0 = vmax.f32 %v18173_v9, 0.0  ;;  %v3530_v37 = vmax.f32 %v18176_v42, 0.0 }
 0x30e   : > { %3546 = vst.msk [vmem:[#allocation2 + $0x91] sm:$0xff] %vm273_vm0, %v3514_v22  ;;  %3547 = vst.msk [vmem:[#allocation2 + $0x99] sm:$0xff] %vm273_vm0, %v3515_v4  ;;  %v3531_v17 = vmax.f32 %v18179_v45, 0.0  ;;  %v3532_v12 = vmax.f32 %v18182_v50, 0.0  ;;  %v3534_v26 = vmax.f32 %v18185_v27, 0.0  ;;  %v3535_v38 = vmax.f32 %v18188_v36, 0.0 }
 0x30f   : > { %3548 = vst.msk [vmem:[#allocation2 + $0xa9] sm:$0xff] %vm273_vm0, %v3516_v32  ;;  %3549 = vst.msk [vmem:[#allocation2 + $0xb1] sm:$0xff] %vm273_vm0, %v3517_v63  ;;  %v16215_v49 = vld [vmem:[#allocation8 + $0x50] sm:$0xff]   ;;  %v16216_v21 = vld [vmem:[#allocation8 + $0x48] sm:$0xff]  }
 0x310   : > { %3550 = vst.msk [vmem:[#allocation2 + $0xc1] sm:$0xff] %vm273_vm0, %v3518_v61  ;;  %3551 = vst.msk [vmem:[#allocation2 + $0xc9] sm:$0xff] %vm273_vm0, %v3519_v15  ;;  %v3626_v18 = vld [vmem:[#allocation2 + $0x19] sm:$0xff]  ;;  %v3627_v29 = vld [vmem:[#allocation2 + $0x21] sm:$0xff] }
 0x311   : > { %3552 = vst.msk [vmem:[#allocation2 + $0xd9] sm:$0xff] %vm273_vm0, %v3520_v53  ;;  %3553 = vst.msk [vmem:[#allocation2 + $0xe1] sm:$0xff] %vm273_vm0, %v3521_v41  ;;  %v3570_v14 = vld [vmem:[#allocation2 + $0x18] sm:$0xff]  ;;  %v18233_v13 = vpack.c.bf16 %v3627_v29, %v3626_v18  ;;  %v3571_v30 = vld [vmem:[#allocation2 + $0x20] sm:$0xff] }
 0x312   : > { %3554 = vst.msk [vmem:[#allocation2 + $0xf1] sm:$0xff] %vm273_vm0, %v3522_v1  ;;  %3555 = vst.msk [vmem:[#allocation2 + $0xf9] sm:$0xff] %vm273_vm0, %v3523_v56  ;;  %v3628_v40 = vld [vmem:[#allocation2 + $0x31] sm:$0xff]  ;;  %v3629_v3 = vld [vmem:[#allocation2 + $0x39] sm:$0xff]  ;;  %v18235_v7 = vpack.c.bf16 %v3571_v30, %v3570_v14 }
 0x313   : > { %3556 = vst.msk [vmem:[#allocation2 + $0x109] sm:$0xff] %vm273_vm0, %v3524_v60  ;;  %3557 = vst.msk [vmem:[#allocation2 + $0x111] sm:$0xff] %vm273_vm0, %v3525_v48  ;;  %v18237_v44 = vpack.c.bf16 %v3629_v3, %v3628_v40  ;;  %v3572_v8 = vld [vmem:[#allocation2 + $0x30] sm:$0xff]  ;;  %v3573_v62 = vld [vmem:[#allocation2 + $0x38] sm:$0xff]  ;;  %15025 = vmatmul.mubr.msk.bf16.vlgmr.msra.gmra.mxu1 %vm273_vm0, %v18233_v13 }
 0x314   : > { %3558 = vst.msk [vmem:[#allocation2 + $0x121] sm:$0xff] %vm273_vm0, %v3526_v54  ;;  %3559 = vst.msk [vmem:[#allocation2 + $0x129] sm:$0xff] %vm273_vm0, %v3527_v20  ;;  %v18241_v46 = vpack.c.bf16 %v3573_v62, %v3572_v8  ;;  %v16219_v35 = vld [vmem:[#allocation8 + $0x70] sm:$0xff]   ;;  %15065 = vmatmul.mubr.msk.bf16.vlgmr.msra.gmra.mxu0 %vm273_vm0, %v18235_v7  ;;  %15097 = vmatpush3.bf16.msra.mxu1 %v17924_v33  ;;  %v16220_v23 = vld [vmem:[#allocation8 + $0x68] sm:$0xff]  }
 0x315   : > { %3560 = vst.msk [vmem:[#allocation2 + $0x139] sm:$0xff] %vm273_vm0, %v3528_v2  ;;  %3561 = vst.msk [vmem:[#allocation2 + $0x141] sm:$0xff] %vm273_vm0, %v3529_v0  ;;  %15028 = vmatprep.mubr.msk.bf16.mxu1 %vm273_vm0, %v18237_v44  ;;  %v3630_v6 = vld [vmem:[#allocation2 + $0x49] sm:$0xff]  ;;  %v3631_v19 = vld [vmem:[#allocation2 + $0x51] sm:$0xff]  ;;  %15098 = vmatprep.subr.bf16.mxu1 %v16215_v49 }
 0x316   : > { %3562 = vst.msk [vmem:[#allocation2 + $0x151] sm:$0xff] %vm273_vm0, %v3530_v37  ;;  %3563 = vst.msk [vmem:[#allocation2 + $0x159] sm:$0xff] %vm273_vm0, %v3531_v17  ;;  %15068 = vmatprep.mubr.msk.bf16.mxu0 %vm273_vm0, %v18241_v46  ;;  %v3574_v59 = vld [vmem:[#allocation2 + $0x48] sm:$0xff]  ;;  %15137 = vmatpush3.bf16.msra.mxu0 %v18095_v51  ;;  %v3575_v25 = vld [vmem:[#allocation2 + $0x50] sm:$0xff]  ;;  %v18251_v24 = vpack.c.bf16 %v3631_v19, %v3630_v6 }
 0x317   : > { %3564 = vst.msk [vmem:[#allocation2 + $0x169] sm:$0xff] %vm273_vm0, %v3532_v12  ;;  %3566 = vst.msk [vmem:[#allocation2 + $0x181] sm:$0xff] %vm273_vm0, %v3534_v26  ;;  %v3632_v5 = vld [vmem:[#allocation2 + $0x61] sm:$0xff]  ;;  %v3633_v55 = vld [vmem:[#allocation2 + $0x69] sm:$0xff]  ;;  %15138 = vmatprep.subr.bf16.mxu0 %v16219_v35  ;;  %v18253_v9 = vpack.c.bf16 %v3575_v25, %v3574_v59 }
 0x318   : > { %3567 = vst.msk [vmem:[#allocation2 + $0x189] sm:$0xff] %vm273_vm0, %v3535_v38  ;;  %v3576_v16 = vld [vmem:[#allocation2 + $0x60] sm:$0xff]  ;;  %v3577_v28 = vld [vmem:[#allocation2 + $0x68] sm:$0xff]  ;;  %15099 = vmatpush3.bf16.msra.mxu1 %v16215_v49  ;;  %v18255_v33 = vpack.c.bf16 %v3633_v55, %v3632_v5  ;;  %v16217_v42 = vld [vmem:[#allocation8 + $0x40] sm:$0xff]  }
 0x319   : > { %15100 = vmatprep.subr.bf16.mxu1 %v16216_v21  ;;  %v18259_v51 = vpack.c.bf16 %v3577_v28, %v3576_v16  ;;  %v16221_v45 = vld [vmem:[#allocation8 + $0x60] sm:$0xff]   ;;  %v18267_v50 = vld [vmem:[#allocation8 + $0x98] sm:$0xff]   ;;  %v3634_v36 = vld [vmem:[#allocation2 + $0x79] sm:$0xff] }
 0x31a   : > { %15139 = vmatpush3.bf16.msra.mxu0 %v16219_v35  ;;  %v18269_v27 = vld [vmem:[#allocation8 + $0xb8] sm:$0xff]   ;;  %v3578_v39 = vld [vmem:[#allocation2 + $0x78] sm:$0xff]  ;;  %v3579_v52 = vld [vmem:[#allocation2 + $0x80] sm:$0xff] }
 0x31b   : > { %15029 = vmatmul.mubr.msk.bf16.gmra.mxu1 %vm273_vm0, %v18251_v24  ;;  %15140 = vmatprep.subr.bf16.mxu0 %v16220_v23  ;;  %v3635_v58 = vld [vmem:[#allocation2 + $0x81] sm:$0xff]  ;;  %v3636_v11 = vld [vmem:[#allocation2 + $0x91] sm:$0xff]  ;;  %v3637_v10 = vld [vmem:[#allocation2 + $0x99] sm:$0xff]  ;;  %v18273_v43 = vpack.c.bf16 %v3579_v52, %v3578_v39 }
 0x31c   : > { %15069 = vmatmul.mubr.msk.bf16.gmra.mxu0 %vm273_vm0, %v18253_v9  ;;  %15032 = vmatprep.mubr.msk.bf16.mxu1 %vm273_vm0, %v18255_v33  ;;  %v3580_v34 = vld [vmem:[#allocation2 + $0x90] sm:$0xff]  ;;  %v3581_v57 = vld [vmem:[#allocation2 + $0x98] sm:$0xff]  ;;  %v18271_v31 = vpack.c.bf16 %v3635_v58, %v3634_v36  ;;  %v18275_v47 = vpack.c.bf16 %v3637_v10, %v3636_v11  ;;  %v3582_v63 = vld [vmem:[#allocation2 + $0xa8] sm:$0xff] }
 0x31d   : > { %15072 = vmatprep.mubr.msk.bf16.mxu0 %vm273_vm0, %v18259_v51  ;;  %15101 = vmatpush3.bf16.msra.mxu1 %v16216_v21  ;;  %v18280_v22 = vpack.c.bf16 %v3581_v57, %v3580_v34  ;;  %v3638_v4 = vld [vmem:[#allocation2 + $0xa9] sm:$0xff]  ;;  %v3639_v32 = vld [vmem:[#allocation2 + $0xb1] sm:$0xff]  ;;  %v3640_v15 = vld [vmem:[#allocation2 + $0xc1] sm:$0xff] }
 0x31e   : > { %15102 = vmatprep.subr.bf16.mxu1 %v16217_v42  ;;  %15141 = vmatpush3.bf16.msra.mxu0 %v16220_v23  ;;  %v3583_v61 = vld [vmem:[#allocation2 + $0xb0] sm:$0xff]  ;;  %v3584_v41 = vld [vmem:[#allocation2 + $0xc0] sm:$0xff]  ;;  %v3585_v1 = vld [vmem:[#allocation2 + $0xc8] sm:$0xff]  ;;  %v18289_v56 = vpack.c.bf16 %v3639_v32, %v3638_v4 }
 0x31f   : > { %15142 = vmatprep.subr.bf16.mxu0 %v16221_v45  ;;  %v3641_v53 = vld [vmem:[#allocation2 + $0xc9] sm:$0xff]  ;;  %v18291_v60 = vpack.c.bf16 %v3583_v61, %v3582_v63  ;;  %v18297_v54 = vpack.c.bf16 %v3585_v1, %v3584_v41  ;;  %v3642_v20 = vld [vmem:[#allocation2 + $0xd9] sm:$0xff]  ;;  %v3643_v2 = vld [vmem:[#allocation2 + $0xe1] sm:$0xff] }
 0x320   : > { %v18293_v48 = vpack.c.bf16 %v3641_v53, %v3640_v15  ;;  %v3586_v0 = vld [vmem:[#allocation2 + $0xd8] sm:$0xff]  ;;  %v3587_v37 = vld [vmem:[#allocation2 + $0xe0] sm:$0xff]  ;;  %v3588_v26 = vld [vmem:[#allocation2 + $0xf0] sm:$0xff]  ;;  %v18305_v18 = vpack.c.bf16 %v3643_v2, %v3642_v20 }
 0x321   : > { %15103 = vmatpush3.bf16.msra.mxu1 %v16217_v42  ;;  %v3644_v17 = vld [vmem:[#allocation2 + $0xf1] sm:$0xff]  ;;  %v3645_v12 = vld [vmem:[#allocation2 + $0xf9] sm:$0xff]  ;;  %v18307_v29 = vpack.c.bf16 %v3587_v37, %v3586_v0  ;;  %v3646_v40 = vld [vmem:[#allocation2 + $0x109] sm:$0xff] }
 0x322   : > { %15143 = vmatpush3.bf16.msra.mxu0 %v16221_v45  ;;  %15176 = vmatprep.subr.bf16.mxu1 %v18267_v50  ;;  %v3589_v38 = vld [vmem:[#allocation2 + $0xf8] sm:$0xff]  ;;  %v18309_v14 = vpack.c.bf16 %v3645_v12, %v3644_v17  ;;  %v3590_v8 = vld [vmem:[#allocation2 + $0x108] sm:$0xff]  ;;  %v3591_v62 = vld [vmem:[#allocation2 + $0x110] sm:$0xff] }
 0x323   : > { %15033 = vmatmul.mubr.msk.bf16.gmra.mxu1 %vm273_vm0, %v18271_v31  ;;  %15216 = vmatprep.subr.bf16.mxu0 %v18269_v27  ;;  %v18313_v30 = vpack.c.bf16 %v3589_v38, %v3588_v26  ;;  %v3647_v3 = vld [vmem:[#allocation2 + $0x111] sm:$0xff]  ;;  %v3648_v49 = vld [vmem:[#allocation2 + $0x121] sm:$0xff]  ;;  %v3649_v35 = vld [vmem:[#allocation2 + $0x129] sm:$0xff]  ;;  %v18323_v19 = vpack.c.bf16 %v3591_v62, %v3590_v8 }
 0x324   : > { %15073 = vmatmul.mubr.msk.bf16.gmra.mxu0 %vm273_vm0, %v18273_v43  ;;  %15036 = vmatprep.mubr.msk.bf16.mxu1 %vm273_vm0, %v18275_v47  ;;  %v3592_v21 = vld [vmem:[#allocation2 + $0x120] sm:$0xff]  ;;  %v3593_v23 = vld [vmem:[#allocation2 + $0x128] sm:$0xff]  ;;  %v18321_v6 = vpack.c.bf16 %v3647_v3, %v3646_v40  ;;  %v18325_v59 = vpack.c.bf16 %v3649_v35, %v3648_v49  ;;  %v3594_v16 = vld [vmem:[#allocation2 + $0x138] sm:$0xff] }
 0x325   : > { %15076 = vmatprep.mubr.msk.bf16.mxu0 %vm273_vm0, %v18280_v22  ;;  %v18329_v25 = vpack.c.bf16 %v3593_v23, %v3592_v21  ;;  %v3650_v5 = vld [vmem:[#allocation2 + $0x139] sm:$0xff]  ;;  %v3651_v55 = vld [vmem:[#allocation2 + $0x141] sm:$0xff]  ;;  %v3652_v42 = vld [vmem:[#allocation2 + $0x151] sm:$0xff] }
 0x326   : > { %v3595_v28 = vld [vmem:[#allocation2 + $0x140] sm:$0xff]  ;;  %v3596_v36 = vld [vmem:[#allocation2 + $0x150] sm:$0xff]  ;;  %v3597_v58 = vld [vmem:[#allocation2 + $0x158] sm:$0xff]  ;;  %v18337_v39 = vpack.c.bf16 %v3651_v55, %v3650_v5 }
 0x327   : > { %v3653_v45 = vld [vmem:[#allocation2 + $0x159] sm:$0xff]  ;;  %v18339_v52 = vpack.c.bf16 %v3595_v28, %v3594_v16  ;;  %v18345_v10 = vpack.c.bf16 %v3597_v58, %v3596_v36  ;;  %v4147_v34 = vld [vmem:[#allocation2 + $0x2] sm:$0xff]  ;;  %v4148_v57 = vld [vmem:[#allocation2 + $0xa] sm:$0xff] }
 0x328   : > { %v18341_v11 = vpack.c.bf16 %v3653_v45, %v3652_v42  ;;  %v3654_v4 = vld [vmem:[#allocation2 + $0x169] sm:$0xff]  ;;  %v3655_v32 = vld [vmem:[#allocation2 + $0x171] sm:$0xff]  ;;  %v4179_v15 = vpack.c.bf16 %v4148_v57, %v4147_v34  ;;  %v4149_v1 = vld [vmem:[#allocation2 + $0x1a] sm:$0xff] }
 0x329   : > { %v3598_v63 = vld [vmem:[#allocation2 + $0x168] sm:$0xff]  ;;  %v3599_v61 = vld [vmem:[#allocation2 + $0x170] sm:$0xff]  ;;  %v18353_v53 = vpack.c.bf16 %v3655_v32, %v3654_v4  ;;  %v4152_v0 = vld [vmem:[#allocation2 + $0x3a] sm:$0xff] }
 0x32a   : > { %v18355_v41 = vpack.c.bf16 %v3599_v61, %v3598_v63  ;;  %v4150_v20 = vld [vmem:[#allocation2 + $0x22] sm:$0xff]  ;;  %v4151_v2 = vld [vmem:[#allocation2 + $0x32] sm:$0xff]  ;;  %v4156_v8 = vld [vmem:[#allocation2 + $0x6a] sm:$0xff] }
 0x32b   : > { %15037 = vmatmul.mubr.msk.bf16.gmra.mxu1 %vm273_vm0, %v18289_v56  ;;  %v18364_v37 = vpack.c.bf16 %v4150_v20, %v4149_v1  ;;  %v18366_v17 = vpack.c.bf16 %v4152_v0, %v4151_v2  ;;  %v16223_v12 = vld [vmem:[#allocation8 + $0x90] sm:$0xff]   ;;  %v4154_v38 = vld [vmem:[#allocation2 + $0x52] sm:$0xff]  ;;  %v18390_v5 = vld [vmem:[#allocation8 + $0xd8] sm:$0xff]  }
 0x32c   : > { %15077 = vmatmul.mubr.msk.bf16.gmra.mxu0 %vm273_vm0, %v18291_v60  ;;  %15040 = vmatprep.mubr.msk.bf16.mxu1 %vm273_vm0, %v18293_v48  ;;  %v16227_v26 = vld [vmem:[#allocation8 + $0xb0] sm:$0xff]   ;;  %v16224_v40 = vld [vmem:[#allocation8 + $0x88] sm:$0xff]   ;;  %v16225_v21 = vld [vmem:[#allocation8 + $0x80] sm:$0xff]  }
 0x32d   : > { %15080 = vmatprep.mubr.msk.bf16.mxu0 %vm273_vm0, %v18297_v54  ;;  %v4155_v3 = vld [vmem:[#allocation2 + $0x62] sm:$0xff]  ;;  %v16228_v62 = vld [vmem:[#allocation8 + $0xa8] sm:$0xff]   ;;  %v4161_v36 = vld [vmem:[#allocation2 + $0xaa] sm:$0xff] }
 0x32e   : > { %v18380_v35 = vpack.c.bf16 %v4156_v8, %v4155_v3  ;;  %v4158_v23 = vld [vmem:[#allocation2 + $0x82] sm:$0xff]  ;;  %v4159_v55 = vld [vmem:[#allocation2 + $0x92] sm:$0xff]  ;;  %v4160_v16 = vld [vmem:[#allocation2 + $0x9a] sm:$0xff] }
 0x32f   : > { %v18392_v28 = vld [vmem:[#allocation8 + $0xf8] sm:$0xff]   ;;  %v18396_v45 = vpack.c.bf16 %v4160_v16, %v4159_v55  ;;  %v4162_v58 = vld [vmem:[#allocation2 + $0xb2] sm:$0xff]  ;;  %v4165_v63 = vld [vmem:[#allocation2 + $0xda] sm:$0xff] }
 0x330   : > { %v4163_v34 = vld [vmem:[#allocation2 + $0xc2] sm:$0xff]  ;;  %v4164_v57 = vld [vmem:[#allocation2 + $0xca] sm:$0xff]  ;;  %v18408_v4 = vpack.c.bf16 %v4162_v58, %v4161_v36  ;;  %v4168_v1 = vld [vmem:[#allocation2 + $0xfa] sm:$0xff] }
 0x331   : > { %v18410_v32 = vpack.c.bf16 %v4164_v57, %v4163_v34  ;;  %v4166_v61 = vld [vmem:[#allocation2 + $0xe2] sm:$0xff]  ;;  %v4170_v0 = vld [vmem:[#allocation2 + $0x112] sm:$0xff]  ;;  %v4176_v3 = vld [vmem:[#allocation2 + $0x15a] sm:$0xff] }
 0x332   : > { %v18420_v20 = vpack.c.bf16 %v4166_v61, %v4165_v63  ;;  %v16233_v55 = vld [vmem:[#allocation8 + $0xc0] sm:$0xff]  }
 0x333   : > { %15041 = vmatmul.mubr.msk.bf16.gmra.mxu1 %vm273_vm0, %v18305_v18  ;;  %v5768_v61 = vld [vmem:[#allocation2 + $0xb1] sm:$0xff] }
 0x334   : > { %15081 = vmatmul.mubr.msk.bf16.gmra.mxu0 %vm273_vm0, %v18307_v29  ;;  %15044 = vmatprep.mubr.msk.bf16.mxu1 %vm273_vm0, %v18309_v14 }
 0x335   : > { %15084 = vmatprep.mubr.msk.bf16.mxu0 %vm273_vm0, %v18313_v30 }
 0x33b   : > { %15045 = vmatmul.mubr.msk.bf16.gmra.mxu1 %vm273_vm0, %v18321_v6 }
 0x33c   : > { %15085 = vmatmul.mubr.msk.bf16.gmra.mxu0 %vm273_vm0, %v18323_v19  ;;  %15048 = vmatprep.mubr.msk.bf16.mxu1 %vm273_vm0, %v18325_v59 }
 0x33d   : > { %15088 = vmatprep.mubr.msk.bf16.mxu0 %vm273_vm0, %v18329_v25 }
 0x343   : > { %15049 = vmatmul.mubr.msk.bf16.gmra.mxu1 %vm273_vm0, %v18337_v39 }
 0x344   : > { %15089 = vmatmul.mubr.msk.bf16.gmra.mxu0 %vm273_vm0, %v18339_v52  ;;  %15052 = vmatprep.mubr.msk.bf16.mxu1 %vm273_vm0, %v18341_v11 }
 0x345   : > { %15092 = vmatprep.mubr.msk.bf16.mxu0 %vm273_vm0, %v18345_v10 }
 0x34b   : > { %15053 = vmatmul.mubr.msk.bf16.gmra.mxu1 %vm273_vm0, %v18353_v53 }
 0x34c   : > { %15093 = vmatmul.mubr.msk.bf16.gmra.mxu0 %vm273_vm0, %v18355_v41  ;;  %15104 = vmatprep.mubr.msk.bf16.mxu1 %vm273_vm0, %v4179_v15  ;;  %v4167_v15 = vld [vmem:[#allocation2 + $0xf2] sm:$0xff] }
 0x34d   : > { %15144 = vmatprep.mubr.msk.bf16.mxu0 %vm273_vm0, %v18235_v7  ;;  %v4153_v7 = vld [vmem:[#allocation2 + $0x4a] sm:$0xff]  ;;  %v18422_v2 = vpack.c.bf16 %v4168_v1, %v4167_v15  ;;  %v5769_v1 = vld [vmem:[#allocation2 + $0xc1] sm:$0xff] }
 0x34e   : > { %v18378_v49 = vpack.c.bf16 %v4154_v38, %v4153_v7 }
 0x353   : > { %15105 = vmatmul.mubr.msk.bf16.vlgmr.msra.gmra.mxu1 %vm273_vm0, %v18364_v37 }
 0x354   : > { %15145 = vmatmul.mubr.msk.bf16.vlgmr.msra.gmra.mxu0 %vm273_vm0, %v18241_v46  ;;  %15108 = vmatprep.mubr.msk.bf16.mxu1 %vm273_vm0, %v18366_v17 }
 0x355   : > { %15148 = vmatprep.mubr.msk.bf16.mxu0 %vm273_vm0, %v18253_v9  ;;  %15177 = vmatpush3.bf16.msra.mxu1 %v18267_v50  ;;  %v16229_v50 = vld [vmem:[#allocation8 + $0xa0] sm:$0xff]  }
 0x356   : > { %15178 = vmatprep.subr.bf16.mxu1 %v16223_v12  ;;  %15217 = vmatpush3.bf16.msra.mxu0 %v18269_v27  ;;  %v4157_v27 = vld [vmem:[#allocation2 + $0x7a] sm:$0xff] }
 0x357   : > { %15218 = vmatprep.subr.bf16.mxu0 %v16227_v26  ;;  %v18394_v42 = vpack.c.bf16 %v4158_v23, %v4157_v27 }
 0x359   : > { %15179 = vmatpush3.bf16.msra.mxu1 %v16223_v12  ;;  %v4171_v12 = vld [vmem:[#allocation2 + $0x122] sm:$0xff] }
 0x35a   : > { %15180 = vmatprep.subr.bf16.mxu1 %v16224_v40  ;;  %15219 = vmatpush3.bf16.msra.mxu0 %v16227_v26  ;;  %v4172_v26 = vld [vmem:[#allocation2 + $0x12a] sm:$0xff] }
 0x35b   : > { %15109 = vmatmul.mubr.msk.bf16.gmra.mxu1 %vm273_vm0, %v18378_v49  ;;  %15220 = vmatprep.subr.bf16.mxu0 %v16228_v62  ;;  %v18434_v38 = vpack.c.bf16 %v4172_v26, %v4171_v12 }
 0x35c   : > { %15149 = vmatmul.mubr.msk.bf16.gmra.mxu0 %vm273_vm0, %v18259_v51  ;;  %15112 = vmatprep.mubr.msk.bf16.mxu1 %vm273_vm0, %v18380_v35 }
 0x35d   : > { %15152 = vmatprep.mubr.msk.bf16.mxu0 %vm273_vm0, %v18273_v43  ;;  %15181 = vmatpush3.bf16.msra.mxu1 %v16224_v40  ;;  %v4175_v40 = vld [vmem:[#allocation2 + $0x152] sm:$0xff] }
 0x35e   : > { %15182 = vmatprep.subr.bf16.mxu1 %v16225_v21  ;;  %15221 = vmatpush3.bf16.msra.mxu0 %v16228_v62  ;;  %v4193_v62 = vpack.c.bf16 %v4176_v3, %v4175_v40  ;;  %v5450_v40 = vld [vmem:[#allocation2 + $0xe0] sm:$0xff] }
 0x35f   : > { %15222 = vmatprep.subr.bf16.mxu0 %v16229_v50  ;;  %v5771_v3 = vld [vmem:[#allocation2 + $0xd9] sm:$0xff] }
 0x361   : > { %15183 = vmatpush3.bf16.msra.mxu1 %v16225_v21  ;;  %v4178_v21 = vld [vmem:[#allocation2 + $0x172] sm:$0xff] }
 0x362   : > { %15223 = vmatpush3.bf16.msra.mxu0 %v16229_v50  ;;  %15256 = vmatprep.subr.bf16.mxu1 %v18390_v5  ;;  %v4499_v50 = vld [vmem:[#allocation2 + $0x180] sm:$0xff] }
 0x363   : > { %15113 = vmatmul.mubr.msk.bf16.gmra.mxu1 %vm273_vm0, %v18394_v42  ;;  %15296 = vmatprep.subr.bf16.mxu0 %v18392_v28 }
 0x364   : > { %15153 = vmatmul.mubr.msk.bf16.gmra.mxu0 %vm273_vm0, %v18280_v22  ;;  %15116 = vmatprep.mubr.msk.bf16.mxu1 %vm273_vm0, %v18396_v45 }
 0x365   : > { %15156 = vmatprep.mubr.msk.bf16.mxu0 %vm273_vm0, %v18291_v60 }
 0x36b   : > { %15117 = vmatmul.mubr.msk.bf16.gmra.mxu1 %vm273_vm0, %v18408_v4 }
 0x36c   : > { %15157 = vmatmul.mubr.msk.bf16.gmra.mxu0 %vm273_vm0, %v18297_v54  ;;  %15120 = vmatprep.mubr.msk.bf16.mxu1 %vm273_vm0, %v18410_v32 }
 0x36d   : > { %15160 = vmatprep.mubr.msk.bf16.mxu0 %vm273_vm0, %v18307_v29  ;;  %v4169_v29 = vld [vmem:[#allocation2 + $0x10a] sm:$0xff] }
 0x36e   : > { %v18432_v7 = vpack.c.bf16 %v4170_v0, %v4169_v29 }
 0x373   : > { %15121 = vmatmul.mubr.msk.bf16.gmra.mxu1 %vm273_vm0, %v18420_v20 }
 0x374   : > { %15161 = vmatmul.mubr.msk.bf16.gmra.mxu0 %vm273_vm0, %v18313_v30  ;;  %15124 = vmatprep.mubr.msk.bf16.mxu1 %vm273_vm0, %v18422_v2  ;;  %v4173_v30 = vld [vmem:[#allocation2 + $0x13a] sm:$0xff] }
 0x375   : > { %15164 = vmatprep.mubr.msk.bf16.mxu0 %vm273_vm0, %v18323_v19  ;;  %v4174_v19 = vld [vmem:[#allocation2 + $0x142] sm:$0xff] }
 0x376   : > { %v4192_v8 = vpack.c.bf16 %v4174_v19, %v4173_v30  ;;  %v5449_v19 = vld [vmem:[#allocation2 + $0xd8] sm:$0xff] }
 0x37b   : > { %15125 = vmatmul.mubr.msk.bf16.gmra.mxu1 %vm273_vm0, %v18432_v7 }
 0x37c   : > { %15165 = vmatmul.mubr.msk.bf16.gmra.mxu0 %vm273_vm0, %v18329_v25  ;;  %15128 = vmatprep.mubr.msk.bf16.mxu1 %vm273_vm0, %v18434_v38  ;;  %v4177_v25 = vld [vmem:[#allocation2 + $0x16a] sm:$0xff] }
 0x37d   : > { %15168 = vmatprep.mubr.msk.bf16.mxu0 %vm273_vm0, %v18339_v52  ;;  %v4500_v52 = vld [vmem:[#allocation2 + $0x188] sm:$0xff]  ;;  %v4194_v27 = vpack.c.bf16 %v4178_v21, %v4177_v25  ;;  %v5451_v25 = vld [vmem:[#allocation2 + $0xf0] sm:$0xff]  ;;  %v5452_v21 = vld [vmem:[#allocation2 + $0xf8] sm:$0xff] }
 0x37e   : > { %v18450_v23 = vpack.c.bf16 %v4500_v52, %v4499_v50  ;;  %v5773_v52 = vld [vmem:[#allocation2 + $0xf1] sm:$0xff] }
 0x383   : > { %15129 = vmatmul.mubr.msk.bf16.gmra.mxu1 %vm273_vm0, %v4192_v8 }
 0x384   : > { %15169 = vmatmul.mubr.msk.bf16.gmra.mxu0 %vm273_vm0, %v18345_v10  ;;  %15132 = vmatprep.mubr.msk.bf16.mxu1 %vm273_vm0, %v4193_v62  ;;  %v16231_v10 = vld [vmem:[#allocation8 + $0xd0] sm:$0xff]  }
 0x385   : > { %15172 = vmatprep.mubr.msk.bf16.mxu0 %vm273_vm0, %v18355_v41  ;;  %v16235_v41 = vld [vmem:[#allocation8 + $0xf0] sm:$0xff]  }
 0x38b   : > { %15133 = vmatmul.mubr.msk.bf16.gmra.mxu1 %vm273_vm0, %v4194_v27 }
 0x38c   : > { %15173 = vmatmul.mubr.msk.bf16.gmra.mxu0 %vm273_vm0, %v18450_v23  ;;  %15184 = vmatprep.mubr.msk.bf16.mxu1 %vm273_vm0, %v18233_v13  ;;  %v16232_v13 = vld [vmem:[#allocation8 + $0xc8] sm:$0xff]  }
 0x38d   : > { %15224 = vmatprep.mubr.msk.bf16.mxu0 %vm273_vm0, %v18364_v37  ;;  %v16236_v37 = vld [vmem:[#allocation8 + $0xe8] sm:$0xff]  }
 0x393   : > { %15185 = vmatmul.mubr.msk.bf16.vlgmr.msra.gmra.mxu1 %vm273_vm0, %v18237_v44 }
 0x394   : > { %15225 = vmatmul.mubr.msk.bf16.vlgmr.msra.gmra.mxu0 %vm273_vm0, %v18366_v17  ;;  %15188 = vmatprep.mubr.msk.bf16.mxu1 %vm273_vm0, %v18251_v24  ;;  %v16237_v17 = vld [vmem:[#allocation8 + $0xe0] sm:$0xff]  }
 0x395   : > { %15228 = vmatprep.mubr.msk.bf16.mxu0 %vm273_vm0, %v18378_v49  ;;  %15257 = vmatpush3.bf16.msra.mxu1 %v18390_v5  ;;  %v16238_v49 = vld [vmem:[#allocation8 + $0x118] sm:$0xff]   ;;  %v16240_v5 = vld [vmem:[#allocation8 + $0x108] sm:$0xff]  }
 0x396   : > { %15258 = vmatprep.subr.bf16.mxu1 %v16231_v10  ;;  %15297 = vmatpush3.bf16.msra.mxu0 %v18392_v28 }
 0x397   : > { %15298 = vmatprep.subr.bf16.mxu0 %v16235_v41 }
 0x399   : > { %15259 = vmatpush3.bf16.msra.mxu1 %v16231_v10 }
 0x39a   : > { %15260 = vmatprep.subr.bf16.mxu1 %v16232_v13  ;;  %15299 = vmatpush3.bf16.msra.mxu0 %v16235_v41  ;;  %v5474_v41 = vpack.c.bf16 %v5450_v40, %v5449_v19  ;;  %v5780_v40 = vld [vmem:[#allocation2 + $0x141] sm:$0xff] }
 0x39b   : > { %15189 = vmatmul.mubr.msk.bf16.gmra.mxu1 %vm273_vm0, %v18255_v33  ;;  %15300 = vmatprep.subr.bf16.mxu0 %v16236_v37 }
 0x39c   : > { %15229 = vmatmul.mubr.msk.bf16.gmra.mxu0 %vm273_vm0, %v18380_v35  ;;  %15192 = vmatprep.mubr.msk.bf16.mxu1 %vm273_vm0, %v18271_v31 }
 0x39d   : > { %15232 = vmatprep.mubr.msk.bf16.mxu0 %vm273_vm0, %v18394_v42  ;;  %15261 = vmatpush3.bf16.msra.mxu1 %v16232_v13 }
 0x39e   : > { %15262 = vmatprep.subr.bf16.mxu1 %v16233_v55  ;;  %15301 = vmatpush3.bf16.msra.mxu0 %v16236_v37 }
 0x39f   : > { %15302 = vmatprep.subr.bf16.mxu0 %v16237_v17 }
 0x3a1   : > { %15263 = vmatpush3.bf16.msra.mxu1 %v16233_v55  ;;  %v5475_v55 = vpack.c.bf16 %v5452_v21, %v5451_v25  ;;  %v5781_v25 = vld [vmem:[#allocation2 + $0x151] sm:$0xff]  ;;  %v5782_v21 = vld [vmem:[#allocation2 + $0x159] sm:$0xff] }
 0x3a2   : > { %15303 = vmatpush3.bf16.msra.mxu0 %v16237_v17  ;;  %15336 = vmatprep.subr.bf16.mxu1 %v16238_v49 }
 0x3a3   : > { %15193 = vmatmul.mubr.msk.bf16.gmra.mxu1 %vm273_vm0, %v18275_v47 }
 0x3a4   : > { %15233 = vmatmul.mubr.msk.bf16.gmra.mxu0 %vm273_vm0, %v18396_v45  ;;  %15196 = vmatprep.mubr.msk.bf16.mxu1 %vm273_vm0, %v18289_v56  ;;  %v4821_v56 = vld [vmem:[#allocation2 + $0x181] sm:$0xff] }
 0x3a5   : > { %15236 = vmatprep.mubr.msk.bf16.mxu0 %vm273_vm0, %v18408_v4 }
 0x3ab   : > { %15197 = vmatmul.mubr.msk.bf16.gmra.mxu1 %vm273_vm0, %v18293_v48  ;;  %v4822_v48 = vld [vmem:[#allocation2 + $0x189] sm:$0xff] }
 0x3ac   : > { %15237 = vmatmul.mubr.msk.bf16.gmra.mxu0 %vm273_vm0, %v18410_v32  ;;  %15200 = vmatprep.mubr.msk.bf16.mxu1 %vm273_vm0, %v18305_v18  ;;  %v5143_v18 = vld [vmem:[#allocation2 + $0x182] sm:$0xff] }
 0x3ad   : > { %15240 = vmatprep.mubr.msk.bf16.mxu0 %vm273_vm0, %v18420_v20 }
 0x3b3   : > { %15201 = vmatmul.mubr.msk.bf16.gmra.mxu1 %vm273_vm0, %v18309_v14  ;;  %v5144_v14 = vld [vmem:[#allocation2 + $0x18a] sm:$0xff] }
 0x3b4   : > { %15241 = vmatmul.mubr.msk.bf16.gmra.mxu0 %vm273_vm0, %v18422_v2  ;;  %15204 = vmatprep.mubr.msk.bf16.mxu1 %vm273_vm0, %v18321_v6  ;;  %v18514_v6 = vpack.c.bf16 %v4822_v48, %v4821_v56 }
 0x3b5   : > { %15244 = vmatprep.mubr.msk.bf16.mxu0 %vm273_vm0, %v18432_v7 }
 0x3bb   : > { %15205 = vmatmul.mubr.msk.bf16.gmra.mxu1 %vm273_vm0, %v18325_v59  ;;  %v18516_v59 = vpack.c.bf16 %v5144_v14, %v5143_v18 }
 0x3bc   : > { %15245 = vmatmul.mubr.msk.bf16.gmra.mxu0 %vm273_vm0, %v18434_v38  ;;  %15208 = vmatprep.mubr.msk.bf16.mxu1 %vm273_vm0, %v18337_v39  ;;  %v16239_v39 = vld [vmem:[#allocation8 + $0x110] sm:$0xff]  }
 0x3bd   : > { %15248 = vmatprep.mubr.msk.bf16.mxu0 %vm273_vm0, %v4192_v8 }
 0x3c3   : > { %15209 = vmatmul.mubr.msk.bf16.gmra.mxu1 %vm273_vm0, %v18341_v11 }
 0x3c4   : > { %15249 = vmatmul.mubr.msk.bf16.gmra.mxu0 %vm273_vm0, %v4193_v62  ;;  %15212 = vmatprep.mubr.msk.bf16.mxu1 %vm273_vm0, %v18353_v53 }
 0x3c5   : > { %15252 = vmatprep.mubr.msk.bf16.mxu0 %vm273_vm0, %v4194_v27  ;;  %v5774_v27 = vld [vmem:[#allocation2 + $0xf9] sm:$0xff] }
 0x3c6   : > { %v5797_v56 = vpack.c.bf16 %v5774_v27, %v5773_v52 }
 0x3cb   : > { %15213 = vmatmul.mubr.msk.bf16.gmra.mxu1 %vm273_vm0, %v18514_v6 }
 0x3cc   : > { %15253 = vmatmul.mubr.msk.bf16.gmra.mxu0 %vm273_vm0, %v18516_v59  ;;  %15264 = vmatprep.mubr.msk.bf16.mxu1 %vm273_vm0, %v18241_v46 }
 0x3cd   : > { %15304 = vmatprep.mubr.msk.bf16.mxu0 %vm273_vm0, %v18237_v44 }
 0x3d3   : > { %v15026_v11 = vpop.f32.mrf.mxu1  ;;  %15265 = vmatmul.mubr.msk.bf16.vlgmr.msra.gmra.mxu1 %vm273_vm0, %v18253_v9 }
 0x3d4   : > { %v15066_v53 = vpop.f32.mrf.mxu0  ;;  %15305 = vmatmul.mubr.msk.bf16.vlgmr.msra.gmra.mxu0 %vm273_vm0, %v18251_v24  ;;  %15268 = vmatprep.mubr.msk.bf16.mxu1 %vm273_vm0, %v18259_v51  ;;  %v16241_v51 = vld [vmem:[#allocation8 + $0x100] sm:$0xff]  }
 0x3d5   : > { %v18532_v35 = vadd.f32 %v15066_v53, %v15026_v11  ;;  %15308 = vmatprep.mubr.msk.bf16.mxu0 %vm273_vm0, %v18255_v33  ;;  %15337 = vmatpush3.bf16.msra.mxu1 %v16238_v49  ;;  %v3787_v46 = vpop.f32.mrf.mxu1  ;;  %v5453_v11 = vld [vmem:[#allocation2 + $0x108] sm:$0xff]  ;;  %v5454_v53 = vld [vmem:[#allocation2 + $0x110] sm:$0xff] }
 0x3d6   : > { %v4020_v44 = vpop.f32.mrf.mxu0  ;;  %15338 = vmatprep.subr.bf16.mxu1 %v16239_v39 }
 0x3d7   : > { %v18536_v16 = vadd.f32 %v4020_v44, %v3787_v46  ;;  %v15027_v9 = vpop.f32.mrf.mxu1  ;;  %v5775_v46 = vld [vmem:[#allocation2 + $0x109] sm:$0xff] }
 0x3d8   : > { %v15067_v28 = vpop.f32.mrf.mxu0 }
 0x3d9   : > { %v18538_v42 = vadd.f32 %v15067_v28, %v15027_v9  ;;  %v3790_v24 = vpop.f32.mrf.mxu1  ;;  %15339 = vmatpush3.bf16.msra.mxu1 %v16239_v39  ;;  %v5776_v9 = vld [vmem:[#allocation2 + $0x111] sm:$0xff]  ;;  %v5455_v28 = vld [vmem:[#allocation2 + $0x120] sm:$0xff] }
 0x3da   : > { %v4023_v45 = vpop.f32.mrf.mxu0  ;;  %15340 = vmatprep.subr.bf16.mxu1 %v16240_v5 }
 0x3db   : > { %v18540_v36 = vadd.f32 %v4023_v45, %v3790_v24  ;;  %v15030_v58 = vpop.f32.mrf.mxu1  ;;  %15269 = vmatmul.mubr.msk.bf16.gmra.mxu1 %vm273_vm0, %v18273_v43  ;;  %v5767_v43 = vld [vmem:[#allocation2 + $0xa9] sm:$0xff] }
 0x3dc   : > { %v15070_v33 = vpop.f32.mrf.mxu0  ;;  %15309 = vmatmul.mubr.msk.bf16.gmra.mxu0 %vm273_vm0, %v18271_v31  ;;  %15272 = vmatprep.mubr.msk.bf16.mxu1 %vm273_vm0, %v18280_v22  ;;  %v5770_v31 = vld [vmem:[#allocation2 + $0xc9] sm:$0xff]  ;;  %v5794_v29 = vpack.c.bf16 %v5768_v61, %v5767_v43  ;;  %v5798_v43 = vpack.c.bf16 %v5776_v9, %v5775_v46  ;;  %v5784_v9 = vld [vmem:[#allocation2 + $0x171] sm:$0xff] }
 0x3dd   : > { %v18548_v34 = vadd.f32 %v15070_v33, %v15030_v58  ;;  %15312 = vmatprep.mubr.msk.bf16.mxu0 %vm273_vm0, %v18275_v47  ;;  %v3803_v57 = vpop.f32.mrf.mxu1  ;;  %15341 = vmatpush3.bf16.msra.mxu1 %v16240_v5  ;;  %v5795_v12 = vpack.c.bf16 %v5770_v31, %v5769_v1  ;;  %v5456_v24 = vld [vmem:[#allocation2 + $0x128] sm:$0xff] }
 0x3de   : > { %v4036_v4 = vpop.f32.mrf.mxu0  ;;  %15342 = vmatprep.subr.bf16.mxu1 %v16241_v51  ;;  %v5778_v58 = vld [vmem:[#allocation2 + $0x129] sm:$0xff]  ;;  %v5477_v61 = vpack.c.bf16 %v5456_v24, %v5455_v28 }
 0x3df   : > { %v18552_v32 = vadd.f32 %v4036_v4, %v3803_v57  ;;  %v15031_v63 = vpop.f32.mrf.mxu1  ;;  %v5476_v4 = vpack.c.bf16 %v5454_v53, %v5453_v11  ;;  %v5462_v11 = vld [vmem:[#allocation2 + $0x170] sm:$0xff] }
 0x3e0   : > { %v15071_v15 = vpop.f32.mrf.mxu0 }
 0x3e1   : > { %v18554_v20 = vadd.f32 %v15071_v15, %v15031_v63  ;;  %v3806_v22 = vpop.f32.mrf.mxu1  ;;  %15343 = vmatpush3.bf16.msra.mxu1 %v16241_v51  ;;  %v5777_v51 = vld [vmem:[#allocation2 + $0x121] sm:$0xff] }
 0x3e2   : > { %v4039_v2 = vpop.f32.mrf.mxu0  ;;  %v5799_v31 = vpack.c.bf16 %v5778_v58, %v5777_v51 }
 0x3e3   : > { %v18556_v0 = vadd.f32 %v4039_v2, %v3806_v22  ;;  %v15034_v47 = vpop.f32.mrf.mxu1  ;;  %15273 = vmatmul.mubr.msk.bf16.gmra.mxu1 %vm273_vm0, %v18291_v60  ;;  %v5772_v60 = vld [vmem:[#allocation2 + $0xe1] sm:$0xff] }
 0x3e4   : > { %v15074_v26 = vpop.f32.mrf.mxu0  ;;  %15313 = vmatmul.mubr.msk.bf16.gmra.mxu0 %vm273_vm0, %v5794_v29  ;;  %15276 = vmatprep.mubr.msk.bf16.mxu1 %vm273_vm0, %v18297_v54  ;;  %v5796_v37 = vpack.c.bf16 %v5772_v60, %v5771_v3  ;;  %v5459_v3 = vld [vmem:[#allocation2 + $0x150] sm:$0xff] }
 0x3e5   : > { %v18563_v7 = vadd.f32 %v15074_v26, %v15034_v47  ;;  %15316 = vmatprep.mubr.msk.bf16.mxu0 %vm273_vm0, %v5795_v12  ;;  %v3819_v38 = vpop.f32.mrf.mxu1  ;;  %v5457_v12 = vld [vmem:[#allocation2 + $0x138] sm:$0xff]  ;;  %v5458_v26 = vld [vmem:[#allocation2 + $0x140] sm:$0xff] }
 0x3e6   : > { %v4052_v30 = vpop.f32.mrf.mxu0  ;;  %v5478_v27 = vpack.c.bf16 %v5458_v26, %v5457_v12 }
 0x3e7   : > { %v18566_v8 = vadd.f32 %v4052_v30, %v3819_v38  ;;  %v15035_v62 = vpop.f32.mrf.mxu1  ;;  %v5779_v38 = vld [vmem:[#allocation2 + $0x139] sm:$0xff] }
 0x3e8   : > { %v15075_v50 = vpop.f32.mrf.mxu0 }
 0x3e9   : > { %v18568_v10 = vadd.f32 %v15075_v50, %v15035_v62  ;;  %v3822_v54 = vpop.f32.mrf.mxu1  ;;  %v5460_v62 = vld [vmem:[#allocation2 + $0x158] sm:$0xff] }
 0x3ea   : > { %v4055_v13 = vpop.f32.mrf.mxu0 }
 0x3eb   : > { %v18570_v17 = vadd.f32 %v4055_v13, %v3822_v54  ;;  %v15038_v49 = vpop.f32.mrf.mxu1  ;;  %15277 = vmatmul.mubr.msk.bf16.gmra.mxu1 %vm273_vm0, %v5474_v41  ;;  %v5800_v41 = vpack.c.bf16 %v5780_v40, %v5779_v38  ;;  %v5479_v13 = vpack.c.bf16 %v5460_v62, %v5459_v3  ;;  %v6080_v40 = vld [vmem:[#allocation2 + $0x3a] sm:$0xff] }
 0x3ec   : > { %v15078_v48 = vpop.f32.mrf.mxu0  ;;  %15317 = vmatmul.mubr.msk.bf16.gmra.mxu0 %vm273_vm0, %v5796_v37  ;;  %15280 = vmatprep.mubr.msk.bf16.mxu1 %vm273_vm0, %v5475_v55  ;;  %v5801_v55 = vpack.c.bf16 %v5782_v21, %v5781_v25 }
 0x3ed   : > { %v18575_v18 = vadd.f32 %v15078_v48, %v15038_v49  ;;  %15320 = vmatprep.mubr.msk.bf16.mxu0 %vm273_vm0, %v5797_v56  ;;  %v3835_v14 = vpop.f32.mrf.mxu1 }
 0x3ee   : > { %v4068_v39 = vpop.f32.mrf.mxu0 }
 0x3ef   : > { %v18578_v44 = vadd.f32 %v4068_v39, %v3835_v14  ;;  %v15039_v5 = vpop.f32.mrf.mxu1  ;;  %v5461_v39 = vld [vmem:[#allocation2 + $0x168] sm:$0xff] }
 0x3f0   : > { %v15079_v45 = vpop.f32.mrf.mxu0  ;;  %v5480_v51 = vpack.c.bf16 %v5462_v11, %v5461_v39  ;;  %v6083_v39 = vld [vmem:[#allocation2 + $0x62] sm:$0xff]  ;;  %v6084_v11 = vld [vmem:[#allocation2 + $0x6a] sm:$0xff] }
 0x3f1   : > { %v18580_v33 = vadd.f32 %v15079_v45, %v15039_v5  ;;  %v3838_v57 = vpop.f32.mrf.mxu1  ;;  %v5783_v5 = vld [vmem:[#allocation2 + $0x169] sm:$0xff] }
 0x3f2   : > { %v4071_v63 = vpop.f32.mrf.mxu0 }
 0x3f3   : > { %v18582_v15 = vadd.f32 %v4071_v63, %v3838_v57  ;;  %v15042_v1 = vpop.f32.mrf.mxu1  ;;  %15281 = vmatmul.mubr.msk.bf16.gmra.mxu1 %vm273_vm0, %v5476_v4  ;;  %v5802_v57 = vpack.c.bf16 %v5784_v9, %v5783_v5 }
 0x3f4   : > { %v15082_v22 = vpop.f32.mrf.mxu0  ;;  %15321 = vmatmul.mubr.msk.bf16.gmra.mxu0 %vm273_vm0, %v5798_v43  ;;  %15284 = vmatprep.mubr.msk.bf16.mxu1 %vm273_vm0, %v5477_v61  ;;  %v5465_v43 = vld [vmem:[#allocation2 + $0x198] sm:$0xff]  ;;  %v5466_v61 = vld [vmem:[#allocation2 + $0x1a0] sm:$0xff] }
 0x3f5   : > { %v18587_v2 = vadd.f32 %v15082_v22, %v15042_v1  ;;  %15324 = vmatprep.mubr.msk.bf16.mxu0 %vm273_vm0, %v5799_v31  ;;  %v3851_v29 = vpop.f32.mrf.mxu1  ;;  %v5787_v22 = vld [vmem:[#allocation2 + $0x199] sm:$0xff]  ;;  %v5482_v38 = vpack.c.bf16 %v5466_v61, %v5465_v43 }
 0x3f6   : > { %v4084_v47 = vpop.f32.mrf.mxu0 }
 0x3f7   : > { %v18590_v30 = vadd.f32 %v4084_v47, %v3851_v29  ;;  %v15043_v19 = vpop.f32.mrf.mxu1  ;;  %v5788_v29 = vld [vmem:[#allocation2 + $0x1a1] sm:$0xff] }
 0x3f8   : > { %v15083_v60 = vpop.f32.mrf.mxu0  ;;  %v5804_v62 = vpack.c.bf16 %v5788_v29, %v5787_v22 }
 0x3f9   : > { %v18592_v50 = vadd.f32 %v15083_v60, %v15043_v19  ;;  %v18594_v52 = vpop.f32.mrf.mxu1  ;;  %v6079_v19 = vld [vmem:[#allocation2 + $0x32] sm:$0xff] }
 0x3fa   : > { %v18596_v54 = vpop.f32.mrf.mxu0  ;;  %v6111_v21 = vpack.c.bf16 %v6080_v40, %v6079_v19  ;;  %v6087_v19 = vld [vmem:[#allocation2 + $0x92] sm:$0xff]  ;;  %v6088_v40 = vld [vmem:[#allocation2 + $0x9a] sm:$0xff] }
 0x3fb   : > { %v15046_v37 = vpop.f32.mrf.mxu1  ;;  %15285 = vmatmul.mubr.msk.bf16.gmra.mxu1 %vm273_vm0, %v5478_v27 }
 0x3fc   : > { %v15086_v49 = vpop.f32.mrf.mxu0  ;;  %15325 = vmatmul.mubr.msk.bf16.gmra.mxu0 %vm273_vm0, %v5800_v41  ;;  %15288 = vmatprep.mubr.msk.bf16.mxu1 %vm273_vm0, %v5479_v13 }
 0x3fd   : > { %v18601_v56 = vadd.f32 %v15086_v49, %v15046_v37  ;;  %15328 = vmatprep.mubr.msk.bf16.mxu0 %vm273_vm0, %v5801_v55  ;;  %v3867_v48 = vpop.f32.mrf.mxu1  ;;  %v6081_v55 = vld [vmem:[#allocation2 + $0x4a] sm:$0xff]  ;;  %v6082_v49 = vld [vmem:[#allocation2 + $0x52] sm:$0xff] }
 0x3fe   : > { %v4100_v14 = vpop.f32.mrf.mxu0 }
 0x3ff   : > { %v18604_v53 = vadd.f32 %v4100_v14, %v3867_v48  ;;  %v15047_v46 = vpop.f32.mrf.mxu1 }
 0x400   : > { %v15087_v28 = vpop.f32.mrf.mxu0 }
 0x401   : > { %v18606_v24 = vadd.f32 %v15087_v28, %v15047_v46  ;;  %v18608_v45 = vpop.f32.mrf.mxu1  ;;  %v6112_v28 = vpack.c.bf16 %v6082_v49, %v6081_v55 }
 0x402   : > { %22650 = vst [vmem:[#allocation76_spill] sm:$0xff] %v18608_v45  ;;  %v18610_v58 = vpop.f32.mrf.mxu0 }
 0x403   : > { %22651 = vst [vmem:[#allocation58_spill] sm:$0xff] %v18610_v58  ;;  %v15050_v4 = vpop.f32.mrf.mxu1  ;;  %15289 = vmatmul.mubr.msk.bf16.gmra.mxu1 %vm273_vm0, %v5480_v51 }
 0x404   : > { %v15090_v63 = vpop.f32.mrf.mxu0  ;;  %15329 = vmatmul.mubr.msk.bf16.gmra.mxu0 %vm273_vm0, %v5802_v57  ;;  %15292 = vmatprep.mubr.msk.bf16.mxu1 %vm273_vm0, %v18450_v23  ;;  %v6113_v57 = vpack.c.bf16 %v6084_v11, %v6083_v39 }
 0x405   : > { %v18616_v1 = vadd.f32 %v15090_v63, %v15050_v4  ;;  %15332 = vmatprep.mubr.msk.bf16.mxu0 %vm273_vm0, %v18514_v6  ;;  %v3883_v31 = vpop.f32.mrf.mxu1 }
 0x406   : > { %v4116_v47 = vpop.f32.mrf.mxu0 }
 0x407   : > { %v18620_v12 = vadd.f32 %v4116_v47, %v3883_v31  ;;  %v15051_v26 = vpop.f32.mrf.mxu1  ;;  %v6085_v47 = vld [vmem:[#allocation2 + $0x7a] sm:$0xff] }
 0x408   : > { %v15091_v3 = vpop.f32.mrf.mxu0 }
 0x409   : > { %v18622_v23 = vadd.f32 %v15091_v3, %v15051_v26  ;;  %v18624_v60 = vpop.f32.mrf.mxu1  ;;  %v6086_v26 = vld [vmem:[#allocation2 + $0x82] sm:$0xff] }
 0x40a   : > { %22652 = vst [vmem:[#allocation51_spill] sm:$0xff] %v18624_v60  ;;  %v18626_v25 = vpop.f32.mrf.mxu0 }
 0x40b   : > { %22653 = vst [vmem:[#allocation78_spill] sm:$0xff] %v18626_v25  ;;  %v15054_v6 = vpop.f32.mrf.mxu1  ;;  %15293 = vmatmul.mubr.msk.bf16.gmra.mxu1 %vm273_vm0, %v5482_v38 }
 0x40c   : > { %v15094_v27 = vpop.f32.mrf.mxu0  ;;  %15344 = vmatprep.mubr.msk.bf16.mxu1 %vm273_vm0, %v6111_v21  ;;  %15333 = vmatmul.mubr.msk.bf16.gmra.mxu0 %vm273_vm0, %v5804_v62 }
 0x40d   : > { %v18631_v41 = vadd.f32 %v15094_v27, %v15054_v6  ;;  %v3899_v13 = vpop.f32.mrf.mxu1  ;;  %v6114_v6 = vpack.c.bf16 %v6086_v26, %v6085_v47 }
 0x40e   : > { %v4132_v37 = vpop.f32.mrf.mxu0 }
 0x40f   : > { %v18633_v48 = vadd.f32 %v4132_v37, %v3899_v13  ;;  %v15055_v14 = vpop.f32.mrf.mxu1 }
 0x410   : > { %v15095_v46 = vpop.f32.mrf.mxu0 }
 0x411   : > { %v18635_v5 = vadd.f32 %v15095_v46, %v15055_v14  ;;  %v18637_v9 = vpop.f32.mrf.mxu1 }
 0x412   : > { %22654 = vst [vmem:[#allocation45_spill] sm:$0xff] %v18637_v9  ;;  %v18639_v51 = vpop.f32.mrf.mxu0 }
 0x413   : > { %22655 = vst [vmem:[#allocation46_spill] sm:$0xff] %v18639_v51  ;;  %v15106_v4 = vpop.f32.mrf.mxu1  ;;  %15345 = vmatmul.mubr.msk.bf16.vlgmr.msra.gmra.mxu1 %vm273_vm0, %v6112_v28  ;;  %v6089_v28 = vld [vmem:[#allocation2 + $0xaa] sm:$0xff] }
 0x414   : > { %v4439_v63 = vadd.f32 %v15106_v4, %v18532_v35  ;;  %v15146_v43 = vpop.f32.mrf.mxu0  ;;  %15348 = vmatprep.mubr.msk.bf16.mxu1 %vm273_vm0, %v6113_v57  ;;  %v6091_v4 = vld [vmem:[#allocation2 + $0xc2] sm:$0xff] }
 0x415   : > { %v4310_v61 = vpop.f32.mrf.mxu1 }
 0x416   : > { %v18644_v31 = vadd.f32 %v15146_v43, %v4439_v63  ;;  %v4437_v22 = vadd.f32 %v4310_v61, %v18536_v16  ;;  %v4632_v29 = vpop.f32.mrf.mxu0  ;;  %v6115_v16 = vpack.c.bf16 %v6088_v40, %v6087_v19  ;;  %v6092_v63 = vld [vmem:[#allocation2 + $0xca] sm:$0xff] }
 0x417   : > { %v15107_v38 = vpop.f32.mrf.mxu1 }
 0x418   : > { %v18647_v3 = vadd.f32 %v4632_v29, %v4437_v22  ;;  %v4440_v62 = vadd.f32 %v15107_v38, %v18538_v42  ;;  %v15147_v21 = vpop.f32.mrf.mxu0 }
 0x419   : > { %v4313_v35 = vpop.f32.mrf.mxu1 }
 0x41a   : > { %v18650_v27 = vadd.f32 %v15147_v21, %v4440_v62  ;;  %v18653_v13 = vadd.f32 %v4313_v35, %v18540_v36  ;;  %v18655_v37 = vpop.f32.mrf.mxu0  ;;  %v6090_v36 = vld [vmem:[#allocation2 + $0xb2] sm:$0xff] }
 0x41b   : > { %v15110_v55 = vpop.f32.mrf.mxu1  ;;  %15349 = vmatmul.mubr.msk.bf16.gmra.mxu1 %vm273_vm0, %v6114_v6  ;;  %v6116_v29 = vpack.c.bf16 %v6090_v36, %v6089_v28 }
 0x41c   : > { %v4443_v49 = vadd.f32 %v15110_v55, %v18548_v34  ;;  %v15150_v14 = vpop.f32.mrf.mxu0  ;;  %15352 = vmatprep.mubr.msk.bf16.mxu1 %vm273_vm0, %v6115_v16  ;;  %v6093_v16 = vld [vmem:[#allocation2 + $0xda] sm:$0xff] }
 0x41d   : > { %v4326_v42 = vpop.f32.mrf.mxu1 }
 0x41e   : > { %v18660_v39 = vadd.f32 %v15150_v14, %v4443_v49  ;;  %v4441_v11 = vadd.f32 %v4326_v42, %v18552_v32  ;;  %v4648_v46 = vpop.f32.mrf.mxu0  ;;  %v6117_v32 = vpack.c.bf16 %v6092_v63, %v6091_v4  ;;  %v6095_v49 = vld [vmem:[#allocation2 + $0xf2] sm:$0xff]  ;;  %v6096_v14 = vld [vmem:[#allocation2 + $0xfa] sm:$0xff] }
 0x41f   : > { %v15111_v57 = vpop.f32.mrf.mxu1 }
 0x420   : > { %v18663_v43 = vadd.f32 %v4648_v46, %v4441_v11  ;;  %v4444_v61 = vadd.f32 %v15111_v57, %v18554_v20  ;;  %v15151_v22 = vpop.f32.mrf.mxu0 }
 0x421   : > { %v4329_v34 = vpop.f32.mrf.mxu1 }
 0x422   : > { %v18666_v47 = vadd.f32 %v15151_v22, %v4444_v61  ;;  %v18669_v26 = vadd.f32 %v4329_v34, %v18556_v0  ;;  %v18671_v38 = vpop.f32.mrf.mxu0  ;;  %v6094_v0 = vld [vmem:[#allocation2 + $0xe2] sm:$0xff] }
 0x423   : > { %v15114_v19 = vpop.f32.mrf.mxu1  ;;  %15353 = vmatmul.mubr.msk.bf16.gmra.mxu1 %vm273_vm0, %v6116_v29  ;;  %v6118_v28 = vpack.c.bf16 %v6094_v0, %v6093_v16 }
 0x424   : > { %v4447_v40 = vadd.f32 %v15114_v19, %v18563_v7  ;;  %v15154_v62 = vpop.f32.mrf.mxu0  ;;  %15356 = vmatprep.mubr.msk.bf16.mxu1 %vm273_vm0, %v6117_v32  ;;  %v6097_v19 = vld [vmem:[#allocation2 + $0x10a] sm:$0xff] }
 0x425   : > { %v4342_v20 = vpop.f32.mrf.mxu1 }
 0x426   : > { %v18676_v21 = vadd.f32 %v15154_v62, %v4447_v40  ;;  %v4445_v35 = vadd.f32 %v4342_v20, %v18566_v8  ;;  %v4664_v6 = vpop.f32.mrf.mxu0  ;;  %v6119_v8 = vpack.c.bf16 %v6096_v14, %v6095_v49  ;;  %v6099_v62 = vld [vmem:[#allocation2 + $0x122] sm:$0xff]  ;;  %v6100_v20 = vld [vmem:[#allocation2 + $0x12a] sm:$0xff] }
 0x427   : > { %v15115_v55 = vpop.f32.mrf.mxu1 }
 0x428   : > { %v18679_v42 = vadd.f32 %v4664_v6, %v4445_v35  ;;  %v4448_v11 = vadd.f32 %v15115_v55, %v18568_v10  ;;  %v15155_v46 = vpop.f32.mrf.mxu0 }
 0x429   : > { %v4345_v7 = vpop.f32.mrf.mxu1 }
 0x42a   : > { %v18682_v36 = vadd.f32 %v15155_v46, %v4448_v11  ;;  %v18685_v57 = vadd.f32 %v4345_v7, %v18570_v17  ;;  %v18687_v4 = vpop.f32.mrf.mxu0  ;;  %v6098_v17 = vld [vmem:[#allocation2 + $0x112] sm:$0xff] }
 0x42b   : > { %v15118_v63 = vpop.f32.mrf.mxu1  ;;  %15357 = vmatmul.mubr.msk.bf16.gmra.mxu1 %vm273_vm0, %v6118_v28  ;;  %v6120_v0 = vpack.c.bf16 %v6098_v17, %v6097_v19 }
 0x42c   : > { %v4451_v61 = vadd.f32 %v15118_v63, %v18575_v18  ;;  %v15158_v22 = vpop.f32.mrf.mxu0  ;;  %15360 = vmatprep.mubr.msk.bf16.mxu1 %vm273_vm0, %v6119_v8 }
 0x42d   : > { %v4358_v10 = vpop.f32.mrf.mxu1 }
 0x42e   : > { %v18692_v34 = vadd.f32 %v15158_v22, %v4451_v61  ;;  %v4449_v29 = vadd.f32 %v4358_v10, %v18578_v44  ;;  %v4680_v32 = vpop.f32.mrf.mxu0  ;;  %v6121_v44 = vpack.c.bf16 %v6100_v20, %v6099_v62  ;;  %v6101_v61 = vld [vmem:[#allocation2 + $0x13a] sm:$0xff]  ;;  %v6103_v10 = vld [vmem:[#allocation2 + $0x152] sm:$0xff] }
 0x42f   : > { %v15119_v40 = vpop.f32.mrf.mxu1 }
 0x430   : > { %v18695_v35 = vadd.f32 %v4680_v32, %v4449_v29  ;;  %v4452_v6 = vadd.f32 %v15119_v40, %v18580_v33  ;;  %v15159_v16 = vpop.f32.mrf.mxu0  ;;  %v6104_v29 = vld [vmem:[#allocation2 + $0x15a] sm:$0xff] }
 0x431   : > { %v4361_v18 = vpop.f32.mrf.mxu1 }
 0x432   : > { %v18698_v55 = vadd.f32 %v15159_v16, %v4452_v6  ;;  %v18701_v49 = vadd.f32 %v4361_v18, %v18582_v15  ;;  %v18703_v14 = vpop.f32.mrf.mxu0  ;;  %v6102_v15 = vld [vmem:[#allocation2 + $0x142] sm:$0xff]  ;;  %v6123_v6 = vpack.c.bf16 %v6104_v29, %v6103_v10 }
 0x433   : > { %v15122_v11 = vpop.f32.mrf.mxu1  ;;  %15361 = vmatmul.mubr.msk.bf16.gmra.mxu1 %vm273_vm0, %v6120_v0  ;;  %v6122_v40 = vpack.c.bf16 %v6102_v15, %v6101_v61 }
 0x434   : > { %v4455_v46 = vadd.f32 %v15122_v11, %v18587_v2  ;;  %v15162_v7 = vpop.f32.mrf.mxu0  ;;  %15364 = vmatprep.mubr.msk.bf16.mxu1 %vm273_vm0, %v6121_v44 }
 0x435   : > { %v4374_v33 = vpop.f32.mrf.mxu1 }
 0x436   : > { %v18708_v28 = vadd.f32 %v15162_v7, %v4455_v46  ;;  %v4453_v8 = vadd.f32 %v4374_v33, %v18590_v30  ;;  %v4696_v63 = vpop.f32.mrf.mxu0  ;;  %v6105_v46 = vld [vmem:[#allocation2 + $0x16a] sm:$0xff]  ;;  %v6106_v7 = vld [vmem:[#allocation2 + $0x172] sm:$0xff] }
 0x437   : > { %v15123_v22 = vpop.f32.mrf.mxu1 }
 0x438   : > { %v18711_v32 = vadd.f32 %v4696_v63, %v4453_v8  ;;  %v4456_v19 = vadd.f32 %v15123_v22, %v18592_v50  ;;  %v15163_v17 = vpop.f32.mrf.mxu0 }
 0x439   : > { %v18714_v2 = vpop.f32.mrf.mxu1 }
 0x43a   : > { %v18716_v62 = vadd.f32 %v15163_v17, %v4456_v19  ;;  %v18718_v20 = vpop.f32.mrf.mxu0  ;;  %v6109_v17 = vld [vmem:[#allocation2 + $0x19a] sm:$0xff] }
 0x43b   : > { %22656 = vst [vmem:[#allocation59_spill] sm:$0xff] %v18718_v20  ;;  %v15126_v30 = vpop.f32.mrf.mxu1  ;;  %15365 = vmatmul.mubr.msk.bf16.gmra.mxu1 %vm273_vm0, %v6122_v40  ;;  %v6110_v40 = vld [vmem:[#allocation2 + $0x1a2] sm:$0xff] }
 0x43c   : > { %v4459_v16 = vadd.f32 %v15126_v30, %v18601_v56  ;;  %v15166_v18 = vpop.f32.mrf.mxu0  ;;  %15368 = vmatprep.mubr.msk.bf16.mxu1 %vm273_vm0, %v6123_v6  ;;  %v6124_v56 = vpack.c.bf16 %v6106_v7, %v6105_v46 }
 0x43d   : > { %v4390_v0 = vpop.f32.mrf.mxu1 }
 0x43e   : > { %v18723_v44 = vadd.f32 %v15166_v18, %v4459_v16  ;;  %v4457_v50 = vadd.f32 %v4390_v0, %v18604_v53  ;;  %v4712_v11 = vpop.f32.mrf.mxu0  ;;  %v6126_v0 = vpack.c.bf16 %v6110_v40, %v6109_v17 }
 0x43f   : > { %v15127_v33 = vpop.f32.mrf.mxu1 }
 0x440   : > { %v18726_v8 = vadd.f32 %v4712_v11, %v4457_v50  ;;  %v4460_v63 = vadd.f32 %v15127_v33, %v18606_v24  ;;  %v15167_v61 = vpop.f32.mrf.mxu0 }
 0x441   : > { %v18729_v15 = vpop.f32.mrf.mxu1 }
 0x442   : > { %22657 = vst [vmem:[#allocation60_spill] sm:$0xff] %v18729_v15  ;;  %v18731_v22 = vadd.f32 %v15167_v61, %v4460_v63  ;;  %v18733_v10 = vpop.f32.mrf.mxu0 }
 0x443   : > { %22658 = vst [vmem:[#allocation61_spill] sm:$0xff] %v18733_v10  ;;  %v15130_v29 = vpop.f32.mrf.mxu1  ;;  %15369 = vmatmul.mubr.msk.bf16.gmra.mxu1 %vm273_vm0, %v6124_v56 }
 0x444   : > { %v4463_v53 = vadd.f32 %v15130_v29, %v18616_v1  ;;  %v15170_v19 = vpop.f32.mrf.mxu0  ;;  %15372 = vmatprep.mubr.msk.bf16.mxu1 %vm273_vm0, %v18516_v59 }
 0x445   : > { %v4406_v24 = vpop.f32.mrf.mxu1 }
 0x446   : > { %v18739_v6 = vadd.f32 %v15170_v19, %v4463_v53  ;;  %v4461_v30 = vadd.f32 %v4406_v24, %v18620_v12  ;;  %v4728_v16 = vpop.f32.mrf.mxu0 }
 0x447   : > { %v15131_v18 = vpop.f32.mrf.mxu1 }
 0x448   : > { %v18742_v50 = vadd.f32 %v4728_v16, %v4461_v30  ;;  %v4464_v11 = vadd.f32 %v15131_v18, %v18622_v23  ;;  %v15171_v46 = vpop.f32.mrf.mxu0 }
 0x449   : > { %v18745_v1 = vpop.f32.mrf.mxu1 }
 0x44a   : > { %22659 = vst [vmem:[#allocation75_spill] sm:$0xff] %v18745_v1  ;;  %v18747_v7 = vadd.f32 %v15171_v46, %v4464_v11  ;;  %v18749_v59 = vpop.f32.mrf.mxu0 }
 0x44b   : > { %22660 = vst [vmem:[#allocation52_spill] sm:$0xff] %v18749_v59  ;;  %v15134_v33 = vpop.f32.mrf.mxu1  ;;  %15373 = vmatmul.mubr.msk.bf16.gmra.mxu1 %vm273_vm0, %v6126_v0 }
 0x44c   : > { %v4467_v63 = vadd.f32 %v15134_v33, %v18631_v41  ;;  %v15174_v12 = vpop.f32.mrf.mxu0 }
 0x44d   : > { %v4422_v61 = vpop.f32.mrf.mxu1 }
 0x44e   : > { %v18753_v56 = vadd.f32 %v15174_v12, %v4467_v63  ;;  %v4465_v29 = vadd.f32 %v4422_v61, %v18633_v48  ;;  %v4744_v53 = vpop.f32.mrf.mxu0 }
 0x44f   : > { %v15135_v23 = vpop.f32.mrf.mxu1 }
 0x450   : > { %v18756_v19 = vadd.f32 %v4744_v53, %v4465_v29  ;;  %v4468_v17 = vadd.f32 %v15135_v23, %v18635_v5  ;;  %v15175_v40 = vpop.f32.mrf.mxu0 }
 0x451   : > { %v18759_v24 = vpop.f32.mrf.mxu1 }
 0x452   : > { %22661 = vst [vmem:[#allocation77_spill] sm:$0xff] %v18759_v24  ;;  %v18761_v30 = vadd.f32 %v15175_v40, %v4468_v17  ;;  %v18763_v16 = vpop.f32.mrf.mxu0 }
 0x453   : > { %22662 = vst [vmem:[#allocation80_spill] sm:$0xff] %v18763_v16  ;;  %v15186_v41 = vpop.f32.mrf.mxu1 }
 0x454   : > { %v5083_v18 = vadd.f32 %v15186_v41, %v18644_v31  ;;  %v15226_v0 = vpop.f32.mrf.mxu0 }
 0x455   : > { %v4954_v11 = vpop.f32.mrf.mxu1 }
 0x456   : > { %v18766_v46 = vadd.f32 %v15226_v0, %v5083_v18  ;;  %v5081_v48 = vadd.f32 %v4954_v11, %v18647_v3  ;;  %v5276_v33 = vpop.f32.mrf.mxu0 }
 0x457   : > { %v15187_v63 = vpop.f32.mrf.mxu1 }
 0x458   : > { %v18769_v12 = vadd.f32 %v5276_v33, %v5081_v48  ;;  %v5084_v5 = vadd.f32 %v15187_v63, %v18650_v27  ;;  %v15227_v61 = vpop.f32.mrf.mxu0 }
 0x459   : > { %v18772_v29 = vpop.f32.mrf.mxu1 }
 0x45a   : > { %v18774_v53 = vadd.f32 %v15227_v61, %v5084_v5  ;;  %v18776_v23 = vpop.f32.mrf.mxu0 }
 0x45b   : > { %v15190_v31 = vpop.f32.mrf.mxu1 }
 0x45c   : > { %v5087_v17 = vadd.f32 %v15190_v31, %v18660_v39  ;;  %v15230_v40 = vpop.f32.mrf.mxu0 }
 0x45d   : > { %v4970_v41 = vpop.f32.mrf.mxu1 }
 0x45e   : > { %v18779_v18 = vadd.f32 %v15230_v40, %v5087_v17  ;;  %v18782_v3 = vadd.f32 %v4970_v41, %v18663_v43  ;;  %v18784_v0 = vpop.f32.mrf.mxu0 }
 0x45f   : > { %v15191_v27 = vpop.f32.mrf.mxu1 }
 0x460   : > { %v5088_v11 = vadd.f32 %v15191_v27, %v18666_v47  ;;  %v15231_v48 = vpop.f32.mrf.mxu0 }
 0x461   : > { %v18787_v33 = vpop.f32.mrf.mxu1 }
 0x462   : > { %v18789_v63 = vadd.f32 %v15231_v48, %v5088_v11  ;;  %v18791_v5 = vpop.f32.mrf.mxu0 }
 0x463   : > { %v15194_v39 = vpop.f32.mrf.mxu1 }
 0x464   : > { %v5091_v61 = vadd.f32 %v15194_v39, %v18676_v21  ;;  %v15234_v31 = vpop.f32.mrf.mxu0 }
 0x465   : > { %v4986_v17 = vpop.f32.mrf.mxu1 }
 0x466   : > { %v18794_v40 = vadd.f32 %v15234_v31, %v5091_v61  ;;  %v18797_v43 = vadd.f32 %v4986_v17, %v18679_v42  ;;  %v18799_v41 = vpop.f32.mrf.mxu0 }
 0x467   : > { %v15195_v47 = vpop.f32.mrf.mxu1 }
 0x468   : > { %v5092_v27 = vadd.f32 %v15195_v47, %v18682_v36  ;;  %v15235_v16 = vpop.f32.mrf.mxu0 }
 0x469   : > { %v18802_v11 = vpop.f32.mrf.mxu1 }
 0x46a   : > { %v18804_v48 = vadd.f32 %v15235_v16, %v5092_v27  ;;  %v18806_v24 = vpop.f32.mrf.mxu0 }
 0x46b   : > { %v15198_v21 = vpop.f32.mrf.mxu1 }
 0x46c   : > { %v5095_v39 = vadd.f32 %v15198_v21, %v18692_v34  ;;  %v15238_v61 = vpop.f32.mrf.mxu0 }
 0x46d   : > { %v5002_v31 = vpop.f32.mrf.mxu1 }
 0x46e   : > { %v18809_v51 = vadd.f32 %v15238_v61, %v5095_v39  ;;  %v18812_v42 = vadd.f32 %v5002_v31, %v18695_v35  ;;  %v18814_v17 = vpop.f32.mrf.mxu0 }
 0x46f   : > { %v15199_v36 = vpop.f32.mrf.mxu1 }
 0x470   : > { %v5096_v47 = vadd.f32 %v15199_v36, %v18698_v55  ;;  %v15239_v9 = vpop.f32.mrf.mxu0 }
 0x471   : > { %v18817_v16 = vpop.f32.mrf.mxu1 }
 0x472   : > { %v18819_v27 = vadd.f32 %v15239_v9, %v5096_v47  ;;  %v18821_v59 = vpop.f32.mrf.mxu0 }
 0x473   : > { %22663 = vst [vmem:[#allocation62_spill] sm:$0xff] %v18821_v59  ;;  %v15202_v34 = vpop.f32.mrf.mxu1 }
 0x474   : > { %v5099_v21 = vadd.f32 %v15202_v34, %v18708_v28  ;;  %v15242_v39 = vpop.f32.mrf.mxu0 }
 0x475   : > { %v5018_v61 = vpop.f32.mrf.mxu1 }
 0x476   : > { %v18824_v1 = vadd.f32 %v15242_v39, %v5099_v21  ;;  %v18827_v35 = vadd.f32 %v5018_v61, %v18711_v32  ;;  %v18829_v31 = vpop.f32.mrf.mxu0 }
 0x477   : > { %22665 = vst [vmem:[#allocation82_spill] sm:$0xff] %v18829_v31  ;;  %v15203_v55 = vpop.f32.mrf.mxu1 }
 0x478   : > { %22664 = vst [vmem:[#allocation53_spill] sm:$0xff] %v18827_v35  ;;  %v5100_v36 = vadd.f32 %v15203_v55, %v18716_v62  ;;  %v15243_v25 = vpop.f32.mrf.mxu0 }
 0x479   : > { %v18832_v9 = vpop.f32.mrf.mxu1 }
 0x47a   : > { %22666 = vst [vmem:[#allocation47_spill] sm:$0xff] %v18832_v9  ;;  %v18834_v47 = vadd.f32 %v15243_v25, %v5100_v36  ;;  %v18836_v60 = vpop.f32.mrf.mxu0 }
 0x47b   : > { %22667 = vst [vmem:[#allocation48_spill] sm:$0xff] %v18836_v60  ;;  %v15206_v28 = vpop.f32.mrf.mxu1 }
 0x47c   : > { %v5103_v34 = vadd.f32 %v15206_v28, %v18723_v44  ;;  %v15246_v21 = vpop.f32.mrf.mxu0 }
 0x47d   : > { %v5034_v39 = vpop.f32.mrf.mxu1 }
 0x47e   : > { %v18839_v10 = vadd.f32 %v15246_v21, %v5103_v34  ;;  %v18842_v32 = vadd.f32 %v5034_v39, %v18726_v8  ;;  %v18844_v61 = vpop.f32.mrf.mxu0 }
 0x47f   : > { %22669 = vst [vmem:[#allocation64_spill] sm:$0xff] %v18844_v61  ;;  %v15207_v62 = vpop.f32.mrf.mxu1 }
 0x480   : > { %22668 = vst [vmem:[#allocation63_spill] sm:$0xff] %v18842_v32  ;;  %v5104_v55 = vadd.f32 %v15207_v62, %v18731_v22  ;;  %v15247_v15 = vpop.f32.mrf.mxu0 }
 0x481   : > { %v18847_v25 = vpop.f32.mrf.mxu1 }
 0x482   : > { %22670 = vst [vmem:[#allocation65_spill] sm:$0xff] %v18847_v25  ;;  %v18849_v36 = vadd.f32 %v15247_v15, %v5104_v55  ;;  %v18851_v60 = vpop.f32.mrf.mxu0 }
 0x483   : > { %22671 = vst [vmem:[#allocation79_spill] sm:$0xff] %v18851_v60  ;;  %v15210_v44 = vpop.f32.mrf.mxu1 }
 0x484   : > { %v5107_v28 = vadd.f32 %v15210_v44, %v18739_v6  ;;  %v15250_v34 = vpop.f32.mrf.mxu0 }
 0x485   : > { %v5050_v21 = vpop.f32.mrf.mxu1 }
 0x486   : > { %v18854_v9 = vadd.f32 %v15250_v34, %v5107_v28  ;;  %v18857_v8 = vadd.f32 %v5050_v21, %v18742_v50  ;;  %v18859_v39 = vpop.f32.mrf.mxu0 }
 0x487   : > { %22673 = vst [vmem:[#allocation81_spill] sm:$0xff] %v18859_v39  ;;  %v15211_v22 = vpop.f32.mrf.mxu1 }
 0x488   : > { %22672 = vst [vmem:[#allocation54_spill] sm:$0xff] %v18857_v8  ;;  %v5108_v62 = vadd.f32 %v15211_v22, %v18747_v7  ;;  %v15251_v25 = vpop.f32.mrf.mxu0 }
 0x489   : > { %v18862_v15 = vpop.f32.mrf.mxu1 }
 0x48a   : > { %22674 = vst [vmem:[#allocation84_spill] sm:$0xff] %v18862_v15  ;;  %v18864_v55 = vadd.f32 %v15251_v25, %v5108_v62  ;;  %v18866_v60 = vpop.f32.mrf.mxu0 }
 0x48b   : > { %22675 = vst [vmem:[#allocation66_spill] sm:$0xff] %v18866_v60  ;;  %v15214_v6 = vpop.f32.mrf.mxu1 }
 0x48c   : > { %v5111_v44 = vadd.f32 %v15214_v6, %v18753_v56  ;;  %v15254_v28 = vpop.f32.mrf.mxu0 }
 0x48d   : > { %v5066_v34 = vpop.f32.mrf.mxu1 }
 0x48e   : > { %v18869_v61 = vadd.f32 %v15254_v28, %v5111_v44  ;;  %v18872_v50 = vadd.f32 %v5066_v34, %v18756_v19  ;;  %v18874_v21 = vpop.f32.mrf.mxu0 }
 0x48f   : > { %22677 = vst [vmem:[#allocation86_spill] sm:$0xff] %v18874_v21  ;;  %v15215_v7 = vpop.f32.mrf.mxu1 }
 0x490   : > { %22676 = vst [vmem:[#allocation55_spill] sm:$0xff] %v18872_v50  ;;  %v5112_v22 = vadd.f32 %v15215_v7, %v18761_v30  ;;  %v15255_v15 = vpop.f32.mrf.mxu0 }
 0x491   : > { %v18877_v25 = vpop.f32.mrf.mxu1 }
 0x492   : > { %22678 = vst [vmem:[#allocation49_spill] sm:$0xff] %v18877_v25  ;;  %v18879_v62 = vadd.f32 %v15255_v15, %v5112_v22  ;;  %v18881_v60 = vpop.f32.mrf.mxu0 }
 0x493   : > { %22679 = vst [vmem:[#allocation50_spill] sm:$0xff] %v18881_v60  ;;  %v15266_v56 = vpop.f32.mrf.mxu1 }
 0x494   : > { %v18884_v6 = vadd.f32 %v15266_v56, %v18766_v46  ;;  %v18886_v44 = vpop.f32.mrf.mxu0 }
 0x495   : > { %v5598_v19 = vpop.f32.mrf.mxu1 }
 0x496   : > { %v18889_v28 = vadd.f32 %v5598_v19, %v18769_v12  ;;  %v18891_v34 = vpop.f32.mrf.mxu0 }
 0x497   : > { %v15267_v30 = vpop.f32.mrf.mxu1 }
 0x498   : > { %v18894_v7 = vadd.f32 %v15267_v30, %v18774_v53  ;;  %v18898_v22 = vpop.f32.mrf.mxu0 }
 0x499   : > { %v18896_v15 = vpop.f32.mrf.mxu1 }
 0x49a   : > { %v18905_v25 = vpop.f32.mrf.mxu0 }
 0x49b   : > { %v15270_v60 = vpop.f32.mrf.mxu1 }
 0x49c   : > { %v18901_v46 = vadd.f32 %v15270_v60, %v18779_v18  ;;  %v18912_v53 = vpop.f32.mrf.mxu0 }
 0x49d   : > { %v18903_v56 = vpop.f32.mrf.mxu1 }
 0x49e   : > { %v18919_v60 = vpop.f32.mrf.mxu0 }
 0x49f   : > { %v15271_v12 = vpop.f32.mrf.mxu1 }
 0x4a0   : > { %v18908_v19 = vadd.f32 %v15271_v12, %v18789_v63  ;;  %v18926_v63 = vpop.f32.mrf.mxu0 }
 0x4a1   : > { %v18910_v21 = vpop.f32.mrf.mxu1 }
 0x4a3   : > { %v15274_v30 = vpop.f32.mrf.mxu1 }
 0x4a4   : > { %v18915_v50 = vadd.f32 %v15274_v30, %v18794_v40  ;;  %v18933_v40 = vpop.f32.mrf.mxu0 }
 0x4a5   : > { %v18917_v39 = vpop.f32.mrf.mxu1 }
 0x4a7   : > { %v15275_v18 = vpop.f32.mrf.mxu1 }
 0x4a8   : > { %v18922_v8 = vadd.f32 %v15275_v18, %v18804_v48  ;;  %v18940_v48 = vpop.f32.mrf.mxu0 }
 0x4a9   : > { %v18924_v32 = vpop.f32.mrf.mxu1 }
 0x4ab   : > { %v15278_v12 = vpop.f32.mrf.mxu1 }
 0x4ac   : > { %v18929_v31 = vadd.f32 %v15278_v12, %v18809_v51  ;;  %v18947_v51 = vpop.f32.mrf.mxu0 }
 0x4ad   : > { %v18931_v35 = vpop.f32.mrf.mxu1 }
 0x4ae   : > { %22680 = vst [vmem:[#allocation67_spill] sm:$0xff] %v18929_v31  ;;  %22681 = vst [vmem:[#allocation68_spill] sm:$0xff] %v18931_v35 }
 0x4af   : > { %v15279_v30 = vpop.f32.mrf.mxu1 }
 0x4b0   : > { %v18936_v58 = vadd.f32 %v15279_v30, %v18819_v27  ;;  %v18954_v27 = vpop.f32.mrf.mxu0 }
 0x4b1   : > { %v18938_v45 = vpop.f32.mrf.mxu1 }
 0x4b2   : > { %22682 = vst [vmem:[#allocation69_spill] sm:$0xff] %v18936_v58  ;;  %22683 = vst [vmem:[#allocation83_spill] sm:$0xff] %v18938_v45 }
 0x4b3   : > { %v15282_v18 = vpop.f32.mrf.mxu1 }
 0x4b4   : > { %v18943_v20 = vadd.f32 %v15282_v18, %v18824_v1  ;;  %v18961_v1 = vpop.f32.mrf.mxu0 }
 0x4b5   : > { %v18945_v59 = vpop.f32.mrf.mxu1 }
 0x4b6   : > { %22684 = vst [vmem:[#allocation56_spill] sm:$0xff] %v18943_v20  ;;  %22685 = vst [vmem:[#allocation85_spill] sm:$0xff] %v18945_v59 }
 0x4b7   : > { %v15283_v12 = vpop.f32.mrf.mxu1 }
 0x4b8   : > { %v18950_v31 = vadd.f32 %v15283_v12, %v18834_v47  ;;  %v18968_v47 = vpop.f32.mrf.mxu0 }
 0x4b9   : > { %v18952_v35 = vpop.f32.mrf.mxu1 }
 0x4ba   : > { %22686 = vst [vmem:[#allocation88_spill] sm:$0xff] %v18950_v31  ;;  %22687 = vst [vmem:[#allocation70_spill] sm:$0xff] %v18952_v35 }
 0x4bb   : > { %v15286_v30 = vpop.f32.mrf.mxu1 }
 0x4bc   : > { %v18957_v58 = vadd.f32 %v15286_v30, %v18839_v10  ;;  %v18975_v10 = vpop.f32.mrf.mxu0 }
 0x4bd   : > { %v18959_v45 = vpop.f32.mrf.mxu1 }
 0x4be   : > { %22688 = vst [vmem:[#allocation57_spill] sm:$0xff] %v18957_v58  ;;  %22689 = vst [vmem:[#allocation90_spill] sm:$0xff] %v18959_v45 }
 0x4bf   : > { %v15287_v18 = vpop.f32.mrf.mxu1 }
 0x4c0   : > { %v18964_v20 = vadd.f32 %v15287_v18, %v18849_v36  ;;  %v18982_v36 = vpop.f32.mrf.mxu0 }
 0x4c1   : > { %v18966_v59 = vpop.f32.mrf.mxu1 }
 0x4c2   : > { %22690 = vst [vmem:[#allocation71_spill] sm:$0xff] %v18964_v20  ;;  %22691 = vst [vmem:[#allocation72_spill] sm:$0xff] %v18966_v59  ;;  %v4760_v20 = vadd.f32 %v18655_v37, %v18653_v13  ;;  %v4764_v37 = vadd.f32 %v18671_v38, %v18669_v26  ;;  %v6050_v26 = vadd.f32 %v18898_v22, %v18894_v7 }
 0x4c3   : > { %v15290_v12 = vpop.f32.mrf.mxu1  ;;  %v4768_v7 = vadd.f32 %v18687_v4, %v18685_v57  ;;  %v6053_v57 = vadd.f32 %v18912_v53, %v18901_v46 }
 0x4c4   : > { %v18971_v31 = vadd.f32 %v15290_v12, %v18854_v9  ;;  %v5082_v12 = vadd.f32 %v18772_v29, %v4760_v20 }
 0x4c5   : > { %v18973_v35 = vpop.f32.mrf.mxu1 }
 0x4c6   : > { %22692 = vst [vmem:[#allocation73_spill] sm:$0xff] %v18971_v31  ;;  %22693 = vst [vmem:[#allocation87_spill] sm:$0xff] %v18973_v35  ;;  %v18992_v31 = vpop.f32.mrf.mxu0 }
 0x4c7   : > { %v15291_v30 = vpop.f32.mrf.mxu1 }
 0x4c8   : > { %v18978_v58 = vadd.f32 %v15291_v30, %v18864_v55 }
 0x4c9   : > { %v18980_v45 = vpop.f32.mrf.mxu1 }
 0x4ca   : > { %22694 = vst [vmem:[#allocation89_spill] sm:$0xff] %v18978_v58  ;;  %22695 = vst [vmem:[#allocation74_spill] sm:$0xff] %v18980_v45  ;;  %v5404_v58 = vadd.f32 %v18776_v23, %v5082_v12  ;;  %v19000_v45 = vpop.f32.mrf.mxu0  ;;  %v6049_v23 = vadd.f32 %v18886_v44, %v18884_v6 }
 0x4cb   : > { %v15294_v18 = vpop.f32.mrf.mxu1 }
 0x4cc   : > { %v18987_v59 = vadd.f32 %v15294_v18, %v18869_v61  ;;  %v6047_v61 = vadd.f32 %v18891_v34, %v18889_v28  ;;  %v5726_v20 = vadd.f32 %v18896_v15, %v5404_v58  ;;  %v19012_v12 = vpop.f32.mrf.mxu0 }
 0x4cd   : > { %v18989_v9 = vpop.f32.mrf.mxu1 }
 0x4ce   : > { %v6048_v38 = vadd.f32 %v18905_v25, %v5726_v20  ;;  %v19029_v25 = vpop.f32.mrf.mxu0 }
 0x4cf   : > { %v15295_v35 = vpop.f32.mrf.mxu1 }
 0x4d0   : > { %v18995_v55 = vadd.f32 %v15295_v35, %v18879_v62  ;;  %v5407_v35 = vadd.f32 %v18784_v0, %v18782_v3  ;;  %v5086_v62 = vadd.f32 %v18787_v33, %v4764_v37  ;;  %v19021_v3 = vld [vmem:[%s22443_s4] ss:$0 sm:$0xff]  ;;  %v5090_v37 = vadd.f32 %v18802_v11, %v4768_v7 }
 0x4d1   : > { %v18997_v30 = vpop.f32.mrf.mxu1 }
 0x4d2   : > { %22696 = vst [vmem:[#allocation91_spill] sm:$0xff] %v18995_v55  ;;  %v5729_v58 = vadd.f32 %v18903_v56, %v5407_v35  ;;  %v5408_v33 = vadd.f32 %v18791_v5, %v5086_v62 }
 0x4d3   : > { %v15346_v13 = vpop.f32.mrf.mxu1 }
 0x4d4   : > { %v6371_v28 = vadd.f32 %v15346_v13, %v6049_v23  ;;  %v6051_v22 = vadd.f32 %v18919_v60, %v5729_v58  ;;  %v5730_v56 = vadd.f32 %v18910_v21, %v5408_v33  ;;  %v4772_v58 = vadd.f32 %v18703_v14, %v18701_v49 }
 0x4d5   : > { %v6242_v29 = vpop.f32.mrf.mxu1  ;;  %v4088_v49 = vadd.f32 %v18596_v54, %v18594_v52  ;;  %v5415_v14 = vadd.f32 %v18814_v17, %v18812_v42  ;;  %v6058_v52 = vadd.f32 %v18954_v27, %v18922_v8  ;;  %v22697_v54 = vld [vmem:[#allocation68_spill] sm:$0xff] }
 0x4d6   : > { %v6369_v18 = vadd.f32 %v6242_v29, %v6047_v61  ;;  %v19034_v13 = vadd.f32 %v19021_v3, %v6371_v28  ;;  %v6054_v29 = vadd.f32 %v18926_v63, %v18908_v19  ;;  %v6052_v53 = vadd.f32 %v18933_v40, %v5730_v56 }
 0x4d7   : > { %v15347_v55 = vpop.f32.mrf.mxu1  ;;  %v5737_v42 = vadd.f32 %v22697_v54, %v5415_v14  ;;  %v22708_v54 = vld [vmem:[#allocation69_spill] sm:$0xff] }
 0x4d8   : > { %v19025_v6 = vadd.f32 %v19021_v3, %v6369_v18  ;;  %v6372_v44 = vadd.f32 %v15347_v55, %v6050_v26  ;;  %v5411_v55 = vadd.f32 %v18799_v41, %v18797_v43  ;;  %v19054_v41 = vpop.f32.mrf.mxu0  ;;  %v6441_v35 = vsel %vm273_vm0, %v19034_v13, 0.0 }
 0x4d9   : > { %v6245_v0 = vpop.f32.mrf.mxu1 }
 0x4da   : > { %v6370_v34 = vadd.f32 %v6245_v0, %v6048_v38  ;;  %v6438_v60 = vsel %vm273_vm0, %v19025_v6, 0.0  ;;  %v19047_v21 = vadd.f32 %v19021_v3, %v6372_v44  ;;  %v5733_v43 = vadd.f32 %v18917_v39, %v5411_v55  ;;  %v19068_v28 = vpop.f32.mrf.mxu0 }
 0x4db   : > { %v15350_v15 = vpop.f32.mrf.mxu1  ;;  %v5412_v38 = vadd.f32 %v18806_v24, %v5090_v37 }
 0x4dc   : > { %v19037_v5 = vadd.f32 %v19021_v3, %v6370_v34  ;;  %v6375_v62 = vadd.f32 %v15350_v15, %v6053_v57  ;;  %v6443_v39 = vsel %vm273_vm0, %v19047_v21, 0.0  ;;  %v6055_v40 = vadd.f32 %v18947_v51, %v5733_v43  ;;  %v19095_v17 = vpop.f32.mrf.mxu0 }
 0x4dd   : > { %v6258_v4 = vpop.f32.mrf.mxu1  ;;  %v5734_v44 = vadd.f32 %v18924_v32, %v5412_v38  ;;  %v5094_v51 = vadd.f32 %v18817_v16, %v4772_v58  ;;  %v6057_v32 = vadd.f32 %v18940_v48, %v18915_v50  ;;  %v4454_v57 = vadd.f32 %v18714_v2, %v4088_v49  ;;  %v22701_v58 = vld [vmem:[#allocation76_spill] sm:$0xff] }
 0x4de   : > { %v6439_v61 = vsel %vm273_vm0, %v19037_v5, 0.0  ;;  %v6373_v20 = vadd.f32 %v6258_v4, %v6051_v22  ;;  %v19072_v34 = vadd.f32 %v19021_v3, %v6375_v62 }
 0x4df   : > { %v6440_v11 = vadd.f32 %v6439_v61, %v6438_v60  ;;  %v15351_v46 = vpop.f32.mrf.mxu1  ;;  %v6056_v50 = vadd.f32 %v18961_v1, %v5734_v44  ;;  %v6059_v1 = vadd.f32 %v18975_v10, %v5737_v42  ;;  %v22704_v10 = vld [vmem:[#allocation82_spill] sm:$0xff]  ;;  %v6062_v42 = vadd.f32 %v18982_v36, %v22708_v54 }
 0x4e0   : > { %v19060_v23 = vadd.f32 %v19021_v3, %v6373_v20  ;;  %v6376_v19 = vadd.f32 %v15351_v46, %v6054_v29  ;;  %v6449_v48 = vsel %vm273_vm0, %v19072_v34, 0.0  ;;  %v22698_v29 = vld [vmem:[#allocation62_spill] sm:$0xff]  ;;  %v22699_v46 = vld [vmem:[#allocation59_spill] sm:$0xff] }
 0x4e1   : > { %v6442_v18 = vadd.f32 %v6441_v35, %v6440_v11  ;;  %v6261_v26 = vpop.f32.mrf.mxu1  ;;  %v5416_v43 = vadd.f32 %v22698_v29, %v5094_v51  ;;  %v19108_v35 = vpop.f32.mrf.mxu0 }
 0x4e2   : > { %v6374_v63 = vadd.f32 %v6261_v26, %v6052_v53  ;;  %v6445_v24 = vsel %vm273_vm0, %v19060_v23, 0.0  ;;  %v19087_v56 = vadd.f32 %v19021_v3, %v6376_v19  ;;  %v4776_v53 = vadd.f32 %v22699_v46, %v4454_v57  ;;  %v22700_v26 = vld [vmem:[#allocation83_spill] sm:$0xff]  ;;  %v22707_v57 = vld [vmem:[#allocation60_spill] sm:$0xff] }
 0x4e3   : > { %v6444_v0 = vadd.f32 %v6443_v39, %v6442_v18  ;;  %v15354_v33 = vpop.f32.mrf.mxu1  ;;  %v5738_v38 = vadd.f32 %v22700_v26, %v5416_v43 }
 0x4e4   : > { %v19077_v7 = vadd.f32 %v19021_v3, %v6374_v63  ;;  %v6379_v60 = vadd.f32 %v15354_v33, %v6057_v32  ;;  %v6451_v8 = vsel %vm273_vm0, %v19087_v56, 0.0  ;;  %v22703_v33 = vld [vmem:[#allocation53_spill] sm:$0xff] }
 0x4e5   : > { %v6446_v15 = vadd.f32 %v6445_v24, %v6444_v0  ;;  %v6274_v22 = vpop.f32.mrf.mxu1  ;;  %v5419_v44 = vadd.f32 %v22704_v10, %v22703_v33  ;;  %v22705_v24 = vld [vmem:[#allocation47_spill] sm:$0xff] }
 0x4e6   : > { %v6447_v55 = vsel %vm273_vm0, %v19077_v7, 0.0  ;;  %v6377_v37 = vadd.f32 %v6274_v22, %v6055_v40  ;;  %v19112_v39 = vadd.f32 %v19021_v3, %v6379_v60  ;;  %v22702_v40 = vld [vmem:[#allocation58_spill] sm:$0xff]  ;;  %v5098_v49 = vadd.f32 %v22705_v24, %v4776_v53  ;;  %v22713_v10 = vld [vmem:[#allocation51_spill] sm:$0xff] }
 0x4e7   : > { %v6448_v16 = vadd.f32 %v6447_v55, %v6446_v15  ;;  %v15355_v4 = vpop.f32.mrf.mxu1  ;;  %v4104_v0 = vadd.f32 %v22702_v40, %v22701_v58  ;;  %v22706_v15 = vld [vmem:[#allocation67_spill] sm:$0xff] }
 0x4e8   : > { %v19101_v61 = vadd.f32 %v19021_v3, %v6377_v37  ;;  %v6380_v27 = vadd.f32 %v15355_v4, %v6058_v52  ;;  %v6061_v22 = vadd.f32 %v18968_v47, %v22706_v15  ;;  %v6060_v47 = vadd.f32 %v18992_v31, %v5738_v38 }
 0x4e9   : > { %v6450_v20 = vadd.f32 %v6449_v48, %v6448_v16  ;;  %v6277_v2 = vpop.f32.mrf.mxu1  ;;  %v4458_v52 = vadd.f32 %v22707_v57, %v4104_v0  ;;  %v22709_v16 = vld [vmem:[#allocation85_spill] sm:$0xff] }
 0x4ea   : > { %v6378_v11 = vadd.f32 %v6277_v2, %v6056_v50  ;;  %v6453_v19 = vsel %vm273_vm0, %v19101_v61, 0.0  ;;  %v19127_v32 = vadd.f32 %v19021_v3, %v6380_v27  ;;  %v5741_v4 = vadd.f32 %v22709_v16, %v5419_v44  ;;  %v19135_v50 = vpop.f32.mrf.mxu0  ;;  %v22710_v27 = vld [vmem:[#allocation48_spill] sm:$0xff]  ;;  %v22714_v44 = vld [vmem:[#allocation78_spill] sm:$0xff]  ;;  %v22719_v16 = vld [vmem:[#allocation75_spill] sm:$0xff] }
 0x4eb   : > { %v6452_v62 = vadd.f32 %v6451_v8, %v6450_v20  ;;  %v15358_v18 = vpop.f32.mrf.mxu1  ;;  %v6457_v20 = vsel %vm273_vm0, %v19112_v39, 0.0  ;;  %v4120_v24 = vadd.f32 %v22714_v44, %v22713_v10 }
 0x4ec   : > { %v19117_v63 = vadd.f32 %v19021_v3, %v6378_v11  ;;  %v6383_v2 = vadd.f32 %v15358_v18, %v6061_v22  ;;  %v5420_v11 = vadd.f32 %v22710_v27, %v5098_v49  ;;  %v6459_v36 = vsel %vm273_vm0, %v19127_v32, 0.0  ;;  %v19148_v26 = vpop.f32.mrf.mxu0  ;;  %v22715_v49 = vld [vmem:[#allocation63_spill] sm:$0xff] }
 0x4ed   : > { %v6454_v14 = vadd.f32 %v6453_v19, %v6452_v62  ;;  %v6290_v51 = vpop.f32.mrf.mxu1  ;;  %v6063_v31 = vadd.f32 %v19012_v12, %v5741_v4  ;;  %v22712_v19 = vld [vmem:[#allocation70_spill] sm:$0xff]  ;;  %v22716_v12 = vld [vmem:[#allocation64_spill] sm:$0xff]  ;;  %v4462_v4 = vadd.f32 %v22719_v16, %v4120_v24 }
 0x4ee   : > { %v6455_v55 = vsel %vm273_vm0, %v19117_v63, 0.0  ;;  %v6381_v37 = vadd.f32 %v6290_v51, %v6059_v1  ;;  %v22711_v1 = vld [vmem:[#allocation61_spill] sm:$0xff]  ;;  %v5742_v58 = vadd.f32 %v22712_v19, %v5420_v11  ;;  %v19152_v40 = vadd.f32 %v19021_v3, %v6383_v2  ;;  %v6016_v2 = vpop.f32.mrf.mxu0  ;;  %v22723_v19 = vld [vmem:[#allocation52_spill] sm:$0xff] }
 0x4ef   : > { %v6456_v48 = vadd.f32 %v6455_v55, %v6454_v14  ;;  %v15359_v60 = vpop.f32.mrf.mxu1  ;;  %v4780_v62 = vadd.f32 %v22711_v1, %v4458_v52  ;;  %v5423_v14 = vadd.f32 %v22716_v12, %v22715_v49  ;;  %v22717_v51 = vld [vmem:[#allocation65_spill] sm:$0xff]  ;;  %v22722_v1 = vld [vmem:[#allocation79_spill] sm:$0xff] }
 0x4f0   : > { %v19141_v29 = vadd.f32 %v19021_v3, %v6381_v37  ;;  %v6384_v46 = vadd.f32 %v15359_v60, %v6062_v42  ;;  %v22718_v37 = vld [vmem:[#allocation56_spill] sm:$0xff]  ;;  %v6064_v27 = vadd.f32 %v19054_v41, %v5742_v58  ;;  %v15331_v58 = vpop.f32.mrf.mxu0 }
 0x4f1   : > { %v6458_v43 = vadd.f32 %v6457_v20, %v6456_v48  ;;  %v6293_v8 = vpop.f32.mrf.mxu1  ;;  %v5102_v15 = vadd.f32 %v22717_v51, %v4780_v62  ;;  %v6065_v57 = vadd.f32 %v19000_v45, %v22718_v37  ;;  %v22720_v48 = vld [vmem:[#allocation88_spill] sm:$0xff]  ;;  %v6465_v45 = vsel %vm273_vm0, %v19152_v40, 0.0  ;;  %v22725_v51 = vld [vmem:[#allocation45_spill] sm:$0xff] }
 0x4f2   : > { %v6382_v53 = vadd.f32 %v6293_v8, %v6060_v47  ;;  %v6461_v0 = vsel %vm273_vm0, %v19141_v29, 0.0  ;;  %v19167_v52 = vadd.f32 %v19021_v3, %v6384_v46  ;;  %v6066_v60 = vadd.f32 %v19029_v25, %v22720_v48  ;;  %v22721_v47 = vld [vmem:[#allocation90_spill] sm:$0xff]  ;;  %v22728_v37 = vld [vmem:[#allocation81_spill] sm:$0xff] }
 0x4f3   : > { %v6460_v38 = vadd.f32 %v6459_v36, %v6458_v43  ;;  %v15362_v18 = vpop.f32.mrf.mxu1  ;;  %v5745_v20 = vadd.f32 %v22721_v47, %v5423_v14  ;;  %v5424_v62 = vadd.f32 %v22722_v1, %v5102_v15  ;;  %v22726_v15 = vld [vmem:[#allocation46_spill] sm:$0xff] }
 0x4f4   : > { %v19157_v33 = vadd.f32 %v19021_v3, %v6382_v53  ;;  %v6387_v11 = vadd.f32 %v15362_v18, %v6065_v57  ;;  %v6467_v25 = vsel %vm273_vm0, %v19167_v52, 0.0  ;;  %v22724_v18 = vld [vmem:[#allocation72_spill] sm:$0xff] }
 0x4f5   : > { %v6462_v22 = vadd.f32 %v6461_v0, %v6460_v38  ;;  %v6306_v55 = vpop.f32.mrf.mxu1  ;;  %v4784_v0 = vadd.f32 %v22723_v19, %v4462_v4  ;;  %v6067_v41 = vadd.f32 %v19095_v17, %v5745_v20  ;;  %v5746_v24 = vadd.f32 %v22724_v18, %v5424_v62  ;;  %v22729_v57 = vld [vmem:[#allocation84_spill] sm:$0xff]  ;;  %v22730_v4 = vld [vmem:[#allocation57_spill] sm:$0xff] }
 0x4f6   : > { %v6463_v54 = vsel %vm273_vm0, %v19157_v33, 0.0  ;;  %v6385_v42 = vadd.f32 %v6306_v55, %v6063_v31  ;;  %v19188_v49 = vadd.f32 %v19021_v3, %v6387_v11  ;;  %v22727_v55 = vld [vmem:[#allocation54_spill] sm:$0xff]  ;;  %v6069_v48 = vadd.f32 %v19068_v28, %v22730_v4  ;;  %v22733_v11 = vld [vmem:[#allocation87_spill] sm:$0xff] }
 0x4f7   : > { %v6464_v43 = vadd.f32 %v6463_v54, %v6462_v22  ;;  %v15363_v8 = vpop.f32.mrf.mxu1  ;;  %v4136_v22 = vadd.f32 %v22726_v15, %v22725_v51  ;;  %v5427_v17 = vadd.f32 %v22728_v37, %v22727_v55  ;;  %v5106_v54 = vadd.f32 %v22729_v57, %v4784_v0  ;;  %v22735_v15 = vld [vmem:[#allocation80_spill] sm:$0xff]  ;;  %v22736_v37 = vld [vmem:[#allocation74_spill] sm:$0xff] }
 0x4f8   : > { %v19179_v36 = vadd.f32 %v19021_v3, %v6385_v42  ;;  %v6388_v31 = vadd.f32 %v15363_v8, %v6066_v60  ;;  %v6473_v28 = vsel %vm273_vm0, %v19188_v49, 0.0 }
 0x4f9   : > { %v6466_v46 = vadd.f32 %v6465_v45, %v6464_v43  ;;  %v6309_v53 = vpop.f32.mrf.mxu1  ;;  %v22731_v43 = vld [vmem:[#allocation77_spill] sm:$0xff] }
 0x4fa   : > { %v6386_v38 = vadd.f32 %v6309_v53, %v6064_v27  ;;  %v6469_v12 = vsel %vm273_vm0, %v19179_v36, 0.0  ;;  %v19203_v60 = vadd.f32 %v19021_v3, %v6388_v31  ;;  %v4466_v8 = vadd.f32 %v22731_v43, %v4136_v22  ;;  %v22732_v27 = vld [vmem:[#allocation71_spill] sm:$0xff]  ;;  %v6019_v53 = vpop.f32.mrf.mxu0 }
 0x4fb   : > { %v6468_v10 = vadd.f32 %v6467_v25, %v6466_v46  ;;  %v15366_v44 = vpop.f32.mrf.mxu1  ;;  %v6070_v45 = vadd.f32 %v19108_v35, %v22732_v27  ;;  %v5749_v46 = vadd.f32 %v22733_v11, %v5427_v17  ;;  %v6068_v25 = vadd.f32 %v19135_v50, %v5746_v24 }
 0x4fc   : > { %v19193_v14 = vadd.f32 %v19021_v3, %v6386_v38  ;;  %v6391_v31 = vadd.f32 %v15366_v44, %v6069_v48  ;;  %v15334_v19 = vpop.f32.mrf.mxu0  ;;  %v6475_v35 = vsel %vm273_vm0, %v19203_v60, 0.0  ;;  %v4788_v22 = vadd.f32 %v22735_v15, %v4466_v8  ;;  %v22739_v48 = vld [vmem:[#allocation49_spill] sm:$0xff] }
 0x4fd   : > { %v6470_v42 = vadd.f32 %v6469_v12, %v6468_v10  ;;  %v6322_v16 = vpop.f32.mrf.mxu1  ;;  %v22734_v10 = vld [vmem:[#allocation66_spill] sm:$0xff]  ;;  %v6071_v50 = vadd.f32 %v6016_v2, %v5749_v46  ;;  %v22740_v8 = vld [vmem:[#allocation73_spill] sm:$0xff] }
 0x4fe   : > { %v6471_v47 = vsel %vm273_vm0, %v19193_v14, 0.0  ;;  %v6389_v20 = vadd.f32 %v6322_v16, %v6067_v41  ;;  %v5428_v18 = vadd.f32 %v22734_v10, %v5106_v54  ;;  %v19223_v17 = vadd.f32 %v19021_v3, %v6391_v31  ;;  %v22738_v16 = vld [vmem:[#allocation86_spill] sm:$0xff] }
 0x4ff   : > { %v6472_v1 = vadd.f32 %v6471_v47, %v6470_v42  ;;  %v15367_v62 = vpop.f32.mrf.mxu1  ;;  %v22737_v42 = vld [vmem:[#allocation55_spill] sm:$0xff]  ;;  %v5110_v47 = vadd.f32 %v22739_v48, %v4788_v22  ;;  %v6073_v27 = vadd.f32 %v19148_v26, %v22740_v8  ;;  %v6077_v48 = vadd.f32 %v15334_v19, %v18987_v59 }
 0x500   : > { %v19215_v38 = vadd.f32 %v19021_v3, %v6389_v20  ;;  %v6392_v12 = vadd.f32 %v15367_v62, %v6070_v45  ;;  %v5750_v44 = vadd.f32 %v22736_v37, %v5428_v18  ;;  %v5431_v4 = vadd.f32 %v22738_v16, %v22737_v42  ;;  %v6032_v20 = vpop.f32.mrf.mxu0 }
 0x501   : > { %v6474_v0 = vadd.f32 %v6473_v28, %v6472_v1  ;;  %v6325_v41 = vpop.f32.mrf.mxu1  ;;  %v22741_v1 = vld [vmem:[#allocation89_spill] sm:$0xff] }
 0x502   : > { %v6390_v51 = vadd.f32 %v6325_v41, %v6068_v25  ;;  %v6477_v57 = vsel %vm273_vm0, %v19215_v38, 0.0  ;;  %v19236_v45 = vadd.f32 %v19021_v3, %v6392_v12  ;;  %v6074_v62 = vadd.f32 %v15331_v58, %v22741_v1  ;;  %v15335_v18 = vpop.f32.mrf.mxu0 }
 0x503   : > { %v6476_v24 = vadd.f32 %v6475_v35, %v6474_v0  ;;  %v15370_v55 = vpop.f32.mrf.mxu1  ;;  %v5753_v25 = vadd.f32 %v18989_v9, %v5431_v4  ;;  %v6072_v0 = vadd.f32 %v6019_v53, %v5750_v44  ;;  %v6481_v41 = vsel %vm273_vm0, %v19223_v17, 0.0 }
 0x504   : > { %v19228_v54 = vadd.f32 %v19021_v3, %v6390_v51  ;;  %v6395_v10 = vadd.f32 %v15370_v55, %v6073_v27  ;;  %v22742_v51 = vld [vmem:[#allocation50_spill] sm:$0xff]  ;;  %v6483_v58 = vsel %vm273_vm0, %v19236_v45, 0.0  ;;  %v6035_v42 = vpop.f32.mrf.mxu0 }
 0x505   : > { %v6478_v2 = vadd.f32 %v6477_v57, %v6476_v24  ;;  %v6338_v43 = vpop.f32.mrf.mxu1  ;;  %v5432_v15 = vadd.f32 %v22742_v51, %v5110_v47 }
 0x506   : > { %v6479_v11 = vsel %vm273_vm0, %v19228_v54, 0.0  ;;  %v6393_v46 = vadd.f32 %v6338_v43, %v6071_v50  ;;  %v6075_v50 = vadd.f32 %v6032_v20, %v5753_v25  ;;  %v19252_v55 = vadd.f32 %v19021_v3, %v6395_v10 }
 0x507   : > { %v6480_v28 = vadd.f32 %v6479_v11, %v6478_v2  ;;  %v15371_v31 = vpop.f32.mrf.mxu1  ;;  %v5754_v37 = vadd.f32 %v18997_v30, %v5432_v15  ;;  %v22743_v2 = vld [vmem:[#allocation91_spill] sm:$0xff] }
 0x508   : > { %v19245_v26 = vadd.f32 %v19021_v3, %v6393_v46  ;;  %v6396_v22 = vadd.f32 %v15371_v31, %v6074_v62  ;;  %v6078_v43 = vadd.f32 %v15335_v18, %v22743_v2  ;;  %v6489_v46 = vsel %vm273_vm0, %v19252_v55, 0.0  ;;  %v16247_v2 = vld [vmem:[#allocation6 + $0x130] sm:$0xff]  }
 0x509   : > { %v6482_v35 = vadd.f32 %v6481_v41, %v6480_v28  ;;  %v6341_v12 = vpop.f32.mrf.mxu1  ;;  %v6076_v11 = vadd.f32 %v6035_v42, %v5754_v37 }
 0x50a   : > { %v6394_v9 = vadd.f32 %v6341_v12, %v6072_v0  ;;  %v6485_v44 = vsel %vm273_vm0, %v19245_v26, 0.0  ;;  %v19261_v47 = vadd.f32 %v19021_v3, %v6396_v22 }
 0x50b   : > { %v6484_v24 = vadd.f32 %v6483_v58, %v6482_v35  ;;  %v15374_v53 = vpop.f32.mrf.mxu1 }
 0x50c   : > { %v19257_v57 = vadd.f32 %v19021_v3, %v6394_v9  ;;  %v6399_v1 = vadd.f32 %v15374_v53, %v6077_v48  ;;  %v6491_v19 = vsel %vm273_vm0, %v19261_v47, 0.0 }
 0x50d   : > { %v6486_v16 = vadd.f32 %v6485_v44, %v6484_v24  ;;  %v6354_v4 = vpop.f32.mrf.mxu1 }
 0x50e   : > { %v6487_v30 = vsel %vm273_vm0, %v19257_v57, 0.0  ;;  %v6397_v20 = vadd.f32 %v6354_v4, %v6075_v50  ;;  %v6436_v41 = vadd.f32 %v19021_v3, %v6399_v1  ;;  %v16242_v4 = vld [vmem:[#allocation6 + $0x158] sm:$0xff]  }
 0x50f   : > { %v6488_v8 = vadd.f32 %v6487_v30, %v6486_v16  ;;  %v15375_v27 = vpop.f32.mrf.mxu1  ;;  %15376 = vmatprep.subr.bf16.mxu0 %v16242_v4  ;;  %v16246_v30 = vld [vmem:[#allocation6 + $0x138] sm:$0xff]  }
 0x510   : > { %v6434_v62 = vadd.f32 %v19021_v3, %v6397_v20  ;;  %v6400_v28 = vadd.f32 %v15375_v27, %v6078_v43  ;;  %v6497_v58 = vsel %vm273_vm0, %v6436_v41, 0.0  ;;  %15377 = vmatpush3.bf16.msra.mxu0 %v16242_v4  ;;  %v16244_v20 = vld [vmem:[#allocation6 + $0x148] sm:$0xff]   ;;  %15416 = vmatprep.subr.bf16.mxu1 %v16246_v30 }
 0x511   : > { %v6490_v25 = vadd.f32 %v6489_v46, %v6488_v8  ;;  %v6357_v59 = vpop.f32.mrf.mxu1  ;;  %15417 = vmatpush3.bf16.msra.mxu1 %v16246_v30 }
 0x512   : > { %v6398_v31 = vadd.f32 %v6357_v59, %v6076_v11  ;;  %v6493_v10 = vsel %vm273_vm0, %v6434_v62, 0.0  ;;  %v6437_v12 = vadd.f32 %v19021_v3, %v6400_v28  ;;  %15418 = vmatprep.subr.bf16.mxu1 %v16247_v2 }
 0x513   : > { %v6492_v0 = vadd.f32 %v6491_v19, %v6490_v25  ;;  %v19368_v19 = vld [vmem:[#allocation6 + $0x178] sm:$0xff]  }
 0x514   : > { %v6435_v18 = vadd.f32 %v19021_v3, %v6398_v31  ;;  %v6499_v9 = vsel %vm273_vm0, %v6437_v12, 0.0  ;;  %v16243_v3 = vld [vmem:[#allocation6 + $0x150] sm:$0xff]  }
 0x515   : > { %v6494_v35 = vadd.f32 %v6493_v10, %v6492_v0  ;;  %15378 = vmatprep.subr.bf16.mxu0 %v16243_v3  ;;  %15419 = vmatpush3.bf16.msra.mxu1 %v16247_v2 }
 0x516   : > { %v6495_v51 = vsel %vm273_vm0, %v6435_v18, 0.0  ;;  %15379 = vmatpush3.bf16.msra.mxu0 %v16243_v3 }
 0x517   : > { %v6496_v15 = vadd.f32 %v6495_v51, %v6494_v35  ;;  %15380 = vmatprep.subr.bf16.mxu0 %v16244_v20 }
 0x519   : > { %v6498_v22 = vadd.f32 %v6497_v58, %v6496_v15 }
 0x51a   : > { %15381 = vmatpush3.bf16.msra.mxu0 %v16244_v20 }
 0x51b   : > { %v6500_v50 = vadd.f32 %v6499_v9, %v6498_v22 }
 0x51d   : > { %v6501_v24 = vrot.slane %v6500_v50, 4 }
 0x51f   : > { %v6502_v53 = vadd.f32 %v6501_v24, %v6500_v50  ;;  %v6797_v50 = vld [vmem:[#allocation2 + $0x1] sm:$0xff] }
 0x521   : > { %v6503_v37 = vrot.slane %v6502_v53, 2 }
 0x523   : > { %v6504_v44 = vadd.f32 %v6503_v37, %v6502_v53  ;;  %v6798_v37 = vld [vmem:[#allocation2 + $0x9] sm:$0xff] }
 0x524   : > { %v6829_v30 = vpack.c.bf16 %v6798_v37, %v6797_v50 }
 0x525   : > { %v6505_v42 = vrot.slane %v6504_v44, 1 }
 0x526   : > { %15384 = vmatprep.mubr.msk.bf16.mxu0 %vm273_vm0, %v6829_v30 }
 0x527   : > { %v6506_v16 = vadd.f32 %v6505_v42, %v6504_v44  ;;  %v6740_v44 = vld [vmem:[#allocation2] sm:$0xff] }
 0x529   : > { %v19278_v48 = vmul.f32 0.00390625, %v6506_v16 }
 0x52b   : > { %v19282_v43 = vsub.f32 %v19117_v63, %v19278_v48  ;;  %v19286_v8 = vsub.f32 %v19141_v29, %v19278_v48  ;;  %v19290_v27 = vsub.f32 %v19157_v33, %v19278_v48  ;;  %v19294_v11 = vsub.f32 %v19152_v40, %v19278_v48 }
 0x52c   : > { %v19298_v46 = vsub.f32 %v19167_v52, %v19278_v48  ;;  %v19302_v63 = vsub.f32 %v19179_v36, %v19278_v48  ;;  %v19306_v29 = vsub.f32 %v19193_v14, %v19278_v48  ;;  %v19310_v33 = vsub.f32 %v19188_v49, %v19278_v48  ;;  %v16245_v52 = vld [vmem:[#allocation6 + $0x140] sm:$0xff]  }
 0x52d   : > { %v19314_v40 = vsub.f32 %v19203_v60, %v19278_v48  ;;  %v19318_v1 = vsub.f32 %v19215_v38, %v19278_v48  ;;  %v19322_v36 = vsub.f32 %v19228_v54, %v19278_v48  ;;  %v19326_v14 = vsub.f32 %v19223_v17, %v19278_v48  ;;  %v16248_v60 = vld [vmem:[#allocation6 + $0x128] sm:$0xff]   ;;  %15382 = vmatprep.subr.bf16.mxu0 %v16245_v52 }
 0x52e   : > { %v19330_v49 = vsub.f32 %v19236_v45, %v19278_v48  ;;  %v19334_v25 = vsub.f32 %v19245_v26, %v19278_v48  ;;  %v19338_v38 = vsub.f32 %v19257_v57, %v19278_v48  ;;  %v19342_v54 = vsub.f32 %v19252_v55, %v19278_v48  ;;  %15420 = vmatprep.subr.bf16.mxu1 %v16248_v60 }
 0x52f   : > { %v19346_v17 = vsub.f32 %v19261_v47, %v19278_v48  ;;  %v19349_v45 = vsub.f32 %v6434_v62, %v19278_v48  ;;  %v19352_v59 = vsub.f32 %v6435_v18, %v19278_v48  ;;  %v19355_v26 = vsub.f32 %v6436_v41, %v19278_v48  ;;  %v16249_v62 = vld [vmem:[#allocation6 + $0x120] sm:$0xff]   ;;  %15421 = vmatpush3.bf16.msra.mxu1 %v16248_v60 }
 0x530   : > { %v19358_v57 = vsub.f32 %v6437_v12, %v19278_v48  ;;  %v19362_v55 = vsub.f32 %v19025_v6, %v19278_v48  ;;  %v19366_v47 = vsub.f32 %v19037_v5, %v19278_v48  ;;  %v19372_v28 = vsub.f32 %v19034_v13, %v19278_v48  ;;  %15383 = vmatpush3.bf16.msra.mxu0 %v16245_v52 }
 0x531   : > { %v19376_v31 = vsub.f32 %v19047_v21, %v19278_v48  ;;  %15422 = vmatprep.subr.bf16.mxu1 %v16249_v62  ;;  %15456 = vmatprep.subr.bf16.mxu0 %v19368_v19  ;;  %v19385_v0 = vsub.f32 %v19060_v23, %v19278_v48  ;;  %v19391_v21 = vsub.f32 %v19077_v7, %v19278_v48 }
 0x532   : > { %v6540_v6 = vmul.f32 %v19362_v55, %v19362_v55  ;;  %v6541_v5 = vmul.f32 %v19366_v47, %v19366_v47  ;;  %v6542_v13 = vmul.f32 %v19372_v28, %v19372_v28  ;;  %v19399_v23 = vsub.f32 %v19072_v34, %v19278_v48 }
 0x533   : > { %15423 = vmatpush3.bf16.msra.mxu1 %v16249_v62  ;;  %v6543_v41 = vmul.f32 %v19376_v31, %v19376_v31  ;;  %v6544_v12 = vmul.f32 %v19385_v0, %v19385_v0  ;;  %v19406_v7 = vsub.f32 %v19087_v56, %v19278_v48  ;;  %v6545_v58 = vmul.f32 %v19391_v21, %v19391_v21  ;;  %v6741_v56 = vld [vmem:[#allocation2 + $0x8] sm:$0xff] }
 0x534   : > { %v6572_v10 = vsel %vm273_vm0, %v6540_v6, 0.0  ;;  %v6573_v18 = vsel %vm273_vm0, %v6541_v5, 0.0  ;;  %v6575_v51 = vsel %vm273_vm0, %v6542_v13, 0.0  ;;  %v19413_v34 = vsub.f32 %v19101_v61, %v19278_v48 }
 0x535   : > { %v6574_v35 = vadd.f32 %v6573_v18, %v6572_v10  ;;  %v6577_v22 = vsel %vm273_vm0, %v6543_v41, 0.0  ;;  %v6546_v24 = vmul.f32 %v19399_v23, %v19399_v23  ;;  %v6579_v53 = vsel %vm273_vm0, %v6544_v12, 0.0 }
 0x536   : > { %v6547_v16 = vmul.f32 %v19406_v7, %v19406_v7  ;;  %v6581_v4 = vsel %vm273_vm0, %v6545_v58, 0.0  ;;  %v6772_v20 = vpack.c.bf16 %v6741_v56, %v6740_v44  ;;  %v19423_v61 = vsub.f32 %v19112_v39, %v19278_v48 }
 0x537   : > { %v6576_v15 = vadd.f32 %v6575_v51, %v6574_v35  ;;  %v6548_v2 = vmul.f32 %v19413_v34, %v19413_v34  ;;  %v6583_v52 = vsel %vm273_vm0, %v6546_v24, 0.0  ;;  %v19432_v62 = vsub.f32 %v19127_v32, %v19278_v48 }
 0x538   : > { %15424 = vmatprep.mubr.msk.bf16.mxu1 %vm273_vm0, %v6772_v20  ;;  %v6549_v6 = vmul.f32 %v19282_v43, %v19282_v43  ;;  %v6585_v39 = vsel %vm273_vm0, %v6547_v16, 0.0  ;;  %v6550_v13 = vmul.f32 %v19423_v61, %v19423_v61  ;;  %v6552_v32 = vmul.f32 %v19286_v8, %v19286_v8 }
 0x539   : > { %v6578_v9 = vadd.f32 %v6577_v22, %v6576_v15  ;;  %v6587_v41 = vsel %vm273_vm0, %v6548_v2, 0.0  ;;  %v6551_v18 = vmul.f32 %v19432_v62, %v19432_v62  ;;  %v6553_v15 = vmul.f32 %v19290_v27, %v19290_v27 }
 0x53a   : > { %v6589_v35 = vsel %vm273_vm0, %v6549_v6, 0.0  ;;  %v6591_v48 = vsel %vm273_vm0, %v6550_v13, 0.0  ;;  %v6595_v50 = vsel %vm273_vm0, %v6552_v32, 0.0  ;;  %v6556_v56 = vmul.f32 %v19302_v63, %v19302_v63 }
 0x53b   : > { %v6580_v42 = vadd.f32 %v6579_v53, %v6578_v9  ;;  %v6593_v58 = vsel %vm273_vm0, %v6551_v18, 0.0  ;;  %v6554_v9 = vmul.f32 %v19294_v11, %v19294_v11  ;;  %v6555_v53 = vmul.f32 %v19298_v46, %v19298_v46 }
 0x53c   : > { %v6597_v37 = vsel %vm273_vm0, %v6553_v15, 0.0  ;;  %v6558_v20 = vmul.f32 %v19310_v33, %v19310_v33  ;;  %v6603_v2 = vsel %vm273_vm0, %v6556_v56, 0.0  ;;  %v6561_v18 = vmul.f32 %v19322_v36, %v19322_v36 }
 0x53d   : > { %v6582_v3 = vadd.f32 %v6581_v4, %v6580_v42  ;;  %v6599_v42 = vsel %vm273_vm0, %v6554_v9, 0.0  ;;  %v6557_v4 = vmul.f32 %v19306_v29, %v19306_v29  ;;  %v6562_v32 = vmul.f32 %v19326_v14, %v19326_v14 }
 0x53e   : > { %v6607_v13 = vsel %vm273_vm0, %v6558_v20, 0.0  ;;  %v6563_v15 = vmul.f32 %v19330_v49, %v19330_v49  ;;  %v6564_v9 = vmul.f32 %v19334_v25, %v19334_v25  ;;  %v6566_v56 = vmul.f32 %v19342_v54, %v19342_v54 }
 0x53f   : > { %v6584_v60 = vadd.f32 %v6583_v52, %v6582_v3  ;;  %v6601_v3 = vsel %vm273_vm0, %v6555_v53, 0.0  ;;  %v6605_v6 = vsel %vm273_vm0, %v6557_v4, 0.0  ;;  %v6565_v53 = vmul.f32 %v19338_v38, %v19338_v38 }
 0x540   : > { %v6567_v4 = vmul.f32 %v19346_v17, %v19346_v17  ;;  %v6568_v20 = vmul.f32 %v19349_v45, %v19349_v45 }
 0x541   : > { %v6586_v5 = vadd.f32 %v6585_v39, %v6584_v60  ;;  %v6559_v60 = vmul.f32 %v19314_v40, %v19314_v40 }
 0x543   : > { %v6588_v10 = vadd.f32 %v6587_v41, %v6586_v5  ;;  %v6560_v5 = vmul.f32 %v19318_v1, %v19318_v1  ;;  %v19470_v41 = vld [vmem:[#allocation6 + $0x198] sm:$0xff]  }
 0x544   : > { %15496 = vmatprep.subr.bf16.mxu1 %v19470_v41 }
 0x545   : > { %v6590_v12 = vadd.f32 %v6589_v35, %v6588_v10  ;;  %v6609_v35 = vsel %vm273_vm0, %v6559_v60, 0.0  ;;  %v6569_v60 = vmul.f32 %v19352_v59, %v19352_v59 }
 0x547   : > { %v6592_v51 = vadd.f32 %v6591_v48, %v6590_v12  ;;  %v6611_v48 = vsel %vm273_vm0, %v6560_v5, 0.0  ;;  %v6570_v5 = vmul.f32 %v19355_v26, %v19355_v26 }
 0x549   : > { %v6594_v22 = vadd.f32 %v6593_v58, %v6592_v51  ;;  %v6613_v58 = vsel %vm273_vm0, %v6561_v18, 0.0  ;;  %v6571_v18 = vmul.f32 %v19358_v57, %v19358_v57 }
 0x54b   : > { %v6596_v24 = vadd.f32 %v6595_v50, %v6594_v22  ;;  %v6615_v50 = vsel %vm273_vm0, %v6562_v32, 0.0  ;;  %v6631_v32 = vsel %vm273_vm0, %v6570_v5, 0.0 }
 0x54d   : > { %v6598_v44 = vadd.f32 %v6597_v37, %v6596_v24  ;;  %v6617_v37 = vsel %vm273_vm0, %v6563_v15, 0.0 }
 0x54f   : > { %v6600_v16 = vadd.f32 %v6599_v42, %v6598_v44  ;;  %v6619_v42 = vsel %vm273_vm0, %v6564_v9, 0.0 }
 0x551   : > { %v6602_v30 = vadd.f32 %v6601_v3, %v6600_v16  ;;  %v6621_v3 = vsel %vm273_vm0, %v6565_v53, 0.0 }
 0x553   : > { %v6604_v52 = vadd.f32 %v6603_v2, %v6602_v30  ;;  %v6623_v2 = vsel %vm273_vm0, %v6566_v56, 0.0 }
 0x555   : > { %v6606_v39 = vadd.f32 %v6605_v6, %v6604_v52  ;;  %v6625_v6 = vsel %vm273_vm0, %v6567_v4, 0.0 }
 0x557   : > { %v6608_v10 = vadd.f32 %v6607_v13, %v6606_v39  ;;  %v6627_v13 = vsel %vm273_vm0, %v6568_v20, 0.0 }
 0x559   : > { %v6610_v12 = vadd.f32 %v6609_v35, %v6608_v10  ;;  %v6629_v35 = vsel %vm273_vm0, %v6569_v60, 0.0  ;;  %v22744_v60 = vld [vmem:[#allocation42_spill] sm:$0xff] }
 0x55b   : > { %v6612_v51 = vadd.f32 %v6611_v48, %v6610_v12 }
 0x55d   : > { %v6614_v22 = vadd.f32 %v6613_v58, %v6612_v51  ;;  %v6633_v51 = vsel %vm273_vm0, %v6571_v18, 0.0 }
 0x55f   : > { %v6616_v24 = vadd.f32 %v6615_v50, %v6614_v22 }
 0x561   : > { %v6618_v44 = vadd.f32 %v6617_v37, %v6616_v24 }
 0x563   : > { %v6620_v16 = vadd.f32 %v6619_v42, %v6618_v44 }
 0x565   : > { %v6622_v30 = vadd.f32 %v6621_v3, %v6620_v16 }
 0x567   : > { %v6624_v52 = vadd.f32 %v6623_v2, %v6622_v30 }
 0x569   : > { %v6626_v39 = vadd.f32 %v6625_v6, %v6624_v52 }
 0x56b   : > { %v6628_v10 = vadd.f32 %v6627_v13, %v6626_v39  ;;  %v22746_v13 = vld [vmem:[#allocation13_spill] sm:$0xff] }
 0x56d   : > { %v6630_v12 = vadd.f32 %v6629_v35, %v6628_v10 }
 0x56f   : > { %v6632_v48 = vadd.f32 %v6631_v32, %v6630_v12  ;;  %v22760_v12 = vld [vmem:[#allocation20_spill] sm:$0xff] }
 0x571   : > { %v6634_v15 = vadd.f32 %v6633_v51, %v6632_v48  ;;  %v22762_v48 = vld [vmem:[#allocation21_spill] sm:$0xff] }
 0x573   : > { %v6635_v58 = vrot.slane %v6634_v15, 4 }
 0x575   : > { %v6636_v22 = vadd.f32 %v6635_v58, %v6634_v15  ;;  %v22764_v15 = vld [vmem:[#allocation22_spill] sm:$0xff] }
 0x577   : > { %v6637_v9 = vrot.slane %v6636_v22, 2 }
 0x579   : > { %v6638_v50 = vadd.f32 %v6637_v9, %v6636_v22  ;;  %v22766_v22 = vld [vmem:[#allocation23_spill] sm:$0xff] }
 0x57b   : > { %v6639_v24 = vrot.slane %v6638_v50, 1 }
 0x57d   : > { %v6640_v53 = vadd.f32 %v6639_v24, %v6638_v50  ;;  %v22768_v50 = vld [vmem:[#allocation24_spill] sm:$0xff] }
 0x57f   : > { %v6641_v37 = vmul.f32 0.00390625, %v6640_v53  ;;  %v22770_v53 = vld [vmem:[#allocation25_spill] sm:$0xff] }
 0x581   : > { %v6642_v44 = vadd.f32 1e-05, %v6641_v37 }
 0x583   : > { %16316 = vrsqrt.f32 %v6642_v44  ;;  %v22772_v44 = vld [vmem:[#allocation26_spill] sm:$0xff] }
 0x590   : > { %v16317_v56 = vpop.eup %16316 }
 0x591   : > { %v6673_v42 = vmul.f32 %v16317_v56, %v19352_v59  ;;  %v6644_v16 = vmul.f32 %v16317_v56, %v19362_v55  ;;  %v6645_v4 = vmul.f32 %v16317_v56, %v19366_v47  ;;  %v6646_v3 = vmul.f32 %v16317_v56, %v19372_v28 }
 0x592   : > { %v6647_v30 = vmul.f32 %v16317_v56, %v19376_v31  ;;  %v6648_v20 = vmul.f32 %v16317_v56, %v19385_v0  ;;  %v6649_v2 = vmul.f32 %v16317_v56, %v19391_v21  ;;  %v6650_v52 = vmul.f32 %v16317_v56, %v19399_v23 }
 0x593   : > { %v19517_v6 = vadd.f32 %v6673_v42, %v22744_v60  ;;  %v6651_v39 = vmul.f32 %v16317_v56, %v19406_v7  ;;  %v6652_v59 = vmul.f32 %v16317_v56, %v19413_v34  ;;  %v6653_v55 = vmul.f32 %v16317_v56, %v19282_v43  ;;  %v22774_v42 = vld [vmem:[#allocation27_spill] sm:$0xff] }
 0x594   : > { %v6654_v47 = vmul.f32 %v16317_v56, %v19423_v61  ;;  %v6655_v28 = vmul.f32 %v16317_v56, %v19432_v62  ;;  %v6656_v31 = vmul.f32 %v16317_v56, %v19286_v8  ;;  %v6657_v0 = vmul.f32 %v16317_v56, %v19290_v27  ;;  %v22782_v60 = vld [vmem:[#allocation31_spill] sm:$0xff] }
 0x595   : > { %22745 = vst [vmem:[#allocation68_spill] sm:$0xff] %v19517_v6  ;;  %v6658_v21 = vmul.f32 %v16317_v56, %v19294_v11  ;;  %v6659_v23 = vmul.f32 %v16317_v56, %v19298_v46  ;;  %v6660_v5 = vmul.f32 %v16317_v56, %v19302_v63  ;;  %v6661_v7 = vmul.f32 %v16317_v56, %v19306_v29 }
 0x596   : > { %6737 = vst.msk [vmem:[#allocation2 + $0x171] sm:$0xff] %vm273_vm0, %v19517_v6  ;;  %v6662_v43 = vmul.f32 %v16317_v56, %v19310_v33  ;;  %v6663_v34 = vmul.f32 %v16317_v56, %v19314_v40  ;;  %v6664_v61 = vmul.f32 %v16317_v56, %v19318_v1  ;;  %v6665_v8 = vmul.f32 %v16317_v56, %v19322_v36 }
 0x597   : > { %v6666_v27 = vmul.f32 %v16317_v56, %v19326_v14  ;;  %v6667_v11 = vmul.f32 %v16317_v56, %v19330_v49  ;;  %v6668_v46 = vmul.f32 %v16317_v56, %v19334_v25  ;;  %v6669_v63 = vmul.f32 %v16317_v56, %v19338_v38  ;;  %v22748_v14 = vld [vmem:[#allocation14_spill] sm:$0xff]  ;;  %v22750_v49 = vld [vmem:[#allocation15_spill] sm:$0xff]  ;;  %v22752_v38 = vld [vmem:[#allocation16_spill] sm:$0xff] }
 0x598   : > { %v6670_v29 = vmul.f32 %v16317_v56, %v19342_v54  ;;  %v6671_v62 = vmul.f32 %v16317_v56, %v19346_v17  ;;  %v6672_v33 = vmul.f32 %v16317_v56, %v19349_v45  ;;  %v6674_v40 = vmul.f32 %v16317_v56, %v19355_v26  ;;  %v22754_v54 = vld [vmem:[#allocation17_spill] sm:$0xff]  ;;  %v22756_v45 = vld [vmem:[#allocation18_spill] sm:$0xff]  ;;  %v22758_v26 = vld [vmem:[#allocation19_spill] sm:$0xff] }
 0x599   : > { %v6675_v1 = vmul.f32 %v16317_v56, %v19358_v57  ;;  %v19546_v36 = vadd.f32 %v6644_v16, %v22746_v13  ;;  %v19549_v10 = vadd.f32 %v6645_v4, %v22748_v14  ;;  %v19552_v25 = vadd.f32 %v6646_v3, %v22750_v49  ;;  %v22776_v4 = vld [vmem:[#allocation28_spill] sm:$0xff] }
 0x59a   : > { %v19555_v18 = vadd.f32 %v6647_v30, %v22752_v38  ;;  %v19558_v17 = vadd.f32 %v6648_v20, %v22754_v54  ;;  %v19561_v35 = vadd.f32 %v6649_v2, %v22756_v45  ;;  %v19564_v57 = vadd.f32 %v6650_v52, %v22758_v26  ;;  %v22778_v30 = vld [vmem:[#allocation29_spill] sm:$0xff]  ;;  %v22780_v2 = vld [vmem:[#allocation30_spill] sm:$0xff]  ;;  %v22806_v38 = vld [vmem:[#allocation44_spill] sm:$0xff] }
 0x59b   : > { %22747 = vst [vmem:[#allocation62_spill] sm:$0xff] %v19546_v36  ;;  %22749 = vst [vmem:[#allocation59_spill] sm:$0xff] %v19549_v10  ;;  %v19567_v32 = vadd.f32 %v6651_v39, %v22760_v12  ;;  %v19570_v51 = vadd.f32 %v6652_v59, %v22762_v48  ;;  %v19573_v58 = vadd.f32 %v6653_v55, %v22764_v15  ;;  %v22784_v59 = vld [vmem:[#allocation32_spill] sm:$0xff] }
 0x59c   : > { %22751 = vst [vmem:[#allocation83_spill] sm:$0xff] %v19552_v25  ;;  %22753 = vst [vmem:[#allocation76_spill] sm:$0xff] %v19555_v18  ;;  %v19576_v9 = vadd.f32 %v6654_v47, %v22766_v22  ;;  %v19585_v24 = vadd.f32 %v6655_v28, %v22768_v50  ;;  %v19588_v37 = vadd.f32 %v6656_v31, %v22770_v53  ;;  %v22786_v47 = vld [vmem:[#allocation33_spill] sm:$0xff]  ;;  %v22788_v31 = vld [vmem:[#allocation34_spill] sm:$0xff] }
 0x59d   : > { %22755 = vst [vmem:[#allocation58_spill] sm:$0xff] %v19558_v17  ;;  %22757 = vst [vmem:[#allocation53_spill] sm:$0xff] %v19561_v35  ;;  %v19591_v56 = vadd.f32 %v6657_v0, %v22772_v44  ;;  %v19594_v16 = vadd.f32 %v6658_v21, %v22774_v42  ;;  %v19605_v3 = vadd.f32 %v6659_v23, %v22776_v4  ;;  %v22790_v21 = vld [vmem:[#allocation35_spill] sm:$0xff]  ;;  %v16252_v4 = vld [vmem:[#allocation6 + $0x168] sm:$0xff]  }
 0x59e   : > { %22759 = vst [vmem:[#allocation82_spill] sm:$0xff] %v19564_v57  ;;  %22761 = vst [vmem:[#allocation47_spill] sm:$0xff] %v19567_v32  ;;  %v19608_v20 = vadd.f32 %v6660_v5, %v22778_v30  ;;  %v19611_v52 = vadd.f32 %v6661_v7, %v22780_v2  ;;  %v19614_v39 = vadd.f32 %v6662_v43, %v22782_v60  ;;  %v22792_v5 = vld [vmem:[#allocation36_spill] sm:$0xff]  ;;  %v22794_v43 = vld [vmem:[#allocation37_spill] sm:$0xff] }
 0x59f   : > { %22763 = vst [vmem:[#allocation67_spill] sm:$0xff] %v19570_v51  ;;  %22765 = vst [vmem:[#allocation60_spill] sm:$0xff] %v19573_v58  ;;  %v19625_v55 = vadd.f32 %v6663_v34, %v22784_v59  ;;  %v19628_v28 = vadd.f32 %v6664_v61, %v22786_v47  ;;  %v19631_v0 = vadd.f32 %v6665_v8, %v22788_v31  ;;  %v22796_v61 = vld [vmem:[#allocation38_spill] sm:$0xff]  ;;  %v16251_v53 = vld [vmem:[#allocation6 + $0x170] sm:$0xff]  }
 0x5a0   : > { %22767 = vst [vmem:[#allocation69_spill] sm:$0xff] %v19576_v9  ;;  %6708 = vst.msk [vmem:[#allocation2 + $0x19] sm:$0xff] %vm273_vm0, %v19546_v36  ;;  %v19634_v23 = vadd.f32 %v6666_v27, %v22790_v21  ;;  %v19645_v7 = vadd.f32 %v6667_v11, %v22792_v5  ;;  %v19648_v34 = vadd.f32 %v6668_v46, %v22794_v43  ;;  %v22798_v27 = vld [vmem:[#allocation39_spill] sm:$0xff]  ;;  %v22800_v11 = vld [vmem:[#allocation40_spill] sm:$0xff] }
 0x5a1   : > { %6709 = vst.msk [vmem:[#allocation2 + $0x21] sm:$0xff] %vm273_vm0, %v19549_v10  ;;  %6710 = vst.msk [vmem:[#allocation2 + $0x31] sm:$0xff] %vm273_vm0, %v19552_v25  ;;  %v19651_v8 = vadd.f32 %v6669_v63, %v22796_v61  ;;  %v19654_v13 = vadd.f32 %v6670_v29, %v22798_v27  ;;  %v19665_v46 = vadd.f32 %v6671_v62, %v22800_v11  ;;  %v22802_v63 = vld [vmem:[#allocation41_spill] sm:$0xff]  ;;  %v22804_v29 = vld [vmem:[#allocation43_spill] sm:$0xff] }
 0x5a2   : > { %22769 = vst [vmem:[#allocation85_spill] sm:$0xff] %v19585_v24  ;;  %22771 = vst [vmem:[#allocation48_spill] sm:$0xff] %v19588_v37  ;;  %v19668_v14 = vadd.f32 %v6672_v33, %v22802_v63  ;;  %v19671_v49 = vadd.f32 %v6674_v40, %v22804_v29  ;;  %v19674_v54 = vadd.f32 %v6675_v1, %v22806_v38  ;;  %v16255_v42 = vld [vmem:[#allocation6 + $0x190] sm:$0xff]   ;;  %v16256_v30 = vld [vmem:[#allocation6 + $0x188] sm:$0xff]  }
 0x5a3   : > { %22773 = vst [vmem:[#allocation61_spill] sm:$0xff] %v19591_v56  ;;  %22775 = vst [vmem:[#allocation70_spill] sm:$0xff] %v19594_v16  ;;  %v16253_v11 = vld [vmem:[#allocation6 + $0x160] sm:$0xff]   ;;  %v19734_v29 = vld [vmem:[#allocation6 + $0x1b8] sm:$0xff]  }
 0x5a4   : > { %6711 = vst.msk [vmem:[#allocation2 + $0x39] sm:$0xff] %vm273_vm0, %v19555_v18  ;;  %6712 = vst.msk [vmem:[#allocation2 + $0x49] sm:$0xff] %vm273_vm0, %v19558_v17  ;;  %v16257_v63 = vld [vmem:[#allocation6 + $0x180] sm:$0xff]   ;;  %v19736_v38 = vld [vmem:[#allocation6 + $0x1d8] sm:$0xff]  }
 0x5a5   : > { %6713 = vst.msk [vmem:[#allocation2 + $0x51] sm:$0xff] %vm273_vm0, %v19561_v35  ;;  %6714 = vst.msk [vmem:[#allocation2 + $0x61] sm:$0xff] %vm273_vm0, %v19564_v57 }
 0x5a6   : > { %22777 = vst [vmem:[#allocation51_spill] sm:$0xff] %v19605_v3  ;;  %22779 = vst [vmem:[#allocation78_spill] sm:$0xff] %v19608_v20 }
 0x5a7   : > { %22781 = vst [vmem:[#allocation63_spill] sm:$0xff] %v19611_v52  ;;  %22783 = vst [vmem:[#allocation64_spill] sm:$0xff] %v19614_v39  ;;  %v6799_v62 = vld [vmem:[#allocation2 + $0x19] sm:$0xff] }
 0x5a8   : > { %6715 = vst.msk [vmem:[#allocation2 + $0x69] sm:$0xff] %vm273_vm0, %v19567_v32  ;;  %6716 = vst.msk [vmem:[#allocation2 + $0x79] sm:$0xff] %vm273_vm0, %v19570_v51  ;;  %v6800_v33 = vld [vmem:[#allocation2 + $0x21] sm:$0xff]  ;;  %v6742_v40 = vld [vmem:[#allocation2 + $0x18] sm:$0xff] }
 0x5a9   : > { %6717 = vst.msk [vmem:[#allocation2 + $0x81] sm:$0xff] %vm273_vm0, %v19573_v58  ;;  %6718 = vst.msk [vmem:[#allocation2 + $0x91] sm:$0xff] %vm273_vm0, %v19576_v9  ;;  %v19700_v1 = vpack.c.bf16 %v6800_v33, %v6799_v62  ;;  %v6743_v45 = vld [vmem:[#allocation2 + $0x20] sm:$0xff]  ;;  %v6801_v26 = vld [vmem:[#allocation2 + $0x31] sm:$0xff] }
 0x5aa   : > { %22785 = vst [vmem:[#allocation65_spill] sm:$0xff] %v19625_v55  ;;  %22787 = vst [vmem:[#allocation56_spill] sm:$0xff] %v19628_v28  ;;  %v19702_v48 = vpack.c.bf16 %v6743_v45, %v6742_v40  ;;  %v6744_v22 = vld [vmem:[#allocation2 + $0x30] sm:$0xff] }
 0x5ab   : > { %22789 = vst [vmem:[#allocation75_spill] sm:$0xff] %v19631_v0  ;;  %22791 = vst [vmem:[#allocation88_spill] sm:$0xff] %v19634_v23  ;;  %v6802_v12 = vld [vmem:[#allocation2 + $0x39] sm:$0xff]  ;;  %15385 = vmatmul.mubr.msk.bf16.vlgmr.msra.gmra.mxu0 %vm273_vm0, %v19700_v1  ;;  %v6803_v2 = vld [vmem:[#allocation2 + $0x49] sm:$0xff] }
 0x5ac   : > { %6719 = vst.msk [vmem:[#allocation2 + $0x99] sm:$0xff] %vm273_vm0, %v19585_v24  ;;  %6720 = vst.msk [vmem:[#allocation2 + $0xa9] sm:$0xff] %vm273_vm0, %v19588_v37  ;;  %v19704_v15 = vpack.c.bf16 %v6802_v12, %v6801_v26  ;;  %v6745_v50 = vld [vmem:[#allocation2 + $0x38] sm:$0xff]  ;;  %15425 = vmatmul.mubr.msk.bf16.vlgmr.msra.gmra.mxu1 %vm273_vm0, %v19702_v48  ;;  %15457 = vmatpush3.bf16.msra.mxu0 %v19368_v19  ;;  %v6746_v59 = vld [vmem:[#allocation2 + $0x48] sm:$0xff] }
 0x5ad   : > { %6721 = vst.msk [vmem:[#allocation2 + $0xb1] sm:$0xff] %vm273_vm0, %v19591_v56  ;;  %6722 = vst.msk [vmem:[#allocation2 + $0xc1] sm:$0xff] %vm273_vm0, %v19594_v16  ;;  %v19708_v44 = vpack.c.bf16 %v6745_v50, %v6744_v22  ;;  %v6804_v60 = vld [vmem:[#allocation2 + $0x51] sm:$0xff]  ;;  %15458 = vmatprep.subr.bf16.mxu0 %v16251_v53  ;;  %15497 = vmatpush3.bf16.msra.mxu1 %v19470_v41  ;;  %v6805_v31 = vld [vmem:[#allocation2 + $0x61] sm:$0xff] }
 0x5ae   : > { %22793 = vst [vmem:[#allocation90_spill] sm:$0xff] %v19645_v7  ;;  %22795 = vst [vmem:[#allocation79_spill] sm:$0xff] %v19648_v34  ;;  %15388 = vmatprep.mubr.msk.bf16.mxu0 %vm273_vm0, %v19704_v15  ;;  %v6747_v47 = vld [vmem:[#allocation2 + $0x50] sm:$0xff]  ;;  %15498 = vmatprep.subr.bf16.mxu1 %v16255_v42  ;;  %v6748_v5 = vld [vmem:[#allocation2 + $0x60] sm:$0xff]  ;;  %v19718_v61 = vpack.c.bf16 %v6804_v60, %v6803_v2 }
 0x5af   : > { %22797 = vst [vmem:[#allocation52_spill] sm:$0xff] %v19651_v8  ;;  %22799 = vst [vmem:[#allocation72_spill] sm:$0xff] %v19654_v13  ;;  %15428 = vmatprep.mubr.msk.bf16.mxu1 %vm273_vm0, %v19708_v44  ;;  %v6806_v21 = vld [vmem:[#allocation2 + $0x69] sm:$0xff]  ;;  %v19720_v27 = vpack.c.bf16 %v6747_v47, %v6746_v59  ;;  %v6807_v62 = vld [vmem:[#allocation2 + $0x79] sm:$0xff] }
 0x5b0   : > { %6723 = vst.msk [vmem:[#allocation2 + $0xc9] sm:$0xff] %vm273_vm0, %v19605_v3  ;;  %6724 = vst.msk [vmem:[#allocation2 + $0xd9] sm:$0xff] %vm273_vm0, %v19608_v20  ;;  %v6749_v43 = vld [vmem:[#allocation2 + $0x68] sm:$0xff]  ;;  %15459 = vmatpush3.bf16.msra.mxu0 %v16251_v53  ;;  %v19722_v19 = vpack.c.bf16 %v6806_v21, %v6805_v31  ;;  %v6750_v40 = vld [vmem:[#allocation2 + $0x78] sm:$0xff] }
 0x5b1   : > { %6725 = vst.msk [vmem:[#allocation2 + $0xe1] sm:$0xff] %vm273_vm0, %v19611_v52  ;;  %6726 = vst.msk [vmem:[#allocation2 + $0xf1] sm:$0xff] %vm273_vm0, %v19614_v39  ;;  %15460 = vmatprep.subr.bf16.mxu0 %v16252_v4  ;;  %15499 = vmatpush3.bf16.msra.mxu1 %v16255_v42  ;;  %v19726_v41 = vpack.c.bf16 %v6749_v43, %v6748_v5  ;;  %v6808_v33 = vld [vmem:[#allocation2 + $0x81] sm:$0xff]  ;;  %v6809_v26 = vld [vmem:[#allocation2 + $0x91] sm:$0xff] }
 0x5b2   : > { %22801 = vst [vmem:[#allocation45_spill] sm:$0xff] %v19665_v46  ;;  %22803 = vst [vmem:[#allocation46_spill] sm:$0xff] %v19668_v14  ;;  %15500 = vmatprep.subr.bf16.mxu1 %v16256_v30  ;;  %v6751_v45 = vld [vmem:[#allocation2 + $0x80] sm:$0xff]  ;;  %v6752_v22 = vld [vmem:[#allocation2 + $0x90] sm:$0xff]  ;;  %v19738_v53 = vpack.c.bf16 %v6808_v33, %v6807_v62 }
 0x5b3   : > { %22805 = vst [vmem:[#allocation54_spill] sm:$0xff] %v19671_v49  ;;  %22807 = vst [vmem:[#allocation81_spill] sm:$0xff] %v19674_v54  ;;  %15389 = vmatmul.mubr.msk.bf16.gmra.mxu0 %vm273_vm0, %v19718_v61  ;;  %v6810_v12 = vld [vmem:[#allocation2 + $0x99] sm:$0xff]  ;;  %v19740_v42 = vpack.c.bf16 %v6751_v45, %v6750_v40  ;;  %v6811_v2 = vld [vmem:[#allocation2 + $0xa9] sm:$0xff] }
 0x5b4   : > { %6727 = vst.msk [vmem:[#allocation2 + $0xf9] sm:$0xff] %vm273_vm0, %v19625_v55  ;;  %6728 = vst.msk [vmem:[#allocation2 + $0x109] sm:$0xff] %vm273_vm0, %v19628_v28  ;;  %15429 = vmatmul.mubr.msk.bf16.gmra.mxu1 %vm273_vm0, %v19720_v27  ;;  %15392 = vmatprep.mubr.msk.bf16.mxu0 %vm273_vm0, %v19722_v19  ;;  %v6753_v50 = vld [vmem:[#allocation2 + $0x98] sm:$0xff]  ;;  %v6754_v59 = vld [vmem:[#allocation2 + $0xa8] sm:$0xff] }
 0x5b5   : > { %6729 = vst.msk [vmem:[#allocation2 + $0x111] sm:$0xff] %vm273_vm0, %v19631_v0  ;;  %6730 = vst.msk [vmem:[#allocation2 + $0x121] sm:$0xff] %vm273_vm0, %v19634_v23  ;;  %15432 = vmatprep.mubr.msk.bf16.mxu1 %vm273_vm0, %v19726_v41  ;;  %15461 = vmatpush3.bf16.msra.mxu0 %v16252_v4  ;;  %v19742_v4 = vpack.c.bf16 %v6810_v12, %v6809_v26  ;;  %v6812_v60 = vld [vmem:[#allocation2 + $0xb1] sm:$0xff]  ;;  %v6813_v31 = vld [vmem:[#allocation2 + $0xc1] sm:$0xff] }
 0x5b6   : > { %6731 = vst.msk [vmem:[#allocation2 + $0x129] sm:$0xff] %vm273_vm0, %v19645_v7  ;;  %6732 = vst.msk [vmem:[#allocation2 + $0x139] sm:$0xff] %vm273_vm0, %v19648_v34  ;;  %15462 = vmatprep.subr.bf16.mxu0 %v16253_v11  ;;  %15501 = vmatpush3.bf16.msra.mxu1 %v16256_v30  ;;  %v19747_v30 = vpack.c.bf16 %v6753_v50, %v6752_v22  ;;  %v6755_v47 = vld [vmem:[#allocation2 + $0xb0] sm:$0xff]  ;;  %v6756_v5 = vld [vmem:[#allocation2 + $0xc0] sm:$0xff] }
 0x5b7   : > { %6733 = vst.msk [vmem:[#allocation2 + $0x141] sm:$0xff] %vm273_vm0, %v19651_v8  ;;  %6734 = vst.msk [vmem:[#allocation2 + $0x151] sm:$0xff] %vm273_vm0, %v19654_v13  ;;  %15502 = vmatprep.subr.bf16.mxu1 %v16257_v63  ;;  %v6814_v21 = vld [vmem:[#allocation2 + $0xc9] sm:$0xff]  ;;  %v6815_v40 = vld [vmem:[#allocation2 + $0xd9] sm:$0xff] }
 0x5b8   : > { %6735 = vst.msk [vmem:[#allocation2 + $0x159] sm:$0xff] %vm273_vm0, %v19665_v46  ;;  %6736 = vst.msk [vmem:[#allocation2 + $0x169] sm:$0xff] %vm273_vm0, %v19668_v14  ;;  %v6757_v43 = vld [vmem:[#allocation2 + $0xc8] sm:$0xff]  ;;  %v19760_v62 = vpack.c.bf16 %v6814_v21, %v6813_v31  ;;  %v6758_v26 = vld [vmem:[#allocation2 + $0xd8] sm:$0xff] }
 0x5b9   : > { %6738 = vst.msk [vmem:[#allocation2 + $0x181] sm:$0xff] %vm273_vm0, %v19671_v49  ;;  %6739 = vst.msk [vmem:[#allocation2 + $0x189] sm:$0xff] %vm273_vm0, %v19674_v54  ;;  %15463 = vmatpush3.bf16.msra.mxu0 %v16253_v11  ;;  %v19756_v11 = vpack.c.bf16 %v6812_v60, %v6811_v2  ;;  %v19764_v33 = vpack.c.bf16 %v6757_v43, %v6756_v5  ;;  %v6816_v45 = vld [vmem:[#allocation2 + $0xe1] sm:$0xff]  ;;  %v6817_v22 = vld [vmem:[#allocation2 + $0xf1] sm:$0xff] }
 0x5ba   : > { %15503 = vmatpush3.bf16.msra.mxu1 %v16257_v63  ;;  %15536 = vmatprep.subr.bf16.mxu0 %v19734_v29  ;;  %v19758_v63 = vpack.c.bf16 %v6755_v47, %v6754_v59  ;;  %v6759_v12 = vld [vmem:[#allocation2 + $0xe0] sm:$0xff]  ;;  %v6760_v2 = vld [vmem:[#allocation2 + $0xf0] sm:$0xff]  ;;  %v19772_v59 = vpack.c.bf16 %v6816_v45, %v6815_v40 }
 0x5bb   : > { %15393 = vmatmul.mubr.msk.bf16.gmra.mxu0 %vm273_vm0, %v19738_v53  ;;  %15576 = vmatprep.subr.bf16.mxu1 %v19736_v38  ;;  %v6818_v50 = vld [vmem:[#allocation2 + $0xf9] sm:$0xff]  ;;  %v19774_v47 = vpack.c.bf16 %v6759_v12, %v6758_v26  ;;  %v6819_v5 = vld [vmem:[#allocation2 + $0x109] sm:$0xff] }
 0x5bc   : > { %15433 = vmatmul.mubr.msk.bf16.gmra.mxu1 %vm273_vm0, %v19740_v42  ;;  %15396 = vmatprep.mubr.msk.bf16.mxu0 %vm273_vm0, %v19742_v4  ;;  %v6761_v60 = vld [vmem:[#allocation2 + $0xf8] sm:$0xff]  ;;  %v19776_v31 = vpack.c.bf16 %v6818_v50, %v6817_v22  ;;  %v6762_v40 = vld [vmem:[#allocation2 + $0x108] sm:$0xff]  ;;  %v6763_v45 = vld [vmem:[#allocation2 + $0x110] sm:$0xff] }
 0x5bd   : > { %15436 = vmatprep.mubr.msk.bf16.mxu1 %vm273_vm0, %v19747_v30  ;;  %v19780_v21 = vpack.c.bf16 %v6761_v60, %v6760_v2  ;;  %v6820_v43 = vld [vmem:[#allocation2 + $0x111] sm:$0xff]  ;;  %v6821_v26 = vld [vmem:[#allocation2 + $0x121] sm:$0xff]  ;;  %v6822_v12 = vld [vmem:[#allocation2 + $0x129] sm:$0xff]  ;;  %v19790_v2 = vpack.c.bf16 %v6763_v45, %v6762_v40 }
 0x5be   : > { %v6764_v22 = vld [vmem:[#allocation2 + $0x120] sm:$0xff]  ;;  %v6765_v50 = vld [vmem:[#allocation2 + $0x128] sm:$0xff]  ;;  %v19788_v54 = vpack.c.bf16 %v6820_v43, %v6819_v5  ;;  %v19792_v60 = vpack.c.bf16 %v6822_v12, %v6821_v26  ;;  %v6766_v40 = vld [vmem:[#allocation2 + $0x138] sm:$0xff] }
 0x5bf   : > { %v19796_v49 = vpack.c.bf16 %v6765_v50, %v6764_v22  ;;  %v6823_v5 = vld [vmem:[#allocation2 + $0x139] sm:$0xff]  ;;  %v6824_v43 = vld [vmem:[#allocation2 + $0x141] sm:$0xff]  ;;  %v6825_v26 = vld [vmem:[#allocation2 + $0x151] sm:$0xff] }
 0x5c0   : > { %v6767_v45 = vld [vmem:[#allocation2 + $0x140] sm:$0xff]  ;;  %v6768_v14 = vld [vmem:[#allocation2 + $0x150] sm:$0xff]  ;;  %v6769_v46 = vld [vmem:[#allocation2 + $0x158] sm:$0xff]  ;;  %v19804_v13 = vpack.c.bf16 %v6824_v43, %v6823_v5 }
 0x5c1   : > { %v6826_v12 = vld [vmem:[#allocation2 + $0x159] sm:$0xff]  ;;  %v19806_v22 = vpack.c.bf16 %v6767_v45, %v6766_v40  ;;  %v19812_v8 = vpack.c.bf16 %v6769_v46, %v6768_v14  ;;  %v7320_v5 = vld [vmem:[#allocation2 + $0x2] sm:$0xff]  ;;  %v7321_v43 = vld [vmem:[#allocation2 + $0xa] sm:$0xff] }
 0x5c2   : > { %v19808_v50 = vpack.c.bf16 %v6826_v12, %v6825_v26  ;;  %v6827_v40 = vld [vmem:[#allocation2 + $0x169] sm:$0xff]  ;;  %v6828_v45 = vld [vmem:[#allocation2 + $0x171] sm:$0xff]  ;;  %v7352_v34 = vpack.c.bf16 %v7321_v43, %v7320_v5  ;;  %v7322_v14 = vld [vmem:[#allocation2 + $0x1a] sm:$0xff] }
 0x5c3   : > { %15397 = vmatmul.mubr.msk.bf16.gmra.mxu0 %vm273_vm0, %v19756_v11  ;;  %v6770_v26 = vld [vmem:[#allocation2 + $0x168] sm:$0xff]  ;;  %v6771_v12 = vld [vmem:[#allocation2 + $0x170] sm:$0xff]  ;;  %v19820_v7 = vpack.c.bf16 %v6828_v45, %v6827_v40  ;;  %v7325_v28 = vld [vmem:[#allocation2 + $0x3a] sm:$0xff] }
 0x5c4   : > { %15437 = vmatmul.mubr.msk.bf16.gmra.mxu1 %vm273_vm0, %v19758_v63  ;;  %15400 = vmatprep.mubr.msk.bf16.mxu0 %vm273_vm0, %v19760_v62  ;;  %v19822_v46 = vpack.c.bf16 %v6771_v12, %v6770_v26  ;;  %v7323_v23 = vld [vmem:[#allocation2 + $0x22] sm:$0xff]  ;;  %v7324_v0 = vld [vmem:[#allocation2 + $0x32] sm:$0xff]  ;;  %v7341_v20 = vld [vmem:[#allocation2 + $0xfa] sm:$0xff] }
 0x5c5   : > { %15440 = vmatprep.mubr.msk.bf16.mxu1 %vm273_vm0, %v19764_v33  ;;  %v19831_v5 = vpack.c.bf16 %v7323_v23, %v7322_v14  ;;  %v19833_v43 = vpack.c.bf16 %v7325_v28, %v7324_v0  ;;  %v16259_v40 = vld [vmem:[#allocation6 + $0x1b0] sm:$0xff]   ;;  %v7326_v23 = vld [vmem:[#allocation2 + $0x4a] sm:$0xff]  ;;  %v16260_v28 = vld [vmem:[#allocation6 + $0x1a8] sm:$0xff]  }
 0x5c6   : > { %v16263_v45 = vld [vmem:[#allocation6 + $0x1d0] sm:$0xff]   ;;  %v16264_v26 = vld [vmem:[#allocation6 + $0x1c8] sm:$0xff]   ;;  %v16261_v55 = vld [vmem:[#allocation6 + $0x1a0] sm:$0xff]  }
 0x5c7   : > { %v7328_v0 = vld [vmem:[#allocation2 + $0x62] sm:$0xff]  ;;  %v7340_v52 = vld [vmem:[#allocation2 + $0xf2] sm:$0xff]  ;;  %v7345_v3 = vld [vmem:[#allocation2 + $0x12a] sm:$0xff] }
 0x5c8   : > { %v9258_v37 = vld [vmem:[#allocation2 + $0x7a] sm:$0xff]  ;;  %v9259_v24 = vld [vmem:[#allocation2 + $0x82] sm:$0xff] }
 0x5c9   : > { %v9261_v9 = vld [vmem:[#allocation2 + $0x9a] sm:$0xff] }
 0x5cb   : > { %15401 = vmatmul.mubr.msk.bf16.gmra.mxu0 %vm273_vm0, %v19772_v59 }
 0x5cc   : > { %15441 = vmatmul.mubr.msk.bf16.gmra.mxu1 %vm273_vm0, %v19774_v47  ;;  %15404 = vmatprep.mubr.msk.bf16.mxu0 %vm273_vm0, %v19776_v31 }
 0x5cd   : > { %15444 = vmatprep.mubr.msk.bf16.mxu1 %vm273_vm0, %v19780_v21 }
 0x5d3   : > { %15405 = vmatmul.mubr.msk.bf16.gmra.mxu0 %vm273_vm0, %v19788_v54 }
 0x5d4   : > { %15445 = vmatmul.mubr.msk.bf16.gmra.mxu1 %vm273_vm0, %v19790_v2  ;;  %15408 = vmatprep.mubr.msk.bf16.mxu0 %vm273_vm0, %v19792_v60 }
 0x5d5   : > { %15448 = vmatprep.mubr.msk.bf16.mxu1 %vm273_vm0, %v19796_v49 }
 0x5db   : > { %15409 = vmatmul.mubr.msk.bf16.gmra.mxu0 %vm273_vm0, %v19804_v13 }
 0x5dc   : > { %15449 = vmatmul.mubr.msk.bf16.gmra.mxu1 %vm273_vm0, %v19806_v22  ;;  %15412 = vmatprep.mubr.msk.bf16.mxu0 %vm273_vm0, %v19808_v50 }
 0x5dd   : > { %15452 = vmatprep.mubr.msk.bf16.mxu1 %vm273_vm0, %v19812_v8 }
 0x5e3   : > { %15413 = vmatmul.mubr.msk.bf16.gmra.mxu0 %vm273_vm0, %v19820_v7 }
 0x5e4   : > { %15453 = vmatmul.mubr.msk.bf16.gmra.mxu1 %vm273_vm0, %v19822_v46  ;;  %15464 = vmatprep.mubr.msk.bf16.mxu0 %vm273_vm0, %v7352_v34  ;;  %v7327_v34 = vld [vmem:[#allocation2 + $0x52] sm:$0xff] }
 0x5e5   : > { %15504 = vmatprep.mubr.msk.bf16.mxu1 %vm273_vm0, %v19702_v48  ;;  %v7329_v48 = vld [vmem:[#allocation2 + $0x6a] sm:$0xff]  ;;  %v19845_v12 = vpack.c.bf16 %v7327_v34, %v7326_v23  ;;  %v7332_v23 = vld [vmem:[#allocation2 + $0x92] sm:$0xff]  ;;  %v7333_v34 = vld [vmem:[#allocation2 + $0x9a] sm:$0xff] }
 0x5e6   : > { %v19847_v14 = vpack.c.bf16 %v7329_v48, %v7328_v0  ;;  %v19859_v0 = vld [vmem:[#allocation6 + $0x218] sm:$0xff]   ;;  %v19863_v39 = vpack.c.bf16 %v7333_v34, %v7332_v23  ;;  %v7338_v23 = vld [vmem:[#allocation2 + $0xda] sm:$0xff] }
 0x5e7   : > { %v7339_v34 = vld [vmem:[#allocation2 + $0xe2] sm:$0xff] }
 0x5eb   : > { %15465 = vmatmul.mubr.msk.bf16.vlgmr.msra.gmra.mxu0 %vm273_vm0, %v19831_v5 }
 0x5ec   : > { %15505 = vmatmul.mubr.msk.bf16.vlgmr.msra.gmra.mxu1 %vm273_vm0, %v19708_v44  ;;  %15468 = vmatprep.mubr.msk.bf16.mxu0 %vm273_vm0, %v19833_v43 }
 0x5ed   : > { %15508 = vmatprep.mubr.msk.bf16.mxu1 %vm273_vm0, %v19720_v27  ;;  %15537 = vmatpush3.bf16.msra.mxu0 %v19734_v29  ;;  %v16265_v29 = vld [vmem:[#allocation6 + $0x1c0] sm:$0xff]  }
 0x5ee   : > { %15538 = vmatprep.subr.bf16.mxu0 %v16259_v40  ;;  %15577 = vmatpush3.bf16.msra.mxu1 %v19736_v38  ;;  %v7330_v38 = vld [vmem:[#allocation2 + $0x7a] sm:$0xff] }
 0x5ef   : > { %15578 = vmatprep.subr.bf16.mxu1 %v16263_v45 }
 0x5f1   : > { %15539 = vmatpush3.bf16.msra.mxu0 %v16259_v40  ;;  %v7331_v40 = vld [vmem:[#allocation2 + $0x82] sm:$0xff] }
 0x5f2   : > { %15540 = vmatprep.subr.bf16.mxu0 %v16260_v28  ;;  %15579 = vmatpush3.bf16.msra.mxu1 %v16263_v45  ;;  %v19857_v45 = vld [vmem:[#allocation6 + $0x1f8] sm:$0xff]   ;;  %v19861_v48 = vpack.c.bf16 %v7331_v40, %v7330_v38 }
 0x5f3   : > { %15469 = vmatmul.mubr.msk.bf16.gmra.mxu0 %vm273_vm0, %v19845_v12  ;;  %15580 = vmatprep.subr.bf16.mxu1 %v16264_v26 }
 0x5f4   : > { %15509 = vmatmul.mubr.msk.bf16.gmra.mxu1 %vm273_vm0, %v19726_v41  ;;  %15472 = vmatprep.mubr.msk.bf16.mxu0 %vm273_vm0, %v19847_v14 }
 0x5f5   : > { %15512 = vmatprep.mubr.msk.bf16.mxu1 %vm273_vm0, %v19740_v42  ;;  %15541 = vmatpush3.bf16.msra.mxu0 %v16260_v28  ;;  %v7335_v28 = vld [vmem:[#allocation2 + $0xb2] sm:$0xff] }
 0x5f6   : > { %15542 = vmatprep.subr.bf16.mxu0 %v16261_v55  ;;  %15581 = vmatpush3.bf16.msra.mxu1 %v16264_v26  ;;  %v7336_v26 = vld [vmem:[#allocation2 + $0xc2] sm:$0xff] }
 0x5f7   : > { %15582 = vmatprep.subr.bf16.mxu1 %v16265_v29 }
 0x5f9   : > { %15543 = vmatpush3.bf16.msra.mxu0 %v16261_v55  ;;  %v7334_v55 = vld [vmem:[#allocation2 + $0xaa] sm:$0xff] }
 0x5fa   : > { %15583 = vmatpush3.bf16.msra.mxu1 %v16265_v29  ;;  %15616 = vmatprep.subr.bf16.mxu0 %v19857_v45  ;;  %v7337_v29 = vld [vmem:[#allocation2 + $0xca] sm:$0xff]  ;;  %v19875_v38 = vpack.c.bf16 %v7335_v28, %v7334_v55  ;;  %v19887_v55 = vpack.c.bf16 %v7339_v34, %v7338_v23  ;;  %v19889_v28 = vpack.c.bf16 %v7341_v20, %v7340_v52  ;;  %v7346_v52 = vld [vmem:[#allocation2 + $0x13a] sm:$0xff] }
 0x5fb   : > { %15473 = vmatmul.mubr.msk.bf16.gmra.mxu0 %vm273_vm0, %v19861_v48  ;;  %15656 = vmatprep.subr.bf16.mxu1 %v19859_v0  ;;  %v19877_v40 = vpack.c.bf16 %v7337_v29, %v7336_v26  ;;  %v7343_v26 = vld [vmem:[#allocation2 + $0x112] sm:$0xff]  ;;  %v7344_v29 = vld [vmem:[#allocation2 + $0x122] sm:$0xff]  ;;  %v7349_v34 = vld [vmem:[#allocation2 + $0x15a] sm:$0xff] }
 0x5fc   : > { %15513 = vmatmul.mubr.msk.bf16.gmra.mxu1 %vm273_vm0, %v19747_v30  ;;  %15476 = vmatprep.mubr.msk.bf16.mxu0 %vm273_vm0, %v19863_v39  ;;  %v19901_v20 = vpack.c.bf16 %v7345_v3, %v7344_v29  ;;  %v7350_v3 = vld [vmem:[#allocation2 + $0x16a] sm:$0xff]  ;;  %v7672_v29 = vld [vmem:[#allocation2 + $0x180] sm:$0xff] }
 0x5fd   : > { %15516 = vmatprep.mubr.msk.bf16.mxu1 %vm273_vm0, %v19758_v63 }
 0x603   : > { %15477 = vmatmul.mubr.msk.bf16.gmra.mxu0 %vm273_vm0, %v19875_v38 }
 0x604   : > { %15517 = vmatmul.mubr.msk.bf16.gmra.mxu1 %vm273_vm0, %v19764_v33  ;;  %15480 = vmatprep.mubr.msk.bf16.mxu0 %vm273_vm0, %v19877_v40 }
 0x605   : > { %15520 = vmatprep.mubr.msk.bf16.mxu1 %vm273_vm0, %v19774_v47  ;;  %v7342_v47 = vld [vmem:[#allocation2 + $0x10a] sm:$0xff] }
 0x606   : > { %v19899_v23 = vpack.c.bf16 %v7343_v26, %v7342_v47 }
 0x60b   : > { %15481 = vmatmul.mubr.msk.bf16.gmra.mxu0 %vm273_vm0, %v19887_v55 }
 0x60c   : > { %15521 = vmatmul.mubr.msk.bf16.gmra.mxu1 %vm273_vm0, %v19780_v21  ;;  %15484 = vmatprep.mubr.msk.bf16.mxu0 %vm273_vm0, %v19889_v28  ;;  %v7347_v21 = vld [vmem:[#allocation2 + $0x142] sm:$0xff] }
 0x60d   : > { %15524 = vmatprep.mubr.msk.bf16.mxu1 %vm273_vm0, %v19790_v2  ;;  %v7348_v2 = vld [vmem:[#allocation2 + $0x152] sm:$0xff]  ;;  %v7365_v47 = vpack.c.bf16 %v7347_v21, %v7346_v52 }
 0x60e   : > { %v7366_v26 = vpack.c.bf16 %v7349_v34, %v7348_v2  ;;  %v16269_v52 = vld [vmem:[#allocation6 + $0x1e0] sm:$0xff]  }
 0x60f   : > { %v8941_v2 = vld [vmem:[#allocation2 + $0xb1] sm:$0xff] }
 0x613   : > { %15485 = vmatmul.mubr.msk.bf16.gmra.mxu0 %vm273_vm0, %v19899_v23 }
 0x614   : > { %15525 = vmatmul.mubr.msk.bf16.gmra.mxu1 %vm273_vm0, %v19796_v49  ;;  %15488 = vmatprep.mubr.msk.bf16.mxu0 %vm273_vm0, %v19901_v20  ;;  %v7351_v49 = vld [vmem:[#allocation2 + $0x172] sm:$0xff] }
 0x615   : > { %15528 = vmatprep.mubr.msk.bf16.mxu1 %vm273_vm0, %v19806_v22  ;;  %v7673_v22 = vld [vmem:[#allocation2 + $0x188] sm:$0xff]  ;;  %v7367_v16 = vpack.c.bf16 %v7351_v49, %v7350_v3 }
 0x616   : > { %v19917_v56 = vpack.c.bf16 %v7673_v22, %v7672_v29 }
 0x61b   : > { %15489 = vmatmul.mubr.msk.bf16.gmra.mxu0 %vm273_vm0, %v7365_v47 }
 0x61c   : > { %15529 = vmatmul.mubr.msk.bf16.gmra.mxu1 %vm273_vm0, %v19812_v8  ;;  %15492 = vmatprep.mubr.msk.bf16.mxu0 %vm273_vm0, %v7366_v26  ;;  %v16267_v8 = vld [vmem:[#allocation6 + $0x1f0] sm:$0xff]  }
 0x61d   : > { %15532 = vmatprep.mubr.msk.bf16.mxu1 %vm273_vm0, %v19822_v46  ;;  %v16271_v46 = vld [vmem:[#allocation6 + $0x210] sm:$0xff]  }
 0x623   : > { %15493 = vmatmul.mubr.msk.bf16.gmra.mxu0 %vm273_vm0, %v7367_v16 }
 0x624   : > { %15533 = vmatmul.mubr.msk.bf16.gmra.mxu1 %vm273_vm0, %v19917_v56  ;;  %15544 = vmatprep.mubr.msk.bf16.mxu0 %vm273_vm0, %v19700_v1  ;;  %v16268_v1 = vld [vmem:[#allocation6 + $0x1e8] sm:$0xff]  }
 0x625   : > { %15584 = vmatprep.mubr.msk.bf16.mxu1 %vm273_vm0, %v19831_v5  ;;  %v16272_v5 = vld [vmem:[#allocation6 + $0x208] sm:$0xff]  }
 0x62b   : > { %15545 = vmatmul.mubr.msk.bf16.vlgmr.msra.gmra.mxu0 %vm273_vm0, %v19704_v15 }
 0x62c   : > { %15585 = vmatmul.mubr.msk.bf16.vlgmr.msra.gmra.mxu1 %vm273_vm0, %v19833_v43  ;;  %15548 = vmatprep.mubr.msk.bf16.mxu0 %vm273_vm0, %v19718_v61  ;;  %v16273_v43 = vld [vmem:[#allocation6 + $0x200] sm:$0xff]  }
 0x62d   : > { %15588 = vmatprep.mubr.msk.bf16.mxu1 %vm273_vm0, %v19845_v12  ;;  %15617 = vmatpush3.bf16.msra.mxu0 %v19857_v45  ;;  %v16274_v12 = vld [vmem:[#allocation6 + $0x238] sm:$0xff]  }
 0x62e   : > { %15618 = vmatprep.subr.bf16.mxu0 %v16267_v8  ;;  %15657 = vmatpush3.bf16.msra.mxu1 %v19859_v0 }
 0x62f   : > { %15658 = vmatprep.subr.bf16.mxu1 %v16271_v46 }
 0x631   : > { %15619 = vmatpush3.bf16.msra.mxu0 %v16267_v8 }
 0x632   : > { %15620 = vmatprep.subr.bf16.mxu0 %v16268_v1  ;;  %15659 = vmatpush3.bf16.msra.mxu1 %v16271_v46 }
 0x633   : > { %15549 = vmatmul.mubr.msk.bf16.gmra.mxu0 %vm273_vm0, %v19722_v19  ;;  %15660 = vmatprep.subr.bf16.mxu1 %v16272_v5 }
 0x634   : > { %15589 = vmatmul.mubr.msk.bf16.gmra.mxu1 %vm273_vm0, %v19847_v14  ;;  %15552 = vmatprep.mubr.msk.bf16.mxu0 %vm273_vm0, %v19738_v53 }
 0x635   : > { %15592 = vmatprep.mubr.msk.bf16.mxu1 %vm273_vm0, %v19861_v48  ;;  %15621 = vmatpush3.bf16.msra.mxu0 %v16268_v1 }
 0x636   : > { %15622 = vmatprep.subr.bf16.mxu0 %v16269_v52  ;;  %15661 = vmatpush3.bf16.msra.mxu1 %v16272_v5 }
 0x637   : > { %15662 = vmatprep.subr.bf16.mxu1 %v16273_v43 }
 0x639   : > { %15623 = vmatpush3.bf16.msra.mxu0 %v16269_v52  ;;  %v8622_v52 = vld [vmem:[#allocation2 + $0xd8] sm:$0xff] }
 0x63a   : > { %15663 = vmatpush3.bf16.msra.mxu1 %v16273_v43  ;;  %15696 = vmatprep.subr.bf16.mxu0 %v16274_v12  ;;  %v8623_v43 = vld [vmem:[#allocation2 + $0xe0] sm:$0xff] }
 0x63b   : > { %15553 = vmatmul.mubr.msk.bf16.gmra.mxu0 %vm273_vm0, %v19742_v4 }
 0x63c   : > { %15593 = vmatmul.mubr.msk.bf16.gmra.mxu1 %vm273_vm0, %v19863_v39  ;;  %15556 = vmatprep.mubr.msk.bf16.mxu0 %vm273_vm0, %v19756_v11  ;;  %v7994_v39 = vld [vmem:[#allocation2 + $0x181] sm:$0xff] }
 0x63d   : > { %15596 = vmatprep.mubr.msk.bf16.mxu1 %vm273_vm0, %v19875_v38  ;;  %v8316_v11 = vld [vmem:[#allocation2 + $0x182] sm:$0xff] }
 0x643   : > { %15557 = vmatmul.mubr.msk.bf16.gmra.mxu0 %vm273_vm0, %v19760_v62  ;;  %v8317_v62 = vld [vmem:[#allocation2 + $0x18a] sm:$0xff] }
 0x644   : > { %15597 = vmatmul.mubr.msk.bf16.gmra.mxu1 %vm273_vm0, %v19877_v40  ;;  %15560 = vmatprep.mubr.msk.bf16.mxu0 %vm273_vm0, %v19772_v59 }
 0x645   : > { %15600 = vmatprep.mubr.msk.bf16.mxu1 %vm273_vm0, %v19887_v55 }
 0x64b   : > { %15561 = vmatmul.mubr.msk.bf16.gmra.mxu0 %vm273_vm0, %v19776_v31  ;;  %v19983_v31 = vpack.c.bf16 %v8317_v62, %v8316_v11  ;;  %v8624_v11 = vld [vmem:[#allocation2 + $0xf0] sm:$0xff]  ;;  %v8625_v62 = vld [vmem:[#allocation2 + $0xf8] sm:$0xff] }
 0x64c   : > { %15601 = vmatmul.mubr.msk.bf16.gmra.mxu1 %vm273_vm0, %v19889_v28  ;;  %15564 = vmatprep.mubr.msk.bf16.mxu0 %vm273_vm0, %v19788_v54  ;;  %v7995_v54 = vld [vmem:[#allocation2 + $0x189] sm:$0xff] }
 0x64d   : > { %15604 = vmatprep.mubr.msk.bf16.mxu1 %vm273_vm0, %v19899_v23  ;;  %v19981_v59 = vpack.c.bf16 %v7995_v54, %v7994_v39 }
 0x653   : > { %15565 = vmatmul.mubr.msk.bf16.gmra.mxu0 %vm273_vm0, %v19792_v60 }
 0x654   : > { %15605 = vmatmul.mubr.msk.bf16.gmra.mxu1 %vm273_vm0, %v19901_v20  ;;  %15568 = vmatprep.mubr.msk.bf16.mxu0 %vm273_vm0, %v19804_v13 }
 0x655   : > { %15608 = vmatprep.mubr.msk.bf16.mxu1 %vm273_vm0, %v7365_v47  ;;  %v8942_v47 = vld [vmem:[#allocation2 + $0xc1] sm:$0xff] }
 0x65b   : > { %15569 = vmatmul.mubr.msk.bf16.gmra.mxu0 %vm273_vm0, %v19808_v50  ;;  %v16276_v50 = vld [vmem:[#allocation6 + $0x228] sm:$0xff]  }
 0x65c   : > { %15609 = vmatmul.mubr.msk.bf16.gmra.mxu1 %vm273_vm0, %v7366_v26  ;;  %15572 = vmatprep.mubr.msk.bf16.mxu0 %vm273_vm0, %v19820_v7 }
 0x65d   : > { %15612 = vmatprep.mubr.msk.bf16.mxu1 %vm273_vm0, %v7367_v16  ;;  %v16275_v16 = vld [vmem:[#allocation6 + $0x230] sm:$0xff]  }
 0x663   : > { %15573 = vmatmul.mubr.msk.bf16.gmra.mxu0 %vm273_vm0, %v19981_v59 }
 0x664   : > { %15613 = vmatmul.mubr.msk.bf16.gmra.mxu1 %vm273_vm0, %v19983_v31  ;;  %15624 = vmatprep.mubr.msk.bf16.mxu0 %vm273_vm0, %v19708_v44 }
 0x665   : > { %15664 = vmatprep.mubr.msk.bf16.mxu1 %vm273_vm0, %v19704_v15 }
 0x66b   : > { %v15386_v7 = vpop.f32.mrf.mxu0  ;;  %15625 = vmatmul.mubr.msk.bf16.vlgmr.msra.gmra.mxu0 %vm273_vm0, %v19720_v27 }
 0x66c   : > { %v15426_v13 = vpop.f32.mrf.mxu1  ;;  %15665 = vmatmul.mubr.msk.bf16.vlgmr.msra.gmra.mxu1 %vm273_vm0, %v19718_v61  ;;  %15628 = vmatprep.mubr.msk.bf16.mxu0 %vm273_vm0, %v19726_v41  ;;  %v16277_v41 = vld [vmem:[#allocation6 + $0x220] sm:$0xff]  }
 0x66d   : > { %v19999_v60 = vadd.f32 %v15426_v13, %v15386_v7  ;;  %15668 = vmatprep.mubr.msk.bf16.mxu1 %vm273_vm0, %v19722_v19  ;;  %15697 = vmatpush3.bf16.msra.mxu0 %v16274_v12  ;;  %v6960_v44 = vpop.f32.mrf.mxu0  ;;  %v8944_v12 = vld [vmem:[#allocation2 + $0xd9] sm:$0xff]  ;;  %v8946_v7 = vld [vmem:[#allocation2 + $0xf1] sm:$0xff] }
 0x66e   : > { %v7193_v15 = vpop.f32.mrf.mxu1  ;;  %15698 = vmatprep.subr.bf16.mxu0 %v16275_v16  ;;  %v8947_v13 = vld [vmem:[#allocation2 + $0xf9] sm:$0xff] }
 0x66f   : > { %v20003_v14 = vadd.f32 %v7193_v15, %v6960_v44  ;;  %v15387_v27 = vpop.f32.mrf.mxu0  ;;  %v8647_v15 = vpack.c.bf16 %v8623_v43, %v8622_v52 }
 0x670   : > { %v15427_v45 = vpop.f32.mrf.mxu1 }
 0x671   : > { %v20005_v0 = vadd.f32 %v15427_v45, %v15387_v27  ;;  %v6963_v61 = vpop.f32.mrf.mxu0  ;;  %15699 = vmatpush3.bf16.msra.mxu0 %v16275_v16  ;;  %v8648_v45 = vpack.c.bf16 %v8625_v62, %v8624_v11 }
 0x672   : > { %v7196_v48 = vpop.f32.mrf.mxu1  ;;  %15700 = vmatprep.subr.bf16.mxu0 %v16276_v50 }
 0x673   : > { %v20007_v38 = vadd.f32 %v7196_v48, %v6963_v61  ;;  %v15390_v40 = vpop.f32.mrf.mxu0  ;;  %15629 = vmatmul.mubr.msk.bf16.gmra.mxu0 %vm273_vm0, %v19740_v42  ;;  %v8940_v42 = vld [vmem:[#allocation2 + $0xa9] sm:$0xff] }
 0x674   : > { %v15430_v19 = vpop.f32.mrf.mxu1  ;;  %15669 = vmatmul.mubr.msk.bf16.gmra.mxu1 %vm273_vm0, %v19738_v53  ;;  %15632 = vmatprep.mubr.msk.bf16.mxu0 %vm273_vm0, %v19747_v30  ;;  %v8943_v53 = vld [vmem:[#allocation2 + $0xc9] sm:$0xff]  ;;  %v8967_v49 = vpack.c.bf16 %v8941_v2, %v8940_v42 }
 0x675   : > { %v20015_v55 = vadd.f32 %v15430_v19, %v15390_v40  ;;  %15672 = vmatprep.mubr.msk.bf16.mxu1 %vm273_vm0, %v19742_v4  ;;  %v6976_v28 = vpop.f32.mrf.mxu0  ;;  %15701 = vmatpush3.bf16.msra.mxu0 %v16276_v50  ;;  %v8968_v22 = vpack.c.bf16 %v8943_v53, %v8942_v47  ;;  %v8627_v42 = vld [vmem:[#allocation2 + $0x110] sm:$0xff] }
 0x676   : > { %v7209_v23 = vpop.f32.mrf.mxu1  ;;  %15702 = vmatprep.subr.bf16.mxu0 %v16277_v41  ;;  %v8948_v2 = vld [vmem:[#allocation2 + $0x109] sm:$0xff]  ;;  %v8949_v53 = vld [vmem:[#allocation2 + $0x111] sm:$0xff] }
 0x677   : > { %v20019_v20 = vadd.f32 %v7209_v23, %v6976_v28  ;;  %v15391_v21 = vpop.f32.mrf.mxu0  ;;  %v8971_v43 = vpack.c.bf16 %v8949_v53, %v8948_v2 }
 0x678   : > { %v15431_v34 = vpop.f32.mrf.mxu1 }
 0x679   : > { %v20021_v26 = vadd.f32 %v15431_v34, %v15391_v21  ;;  %v6979_v30 = vpop.f32.mrf.mxu0  ;;  %15703 = vmatpush3.bf16.msra.mxu0 %v16277_v41  ;;  %v8970_v41 = vpack.c.bf16 %v8947_v13, %v8946_v7  ;;  %v8626_v21 = vld [vmem:[#allocation2 + $0x108] sm:$0xff] }
 0x67a   : > { %v7212_v3 = vpop.f32.mrf.mxu1 }
 0x67b   : > { %v20023_v29 = vadd.f32 %v7212_v3, %v6979_v30  ;;  %v15394_v4 = vpop.f32.mrf.mxu0  ;;  %15633 = vmatmul.mubr.msk.bf16.gmra.mxu0 %vm273_vm0, %v19758_v63  ;;  %v8945_v63 = vld [vmem:[#allocation2 + $0xe1] sm:$0xff] }
 0x67c   : > { %v15434_v8 = vpop.f32.mrf.mxu1  ;;  %15673 = vmatmul.mubr.msk.bf16.gmra.mxu1 %vm273_vm0, %v8967_v49  ;;  %15636 = vmatprep.mubr.msk.bf16.mxu0 %vm273_vm0, %v19764_v33  ;;  %v8969_v27 = vpack.c.bf16 %v8945_v63, %v8944_v12  ;;  %v8628_v30 = vld [vmem:[#allocation2 + $0x120] sm:$0xff]  ;;  %v8629_v3 = vld [vmem:[#allocation2 + $0x128] sm:$0xff] }
 0x67d   : > { %v20030_v46 = vadd.f32 %v15434_v8, %v15394_v4  ;;  %15676 = vmatprep.mubr.msk.bf16.mxu1 %vm273_vm0, %v8968_v22  ;;  %v6992_v1 = vpop.f32.mrf.mxu0  ;;  %v8950_v4 = vld [vmem:[#allocation2 + $0x121] sm:$0xff]  ;;  %v8951_v22 = vld [vmem:[#allocation2 + $0x129] sm:$0xff]  ;;  %v8650_v12 = vpack.c.bf16 %v8629_v3, %v8628_v30 }
 0x67e   : > { %v7225_v5 = vpop.f32.mrf.mxu1  ;;  %v8972_v11 = vpack.c.bf16 %v8951_v22, %v8950_v4 }
 0x67f   : > { %v20033_v39 = vadd.f32 %v7225_v5, %v6992_v1  ;;  %v15395_v54 = vpop.f32.mrf.mxu0  ;;  %v8649_v5 = vpack.c.bf16 %v8627_v42, %v8626_v21  ;;  %v8955_v21 = vld [vmem:[#allocation2 + $0x159] sm:$0xff] }
 0x680   : > { %v15435_v16 = vpop.f32.mrf.mxu1 }
 0x681   : > { %v20035_v44 = vadd.f32 %v15435_v16, %v15395_v54  ;;  %v6995_v33 = vpop.f32.mrf.mxu0 }
 0x682   : > { %v7228_v50 = vpop.f32.mrf.mxu1 }
 0x683   : > { %v20037_v61 = vadd.f32 %v7228_v50, %v6995_v33  ;;  %v15398_v48 = vpop.f32.mrf.mxu0  ;;  %15637 = vmatmul.mubr.msk.bf16.gmra.mxu0 %vm273_vm0, %v8647_v15  ;;  %v8630_v33 = vld [vmem:[#allocation2 + $0x138] sm:$0xff]  ;;  %v8631_v15 = vld [vmem:[#allocation2 + $0x140] sm:$0xff] }
 0x684   : > { %v15438_v40 = vpop.f32.mrf.mxu1  ;;  %15677 = vmatmul.mubr.msk.bf16.gmra.mxu1 %vm273_vm0, %v8969_v27  ;;  %15640 = vmatprep.mubr.msk.bf16.mxu0 %vm273_vm0, %v8648_v45  ;;  %v8952_v50 = vld [vmem:[#allocation2 + $0x139] sm:$0xff] }
 0x685   : > { %v20042_v19 = vadd.f32 %v15438_v40, %v15398_v48  ;;  %15680 = vmatprep.mubr.msk.bf16.mxu1 %vm273_vm0, %v8970_v41  ;;  %v7008_v28 = vpop.f32.mrf.mxu0  ;;  %v8953_v48 = vld [vmem:[#allocation2 + $0x141] sm:$0xff]  ;;  %v8632_v41 = vld [vmem:[#allocation2 + $0x150] sm:$0xff]  ;;  %v8633_v40 = vld [vmem:[#allocation2 + $0x158] sm:$0xff] }
 0x686   : > { %v7241_v23 = vpop.f32.mrf.mxu1  ;;  %v8973_v30 = vpack.c.bf16 %v8953_v48, %v8952_v50  ;;  %v8652_v3 = vpack.c.bf16 %v8633_v40, %v8632_v41 }
 0x687   : > { %v20045_v34 = vadd.f32 %v7241_v23, %v7008_v28  ;;  %v15399_v47 = vpop.f32.mrf.mxu0  ;;  %v8954_v23 = vld [vmem:[#allocation2 + $0x151] sm:$0xff] }
 0x688   : > { %v15439_v49 = vpop.f32.mrf.mxu1  ;;  %v8974_v4 = vpack.c.bf16 %v8955_v21, %v8954_v23  ;;  %v8639_v23 = vld [vmem:[#allocation2 + $0x1a0] sm:$0xff] }
 0x689   : > { %v20047_v8 = vadd.f32 %v15439_v49, %v15399_v47  ;;  %v7011_v1 = vpop.f32.mrf.mxu0  ;;  %v8651_v47 = vpack.c.bf16 %v8631_v15, %v8630_v33 }
 0x68a   : > { %v7244_v52 = vpop.f32.mrf.mxu1 }
 0x68b   : > { %v20049_v54 = vadd.f32 %v7244_v52, %v7011_v1  ;;  %v15402_v63 = vpop.f32.mrf.mxu0  ;;  %15641 = vmatmul.mubr.msk.bf16.gmra.mxu0 %vm273_vm0, %v8649_v5 }
 0x68c   : > { %v15442_v62 = vpop.f32.mrf.mxu1  ;;  %15681 = vmatmul.mubr.msk.bf16.gmra.mxu1 %vm273_vm0, %v8971_v43  ;;  %15644 = vmatprep.mubr.msk.bf16.mxu0 %vm273_vm0, %v8650_v12  ;;  %v8634_v43 = vld [vmem:[#allocation2 + $0x168] sm:$0xff]  ;;  %v8635_v12 = vld [vmem:[#allocation2 + $0x170] sm:$0xff] }
 0x68d   : > { %v20054_v16 = vadd.f32 %v15442_v62, %v15402_v63  ;;  %15684 = vmatprep.mubr.msk.bf16.mxu1 %vm273_vm0, %v8972_v11  ;;  %v7024_v7 = vpop.f32.mrf.mxu0  ;;  %v8956_v62 = vld [vmem:[#allocation2 + $0x169] sm:$0xff]  ;;  %v8653_v50 = vpack.c.bf16 %v8635_v12, %v8634_v43  ;;  %v9253_v43 = vld [vmem:[#allocation2 + $0x3a] sm:$0xff] }
 0x68e   : > { %v7257_v13 = vpop.f32.mrf.mxu1 }
 0x68f   : > { %v20057_v27 = vadd.f32 %v7257_v13, %v7024_v7  ;;  %v15403_v45 = vpop.f32.mrf.mxu0  ;;  %v8957_v7 = vld [vmem:[#allocation2 + $0x171] sm:$0xff] }
 0x690   : > { %v15443_v28 = vpop.f32.mrf.mxu1  ;;  %v8975_v48 = vpack.c.bf16 %v8957_v7, %v8956_v62 }
 0x691   : > { %v20059_v42 = vadd.f32 %v15443_v28, %v15403_v45  ;;  %v20061_v2 = vpop.f32.mrf.mxu0  ;;  %v8638_v28 = vld [vmem:[#allocation2 + $0x198] sm:$0xff] }
 0x692   : > { %v20063_v53 = vpop.f32.mrf.mxu1 }
 0x693   : > { %v15406_v49 = vpop.f32.mrf.mxu0  ;;  %15645 = vmatmul.mubr.msk.bf16.gmra.mxu0 %vm273_vm0, %v8651_v47 }
 0x694   : > { %v15446_v22 = vpop.f32.mrf.mxu1  ;;  %15685 = vmatmul.mubr.msk.bf16.gmra.mxu1 %vm273_vm0, %v8973_v30  ;;  %15648 = vmatprep.mubr.msk.bf16.mxu0 %vm273_vm0, %v8652_v3  ;;  %v8960_v30 = vld [vmem:[#allocation2 + $0x199] sm:$0xff]  ;;  %v8961_v3 = vld [vmem:[#allocation2 + $0x1a1] sm:$0xff] }
 0x695   : > { %v20068_v1 = vadd.f32 %v15446_v22, %v15406_v49  ;;  %15688 = vmatprep.mubr.msk.bf16.mxu1 %vm273_vm0, %v8974_v4  ;;  %v7040_v5 = vpop.f32.mrf.mxu0 }
 0x696   : > { %v7273_v52 = vpop.f32.mrf.mxu1 }
 0x697   : > { %v20071_v63 = vadd.f32 %v7273_v52, %v7040_v5  ;;  %v15407_v11 = vpop.f32.mrf.mxu0  ;;  %v8655_v5 = vpack.c.bf16 %v8639_v23, %v8638_v28  ;;  %v9252_v52 = vld [vmem:[#allocation2 + $0x32] sm:$0xff]  ;;  %v9254_v28 = vld [vmem:[#allocation2 + $0x4a] sm:$0xff] }
 0x698   : > { %v15447_v13 = vpop.f32.mrf.mxu1  ;;  %v9255_v23 = vld [vmem:[#allocation2 + $0x52] sm:$0xff] }
 0x699   : > { %v20073_v33 = vadd.f32 %v15447_v13, %v15407_v11  ;;  %v20075_v15 = vpop.f32.mrf.mxu0  ;;  %v8977_v11 = vpack.c.bf16 %v8961_v3, %v8960_v30  ;;  %v9284_v13 = vpack.c.bf16 %v9253_v43, %v9252_v52  ;;  %v9256_v3 = vld [vmem:[#allocation2 + $0x62] sm:$0xff]  ;;  %v9285_v43 = vpack.c.bf16 %v9255_v23, %v9254_v28  ;;  %v9260_v23 = vld [vmem:[#allocation2 + $0x92] sm:$0xff] }
 0x69a   : > { %22808 = vst [vmem:[#allocation84_spill] sm:$0xff] %v20075_v15  ;;  %v20077_v45 = vpop.f32.mrf.mxu1 }
 0x69b   : > { %22809 = vst [vmem:[#allocation57_spill] sm:$0xff] %v20077_v45  ;;  %v15410_v41 = vpop.f32.mrf.mxu0  ;;  %15649 = vmatmul.mubr.msk.bf16.gmra.mxu0 %vm273_vm0, %v8653_v50 }
 0x69c   : > { %v15450_v40 = vpop.f32.mrf.mxu1  ;;  %15689 = vmatmul.mubr.msk.bf16.gmra.mxu1 %vm273_vm0, %v8975_v48  ;;  %15652 = vmatprep.mubr.msk.bf16.mxu0 %vm273_vm0, %v19917_v56 }
 0x69d   : > { %v20083_v21 = vadd.f32 %v15450_v40, %v15410_v41  ;;  %15692 = vmatprep.mubr.msk.bf16.mxu1 %vm273_vm0, %v19981_v59  ;;  %v7056_v47 = vpop.f32.mrf.mxu0 }
 0x69e   : > { %v7289_v49 = vpop.f32.mrf.mxu1 }
 0x69f   : > { %v20087_v4 = vadd.f32 %v7289_v49, %v7056_v47  ;;  %v15411_v22 = vpop.f32.mrf.mxu0  ;;  %v9257_v49 = vld [vmem:[#allocation2 + $0x6a] sm:$0xff] }
 0x6a0   : > { %v15451_v12 = vpop.f32.mrf.mxu1 }
 0x6a1   : > { %v20089_v56 = vadd.f32 %v15451_v12, %v15411_v22  ;;  %v20091_v62 = vpop.f32.mrf.mxu0 }
 0x6a2   : > { %22810 = vst [vmem:[#allocation77_spill] sm:$0xff] %v20091_v62  ;;  %v20093_v7 = vpop.f32.mrf.mxu1 }
 0x6a3   : > { %22811 = vst [vmem:[#allocation71_spill] sm:$0xff] %v20093_v7  ;;  %v15414_v59 = vpop.f32.mrf.mxu0  ;;  %15653 = vmatmul.mubr.msk.bf16.gmra.mxu0 %vm273_vm0, %v8655_v5 }
 0x6a4   : > { %v15454_v50 = vpop.f32.mrf.mxu1  ;;  %15704 = vmatprep.mubr.msk.bf16.mxu0 %vm273_vm0, %v9284_v13  ;;  %15693 = vmatmul.mubr.msk.bf16.gmra.mxu1 %vm273_vm0, %v8977_v11  ;;  %v9286_v11 = vpack.c.bf16 %v9257_v49, %v9256_v3 }
 0x6a5   : > { %v20098_v48 = vadd.f32 %v15454_v50, %v15414_v59  ;;  %v7072_v41 = vpop.f32.mrf.mxu0 }
 0x6a6   : > { %v7305_v40 = vpop.f32.mrf.mxu1 }
 0x6a7   : > { %v20100_v47 = vadd.f32 %v7305_v40, %v7072_v41  ;;  %v15415_v30 = vpop.f32.mrf.mxu0 }
 0x6a8   : > { %v15455_v22 = vpop.f32.mrf.mxu1 }
 0x6a9   : > { %v20102_v52 = vadd.f32 %v15455_v22, %v15415_v30  ;;  %v20104_v5 = vpop.f32.mrf.mxu0 }
 0x6aa   : > { %22812 = vst [vmem:[#allocation87_spill] sm:$0xff] %v20104_v5  ;;  %v20106_v12 = vpop.f32.mrf.mxu1 }
 0x6ab   : > { %22813 = vst [vmem:[#allocation66_spill] sm:$0xff] %v20106_v12  ;;  %v15466_v13 = vpop.f32.mrf.mxu0  ;;  %15705 = vmatmul.mubr.msk.bf16.vlgmr.msra.gmra.mxu0 %vm273_vm0, %v9285_v43 }
 0x6ac   : > { %v7612_v59 = vadd.f32 %v15466_v13, %v19999_v60  ;;  %v15506_v50 = vpop.f32.mrf.mxu1  ;;  %15708 = vmatprep.mubr.msk.bf16.mxu0 %vm273_vm0, %v9286_v11  ;;  %v9287_v13 = vpack.c.bf16 %v9259_v24, %v9258_v37 }
 0x6ad   : > { %v7483_v41 = vpop.f32.mrf.mxu0 }
 0x6ae   : > { %v20111_v40 = vadd.f32 %v15506_v50, %v7612_v59  ;;  %v7610_v30 = vadd.f32 %v7483_v41, %v20003_v14  ;;  %v7805_v22 = vpop.f32.mrf.mxu1  ;;  %v9288_v14 = vpack.c.bf16 %v9261_v9, %v9260_v23 }
 0x6af   : > { %v15467_v28 = vpop.f32.mrf.mxu0 }
 0x6b0   : > { %v20114_v3 = vadd.f32 %v7805_v22, %v7610_v30  ;;  %v7613_v49 = vadd.f32 %v15467_v28, %v20005_v0  ;;  %v15507_v43 = vpop.f32.mrf.mxu1  ;;  %v9262_v28 = vld [vmem:[#allocation2 + $0xaa] sm:$0xff] }
 0x6b1   : > { %v7486_v60 = vpop.f32.mrf.mxu0 }
 0x6b2   : > { %v20117_v58 = vadd.f32 %v15507_v43, %v7613_v49  ;;  %v20120_v11 = vadd.f32 %v7486_v60, %v20007_v38  ;;  %v20122_v59 = vpop.f32.mrf.mxu1  ;;  %v9263_v38 = vld [vmem:[#allocation2 + $0xb2] sm:$0xff]  ;;  %v9264_v43 = vld [vmem:[#allocation2 + $0xc2] sm:$0xff]  ;;  %v9265_v60 = vld [vmem:[#allocation2 + $0xca] sm:$0xff] }
 0x6b3   : > { %v15470_v50 = vpop.f32.mrf.mxu0  ;;  %15709 = vmatmul.mubr.msk.bf16.gmra.mxu0 %vm273_vm0, %v9287_v13 }
 0x6b4   : > { %v7616_v41 = vadd.f32 %v15470_v50, %v20015_v55  ;;  %v15510_v30 = vpop.f32.mrf.mxu1  ;;  %15712 = vmatprep.mubr.msk.bf16.mxu0 %vm273_vm0, %v9288_v14  ;;  %v9289_v50 = vpack.c.bf16 %v9263_v38, %v9262_v28 }
 0x6b5   : > { %v7499_v0 = vpop.f32.mrf.mxu0 }
 0x6b6   : > { %v20127_v22 = vadd.f32 %v15510_v30, %v7616_v41  ;;  %v7614_v24 = vadd.f32 %v7499_v0, %v20019_v20  ;;  %v7821_v37 = vpop.f32.mrf.mxu1  ;;  %v9290_v20 = vpack.c.bf16 %v9265_v60, %v9264_v43 }
 0x6b7   : > { %v15471_v49 = vpop.f32.mrf.mxu0 }
 0x6b8   : > { %v20130_v9 = vadd.f32 %v7821_v37, %v7614_v24  ;;  %v7617_v23 = vadd.f32 %v15471_v49, %v20021_v26  ;;  %v15511_v13 = vpop.f32.mrf.mxu1  ;;  %v9266_v49 = vld [vmem:[#allocation2 + $0xda] sm:$0xff] }
 0x6b9   : > { %v7502_v55 = vpop.f32.mrf.mxu0 }
 0x6ba   : > { %v20133_v51 = vadd.f32 %v15511_v13, %v7617_v23  ;;  %v20136_v14 = vadd.f32 %v7502_v55, %v20023_v29  ;;  %v20138_v41 = vpop.f32.mrf.mxu1  ;;  %v9267_v29 = vld [vmem:[#allocation2 + $0xe2] sm:$0xff]  ;;  %v9268_v13 = vld [vmem:[#allocation2 + $0xf2] sm:$0xff]  ;;  %v9269_v55 = vld [vmem:[#allocation2 + $0xfa] sm:$0xff] }
 0x6bb   : > { %v15474_v30 = vpop.f32.mrf.mxu0  ;;  %15713 = vmatmul.mubr.msk.bf16.gmra.mxu0 %vm273_vm0, %v9289_v50 }
 0x6bc   : > { %v7620_v0 = vadd.f32 %v15474_v30, %v20030_v46  ;;  %v15514_v24 = vpop.f32.mrf.mxu1  ;;  %15716 = vmatprep.mubr.msk.bf16.mxu0 %vm273_vm0, %v9290_v20  ;;  %v9291_v30 = vpack.c.bf16 %v9267_v29, %v9266_v49 }
 0x6bd   : > { %v7515_v26 = vpop.f32.mrf.mxu0 }
 0x6be   : > { %v20143_v37 = vadd.f32 %v15514_v24, %v7620_v0  ;;  %v7618_v28 = vadd.f32 %v7515_v26, %v20033_v39  ;;  %v7837_v38 = vpop.f32.mrf.mxu1  ;;  %v9292_v39 = vpack.c.bf16 %v9269_v55, %v9268_v13 }
 0x6bf   : > { %v15475_v23 = vpop.f32.mrf.mxu0 }
 0x6c0   : > { %v20146_v43 = vadd.f32 %v7837_v38, %v7618_v28  ;;  %v7621_v60 = vadd.f32 %v15475_v23, %v20035_v44  ;;  %v15515_v50 = vpop.f32.mrf.mxu1  ;;  %v9270_v23 = vld [vmem:[#allocation2 + $0x10a] sm:$0xff] }
 0x6c1   : > { %v7518_v46 = vpop.f32.mrf.mxu0 }
 0x6c2   : > { %v20149_v32 = vadd.f32 %v15515_v50, %v7621_v60  ;;  %v20152_v20 = vadd.f32 %v7518_v46, %v20037_v61  ;;  %v20154_v0 = vpop.f32.mrf.mxu1  ;;  %v9271_v61 = vld [vmem:[#allocation2 + $0x112] sm:$0xff]  ;;  %v9272_v50 = vld [vmem:[#allocation2 + $0x122] sm:$0xff]  ;;  %v9273_v46 = vld [vmem:[#allocation2 + $0x12a] sm:$0xff] }
 0x6c3   : > { %v15478_v24 = vpop.f32.mrf.mxu0  ;;  %15717 = vmatmul.mubr.msk.bf16.gmra.mxu0 %vm273_vm0, %v9291_v30 }
 0x6c4   : > { %v7624_v26 = vadd.f32 %v15478_v24, %v20042_v19  ;;  %v15518_v28 = vpop.f32.mrf.mxu1  ;;  %15720 = vmatprep.mubr.msk.bf16.mxu0 %vm273_vm0, %v9292_v39  ;;  %v9293_v24 = vpack.c.bf16 %v9271_v61, %v9270_v23 }
 0x6c5   : > { %v7531_v44 = vpop.f32.mrf.mxu0 }
 0x6c6   : > { %v20159_v38 = vadd.f32 %v15518_v28, %v7624_v26  ;;  %v7622_v49 = vadd.f32 %v7531_v44, %v20045_v34  ;;  %v7853_v29 = vpop.f32.mrf.mxu1  ;;  %v9294_v34 = vpack.c.bf16 %v9273_v46, %v9272_v50 }
 0x6c7   : > { %v15479_v60 = vpop.f32.mrf.mxu0 }
 0x6c8   : > { %v20162_v13 = vadd.f32 %v7853_v29, %v7622_v49  ;;  %v7625_v55 = vadd.f32 %v15479_v60, %v20047_v8  ;;  %v15519_v30 = vpop.f32.mrf.mxu1  ;;  %v9274_v60 = vld [vmem:[#allocation2 + $0x13a] sm:$0xff] }
 0x6c9   : > { %v7534_v19 = vpop.f32.mrf.mxu0 }
 0x6ca   : > { %v20165_v57 = vadd.f32 %v15519_v30, %v7625_v55  ;;  %v20168_v39 = vadd.f32 %v7534_v19, %v20049_v54  ;;  %v20170_v26 = vpop.f32.mrf.mxu1  ;;  %v9275_v54 = vld [vmem:[#allocation2 + $0x142] sm:$0xff]  ;;  %v9276_v30 = vld [vmem:[#allocation2 + $0x152] sm:$0xff]  ;;  %v9277_v19 = vld [vmem:[#allocation2 + $0x15a] sm:$0xff] }
 0x6cb   : > { %v15482_v28 = vpop.f32.mrf.mxu0  ;;  %15721 = vmatmul.mubr.msk.bf16.gmra.mxu0 %vm273_vm0, %v9293_v24 }
 0x6cc   : > { %v7628_v44 = vadd.f32 %v15482_v28, %v20054_v16  ;;  %v15522_v49 = vpop.f32.mrf.mxu1  ;;  %15724 = vmatprep.mubr.msk.bf16.mxu0 %vm273_vm0, %v9294_v34  ;;  %v9295_v28 = vpack.c.bf16 %v9275_v54, %v9274_v60  ;;  %v9278_v60 = vld [vmem:[#allocation2 + $0x16a] sm:$0xff]  ;;  %v9279_v54 = vld [vmem:[#allocation2 + $0x172] sm:$0xff] }
 0x6cd   : > { %v7547_v8 = vpop.f32.mrf.mxu0 }
 0x6ce   : > { %v20175_v29 = vadd.f32 %v15522_v49, %v7628_v44  ;;  %v7626_v23 = vadd.f32 %v7547_v8, %v20057_v27  ;;  %v7869_v61 = vpop.f32.mrf.mxu1  ;;  %v9296_v49 = vpack.c.bf16 %v9277_v19, %v9276_v30 }
 0x6cf   : > { %v15483_v55 = vpop.f32.mrf.mxu0 }
 0x6d0   : > { %v20178_v50 = vadd.f32 %v7869_v61, %v7626_v23  ;;  %v7629_v46 = vadd.f32 %v15483_v55, %v20059_v42  ;;  %v15523_v24 = vpop.f32.mrf.mxu1 }
 0x6d1   : > { %v20181_v16 = vpop.f32.mrf.mxu0 }
 0x6d2   : > { %v20183_v34 = vadd.f32 %v15523_v24, %v7629_v46  ;;  %v20185_v44 = vpop.f32.mrf.mxu1 }
 0x6d3   : > { %22814 = vst [vmem:[#allocation80_spill] sm:$0xff] %v20185_v44  ;;  %v15486_v27 = vpop.f32.mrf.mxu0  ;;  %15725 = vmatmul.mubr.msk.bf16.gmra.mxu0 %vm273_vm0, %v9295_v28 }
 0x6d4   : > { %v7632_v8 = vadd.f32 %v15486_v27, %v20068_v1  ;;  %v15526_v35 = vpop.f32.mrf.mxu1  ;;  %15728 = vmatprep.mubr.msk.bf16.mxu0 %vm273_vm0, %v9296_v49  ;;  %v9297_v1 = vpack.c.bf16 %v9279_v54, %v9278_v60 }
 0x6d5   : > { %v7563_v23 = vpop.f32.mrf.mxu0 }
 0x6d6   : > { %v20190_v61 = vadd.f32 %v15526_v35, %v7632_v8  ;;  %v7630_v42 = vadd.f32 %v7563_v23, %v20071_v63  ;;  %v7885_v55 = vpop.f32.mrf.mxu1  ;;  %v9282_v23 = vld [vmem:[#allocation2 + $0x19a] sm:$0xff] }
 0x6d7   : > { %v15487_v46 = vpop.f32.mrf.mxu0 }
 0x6d8   : > { %v20193_v24 = vadd.f32 %v7885_v55, %v7630_v42  ;;  %v7633_v30 = vadd.f32 %v15487_v46, %v20073_v33  ;;  %v15527_v19 = vpop.f32.mrf.mxu1  ;;  %v9283_v42 = vld [vmem:[#allocation2 + $0x1a2] sm:$0xff] }
 0x6d9   : > { %v20196_v28 = vpop.f32.mrf.mxu0 }
 0x6da   : > { %22815 = vst [vmem:[#allocation74_spill] sm:$0xff] %v20196_v28  ;;  %v20198_v27 = vadd.f32 %v15527_v19, %v7633_v30  ;;  %v20200_v49 = vpop.f32.mrf.mxu1  ;;  %v9299_v30 = vpack.c.bf16 %v9283_v42, %v9282_v23 }
 0x6db   : > { %22816 = vst [vmem:[#allocation55_spill] sm:$0xff] %v20200_v49  ;;  %v15490_v35 = vpop.f32.mrf.mxu0  ;;  %15729 = vmatmul.mubr.msk.bf16.gmra.mxu0 %vm273_vm0, %v9297_v1 }
 0x6dc   : > { %v7636_v63 = vadd.f32 %v15490_v35, %v20083_v21  ;;  %v15530_v8 = vpop.f32.mrf.mxu1  ;;  %15732 = vmatprep.mubr.msk.bf16.mxu0 %vm273_vm0, %v19983_v31 }
 0x6dd   : > { %v7579_v33 = vpop.f32.mrf.mxu0 }
 0x6de   : > { %v20206_v55 = vadd.f32 %v15530_v8, %v7636_v63  ;;  %v7634_v60 = vadd.f32 %v7579_v33, %v20087_v4  ;;  %v7901_v54 = vpop.f32.mrf.mxu1 }
 0x6df   : > { %v15491_v46 = vpop.f32.mrf.mxu0 }
 0x6e0   : > { %v20209_v19 = vadd.f32 %v7901_v54, %v7634_v60  ;;  %v7637_v1 = vadd.f32 %v15491_v46, %v20089_v56  ;;  %v15531_v17 = vpop.f32.mrf.mxu1 }
 0x6e1   : > { %v20212_v21 = vpop.f32.mrf.mxu0 }
 0x6e2   : > { %22817 = vst [vmem:[#allocation86_spill] sm:$0xff] %v20212_v21  ;;  %v20214_v35 = vadd.f32 %v15531_v17, %v7637_v1  ;;  %v20216_v31 = vpop.f32.mrf.mxu1 }
 0x6e3   : > { %22818 = vst [vmem:[#allocation49_spill] sm:$0xff] %v20216_v31  ;;  %v15494_v18 = vpop.f32.mrf.mxu0  ;;  %15733 = vmatmul.mubr.msk.bf16.gmra.mxu0 %vm273_vm0, %v9299_v30 }
 0x6e4   : > { %v7640_v63 = vadd.f32 %v15494_v18, %v20098_v48  ;;  %v15534_v4 = vpop.f32.mrf.mxu1 }
 0x6e5   : > { %v7595_v8 = vpop.f32.mrf.mxu0 }
 0x6e6   : > { %v20220_v33 = vadd.f32 %v15534_v4, %v7640_v63  ;;  %v7638_v23 = vadd.f32 %v7595_v8, %v20100_v47  ;;  %v7917_v42 = vpop.f32.mrf.mxu1 }
 0x6e7   : > { %v15495_v56 = vpop.f32.mrf.mxu0 }
 0x6e8   : > { %v20223_v60 = vadd.f32 %v7917_v42, %v7638_v23  ;;  %v7641_v17 = vadd.f32 %v15495_v56, %v20102_v52  ;;  %v15535_v54 = vpop.f32.mrf.mxu1 }
 0x6e9   : > { %v20226_v46 = vpop.f32.mrf.mxu0 }
 0x6ea   : > { %22819 = vst [vmem:[#allocation73_spill] sm:$0xff] %v20226_v46  ;;  %v20228_v1 = vadd.f32 %v15535_v54, %v7641_v17  ;;  %v20230_v30 = vpop.f32.mrf.mxu1 }
 0x6eb   : > { %22820 = vst [vmem:[#allocation89_spill] sm:$0xff] %v20230_v30  ;;  %v15546_v18 = vpop.f32.mrf.mxu0 }
 0x6ec   : > { %v8256_v48 = vadd.f32 %v15546_v18, %v20111_v40  ;;  %v15586_v63 = vpop.f32.mrf.mxu1 }
 0x6ed   : > { %v8127_v4 = vpop.f32.mrf.mxu0 }
 0x6ee   : > { %v20233_v25 = vadd.f32 %v15586_v63, %v8256_v48  ;;  %v8254_v47 = vadd.f32 %v8127_v4, %v20114_v3  ;;  %v8449_v8 = vpop.f32.mrf.mxu1 }
 0x6ef   : > { %v15547_v23 = vpop.f32.mrf.mxu0 }
 0x6f0   : > { %v20236_v42 = vadd.f32 %v8449_v8, %v8254_v47  ;;  %v8257_v52 = vadd.f32 %v15547_v23, %v20117_v58  ;;  %v15587_v56 = vpop.f32.mrf.mxu1 }
 0x6f1   : > { %v20239_v17 = vpop.f32.mrf.mxu0 }
 0x6f2   : > { %v20241_v54 = vadd.f32 %v15587_v56, %v8257_v52  ;;  %v20243_v10 = vpop.f32.mrf.mxu1 }
 0x6f3   : > { %v15550_v40 = vpop.f32.mrf.mxu0 }
 0x6f4   : > { %v8260_v18 = vadd.f32 %v15550_v40, %v20127_v22  ;;  %v15590_v48 = vpop.f32.mrf.mxu1 }
 0x6f5   : > { %v8143_v63 = vpop.f32.mrf.mxu0 }
 0x6f6   : > { %v20246_v36 = vadd.f32 %v15590_v48, %v8260_v18  ;;  %v20249_v3 = vadd.f32 %v8143_v63, %v20130_v9  ;;  %v20251_v4 = vpop.f32.mrf.mxu1 }
 0x6f7   : > { %v15551_v58 = vpop.f32.mrf.mxu0 }
 0x6f8   : > { %v8261_v47 = vadd.f32 %v15551_v58, %v20133_v51  ;;  %v15591_v8 = vpop.f32.mrf.mxu1 }
 0x6f9   : > { %v20254_v23 = vpop.f32.mrf.mxu0 }
 0x6fa   : > { %v20256_v52 = vadd.f32 %v15591_v8, %v8261_v47  ;;  %v20258_v56 = vpop.f32.mrf.mxu1 }
 0x6fb   : > { %v15554_v22 = vpop.f32.mrf.mxu0 }
 0x6fc   : > { %v8264_v40 = vadd.f32 %v15554_v22, %v20143_v37  ;;  %v15594_v18 = vpop.f32.mrf.mxu1 }
 0x6fd   : > { %v8159_v48 = vpop.f32.mrf.mxu0 }
 0x6fe   : > { %v20261_v6 = vadd.f32 %v15594_v18, %v8264_v40  ;;  %v20264_v9 = vadd.f32 %v8159_v48, %v20146_v43  ;;  %v20266_v63 = vpop.f32.mrf.mxu1 }
 0x6ff   : > { %v15555_v51 = vpop.f32.mrf.mxu0 }
 0x700   : > { %v8265_v58 = vadd.f32 %v15555_v51, %v20149_v32  ;;  %v15595_v30 = vpop.f32.mrf.mxu1 }
 0x701   : > { %v20269_v47 = vpop.f32.mrf.mxu0 }
 0x702   : > { %v20271_v8 = vadd.f32 %v15595_v30, %v8265_v58  ;;  %v20273_v46 = vpop.f32.mrf.mxu1 }
 0x703   : > { %v15558_v37 = vpop.f32.mrf.mxu0 }
 0x704   : > { %v8268_v22 = vadd.f32 %v15558_v37, %v20159_v38  ;;  %v15598_v40 = vpop.f32.mrf.mxu1 }
 0x705   : > { %v8175_v18 = vpop.f32.mrf.mxu0 }
 0x706   : > { %v20276_v12 = vadd.f32 %v15598_v40, %v8268_v22  ;;  %v20279_v43 = vadd.f32 %v8175_v18, %v20162_v13  ;;  %v20281_v48 = vpop.f32.mrf.mxu1 }
 0x707   : > { %v15559_v32 = vpop.f32.mrf.mxu0 }
 0x708   : > { %v8269_v51 = vadd.f32 %v15559_v32, %v20165_v57  ;;  %v15599_v5 = vpop.f32.mrf.mxu1 }
 0x709   : > { %v20284_v30 = vpop.f32.mrf.mxu0 }
 0x70a   : > { %v20286_v58 = vadd.f32 %v15599_v5, %v8269_v51  ;;  %v20288_v31 = vpop.f32.mrf.mxu1 }
 0x70b   : > { %22821 = vst [vmem:[#allocation50_spill] sm:$0xff] %v20288_v31  ;;  %v15562_v38 = vpop.f32.mrf.mxu0 }
 0x70c   : > { %v8272_v37 = vadd.f32 %v15562_v38, %v20175_v29  ;;  %v15602_v22 = vpop.f32.mrf.mxu1 }
 0x70d   : > { %v8191_v40 = vpop.f32.mrf.mxu0 }
 0x70e   : > { %v20291_v21 = vadd.f32 %v15602_v22, %v8272_v37  ;;  %v20294_v13 = vadd.f32 %v8191_v40, %v20178_v50  ;;  %v20296_v18 = vpop.f32.mrf.mxu1 }
 0x70f   : > { %22823 = vst [vmem:[#allocation42_spill] sm:$0xff] %v20296_v18  ;;  %v15563_v57 = vpop.f32.mrf.mxu0 }
 0x710   : > { %22822 = vst [vmem:[#allocation91_spill] sm:$0xff] %v20294_v13  ;;  %v8273_v32 = vadd.f32 %v15563_v57, %v20183_v34  ;;  %v15603_v7 = vpop.f32.mrf.mxu1 }
 0x711   : > { %v20299_v5 = vpop.f32.mrf.mxu0 }
 0x712   : > { %22824 = vst [vmem:[#allocation13_spill] sm:$0xff] %v20299_v5  ;;  %v20301_v51 = vadd.f32 %v15603_v7, %v8273_v32  ;;  %v20303_v62 = vpop.f32.mrf.mxu1 }
 0x713   : > { %22825 = vst [vmem:[#allocation14_spill] sm:$0xff] %v20303_v62  ;;  %v15566_v29 = vpop.f32.mrf.mxu0 }
 0x714   : > { %v8276_v38 = vadd.f32 %v15566_v29, %v20190_v61  ;;  %v15606_v37 = vpop.f32.mrf.mxu1 }
 0x715   : > { %v8207_v22 = vpop.f32.mrf.mxu0 }
 0x716   : > { %v20306_v49 = vadd.f32 %v15606_v37, %v8276_v38  ;;  %v20309_v50 = vadd.f32 %v8207_v22, %v20193_v24  ;;  %v20311_v40 = vpop.f32.mrf.mxu1 }
 0x717   : > { %22827 = vst [vmem:[#allocation16_spill] sm:$0xff] %v20311_v40  ;;  %v15567_v34 = vpop.f32.mrf.mxu0 }
 0x718   : > { %22826 = vst [vmem:[#allocation15_spill] sm:$0xff] %v20309_v50  ;;  %v8277_v57 = vadd.f32 %v15567_v34, %v20198_v27  ;;  %v15607_v28 = vpop.f32.mrf.mxu1 }
 0x719   : > { %v20314_v7 = vpop.f32.mrf.mxu0 }
 0x71a   : > { %22828 = vst [vmem:[#allocation17_spill] sm:$0xff] %v20314_v7  ;;  %v20316_v32 = vadd.f32 %v15607_v28, %v8277_v57  ;;  %v20318_v62 = vpop.f32.mrf.mxu1 }
 0x71b   : > { %22829 = vst [vmem:[#allocation18_spill] sm:$0xff] %v20318_v62  ;;  %v15570_v61 = vpop.f32.mrf.mxu0 }
 0x71c   : > { %v8280_v29 = vadd.f32 %v15570_v61, %v20206_v55  ;;  %v15610_v38 = vpop.f32.mrf.mxu1 }
 0x71d   : > { %v8223_v37 = vpop.f32.mrf.mxu0 }
 0x71e   : > { %v20321_v5 = vadd.f32 %v15610_v38, %v8280_v29  ;;  %v20324_v24 = vadd.f32 %v8223_v37, %v20209_v19  ;;  %v20326_v22 = vpop.f32.mrf.mxu1 }
 0x71f   : > { %22831 = vst [vmem:[#allocation20_spill] sm:$0xff] %v20326_v22  ;;  %v15571_v27 = vpop.f32.mrf.mxu0 }
 0x720   : > { %22830 = vst [vmem:[#allocation19_spill] sm:$0xff] %v20324_v24  ;;  %v8281_v34 = vadd.f32 %v15571_v27, %v20214_v35  ;;  %v15611_v7 = vpop.f32.mrf.mxu1 }
 0x721   : > { %v20329_v28 = vpop.f32.mrf.mxu0 }
 0x722   : > { %22832 = vst [vmem:[#allocation21_spill] sm:$0xff] %v20329_v28  ;;  %v20331_v57 = vadd.f32 %v15611_v7, %v8281_v34  ;;  %v20333_v62 = vpop.f32.mrf.mxu1 }
 0x723   : > { %22833 = vst [vmem:[#allocation22_spill] sm:$0xff] %v20333_v62  ;;  %v15574_v55 = vpop.f32.mrf.mxu0 }
 0x724   : > { %v8284_v61 = vadd.f32 %v15574_v55, %v20220_v33  ;;  %v15614_v29 = vpop.f32.mrf.mxu1 }
 0x725   : > { %v8239_v38 = vpop.f32.mrf.mxu0 }
 0x726   : > { %v20336_v40 = vadd.f32 %v15614_v29, %v8284_v61  ;;  %v20339_v19 = vadd.f32 %v8239_v38, %v20223_v60  ;;  %v20341_v37 = vpop.f32.mrf.mxu1 }
 0x727   : > { %22835 = vst [vmem:[#allocation24_spill] sm:$0xff] %v20341_v37  ;;  %v15575_v35 = vpop.f32.mrf.mxu0 }
 0x728   : > { %22834 = vst [vmem:[#allocation23_spill] sm:$0xff] %v20339_v19  ;;  %v8285_v27 = vadd.f32 %v15575_v35, %v20228_v1  ;;  %v15615_v28 = vpop.f32.mrf.mxu1 }
 0x729   : > { %v20344_v7 = vpop.f32.mrf.mxu0 }
 0x72a   : > { %22836 = vst [vmem:[#allocation25_spill] sm:$0xff] %v20344_v7  ;;  %v20346_v34 = vadd.f32 %v15615_v28, %v8285_v27  ;;  %v20348_v62 = vpop.f32.mrf.mxu1 }
 0x72b   : > { %22837 = vst [vmem:[#allocation26_spill] sm:$0xff] %v20348_v62  ;;  %v15626_v33 = vpop.f32.mrf.mxu0 }
 0x72c   : > { %v20351_v55 = vadd.f32 %v15626_v33, %v20233_v25  ;;  %v20353_v61 = vpop.f32.mrf.mxu1 }
 0x72d   : > { %v8771_v60 = vpop.f32.mrf.mxu0 }
 0x72e   : > { %v20356_v29 = vadd.f32 %v8771_v60, %v20236_v42  ;;  %v20358_v38 = vpop.f32.mrf.mxu1 }
 0x72f   : > { %v15627_v1 = vpop.f32.mrf.mxu0 }
 0x730   : > { %v20361_v35 = vadd.f32 %v15627_v1, %v20241_v54  ;;  %v20365_v27 = vpop.f32.mrf.mxu1 }
 0x731   : > { %v20363_v28 = vpop.f32.mrf.mxu0 }
 0x732   : > { %v20372_v7 = vpop.f32.mrf.mxu1 }
 0x733   : > { %v15630_v62 = vpop.f32.mrf.mxu0 }
 0x734   : > { %v20368_v25 = vadd.f32 %v15630_v62, %v20246_v36  ;;  %v20379_v54 = vpop.f32.mrf.mxu1 }
 0x735   : > { %v20370_v33 = vpop.f32.mrf.mxu0 }
 0x736   : > { %v20386_v36 = vpop.f32.mrf.mxu1 }
 0x737   : > { %v15631_v42 = vpop.f32.mrf.mxu0 }
 0x738   : > { %v20375_v60 = vadd.f32 %v15631_v42, %v20256_v52  ;;  %v20393_v52 = vpop.f32.mrf.mxu1 }
 0x739   : > { %v20377_v37 = vpop.f32.mrf.mxu0 }
 0x73b   : > { %v15634_v1 = vpop.f32.mrf.mxu0 }
 0x73c   : > { %v20382_v19 = vadd.f32 %v15634_v1, %v20261_v6  ;;  %v20400_v6 = vpop.f32.mrf.mxu1 }
 0x73d   : > { %v20384_v22 = vpop.f32.mrf.mxu0 }
 0x73f   : > { %v15635_v62 = vpop.f32.mrf.mxu0 }
 0x740   : > { %v20389_v24 = vadd.f32 %v15635_v62, %v20271_v8  ;;  %v20407_v8 = vpop.f32.mrf.mxu1 }
 0x741   : > { %v20391_v50 = vpop.f32.mrf.mxu0 }
 0x743   : > { %v15638_v42 = vpop.f32.mrf.mxu0 }
 0x744   : > { %v20396_v18 = vadd.f32 %v15638_v42, %v20276_v12  ;;  %v20414_v12 = vpop.f32.mrf.mxu1 }
 0x745   : > { %v20398_v13 = vpop.f32.mrf.mxu0 }
 0x746   : > { %22838 = vst [vmem:[#allocation27_spill] sm:$0xff] %v20396_v18  ;;  %22839 = vst [vmem:[#allocation28_spill] sm:$0xff] %v20398_v13 }
 0x747   : > { %v15639_v1 = vpop.f32.mrf.mxu0 }
 0x748   : > { %v20403_v45 = vadd.f32 %v15639_v1, %v20286_v58  ;;  %v20421_v58 = vpop.f32.mrf.mxu1 }
 0x749   : > { %v20405_v15 = vpop.f32.mrf.mxu0 }
 0x74a   : > { %22840 = vst [vmem:[#allocation29_spill] sm:$0xff] %v20403_v45  ;;  %22841 = vst [vmem:[#allocation30_spill] sm:$0xff] %v20405_v15 }
 0x74b   : > { %v15642_v62 = vpop.f32.mrf.mxu0 }
 0x74c   : > { %v20410_v44 = vadd.f32 %v15642_v62, %v20291_v21  ;;  %v20428_v21 = vpop.f32.mrf.mxu1 }
 0x74d   : > { %v20412_v31 = vpop.f32.mrf.mxu0 }
 0x74e   : > { %22842 = vst [vmem:[#allocation31_spill] sm:$0xff] %v20410_v44  ;;  %22843 = vst [vmem:[#allocation32_spill] sm:$0xff] %v20412_v31 }
 0x74f   : > { %v15643_v42 = vpop.f32.mrf.mxu0 }
 0x750   : > { %v20417_v18 = vadd.f32 %v15643_v42, %v20301_v51  ;;  %v20435_v51 = vpop.f32.mrf.mxu1 }
 0x751   : > { %v20419_v13 = vpop.f32.mrf.mxu0 }
 0x752   : > { %22844 = vst [vmem:[#allocation33_spill] sm:$0xff] %v20417_v18  ;;  %22845 = vst [vmem:[#allocation34_spill] sm:$0xff] %v20419_v13 }
 0x753   : > { %v15646_v1 = vpop.f32.mrf.mxu0 }
 0x754   : > { %v20424_v45 = vadd.f32 %v15646_v1, %v20306_v49  ;;  %v20442_v49 = vpop.f32.mrf.mxu1 }
 0x755   : > { %v20426_v15 = vpop.f32.mrf.mxu0 }
 0x756   : > { %22846 = vst [vmem:[#allocation35_spill] sm:$0xff] %v20424_v45  ;;  %22847 = vst [vmem:[#allocation36_spill] sm:$0xff] %v20426_v15 }
 0x757   : > { %v15647_v62 = vpop.f32.mrf.mxu0 }
 0x758   : > { %v20431_v44 = vadd.f32 %v15647_v62, %v20316_v32  ;;  %v20449_v32 = vpop.f32.mrf.mxu1 }
 0x759   : > { %v20433_v31 = vpop.f32.mrf.mxu0 }
 0x75a   : > { %22848 = vst [vmem:[#allocation37_spill] sm:$0xff] %v20431_v44  ;;  %22849 = vst [vmem:[#allocation38_spill] sm:$0xff] %v20433_v31  ;;  %v7933_v44 = vadd.f32 %v20122_v59, %v20120_v11  ;;  %v7937_v59 = vadd.f32 %v20138_v41, %v20136_v14  ;;  %v9223_v14 = vadd.f32 %v20365_v27, %v20361_v35 }
 0x75b   : > { %v15650_v42 = vpop.f32.mrf.mxu0  ;;  %v7941_v35 = vadd.f32 %v20154_v0, %v20152_v20  ;;  %v9226_v20 = vadd.f32 %v20379_v54, %v20368_v25 }
 0x75c   : > { %v20438_v18 = vadd.f32 %v15650_v42, %v20321_v5  ;;  %v8255_v42 = vadd.f32 %v20239_v17, %v7933_v44 }
 0x75d   : > { %v20440_v13 = vpop.f32.mrf.mxu0 }
 0x75e   : > { %22850 = vst [vmem:[#allocation39_spill] sm:$0xff] %v20438_v18  ;;  %22851 = vst [vmem:[#allocation40_spill] sm:$0xff] %v20440_v13  ;;  %v20459_v18 = vpop.f32.mrf.mxu1 }
 0x75f   : > { %v15651_v1 = vpop.f32.mrf.mxu0 }
 0x760   : > { %v20445_v45 = vadd.f32 %v15651_v1, %v20331_v57 }
 0x761   : > { %v20447_v15 = vpop.f32.mrf.mxu0 }
 0x762   : > { %22852 = vst [vmem:[#allocation41_spill] sm:$0xff] %v20445_v45  ;;  %22853 = vst [vmem:[#allocation43_spill] sm:$0xff] %v20447_v15  ;;  %v8577_v45 = vadd.f32 %v20243_v10, %v8255_v42  ;;  %v20467_v15 = vpop.f32.mrf.mxu1  ;;  %v9222_v10 = vadd.f32 %v20353_v61, %v20351_v55 }
 0x763   : > { %v15654_v62 = vpop.f32.mrf.mxu0 }
 0x764   : > { %v20454_v31 = vadd.f32 %v15654_v62, %v20336_v40  ;;  %v9220_v40 = vadd.f32 %v20358_v38, %v20356_v29  ;;  %v8899_v44 = vadd.f32 %v20363_v28, %v8577_v45  ;;  %v20479_v42 = vpop.f32.mrf.mxu1 }
 0x765   : > { %v20456_v5 = vpop.f32.mrf.mxu0 }
 0x766   : > { %v9221_v41 = vadd.f32 %v20372_v7, %v8899_v44  ;;  %v20496_v7 = vpop.f32.mrf.mxu1 }
 0x767   : > { %v15655_v13 = vpop.f32.mrf.mxu0 }
 0x768   : > { %v20462_v57 = vadd.f32 %v15655_v13, %v20346_v34  ;;  %v8580_v13 = vadd.f32 %v20251_v4, %v20249_v3  ;;  %v8259_v34 = vadd.f32 %v20254_v23, %v7937_v59  ;;  %v20488_v3 = vld [vmem:[%s22441_s2 + $0x1] ss:$0 sm:$0xff]  ;;  %v8263_v59 = vadd.f32 %v20269_v47, %v7941_v35 }
 0x769   : > { %v20464_v1 = vpop.f32.mrf.mxu0 }
 0x76a   : > { %22854 = vst [vmem:[#allocation44_spill] sm:$0xff] %v20462_v57  ;;  %v8902_v45 = vadd.f32 %v20370_v33, %v8580_v13  ;;  %v8581_v23 = vadd.f32 %v20258_v56, %v8259_v34 }
 0x76b   : > { %v15706_v11 = vpop.f32.mrf.mxu0 }
 0x76c   : > { %v9544_v29 = vadd.f32 %v15706_v11, %v9222_v10  ;;  %v9224_v27 = vadd.f32 %v20386_v36, %v8902_v45  ;;  %v8903_v33 = vadd.f32 %v20377_v37, %v8581_v23  ;;  %v7945_v45 = vadd.f32 %v20170_v26, %v20168_v39 }
 0x76d   : > { %v9415_v17 = vpop.f32.mrf.mxu0  ;;  %v7261_v39 = vadd.f32 %v20063_v53, %v20061_v2  ;;  %v8588_v26 = vadd.f32 %v20281_v48, %v20279_v43  ;;  %v9231_v2 = vadd.f32 %v20421_v58, %v20389_v24  ;;  %v22855_v53 = vld [vmem:[#allocation28_spill] sm:$0xff] }
 0x76e   : > { %v9542_v62 = vadd.f32 %v9415_v17, %v9220_v40  ;;  %v20501_v11 = vadd.f32 %v20488_v3, %v9544_v29  ;;  %v9227_v17 = vadd.f32 %v20393_v52, %v20375_v60  ;;  %v9225_v54 = vadd.f32 %v20400_v6, %v8903_v33 }
 0x76f   : > { %v15707_v57 = vpop.f32.mrf.mxu0  ;;  %v8910_v43 = vadd.f32 %v22855_v53, %v8588_v26  ;;  %v22866_v53 = vld [vmem:[#allocation29_spill] sm:$0xff] }
 0x770   : > { %v20492_v55 = vadd.f32 %v20488_v3, %v9542_v62  ;;  %v9545_v61 = vadd.f32 %v15707_v57, %v9223_v14  ;;  %v8584_v57 = vadd.f32 %v20266_v63, %v20264_v9  ;;  %v20521_v63 = vpop.f32.mrf.mxu1  ;;  %v9614_v13 = vsel %vm273_vm0, %v20501_v11, 0.0 }
 0x771   : > { %v9418_v4 = vpop.f32.mrf.mxu0 }
 0x772   : > { %v9543_v38 = vadd.f32 %v9418_v4, %v9221_v41  ;;  %v9611_v36 = vsel %vm273_vm0, %v20492_v55, 0.0  ;;  %v20514_v37 = vadd.f32 %v20488_v3, %v9545_v61  ;;  %v8906_v9 = vadd.f32 %v20384_v22, %v8584_v57  ;;  %v20535_v29 = vpop.f32.mrf.mxu1 }
 0x773   : > { %v15710_v28 = vpop.f32.mrf.mxu0  ;;  %v8585_v41 = vadd.f32 %v20273_v46, %v8263_v59 }
 0x774   : > { %v20504_v56 = vadd.f32 %v20488_v3, %v9543_v38  ;;  %v9548_v34 = vadd.f32 %v15710_v28, %v9226_v20  ;;  %v9616_v22 = vsel %vm273_vm0, %v20514_v37, 0.0  ;;  %v9228_v6 = vadd.f32 %v20414_v12, %v8906_v9  ;;  %v20562_v48 = vpop.f32.mrf.mxu1 }
 0x775   : > { %v9431_v0 = vpop.f32.mrf.mxu0  ;;  %v8907_v61 = vadd.f32 %v20391_v50, %v8585_v41  ;;  %v8267_v12 = vadd.f32 %v20284_v30, %v7945_v45  ;;  %v9230_v50 = vadd.f32 %v20407_v8, %v20382_v19  ;;  %v7627_v20 = vadd.f32 %v20181_v16, %v7261_v39  ;;  %v22859_v45 = vld [vmem:[#allocation84_spill] sm:$0xff] }
 0x776   : > { %v9612_v40 = vsel %vm273_vm0, %v20504_v56, 0.0  ;;  %v9546_v44 = vadd.f32 %v9431_v0, %v9224_v27  ;;  %v20539_v38 = vadd.f32 %v20488_v3, %v9548_v34 }
 0x777   : > { %v9613_v47 = vadd.f32 %v9612_v40, %v9611_v36  ;;  %v15711_v25 = vpop.f32.mrf.mxu0  ;;  %v9229_v19 = vadd.f32 %v20428_v21, %v8907_v61  ;;  %v9232_v21 = vadd.f32 %v20442_v49, %v8910_v43  ;;  %v22862_v49 = vld [vmem:[#allocation42_spill] sm:$0xff]  ;;  %v9235_v43 = vadd.f32 %v20449_v32, %v22866_v53 }
 0x778   : > { %v20527_v10 = vadd.f32 %v20488_v3, %v9546_v44  ;;  %v9549_v60 = vadd.f32 %v15711_v25, %v9227_v17  ;;  %v9622_v8 = vsel %vm273_vm0, %v20539_v38, 0.0  ;;  %v22856_v17 = vld [vmem:[#allocation50_spill] sm:$0xff]  ;;  %v22857_v25 = vld [vmem:[#allocation80_spill] sm:$0xff] }
 0x779   : > { %v9615_v62 = vadd.f32 %v9614_v13, %v9613_v47  ;;  %v9434_v14 = vpop.f32.mrf.mxu0  ;;  %v8589_v9 = vadd.f32 %v22856_v17, %v8267_v12  ;;  %v20575_v13 = vpop.f32.mrf.mxu1 }
 0x77a   : > { %v9547_v52 = vadd.f32 %v9434_v14, %v9225_v54  ;;  %v9618_v46 = vsel %vm273_vm0, %v20527_v10, 0.0  ;;  %v20554_v33 = vadd.f32 %v20488_v3, %v9549_v60  ;;  %v7949_v54 = vadd.f32 %v22857_v25, %v7627_v20  ;;  %v22858_v14 = vld [vmem:[#allocation30_spill] sm:$0xff] }
 0x77b   : > { %v9617_v4 = vadd.f32 %v9616_v22, %v9615_v62  ;;  %v15714_v23 = vpop.f32.mrf.mxu0  ;;  %v8911_v41 = vadd.f32 %v22858_v14, %v8589_v9  ;;  %v22865_v20 = vld [vmem:[#allocation74_spill] sm:$0xff] }
 0x77c   : > { %v20544_v35 = vadd.f32 %v20488_v3, %v9547_v52  ;;  %v9552_v36 = vadd.f32 %v15714_v23, %v9230_v50  ;;  %v9624_v24 = vsel %vm273_vm0, %v20554_v33, 0.0  ;;  %v22861_v23 = vld [vmem:[#allocation91_spill] sm:$0xff] }
 0x77d   : > { %v9619_v28 = vadd.f32 %v9618_v46, %v9617_v4  ;;  %v9447_v27 = vpop.f32.mrf.mxu0  ;;  %v8592_v61 = vadd.f32 %v22862_v49, %v22861_v23  ;;  %v22863_v46 = vld [vmem:[#allocation13_spill] sm:$0xff] }
 0x77e   : > { %v9620_v57 = vsel %vm273_vm0, %v20544_v35, 0.0  ;;  %v9550_v59 = vadd.f32 %v9447_v27, %v9228_v6  ;;  %v20579_v22 = vadd.f32 %v20488_v3, %v9552_v36  ;;  %v22860_v6 = vld [vmem:[#allocation57_spill] sm:$0xff]  ;;  %v8271_v39 = vadd.f32 %v22863_v46, %v7949_v54 }
 0x77f   : > { %v9621_v30 = vadd.f32 %v9620_v57, %v9619_v28  ;;  %v15715_v0 = vpop.f32.mrf.mxu0  ;;  %v7277_v4 = vadd.f32 %v22860_v6, %v22859_v45  ;;  %v22864_v28 = vld [vmem:[#allocation27_spill] sm:$0xff]  ;;  %v22871_v49 = vld [vmem:[#allocation77_spill] sm:$0xff] }
 0x780   : > { %v20568_v40 = vadd.f32 %v20488_v3, %v9550_v59  ;;  %v9553_v58 = vadd.f32 %v15715_v0, %v9231_v2  ;;  %v9234_v27 = vadd.f32 %v20435_v51, %v22864_v28  ;;  %v9233_v51 = vadd.f32 %v20459_v18, %v8911_v41 }
 0x781   : > { %v9623_v44 = vadd.f32 %v9622_v8, %v9621_v30  ;;  %v9450_v16 = vpop.f32.mrf.mxu0  ;;  %v7631_v2 = vadd.f32 %v22865_v20, %v7277_v4  ;;  %v22867_v30 = vld [vmem:[#allocation32_spill] sm:$0xff] }
 0x782   : > { %v9551_v47 = vadd.f32 %v9450_v16, %v9229_v19  ;;  %v9626_v60 = vsel %vm273_vm0, %v20568_v40, 0.0  ;;  %v20594_v50 = vadd.f32 %v20488_v3, %v9553_v58  ;;  %v8914_v0 = vadd.f32 %v22867_v30, %v8592_v61  ;;  %v20602_v19 = vpop.f32.mrf.mxu1  ;;  %v22868_v58 = vld [vmem:[#allocation14_spill] sm:$0xff]  ;;  %v22872_v61 = vld [vmem:[#allocation71_spill] sm:$0xff] }
 0x783   : > { %v9625_v34 = vadd.f32 %v9624_v24, %v9623_v44  ;;  %v15718_v62 = vpop.f32.mrf.mxu0  ;;  %v9630_v44 = vsel %vm273_vm0, %v20579_v22, 0.0  ;;  %v7293_v46 = vadd.f32 %v22872_v61, %v22871_v49  ;;  %v22877_v30 = vld [vmem:[#allocation86_spill] sm:$0xff] }
 0x784   : > { %v20584_v52 = vadd.f32 %v20488_v3, %v9551_v47  ;;  %v9556_v16 = vadd.f32 %v15718_v62, %v9234_v27  ;;  %v8593_v47 = vadd.f32 %v22868_v58, %v8271_v39  ;;  %v9632_v32 = vsel %vm273_vm0, %v20594_v50, 0.0  ;;  %v20615_v14 = vpop.f32.mrf.mxu1  ;;  %v22873_v39 = vld [vmem:[#allocation15_spill] sm:$0xff] }
 0x785   : > { %v9627_v26 = vadd.f32 %v9626_v60, %v9625_v34  ;;  %v9463_v12 = vpop.f32.mrf.mxu0  ;;  %v9236_v18 = vadd.f32 %v20479_v42, %v8914_v0  ;;  %v22870_v60 = vld [vmem:[#allocation34_spill] sm:$0xff]  ;;  %v22874_v42 = vld [vmem:[#allocation16_spill] sm:$0xff]  ;;  %v7635_v0 = vadd.f32 %v22877_v30, %v7293_v46 }
 0x786   : > { %v9628_v57 = vsel %vm273_vm0, %v20584_v52, 0.0  ;;  %v9554_v59 = vadd.f32 %v9463_v12, %v9232_v21  ;;  %v22869_v21 = vld [vmem:[#allocation55_spill] sm:$0xff]  ;;  %v8915_v45 = vadd.f32 %v22870_v60, %v8593_v47  ;;  %v20619_v6 = vadd.f32 %v20488_v3, %v9556_v16  ;;  %v22875_v12 = vld [vmem:[#allocation17_spill] sm:$0xff]  ;;  %v9189_v16 = vpop.f32.mrf.mxu1 }
 0x787   : > { %v9629_v8 = vadd.f32 %v9628_v57, %v9627_v26  ;;  %v15719_v36 = vpop.f32.mrf.mxu0  ;;  %v7953_v34 = vadd.f32 %v22869_v21, %v7631_v2  ;;  %v8596_v26 = vadd.f32 %v22874_v42, %v22873_v39  ;;  %v22880_v21 = vld [vmem:[#allocation18_spill] sm:$0xff]  ;;  %v22881_v60 = vld [vmem:[#allocation49_spill] sm:$0xff] }
 0x788   : > { %v20608_v17 = vadd.f32 %v20488_v3, %v9554_v59  ;;  %v9557_v25 = vadd.f32 %v15719_v36, %v9235_v43  ;;  %v22876_v59 = vld [vmem:[#allocation31_spill] sm:$0xff]  ;;  %v9237_v58 = vadd.f32 %v20521_v63, %v8915_v45  ;;  %v15691_v45 = vpop.f32.mrf.mxu1 }
 0x789   : > { %v9631_v9 = vadd.f32 %v9630_v44, %v9629_v8  ;;  %v9466_v24 = vpop.f32.mrf.mxu0  ;;  %v8275_v28 = vadd.f32 %v22875_v12, %v7953_v34  ;;  %v9238_v20 = vadd.f32 %v20467_v15, %v22876_v59  ;;  %v22878_v8 = vld [vmem:[#allocation33_spill] sm:$0xff]  ;;  %v9638_v15 = vsel %vm273_vm0, %v20619_v6, 0.0  ;;  %v22883_v12 = vld [vmem:[#allocation87_spill] sm:$0xff]  ;;  %v22886_v59 = vld [vmem:[#allocation20_spill] sm:$0xff] }
 0x78a   : > { %v9555_v54 = vadd.f32 %v9466_v24, %v9233_v51  ;;  %v9634_v4 = vsel %vm273_vm0, %v20608_v17, 0.0  ;;  %v20634_v2 = vadd.f32 %v20488_v3, %v9557_v25  ;;  %v9239_v36 = vadd.f32 %v20496_v7, %v22878_v8  ;;  %v22879_v51 = vld [vmem:[#allocation36_spill] sm:$0xff] }
 0x78b   : > { %v9633_v41 = vadd.f32 %v9632_v32, %v9631_v9  ;;  %v15722_v62 = vpop.f32.mrf.mxu0  ;;  %v8918_v44 = vadd.f32 %v22879_v51, %v8596_v26  ;;  %v8597_v34 = vadd.f32 %v22880_v21, %v8275_v28  ;;  %v22884_v28 = vld [vmem:[#allocation66_spill] sm:$0xff] }
 0x78c   : > { %v20624_v23 = vadd.f32 %v20488_v3, %v9555_v54  ;;  %v9560_v47 = vadd.f32 %v15722_v62, %v9238_v20  ;;  %v9640_v7 = vsel %vm273_vm0, %v20634_v2, 0.0  ;;  %v22882_v62 = vld [vmem:[#allocation38_spill] sm:$0xff]  ;;  %v22887_v20 = vld [vmem:[#allocation21_spill] sm:$0xff] }
 0x78d   : > { %v9635_v27 = vadd.f32 %v9634_v4, %v9633_v41  ;;  %v9479_v57 = vpop.f32.mrf.mxu0  ;;  %v7957_v4 = vadd.f32 %v22881_v60, %v7635_v0  ;;  %v9240_v63 = vadd.f32 %v20562_v48, %v8918_v44  ;;  %v8919_v46 = vadd.f32 %v22882_v62, %v8597_v34  ;;  %v22888_v0 = vld [vmem:[#allocation35_spill] sm:$0xff] }
 0x78e   : > { %v9636_v53 = vsel %vm273_vm0, %v20624_v23, 0.0  ;;  %v9558_v43 = vadd.f32 %v9479_v57, %v9236_v18  ;;  %v20655_v39 = vadd.f32 %v20488_v3, %v9560_v47  ;;  %v22885_v57 = vld [vmem:[#allocation19_spill] sm:$0xff]  ;;  %v9242_v8 = vadd.f32 %v20535_v29, %v22888_v0  ;;  %v22891_v47 = vld [vmem:[#allocation40_spill] sm:$0xff] }
 0x78f   : > { %v9637_v9 = vadd.f32 %v9636_v53, %v9635_v27  ;;  %v15723_v24 = vpop.f32.mrf.mxu0  ;;  %v7309_v27 = vadd.f32 %v22884_v28, %v22883_v12  ;;  %v8600_v48 = vadd.f32 %v22886_v59, %v22885_v57  ;;  %v8279_v53 = vadd.f32 %v22887_v20, %v7957_v4  ;;  %v22893_v28 = vld [vmem:[#allocation89_spill] sm:$0xff]  ;;  %v22894_v59 = vld [vmem:[#allocation43_spill] sm:$0xff] }
 0x790   : > { %v20646_v32 = vadd.f32 %v20488_v3, %v9558_v43  ;;  %v9561_v18 = vadd.f32 %v15723_v24, %v9239_v36  ;;  %v9646_v29 = vsel %vm273_vm0, %v20655_v39, 0.0 }
 0x791   : > { %v9639_v25 = vadd.f32 %v9638_v15, %v9637_v9  ;;  %v9482_v54 = vpop.f32.mrf.mxu0  ;;  %v22889_v9 = vld [vmem:[#allocation73_spill] sm:$0xff] }
 0x792   : > { %v9559_v41 = vadd.f32 %v9482_v54, %v9237_v58  ;;  %v9642_v42 = vsel %vm273_vm0, %v20646_v32, 0.0  ;;  %v20670_v36 = vadd.f32 %v20488_v3, %v9561_v18  ;;  %v7639_v24 = vadd.f32 %v22889_v9, %v7309_v27  ;;  %v22890_v58 = vld [vmem:[#allocation37_spill] sm:$0xff]  ;;  %v9192_v54 = vpop.f32.mrf.mxu1 }
 0x793   : > { %v9641_v49 = vadd.f32 %v9640_v7, %v9639_v25  ;;  %v15726_v61 = vpop.f32.mrf.mxu0  ;;  %v9243_v15 = vadd.f32 %v20575_v13, %v22890_v58  ;;  %v8922_v25 = vadd.f32 %v22891_v47, %v8600_v48  ;;  %v9241_v7 = vadd.f32 %v20602_v19, %v8919_v46 }
 0x794   : > { %v20660_v26 = vadd.f32 %v20488_v3, %v9559_v41  ;;  %v9564_v18 = vadd.f32 %v15726_v61, %v9242_v8  ;;  %v15694_v60 = vpop.f32.mrf.mxu1  ;;  %v9648_v13 = vsel %vm273_vm0, %v20670_v36, 0.0  ;;  %v7961_v27 = vadd.f32 %v22893_v28, %v7639_v24  ;;  %v22897_v8 = vld [vmem:[#allocation25_spill] sm:$0xff]  ;;  %v22898_v24 = vld [vmem:[#allocation39_spill] sm:$0xff] }
 0x795   : > { %v9643_v43 = vadd.f32 %v9642_v42, %v9641_v49  ;;  %v9495_v30 = vpop.f32.mrf.mxu0  ;;  %v22892_v49 = vld [vmem:[#allocation22_spill] sm:$0xff]  ;;  %v9244_v19 = vadd.f32 %v9189_v16, %v8922_v25  ;;  %v9246_v58 = vadd.f32 %v20615_v14, %v22898_v24 }
 0x796   : > { %v9644_v51 = vsel %vm273_vm0, %v20660_v26, 0.0  ;;  %v9562_v44 = vadd.f32 %v9495_v30, %v9240_v63  ;;  %v8601_v62 = vadd.f32 %v22892_v49, %v8279_v53  ;;  %v20690_v48 = vadd.f32 %v20488_v3, %v9564_v18  ;;  %v22896_v30 = vld [vmem:[#allocation24_spill] sm:$0xff] }
 0x797   : > { %v9645_v21 = vadd.f32 %v9644_v51, %v9643_v43  ;;  %v15727_v34 = vpop.f32.mrf.mxu0  ;;  %v22895_v43 = vld [vmem:[#allocation23_spill] sm:$0xff]  ;;  %v8283_v51 = vadd.f32 %v22897_v8, %v7961_v27  ;;  %v9250_v8 = vadd.f32 %v15694_v60, %v20454_v31 }
 0x798   : > { %v20682_v41 = vadd.f32 %v20488_v3, %v9562_v44  ;;  %v9565_v42 = vadd.f32 %v15727_v34, %v9243_v15  ;;  %v8923_v61 = vadd.f32 %v22894_v59, %v8601_v62  ;;  %v8604_v0 = vadd.f32 %v22896_v30, %v22895_v43  ;;  %v9205_v44 = vpop.f32.mrf.mxu1 }
 0x799   : > { %v9647_v4 = vadd.f32 %v9646_v29, %v9645_v21  ;;  %v9498_v63 = vpop.f32.mrf.mxu0  ;;  %v22899_v21 = vld [vmem:[#allocation41_spill] sm:$0xff] }
 0x79a   : > { %v9563_v12 = vadd.f32 %v9498_v63, %v9241_v7  ;;  %v9650_v20 = vsel %vm273_vm0, %v20682_v41, 0.0  ;;  %v20703_v15 = vadd.f32 %v20488_v3, %v9565_v42  ;;  %v9247_v34 = vadd.f32 %v15691_v45, %v22899_v21  ;;  %v15695_v62 = vpop.f32.mrf.mxu1 }
 0x79b   : > { %v9649_v46 = vadd.f32 %v9648_v13, %v9647_v4  ;;  %v15730_v57 = vpop.f32.mrf.mxu0  ;;  %v8926_v7 = vadd.f32 %v20456_v5, %v8604_v0  ;;  %v9245_v4 = vadd.f32 %v9192_v54, %v8923_v61  ;;  %v9654_v63 = vsel %vm273_vm0, %v20690_v48, 0.0 }
 0x79c   : > { %v20695_v53 = vadd.f32 %v20488_v3, %v9563_v12  ;;  %v9568_v49 = vadd.f32 %v15730_v57, %v9246_v58  ;;  %v22900_v12 = vld [vmem:[#allocation26_spill] sm:$0xff]  ;;  %v9656_v45 = vsel %vm273_vm0, %v20703_v15, 0.0  ;;  %v9208_v43 = vpop.f32.mrf.mxu1 }
 0x79d   : > { %v9651_v16 = vadd.f32 %v9650_v20, %v9649_v46  ;;  %v9511_v9 = vpop.f32.mrf.mxu0  ;;  %v8605_v28 = vadd.f32 %v22900_v12, %v8283_v51 }
 0x79e   : > { %v9652_v47 = vsel %vm273_vm0, %v20695_v53, 0.0  ;;  %v9566_v25 = vadd.f32 %v9511_v9, %v9244_v19  ;;  %v9248_v19 = vadd.f32 %v9205_v44, %v8926_v7  ;;  %v20719_v57 = vadd.f32 %v20488_v3, %v9568_v49 }
 0x79f   : > { %v9653_v29 = vadd.f32 %v9652_v47, %v9651_v16  ;;  %v15731_v18 = vpop.f32.mrf.mxu0  ;;  %v8927_v59 = vadd.f32 %v20464_v1, %v8605_v28  ;;  %v22901_v16 = vld [vmem:[#allocation44_spill] sm:$0xff] }
 0x7a0   : > { %v20712_v14 = vadd.f32 %v20488_v3, %v9566_v25  ;;  %v9569_v27 = vadd.f32 %v15731_v18, %v9247_v34  ;;  %v9251_v9 = vadd.f32 %v15695_v62, %v22901_v16  ;;  %v9662_v25 = vsel %vm273_vm0, %v20719_v57, 0.0  ;;  %v16283_v16 = vld [vmem:[#allocation8 + $0x130] sm:$0xff]  }
 0x7a1   : > { %v9655_v13 = vadd.f32 %v9654_v63, %v9653_v29  ;;  %v9514_v42 = vpop.f32.mrf.mxu0  ;;  %v9249_v47 = vadd.f32 %v9208_v43, %v8927_v59 }
 0x7a2   : > { %v9567_v5 = vadd.f32 %v9514_v42, %v9245_v4  ;;  %v9658_v61 = vsel %vm273_vm0, %v20712_v14, 0.0  ;;  %v20728_v51 = vadd.f32 %v20488_v3, %v9569_v27 }
 0x7a3   : > { %v9657_v46 = vadd.f32 %v9656_v45, %v9655_v13  ;;  %v15734_v54 = vpop.f32.mrf.mxu0 }
 0x7a4   : > { %v20724_v20 = vadd.f32 %v20488_v3, %v9567_v5  ;;  %v9572_v21 = vadd.f32 %v15734_v54, %v9250_v8  ;;  %v9664_v60 = vsel %vm273_vm0, %v20728_v51, 0.0 }
 0x7a5   : > { %v9659_v30 = vadd.f32 %v9658_v61, %v9657_v46  ;;  %v9527_v0 = vpop.f32.mrf.mxu0 }
 0x7a6   : > { %v9660_v1 = vsel %vm273_vm0, %v20724_v20, 0.0  ;;  %v9570_v44 = vadd.f32 %v9527_v0, %v9248_v19  ;;  %v9609_v63 = vadd.f32 %v20488_v3, %v9572_v21  ;;  %v16278_v0 = vld [vmem:[#allocation8 + $0x158] sm:$0xff]  }
 0x7a7   : > { %v9661_v24 = vadd.f32 %v9660_v1, %v9659_v30  ;;  %v15735_v58 = vpop.f32.mrf.mxu0  ;;  %15736 = vmatprep.subr.bf16.mxu1 %v16278_v0  ;;  %v16282_v1 = vld [vmem:[#allocation8 + $0x138] sm:$0xff]  }
 0x7a8   : > { %v9607_v34 = vadd.f32 %v20488_v3, %v9570_v44  ;;  %v9573_v29 = vadd.f32 %v15735_v58, %v9251_v9  ;;  %v9670_v45 = vsel %vm273_vm0, %v9609_v63, 0.0  ;;  %15737 = vmatpush3.bf16.msra.mxu1 %v16278_v0  ;;  %v16280_v44 = vld [vmem:[#allocation8 + $0x148] sm:$0xff]   ;;  %15776 = vmatprep.subr.bf16.mxu0 %v16282_v1 }
 0x7a9   : > { %v9663_v7 = vadd.f32 %v9662_v25, %v9661_v24  ;;  %v9530_v31 = vpop.f32.mrf.mxu0  ;;  %15777 = vmatpush3.bf16.msra.mxu0 %v16282_v1 }
 0x7aa   : > { %v9571_v18 = vadd.f32 %v9530_v31, %v9249_v47  ;;  %v9666_v49 = vsel %vm273_vm0, %v9607_v34, 0.0  ;;  %v9610_v42 = vadd.f32 %v20488_v3, %v9573_v29  ;;  %15778 = vmatprep.subr.bf16.mxu0 %v16283_v16 }
 0x7ab   : > { %v9665_v4 = vadd.f32 %v9664_v60, %v9663_v7  ;;  %v20835_v60 = vld [vmem:[#allocation8 + $0x178] sm:$0xff]  }
 0x7ac   : > { %v9608_v62 = vadd.f32 %v20488_v3, %v9571_v18  ;;  %v9672_v5 = vsel %vm273_vm0, %v9610_v42, 0.0  ;;  %v16279_v3 = vld [vmem:[#allocation8 + $0x150] sm:$0xff]  }
 0x7ad   : > { %v9667_v13 = vadd.f32 %v9666_v49, %v9665_v4  ;;  %15738 = vmatprep.subr.bf16.mxu1 %v16279_v3  ;;  %15779 = vmatpush3.bf16.msra.mxu0 %v16283_v16 }
 0x7ae   : > { %v9668_v12 = vsel %vm273_vm0, %v9608_v62, 0.0  ;;  %15739 = vmatpush3.bf16.msra.mxu1 %v16279_v3 }
 0x7af   : > { %v9669_v28 = vadd.f32 %v9668_v12, %v9667_v13  ;;  %15740 = vmatprep.subr.bf16.mxu1 %v16280_v44 }
 0x7b1   : > { %v9671_v27 = vadd.f32 %v9670_v45, %v9669_v28 }
 0x7b2   : > { %15741 = vmatpush3.bf16.msra.mxu1 %v16280_v44 }
 0x7b3   : > { %v9673_v19 = vadd.f32 %v9672_v5, %v9671_v27 }
 0x7b5   : > { %v9674_v46 = vrot.slane %v9673_v19, 4 }
 0x7b7   : > { %v9675_v54 = vadd.f32 %v9674_v46, %v9673_v19  ;;  %v9970_v19 = vld [vmem:[#allocation2 + $0x1] sm:$0xff] }
 0x7b9   : > { %v9676_v59 = vrot.slane %v9675_v54, 2 }
 0x7bb   : > { %v9677_v61 = vadd.f32 %v9676_v59, %v9675_v54  ;;  %v9971_v59 = vld [vmem:[#allocation2 + $0x9] sm:$0xff] }
 0x7bc   : > { %v10002_v1 = vpack.c.bf16 %v9971_v59, %v9970_v19 }
 0x7bd   : > { %v9678_v43 = vrot.slane %v9677_v61, 1 }
 0x7be   : > { %15744 = vmatprep.mubr.msk.bf16.mxu1 %vm273_vm0, %v10002_v1 }
 0x7bf   : > { %v9679_v30 = vadd.f32 %v9678_v43, %v9677_v61  ;;  %v9913_v61 = vld [vmem:[#allocation2] sm:$0xff] }
 0x7c1   : > { %v20745_v8 = vmul.f32 0.00390625, %v9679_v30 }
 0x7c3   : > { %v20749_v9 = vsub.f32 %v20584_v52, %v20745_v8  ;;  %v20753_v24 = vsub.f32 %v20608_v17, %v20745_v8  ;;  %v20757_v58 = vsub.f32 %v20624_v23, %v20745_v8  ;;  %v20761_v47 = vsub.f32 %v20619_v6, %v20745_v8 }
 0x7c4   : > { %v20765_v25 = vsub.f32 %v20634_v2, %v20745_v8  ;;  %v20769_v52 = vsub.f32 %v20646_v32, %v20745_v8  ;;  %v20773_v17 = vsub.f32 %v20660_v26, %v20745_v8  ;;  %v20777_v23 = vsub.f32 %v20655_v39, %v20745_v8  ;;  %v16281_v2 = vld [vmem:[#allocation8 + $0x140] sm:$0xff]  }
 0x7c5   : > { %v20781_v6 = vsub.f32 %v20670_v36, %v20745_v8  ;;  %v20785_v21 = vsub.f32 %v20682_v41, %v20745_v8  ;;  %v20789_v32 = vsub.f32 %v20695_v53, %v20745_v8  ;;  %v20793_v26 = vsub.f32 %v20690_v48, %v20745_v8  ;;  %v16284_v36 = vld [vmem:[#allocation8 + $0x128] sm:$0xff]   ;;  %15742 = vmatprep.subr.bf16.mxu1 %v16281_v2 }
 0x7c6   : > { %v20797_v39 = vsub.f32 %v20703_v15, %v20745_v8  ;;  %v20801_v7 = vsub.f32 %v20712_v14, %v20745_v8  ;;  %v20805_v41 = vsub.f32 %v20724_v20, %v20745_v8  ;;  %v20809_v53 = vsub.f32 %v20719_v57, %v20745_v8  ;;  %15780 = vmatprep.subr.bf16.mxu0 %v16284_v36 }
 0x7c7   : > { %v20813_v48 = vsub.f32 %v20728_v51, %v20745_v8  ;;  %v20816_v15 = vsub.f32 %v9607_v34, %v20745_v8  ;;  %v20819_v31 = vsub.f32 %v9608_v62, %v20745_v8  ;;  %v20822_v14 = vsub.f32 %v9609_v63, %v20745_v8  ;;  %v16285_v34 = vld [vmem:[#allocation8 + $0x120] sm:$0xff]   ;;  %15781 = vmatpush3.bf16.msra.mxu0 %v16284_v36 }
 0x7c8   : > { %v20825_v20 = vsub.f32 %v9610_v42, %v20745_v8  ;;  %v20829_v57 = vsub.f32 %v20492_v55, %v20745_v8  ;;  %v20833_v51 = vsub.f32 %v20504_v56, %v20745_v8  ;;  %v20839_v29 = vsub.f32 %v20501_v11, %v20745_v8  ;;  %15743 = vmatpush3.bf16.msra.mxu1 %v16281_v2 }
 0x7c9   : > { %v20843_v18 = vsub.f32 %v20514_v37, %v20745_v8  ;;  %15782 = vmatprep.subr.bf16.mxu0 %v16285_v34  ;;  %15816 = vmatprep.subr.bf16.mxu1 %v20835_v60  ;;  %v20852_v4 = vsub.f32 %v20527_v10, %v20745_v8  ;;  %v20858_v37 = vsub.f32 %v20544_v35, %v20745_v8 }
 0x7ca   : > { %v9713_v55 = vmul.f32 %v20829_v57, %v20829_v57  ;;  %v9714_v56 = vmul.f32 %v20833_v51, %v20833_v51  ;;  %v9715_v11 = vmul.f32 %v20839_v29, %v20839_v29  ;;  %v20866_v10 = vsub.f32 %v20539_v38, %v20745_v8 }
 0x7cb   : > { %15783 = vmatpush3.bf16.msra.mxu0 %v16285_v34  ;;  %v9716_v63 = vmul.f32 %v20843_v18, %v20843_v18  ;;  %v9717_v42 = vmul.f32 %v20852_v4, %v20852_v4  ;;  %v20873_v35 = vsub.f32 %v20554_v33, %v20745_v8  ;;  %v9718_v45 = vmul.f32 %v20858_v37, %v20858_v37  ;;  %v9914_v33 = vld [vmem:[#allocation2 + $0x8] sm:$0xff] }
 0x7cc   : > { %v9745_v49 = vsel %vm273_vm0, %v9713_v55, 0.0  ;;  %v9746_v62 = vsel %vm273_vm0, %v9714_v56, 0.0  ;;  %v9748_v12 = vsel %vm273_vm0, %v9715_v11, 0.0  ;;  %v20880_v38 = vsub.f32 %v20568_v40, %v20745_v8 }
 0x7cd   : > { %v9747_v13 = vadd.f32 %v9746_v62, %v9745_v49  ;;  %v9750_v27 = vsel %vm273_vm0, %v9716_v63, 0.0  ;;  %v9719_v46 = vmul.f32 %v20866_v10, %v20866_v10  ;;  %v9752_v54 = vsel %vm273_vm0, %v9717_v42, 0.0 }
 0x7ce   : > { %v9720_v30 = vmul.f32 %v20873_v35, %v20873_v35  ;;  %v9754_v0 = vsel %vm273_vm0, %v9718_v45, 0.0  ;;  %v9945_v44 = vpack.c.bf16 %v9914_v33, %v9913_v61  ;;  %v20890_v40 = vsub.f32 %v20579_v22, %v20745_v8 }
 0x7cf   : > { %v9749_v28 = vadd.f32 %v9748_v12, %v9747_v13  ;;  %v9721_v16 = vmul.f32 %v20880_v38, %v20880_v38  ;;  %v9756_v2 = vsel %vm273_vm0, %v9719_v46, 0.0  ;;  %v20899_v34 = vsub.f32 %v20594_v50, %v20745_v8 }
 0x7d0   : > { %15784 = vmatprep.mubr.msk.bf16.mxu0 %vm273_vm0, %v9945_v44  ;;  %v9722_v55 = vmul.f32 %v20749_v9, %v20749_v9  ;;  %v9758_v22 = vsel %vm273_vm0, %v9720_v30, 0.0  ;;  %v9723_v11 = vmul.f32 %v20890_v40, %v20890_v40  ;;  %v9725_v50 = vmul.f32 %v20753_v24, %v20753_v24 }
 0x7d1   : > { %v9751_v5 = vadd.f32 %v9750_v27, %v9749_v28  ;;  %v9760_v63 = vsel %vm273_vm0, %v9721_v16, 0.0  ;;  %v9724_v62 = vmul.f32 %v20899_v34, %v20899_v34  ;;  %v9726_v28 = vmul.f32 %v20757_v58, %v20757_v58 }
 0x7d2   : > { %v9762_v13 = vsel %vm273_vm0, %v9722_v55, 0.0  ;;  %v9764_v8 = vsel %vm273_vm0, %v9723_v11, 0.0  ;;  %v9768_v19 = vsel %vm273_vm0, %v9725_v50, 0.0  ;;  %v9729_v33 = vmul.f32 %v20769_v52, %v20769_v52 }
 0x7d3   : > { %v9753_v43 = vadd.f32 %v9752_v54, %v9751_v5  ;;  %v9766_v45 = vsel %vm273_vm0, %v9724_v62, 0.0  ;;  %v9727_v5 = vmul.f32 %v20761_v47, %v20761_v47  ;;  %v9728_v54 = vmul.f32 %v20765_v25, %v20765_v25 }
 0x7d4   : > { %v9770_v59 = vsel %vm273_vm0, %v9726_v28, 0.0  ;;  %v9731_v44 = vmul.f32 %v20777_v23, %v20777_v23  ;;  %v9776_v16 = vsel %vm273_vm0, %v9729_v33, 0.0  ;;  %v9734_v62 = vmul.f32 %v20789_v32, %v20789_v32 }
 0x7d5   : > { %v9755_v3 = vadd.f32 %v9754_v0, %v9753_v43  ;;  %v9772_v43 = vsel %vm273_vm0, %v9727_v5, 0.0  ;;  %v9730_v0 = vmul.f32 %v20773_v17, %v20773_v17  ;;  %v9735_v50 = vmul.f32 %v20793_v26, %v20793_v26 }
 0x7d6   : > { %v9780_v11 = vsel %vm273_vm0, %v9731_v44, 0.0  ;;  %v9736_v28 = vmul.f32 %v20797_v39, %v20797_v39  ;;  %v9737_v5 = vmul.f32 %v20801_v7, %v20801_v7  ;;  %v9739_v33 = vmul.f32 %v20809_v53, %v20809_v53 }
 0x7d7   : > { %v9757_v36 = vadd.f32 %v9756_v2, %v9755_v3  ;;  %v9774_v3 = vsel %vm273_vm0, %v9728_v54, 0.0  ;;  %v9778_v55 = vsel %vm273_vm0, %v9730_v0, 0.0  ;;  %v9738_v54 = vmul.f32 %v20805_v41, %v20805_v41 }
 0x7d8   : > { %v9740_v0 = vmul.f32 %v20813_v48, %v20813_v48  ;;  %v9741_v44 = vmul.f32 %v20816_v15, %v20816_v15 }
 0x7d9   : > { %v9759_v56 = vadd.f32 %v9758_v22, %v9757_v36  ;;  %v9732_v36 = vmul.f32 %v20781_v6, %v20781_v6 }
 0x7db   : > { %v9761_v49 = vadd.f32 %v9760_v63, %v9759_v56  ;;  %v9733_v56 = vmul.f32 %v20785_v21, %v20785_v21  ;;  %v20937_v63 = vld [vmem:[#allocation8 + $0x198] sm:$0xff]  }
 0x7dc   : > { %15856 = vmatprep.subr.bf16.mxu0 %v20937_v63 }
 0x7dd   : > { %v9763_v42 = vadd.f32 %v9762_v13, %v9761_v49  ;;  %v9782_v13 = vsel %vm273_vm0, %v9732_v36, 0.0  ;;  %v9742_v36 = vmul.f32 %v20819_v31, %v20819_v31 }
 0x7df   : > { %v9765_v12 = vadd.f32 %v9764_v8, %v9763_v42  ;;  %v9784_v8 = vsel %vm273_vm0, %v9733_v56, 0.0  ;;  %v9743_v56 = vmul.f32 %v20822_v14, %v20822_v14 }
 0x7e1   : > { %v9767_v27 = vadd.f32 %v9766_v45, %v9765_v12  ;;  %v9786_v45 = vsel %vm273_vm0, %v9734_v62, 0.0  ;;  %v9744_v62 = vmul.f32 %v20825_v20, %v20825_v20 }
 0x7e3   : > { %v9769_v46 = vadd.f32 %v9768_v19, %v9767_v27  ;;  %v9788_v19 = vsel %vm273_vm0, %v9735_v50, 0.0  ;;  %v9804_v50 = vsel %vm273_vm0, %v9743_v56, 0.0 }
 0x7e5   : > { %v9771_v61 = vadd.f32 %v9770_v59, %v9769_v46  ;;  %v9790_v59 = vsel %vm273_vm0, %v9736_v28, 0.0 }
 0x7e7   : > { %v9773_v30 = vadd.f32 %v9772_v43, %v9771_v61  ;;  %v9792_v43 = vsel %vm273_vm0, %v9737_v5, 0.0 }
 0x7e9   : > { %v9775_v1 = vadd.f32 %v9774_v3, %v9773_v30  ;;  %v9794_v3 = vsel %vm273_vm0, %v9738_v54, 0.0 }
 0x7eb   : > { %v9777_v2 = vadd.f32 %v9776_v16, %v9775_v1  ;;  %v9796_v16 = vsel %vm273_vm0, %v9739_v33, 0.0 }
 0x7ed   : > { %v9779_v22 = vadd.f32 %v9778_v55, %v9777_v2  ;;  %v9798_v55 = vsel %vm273_vm0, %v9740_v0, 0.0 }
 0x7ef   : > { %v9781_v49 = vadd.f32 %v9780_v11, %v9779_v22  ;;  %v9800_v11 = vsel %vm273_vm0, %v9741_v44, 0.0 }
 0x7f1   : > { %v9783_v42 = vadd.f32 %v9782_v13, %v9781_v49  ;;  %v9802_v13 = vsel %vm273_vm0, %v9742_v36, 0.0 }
 0x7f3   : > { %v9785_v12 = vadd.f32 %v9784_v8, %v9783_v42 }
 0x7f5   : > { %v9787_v27 = vadd.f32 %v9786_v45, %v9785_v12  ;;  %v9806_v12 = vsel %vm273_vm0, %v9744_v62, 0.0 }
 0x7f7   : > { %v9789_v46 = vadd.f32 %v9788_v19, %v9787_v27 }
 0x7f9   : > { %v9791_v61 = vadd.f32 %v9790_v59, %v9789_v46 }
 0x7fb   : > { %v9793_v30 = vadd.f32 %v9792_v43, %v9791_v61 }
 0x7fd   : > { %v9795_v1 = vadd.f32 %v9794_v3, %v9793_v30 }
 0x7ff   : > { %v9797_v2 = vadd.f32 %v9796_v16, %v9795_v1 }
 0x801   : > { %v9799_v22 = vadd.f32 %v9798_v55, %v9797_v2 }
 0x803   : > { %v9801_v49 = vadd.f32 %v9800_v11, %v9799_v22 }
 0x805   : > { %v9803_v42 = vadd.f32 %v9802_v13, %v9801_v49 }
 0x807   : > { %v9805_v8 = vadd.f32 %v9804_v50, %v9803_v42 }
 0x809   : > { %v9807_v28 = vadd.f32 %v9806_v12, %v9805_v8 }
 0x80b   : > { %v9808_v45 = vrot.slane %v9807_v28, 4 }
 0x80d   : > { %v9809_v27 = vadd.f32 %v9808_v45, %v9807_v28 }
 0x80f   : > { %v9810_v5 = vrot.slane %v9809_v27, 2 }
 0x811   : > { %v9811_v19 = vadd.f32 %v9810_v5, %v9809_v27 }
 0x813   : > { %v9812_v46 = vrot.slane %v9811_v19, 1 }
 0x815   : > { %v9813_v54 = vadd.f32 %v9812_v46, %v9811_v19 }
 0x817   : > { %v9814_v59 = vmul.f32 0.00390625, %v9813_v54 }
 0x819   : > { %v9815_v61 = vadd.f32 1e-05, %v9814_v59 }
 0x81b   : > { %16318 = vrsqrt.f32 %v9815_v61 }
 0x828   : > { %v16319_v33 = vpop.eup %16318 }
 0x829   : > { %v9846_v43 = vmul.f32 %v16319_v33, %v20819_v31  ;;  %v9817_v30 = vmul.f32 %v16319_v33, %v20829_v57  ;;  %v9818_v0 = vmul.f32 %v16319_v33, %v20833_v51  ;;  %v9819_v3 = vmul.f32 %v16319_v33, %v20839_v29 }
 0x82a   : > { %v9820_v1 = vmul.f32 %v16319_v33, %v20843_v18  ;;  %v9821_v44 = vmul.f32 %v16319_v33, %v20852_v4  ;;  %v9822_v16 = vmul.f32 %v16319_v33, %v20858_v37  ;;  %v9823_v2 = vmul.f32 %v16319_v33, %v20866_v10 }
 0x82b   : > { %v9878_v36 = vmax.f32 %v9846_v43, 0.0  ;;  %v9824_v55 = vmul.f32 %v16319_v33, %v20873_v35  ;;  %v9825_v22 = vmul.f32 %v16319_v33, %v20880_v38  ;;  %v9826_v31 = vmul.f32 %v16319_v33, %v20749_v9 }
 0x82c   : > { %v9827_v57 = vmul.f32 %v16319_v33, %v20890_v40  ;;  %v9828_v51 = vmul.f32 %v16319_v33, %v20899_v34  ;;  %v9829_v29 = vmul.f32 %v16319_v33, %v20753_v24  ;;  %v9830_v18 = vmul.f32 %v16319_v33, %v20757_v58 }
 0x82d   : > { %v9831_v4 = vmul.f32 %v16319_v33, %v20761_v47  ;;  %v9832_v37 = vmul.f32 %v16319_v33, %v20765_v25  ;;  %v9833_v10 = vmul.f32 %v16319_v33, %v20769_v52  ;;  %v9834_v35 = vmul.f32 %v16319_v33, %v20773_v17  ;;  %9910 = vst.msk [vmem:[#allocation2 + $0x171] sm:$0xff] %vm273_vm0, %v9878_v36 }
 0x82e   : > { %v9835_v9 = vmul.f32 %v16319_v33, %v20777_v23  ;;  %v20997_v38 = vmul.f32 %v16319_v33, %v20781_v6  ;;  %v21000_v40 = vmul.f32 %v16319_v33, %v20785_v21  ;;  %v21003_v24 = vmul.f32 %v16319_v33, %v20789_v32 }
 0x82f   : > { %v21006_v58 = vmul.f32 %v16319_v33, %v20793_v26  ;;  %v21009_v47 = vmul.f32 %v16319_v33, %v20797_v39  ;;  %v21012_v25 = vmul.f32 %v16319_v33, %v20801_v7  ;;  %v21015_v52 = vmul.f32 %v16319_v33, %v20805_v41 }
 0x830   : > { %v21018_v17 = vmul.f32 %v16319_v33, %v20809_v53  ;;  %v21021_v23 = vmul.f32 %v16319_v33, %v20813_v48  ;;  %v21024_v6 = vmul.f32 %v16319_v33, %v20816_v15  ;;  %v21027_v21 = vmul.f32 %v16319_v33, %v20822_v14 }
 0x831   : > { %v21030_v32 = vmul.f32 %v16319_v33, %v20825_v20  ;;  %v9849_v26 = vmax.f32 %v9817_v30, 0.0  ;;  %v9850_v39 = vmax.f32 %v9818_v0, 0.0  ;;  %v9851_v7 = vmax.f32 %v9819_v3, 0.0 }
 0x832   : > { %v9852_v41 = vmax.f32 %v9820_v1, 0.0  ;;  %v9853_v34 = vmax.f32 %v9821_v44, 0.0  ;;  %v9854_v56 = vmax.f32 %v9822_v16, 0.0  ;;  %v9855_v53 = vmax.f32 %v9823_v2, 0.0 }
 0x833   : > { %v9856_v11 = vmax.f32 %v9824_v55, 0.0  ;;  %v9857_v49 = vmax.f32 %v9825_v22, 0.0  ;;  %v9858_v48 = vmax.f32 %v9826_v31, 0.0  ;;  %v9859_v62 = vmax.f32 %v9827_v57, 0.0  ;;  %9881 = vst.msk [vmem:[#allocation2 + $0x19] sm:$0xff] %vm273_vm0, %v9849_v26  ;;  %9882 = vst.msk [vmem:[#allocation2 + $0x21] sm:$0xff] %vm273_vm0, %v9850_v39 }
 0x834   : > { %9883 = vst.msk [vmem:[#allocation2 + $0x31] sm:$0xff] %vm273_vm0, %v9851_v7  ;;  %v9860_v15 = vmax.f32 %v9828_v51, 0.0  ;;  %v9861_v14 = vmax.f32 %v9829_v29, 0.0  ;;  %v9862_v20 = vmax.f32 %v9830_v18, 0.0  ;;  %v9863_v13 = vmax.f32 %v9831_v4, 0.0  ;;  %9884 = vst.msk [vmem:[#allocation2 + $0x39] sm:$0xff] %vm273_vm0, %v9852_v41 }
 0x835   : > { %9885 = vst.msk [vmem:[#allocation2 + $0x49] sm:$0xff] %vm273_vm0, %v9853_v34  ;;  %9886 = vst.msk [vmem:[#allocation2 + $0x51] sm:$0xff] %vm273_vm0, %v9854_v56  ;;  %v9864_v42 = vmax.f32 %v9832_v37, 0.0  ;;  %v9865_v50 = vmax.f32 %v9833_v10, 0.0  ;;  %v9866_v8 = vmax.f32 %v9834_v35, 0.0  ;;  %v9867_v12 = vmax.f32 %v9835_v9, 0.0 }
 0x836   : > { %9887 = vst.msk [vmem:[#allocation2 + $0x61] sm:$0xff] %vm273_vm0, %v9855_v53  ;;  %9888 = vst.msk [vmem:[#allocation2 + $0x69] sm:$0xff] %vm273_vm0, %v9856_v11  ;;  %v9868_v28 = vmax.f32 %v20997_v38, 0.0  ;;  %v9869_v45 = vmax.f32 %v21000_v40, 0.0  ;;  %v9870_v27 = vmax.f32 %v21003_v24, 0.0  ;;  %v9871_v5 = vmax.f32 %v21006_v58, 0.0 }
 0x837   : > { %9889 = vst.msk [vmem:[#allocation2 + $0x79] sm:$0xff] %vm273_vm0, %v9857_v49  ;;  %9890 = vst.msk [vmem:[#allocation2 + $0x81] sm:$0xff] %vm273_vm0, %v9858_v48  ;;  %v9872_v19 = vmax.f32 %v21009_v47, 0.0  ;;  %v9873_v46 = vmax.f32 %v21012_v25, 0.0  ;;  %v9874_v54 = vmax.f32 %v21015_v52, 0.0  ;;  %v9875_v59 = vmax.f32 %v21018_v17, 0.0 }
 0x838   : > { %9891 = vst.msk [vmem:[#allocation2 + $0x91] sm:$0xff] %vm273_vm0, %v9859_v62  ;;  %9892 = vst.msk [vmem:[#allocation2 + $0x99] sm:$0xff] %vm273_vm0, %v9860_v15  ;;  %v9876_v61 = vmax.f32 %v21021_v23, 0.0  ;;  %v9877_v33 = vmax.f32 %v21024_v6, 0.0  ;;  %v9879_v43 = vmax.f32 %v21027_v21, 0.0  ;;  %v9880_v30 = vmax.f32 %v21030_v32, 0.0 }
 0x839   : > { %9893 = vst.msk [vmem:[#allocation2 + $0xa9] sm:$0xff] %vm273_vm0, %v9861_v14  ;;  %9894 = vst.msk [vmem:[#allocation2 + $0xb1] sm:$0xff] %vm273_vm0, %v9862_v20  ;;  %v16287_v51 = vld [vmem:[#allocation8 + $0x170] sm:$0xff]   ;;  %v16288_v4 = vld [vmem:[#allocation8 + $0x168] sm:$0xff]  }
 0x83a   : > { %9895 = vst.msk [vmem:[#allocation2 + $0xc1] sm:$0xff] %vm273_vm0, %v9863_v13  ;;  %9896 = vst.msk [vmem:[#allocation2 + $0xc9] sm:$0xff] %vm273_vm0, %v9864_v42  ;;  %v9972_v0 = vld [vmem:[#allocation2 + $0x19] sm:$0xff]  ;;  %v9973_v3 = vld [vmem:[#allocation2 + $0x21] sm:$0xff] }
 0x83b   : > { %9897 = vst.msk [vmem:[#allocation2 + $0xd9] sm:$0xff] %vm273_vm0, %v9865_v50  ;;  %9898 = vst.msk [vmem:[#allocation2 + $0xe1] sm:$0xff] %vm273_vm0, %v9866_v8  ;;  %v9915_v1 = vld [vmem:[#allocation2 + $0x18] sm:$0xff]  ;;  %v21075_v44 = vpack.c.bf16 %v9973_v3, %v9972_v0  ;;  %v9916_v16 = vld [vmem:[#allocation2 + $0x20] sm:$0xff] }
 0x83c   : > { %9899 = vst.msk [vmem:[#allocation2 + $0xf1] sm:$0xff] %vm273_vm0, %v9867_v12  ;;  %9900 = vst.msk [vmem:[#allocation2 + $0xf9] sm:$0xff] %vm273_vm0, %v9868_v28  ;;  %v9974_v2 = vld [vmem:[#allocation2 + $0x31] sm:$0xff]  ;;  %v9975_v36 = vld [vmem:[#allocation2 + $0x39] sm:$0xff]  ;;  %v21077_v55 = vpack.c.bf16 %v9916_v16, %v9915_v1 }
 0x83d   : > { %9901 = vst.msk [vmem:[#allocation2 + $0x109] sm:$0xff] %vm273_vm0, %v9869_v45  ;;  %9902 = vst.msk [vmem:[#allocation2 + $0x111] sm:$0xff] %vm273_vm0, %v9870_v27  ;;  %v21079_v22 = vpack.c.bf16 %v9975_v36, %v9974_v2  ;;  %v9917_v31 = vld [vmem:[#allocation2 + $0x30] sm:$0xff]  ;;  %v9918_v57 = vld [vmem:[#allocation2 + $0x38] sm:$0xff]  ;;  %15745 = vmatmul.mubr.msk.bf16.vlgmr.msra.gmra.mxu1 %vm273_vm0, %v21075_v44 }
 0x83e   : > { %9903 = vst.msk [vmem:[#allocation2 + $0x121] sm:$0xff] %vm273_vm0, %v9871_v5  ;;  %9904 = vst.msk [vmem:[#allocation2 + $0x129] sm:$0xff] %vm273_vm0, %v9872_v19  ;;  %v21083_v29 = vpack.c.bf16 %v9918_v57, %v9917_v31  ;;  %v16291_v18 = vld [vmem:[#allocation8 + $0x190] sm:$0xff]   ;;  %15785 = vmatmul.mubr.msk.bf16.vlgmr.msra.gmra.mxu0 %vm273_vm0, %v21077_v55  ;;  %15817 = vmatpush3.bf16.msra.mxu1 %v20835_v60  ;;  %v16292_v37 = vld [vmem:[#allocation8 + $0x188] sm:$0xff]  }
 0x83f   : > { %9905 = vst.msk [vmem:[#allocation2 + $0x139] sm:$0xff] %vm273_vm0, %v9873_v46  ;;  %9906 = vst.msk [vmem:[#allocation2 + $0x141] sm:$0xff] %vm273_vm0, %v9874_v54  ;;  %15748 = vmatprep.mubr.msk.bf16.mxu1 %vm273_vm0, %v21079_v22  ;;  %v9976_v10 = vld [vmem:[#allocation2 + $0x49] sm:$0xff]  ;;  %v9977_v35 = vld [vmem:[#allocation2 + $0x51] sm:$0xff]  ;;  %15818 = vmatprep.subr.bf16.mxu1 %v16287_v51 }
 0x840   : > { %9907 = vst.msk [vmem:[#allocation2 + $0x151] sm:$0xff] %vm273_vm0, %v9875_v59  ;;  %9908 = vst.msk [vmem:[#allocation2 + $0x159] sm:$0xff] %vm273_vm0, %v9876_v61  ;;  %15788 = vmatprep.mubr.msk.bf16.mxu0 %vm273_vm0, %v21083_v29  ;;  %v9919_v9 = vld [vmem:[#allocation2 + $0x48] sm:$0xff]  ;;  %15857 = vmatpush3.bf16.msra.mxu0 %v20937_v63  ;;  %v9920_v38 = vld [vmem:[#allocation2 + $0x50] sm:$0xff]  ;;  %v21093_v25 = vpack.c.bf16 %v9977_v35, %v9976_v10 }
 0x841   : > { %9909 = vst.msk [vmem:[#allocation2 + $0x169] sm:$0xff] %vm273_vm0, %v9877_v33  ;;  %9911 = vst.msk [vmem:[#allocation2 + $0x181] sm:$0xff] %vm273_vm0, %v9879_v43  ;;  %v9978_v40 = vld [vmem:[#allocation2 + $0x61] sm:$0xff]  ;;  %v9979_v24 = vld [vmem:[#allocation2 + $0x69] sm:$0xff]  ;;  %15858 = vmatprep.subr.bf16.mxu0 %v16291_v18  ;;  %v21095_v52 = vpack.c.bf16 %v9920_v38, %v9919_v9 }
 0x842   : > { %9912 = vst.msk [vmem:[#allocation2 + $0x189] sm:$0xff] %vm273_vm0, %v9880_v30  ;;  %v9921_v58 = vld [vmem:[#allocation2 + $0x60] sm:$0xff]  ;;  %v9922_v47 = vld [vmem:[#allocation2 + $0x68] sm:$0xff]  ;;  %15819 = vmatpush3.bf16.msra.mxu1 %v16287_v51  ;;  %v21097_v60 = vpack.c.bf16 %v9979_v24, %v9978_v40  ;;  %v16289_v17 = vld [vmem:[#allocation8 + $0x160] sm:$0xff]  }
 0x843   : > { %15820 = vmatprep.subr.bf16.mxu1 %v16288_v4  ;;  %v21101_v63 = vpack.c.bf16 %v9922_v47, %v9921_v58  ;;  %v16293_v23 = vld [vmem:[#allocation8 + $0x180] sm:$0xff]   ;;  %v21109_v6 = vld [vmem:[#allocation8 + $0x1b8] sm:$0xff]   ;;  %v9980_v32 = vld [vmem:[#allocation2 + $0x79] sm:$0xff] }
 0x844   : > { %15859 = vmatpush3.bf16.msra.mxu0 %v16291_v18  ;;  %v21111_v21 = vld [vmem:[#allocation8 + $0x1d8] sm:$0xff]   ;;  %v9923_v39 = vld [vmem:[#allocation2 + $0x78] sm:$0xff]  ;;  %v9924_v7 = vld [vmem:[#allocation2 + $0x80] sm:$0xff] }
 0x845   : > { %15749 = vmatmul.mubr.msk.bf16.gmra.mxu1 %vm273_vm0, %v21093_v25  ;;  %15860 = vmatprep.subr.bf16.mxu0 %v16292_v37  ;;  %v9981_v26 = vld [vmem:[#allocation2 + $0x81] sm:$0xff]  ;;  %v9982_v41 = vld [vmem:[#allocation2 + $0x91] sm:$0xff]  ;;  %v9983_v34 = vld [vmem:[#allocation2 + $0x99] sm:$0xff]  ;;  %v21115_v49 = vpack.c.bf16 %v9924_v7, %v9923_v39 }
 0x846   : > { %15789 = vmatmul.mubr.msk.bf16.gmra.mxu0 %vm273_vm0, %v21095_v52  ;;  %15752 = vmatprep.mubr.msk.bf16.mxu1 %vm273_vm0, %v21097_v60  ;;  %v9925_v56 = vld [vmem:[#allocation2 + $0x90] sm:$0xff]  ;;  %v9926_v53 = vld [vmem:[#allocation2 + $0x98] sm:$0xff]  ;;  %v21113_v11 = vpack.c.bf16 %v9981_v26, %v9980_v32  ;;  %v21117_v48 = vpack.c.bf16 %v9983_v34, %v9982_v41  ;;  %v9927_v20 = vld [vmem:[#allocation2 + $0xa8] sm:$0xff] }
 0x847   : > { %15792 = vmatprep.mubr.msk.bf16.mxu0 %vm273_vm0, %v21101_v63  ;;  %15821 = vmatpush3.bf16.msra.mxu1 %v16288_v4  ;;  %v21122_v62 = vpack.c.bf16 %v9926_v53, %v9925_v56  ;;  %v9984_v15 = vld [vmem:[#allocation2 + $0xa9] sm:$0xff]  ;;  %v9985_v14 = vld [vmem:[#allocation2 + $0xb1] sm:$0xff]  ;;  %v9986_v42 = vld [vmem:[#allocation2 + $0xc1] sm:$0xff] }
 0x848   : > { %15822 = vmatprep.subr.bf16.mxu1 %v16289_v17  ;;  %15861 = vmatpush3.bf16.msra.mxu0 %v16292_v37  ;;  %v9928_v13 = vld [vmem:[#allocation2 + $0xb0] sm:$0xff]  ;;  %v9929_v8 = vld [vmem:[#allocation2 + $0xc0] sm:$0xff]  ;;  %v9930_v12 = vld [vmem:[#allocation2 + $0xc8] sm:$0xff]  ;;  %v21131_v28 = vpack.c.bf16 %v9985_v14, %v9984_v15 }
 0x849   : > { %15862 = vmatprep.subr.bf16.mxu0 %v16293_v23  ;;  %v9987_v50 = vld [vmem:[#allocation2 + $0xc9] sm:$0xff]  ;;  %v21133_v45 = vpack.c.bf16 %v9928_v13, %v9927_v20  ;;  %v21139_v5 = vpack.c.bf16 %v9930_v12, %v9929_v8  ;;  %v9988_v19 = vld [vmem:[#allocation2 + $0xd9] sm:$0xff]  ;;  %v9989_v46 = vld [vmem:[#allocation2 + $0xe1] sm:$0xff] }
 0x84a   : > { %v21135_v27 = vpack.c.bf16 %v9987_v50, %v9986_v42  ;;  %v9931_v54 = vld [vmem:[#allocation2 + $0xd8] sm:$0xff]  ;;  %v9932_v59 = vld [vmem:[#allocation2 + $0xe0] sm:$0xff]  ;;  %v9933_v43 = vld [vmem:[#allocation2 + $0xf0] sm:$0xff]  ;;  %v21147_v0 = vpack.c.bf16 %v9989_v46, %v9988_v19 }
 0x84b   : > { %15823 = vmatpush3.bf16.msra.mxu1 %v16289_v17  ;;  %v9990_v61 = vld [vmem:[#allocation2 + $0xf1] sm:$0xff]  ;;  %v9991_v33 = vld [vmem:[#allocation2 + $0xf9] sm:$0xff]  ;;  %v21149_v3 = vpack.c.bf16 %v9932_v59, %v9931_v54  ;;  %v9992_v2 = vld [vmem:[#allocation2 + $0x109] sm:$0xff] }
 0x84c   : > { %15863 = vmatpush3.bf16.msra.mxu0 %v16293_v23  ;;  %15896 = vmatprep.subr.bf16.mxu1 %v21109_v6  ;;  %v9934_v30 = vld [vmem:[#allocation2 + $0xf8] sm:$0xff]  ;;  %v21151_v1 = vpack.c.bf16 %v9991_v33, %v9990_v61  ;;  %v9935_v31 = vld [vmem:[#allocation2 + $0x108] sm:$0xff]  ;;  %v9936_v57 = vld [vmem:[#allocation2 + $0x110] sm:$0xff] }
 0x84d   : > { %15753 = vmatmul.mubr.msk.bf16.gmra.mxu1 %vm273_vm0, %v21113_v11  ;;  %15936 = vmatprep.subr.bf16.mxu0 %v21111_v21  ;;  %v21155_v16 = vpack.c.bf16 %v9934_v30, %v9933_v43  ;;  %v9993_v36 = vld [vmem:[#allocation2 + $0x111] sm:$0xff]  ;;  %v9994_v51 = vld [vmem:[#allocation2 + $0x121] sm:$0xff]  ;;  %v9995_v18 = vld [vmem:[#allocation2 + $0x129] sm:$0xff]  ;;  %v21165_v35 = vpack.c.bf16 %v9936_v57, %v9935_v31 }
 0x84e   : > { %15793 = vmatmul.mubr.msk.bf16.gmra.mxu0 %vm273_vm0, %v21115_v49  ;;  %15756 = vmatprep.mubr.msk.bf16.mxu1 %vm273_vm0, %v21117_v48  ;;  %v9937_v4 = vld [vmem:[#allocation2 + $0x120] sm:$0xff]  ;;  %v9938_v37 = vld [vmem:[#allocation2 + $0x128] sm:$0xff]  ;;  %v21163_v10 = vpack.c.bf16 %v9993_v36, %v9992_v2  ;;  %v21167_v9 = vpack.c.bf16 %v9995_v18, %v9994_v51  ;;  %v9939_v58 = vld [vmem:[#allocation2 + $0x138] sm:$0xff] }
 0x84f   : > { %15796 = vmatprep.mubr.msk.bf16.mxu0 %vm273_vm0, %v21122_v62  ;;  %v21171_v38 = vpack.c.bf16 %v9938_v37, %v9937_v4  ;;  %v9996_v40 = vld [vmem:[#allocation2 + $0x139] sm:$0xff]  ;;  %v9997_v24 = vld [vmem:[#allocation2 + $0x141] sm:$0xff]  ;;  %v9998_v17 = vld [vmem:[#allocation2 + $0x151] sm:$0xff] }
 0x850   : > { %v9940_v47 = vld [vmem:[#allocation2 + $0x140] sm:$0xff]  ;;  %v9941_v32 = vld [vmem:[#allocation2 + $0x150] sm:$0xff]  ;;  %v9942_v26 = vld [vmem:[#allocation2 + $0x158] sm:$0xff]  ;;  %v21179_v39 = vpack.c.bf16 %v9997_v24, %v9996_v40 }
 0x851   : > { %v9999_v23 = vld [vmem:[#allocation2 + $0x159] sm:$0xff]  ;;  %v21181_v7 = vpack.c.bf16 %v9940_v47, %v9939_v58  ;;  %v21187_v34 = vpack.c.bf16 %v9942_v26, %v9941_v32  ;;  %v10493_v56 = vld [vmem:[#allocation2 + $0x2] sm:$0xff]  ;;  %v10494_v53 = vld [vmem:[#allocation2 + $0xa] sm:$0xff] }
 0x852   : > { %v21183_v41 = vpack.c.bf16 %v9999_v23, %v9998_v17  ;;  %v10000_v15 = vld [vmem:[#allocation2 + $0x169] sm:$0xff]  ;;  %v10001_v14 = vld [vmem:[#allocation2 + $0x171] sm:$0xff]  ;;  %v10525_v42 = vpack.c.bf16 %v10494_v53, %v10493_v56  ;;  %v10495_v12 = vld [vmem:[#allocation2 + $0x1a] sm:$0xff] }
 0x853   : > { %v9943_v20 = vld [vmem:[#allocation2 + $0x168] sm:$0xff]  ;;  %v9944_v13 = vld [vmem:[#allocation2 + $0x170] sm:$0xff]  ;;  %v21195_v50 = vpack.c.bf16 %v10001_v14, %v10000_v15  ;;  %v10498_v54 = vld [vmem:[#allocation2 + $0x3a] sm:$0xff] }
 0x854   : > { %v21197_v8 = vpack.c.bf16 %v9944_v13, %v9943_v20  ;;  %v10496_v19 = vld [vmem:[#allocation2 + $0x22] sm:$0xff]  ;;  %v10497_v46 = vld [vmem:[#allocation2 + $0x32] sm:$0xff]  ;;  %v10502_v31 = vld [vmem:[#allocation2 + $0x6a] sm:$0xff] }
 0x855   : > { %15757 = vmatmul.mubr.msk.bf16.gmra.mxu1 %vm273_vm0, %v21131_v28  ;;  %v21206_v59 = vpack.c.bf16 %v10496_v19, %v10495_v12  ;;  %v21208_v61 = vpack.c.bf16 %v10498_v54, %v10497_v46  ;;  %v16295_v33 = vld [vmem:[#allocation8 + $0x1b0] sm:$0xff]   ;;  %v10500_v30 = vld [vmem:[#allocation2 + $0x52] sm:$0xff]  ;;  %v21232_v40 = vld [vmem:[#allocation8 + $0x1f8] sm:$0xff]  }
 0x856   : > { %15797 = vmatmul.mubr.msk.bf16.gmra.mxu0 %vm273_vm0, %v21133_v45  ;;  %15760 = vmatprep.mubr.msk.bf16.mxu1 %vm273_vm0, %v21135_v27  ;;  %v16299_v43 = vld [vmem:[#allocation8 + $0x1d0] sm:$0xff]   ;;  %v16296_v2 = vld [vmem:[#allocation8 + $0x1a8] sm:$0xff]   ;;  %v16297_v4 = vld [vmem:[#allocation8 + $0x1a0] sm:$0xff]  }
 0x857   : > { %15800 = vmatprep.mubr.msk.bf16.mxu0 %vm273_vm0, %v21139_v5  ;;  %v10501_v36 = vld [vmem:[#allocation2 + $0x62] sm:$0xff]  ;;  %v16300_v57 = vld [vmem:[#allocation8 + $0x1c8] sm:$0xff]   ;;  %v10507_v32 = vld [vmem:[#allocation2 + $0xaa] sm:$0xff] }
 0x858   : > { %v21222_v18 = vpack.c.bf16 %v10502_v31, %v10501_v36  ;;  %v10504_v37 = vld [vmem:[#allocation2 + $0x82] sm:$0xff]  ;;  %v10505_v24 = vld [vmem:[#allocation2 + $0x92] sm:$0xff]  ;;  %v10506_v58 = vld [vmem:[#allocation2 + $0x9a] sm:$0xff] }
 0x859   : > { %v21234_v47 = vld [vmem:[#allocation8 + $0x218] sm:$0xff]   ;;  %v21238_v23 = vpack.c.bf16 %v10506_v58, %v10505_v24  ;;  %v10508_v26 = vld [vmem:[#allocation2 + $0xb2] sm:$0xff]  ;;  %v10511_v20 = vld [vmem:[#allocation2 + $0xda] sm:$0xff] }
 0x85a   : > { %v10509_v56 = vld [vmem:[#allocation2 + $0xc2] sm:$0xff]  ;;  %v10510_v53 = vld [vmem:[#allocation2 + $0xca] sm:$0xff]  ;;  %v21250_v15 = vpack.c.bf16 %v10508_v26, %v10507_v32  ;;  %v10514_v12 = vld [vmem:[#allocation2 + $0xfa] sm:$0xff] }
 0x85b   : > { %v21252_v14 = vpack.c.bf16 %v10510_v53, %v10509_v56  ;;  %v10512_v13 = vld [vmem:[#allocation2 + $0xe2] sm:$0xff]  ;;  %v10516_v54 = vld [vmem:[#allocation2 + $0x112] sm:$0xff]  ;;  %v10522_v36 = vld [vmem:[#allocation2 + $0x15a] sm:$0xff] }
 0x85c   : > { %v21262_v19 = vpack.c.bf16 %v10512_v13, %v10511_v20  ;;  %v16305_v24 = vld [vmem:[#allocation8 + $0x1e0] sm:$0xff]  }
 0x85d   : > { %15761 = vmatmul.mubr.msk.bf16.gmra.mxu1 %vm273_vm0, %v21147_v0  ;;  %v12114_v13 = vld [vmem:[#allocation2 + $0xb1] sm:$0xff] }
 0x85e   : > { %15801 = vmatmul.mubr.msk.bf16.gmra.mxu0 %vm273_vm0, %v21149_v3  ;;  %15764 = vmatprep.mubr.msk.bf16.mxu1 %vm273_vm0, %v21151_v1 }
 0x85f   : > { %15804 = vmatprep.mubr.msk.bf16.mxu0 %vm273_vm0, %v21155_v16 }
 0x865   : > { %15765 = vmatmul.mubr.msk.bf16.gmra.mxu1 %vm273_vm0, %v21163_v10 }
 0x866   : > { %15805 = vmatmul.mubr.msk.bf16.gmra.mxu0 %vm273_vm0, %v21165_v35  ;;  %15768 = vmatprep.mubr.msk.bf16.mxu1 %vm273_vm0, %v21167_v9 }
 0x867   : > { %15808 = vmatprep.mubr.msk.bf16.mxu0 %vm273_vm0, %v21171_v38 }
 0x86d   : > { %15769 = vmatmul.mubr.msk.bf16.gmra.mxu1 %vm273_vm0, %v21179_v39 }
 0x86e   : > { %15809 = vmatmul.mubr.msk.bf16.gmra.mxu0 %vm273_vm0, %v21181_v7  ;;  %15772 = vmatprep.mubr.msk.bf16.mxu1 %vm273_vm0, %v21183_v41 }
 0x86f   : > { %15812 = vmatprep.mubr.msk.bf16.mxu0 %vm273_vm0, %v21187_v34 }
 0x875   : > { %15773 = vmatmul.mubr.msk.bf16.gmra.mxu1 %vm273_vm0, %v21195_v50 }
 0x876   : > { %15813 = vmatmul.mubr.msk.bf16.gmra.mxu0 %vm273_vm0, %v21197_v8  ;;  %15824 = vmatprep.mubr.msk.bf16.mxu1 %vm273_vm0, %v10525_v42  ;;  %v10513_v42 = vld [vmem:[#allocation2 + $0xf2] sm:$0xff] }
 0x877   : > { %15864 = vmatprep.mubr.msk.bf16.mxu0 %vm273_vm0, %v21077_v55  ;;  %v10499_v55 = vld [vmem:[#allocation2 + $0x4a] sm:$0xff]  ;;  %v21264_v46 = vpack.c.bf16 %v10514_v12, %v10513_v42  ;;  %v12115_v12 = vld [vmem:[#allocation2 + $0xc1] sm:$0xff] }
 0x878   : > { %v21220_v51 = vpack.c.bf16 %v10500_v30, %v10499_v55 }
 0x87d   : > { %15825 = vmatmul.mubr.msk.bf16.vlgmr.msra.gmra.mxu1 %vm273_vm0, %v21206_v59 }
 0x87e   : > { %15865 = vmatmul.mubr.msk.bf16.vlgmr.msra.gmra.mxu0 %vm273_vm0, %v21083_v29  ;;  %15828 = vmatprep.mubr.msk.bf16.mxu1 %vm273_vm0, %v21208_v61 }
 0x87f   : > { %15868 = vmatprep.mubr.msk.bf16.mxu0 %vm273_vm0, %v21095_v52  ;;  %15897 = vmatpush3.bf16.msra.mxu1 %v21109_v6  ;;  %v16301_v6 = vld [vmem:[#allocation8 + $0x1c0] sm:$0xff]  }
 0x880   : > { %15898 = vmatprep.subr.bf16.mxu1 %v16295_v33  ;;  %15937 = vmatpush3.bf16.msra.mxu0 %v21111_v21  ;;  %v10503_v21 = vld [vmem:[#allocation2 + $0x7a] sm:$0xff] }
 0x881   : > { %15938 = vmatprep.subr.bf16.mxu0 %v16299_v43  ;;  %v21236_v17 = vpack.c.bf16 %v10504_v37, %v10503_v21 }
 0x883   : > { %15899 = vmatpush3.bf16.msra.mxu1 %v16295_v33  ;;  %v10517_v33 = vld [vmem:[#allocation2 + $0x122] sm:$0xff] }
 0x884   : > { %15900 = vmatprep.subr.bf16.mxu1 %v16296_v2  ;;  %15939 = vmatpush3.bf16.msra.mxu0 %v16299_v43  ;;  %v10518_v43 = vld [vmem:[#allocation2 + $0x12a] sm:$0xff] }
 0x885   : > { %15829 = vmatmul.mubr.msk.bf16.gmra.mxu1 %vm273_vm0, %v21220_v51  ;;  %15940 = vmatprep.subr.bf16.mxu0 %v16300_v57  ;;  %v21276_v30 = vpack.c.bf16 %v10518_v43, %v10517_v33 }
 0x886   : > { %15869 = vmatmul.mubr.msk.bf16.gmra.mxu0 %vm273_vm0, %v21101_v63  ;;  %15832 = vmatprep.mubr.msk.bf16.mxu1 %vm273_vm0, %v21222_v18 }
 0x887   : > { %15872 = vmatprep.mubr.msk.bf16.mxu0 %vm273_vm0, %v21115_v49  ;;  %15901 = vmatpush3.bf16.msra.mxu1 %v16296_v2  ;;  %v10521_v2 = vld [vmem:[#allocation2 + $0x152] sm:$0xff] }
 0x888   : > { %15902 = vmatprep.subr.bf16.mxu1 %v16297_v4  ;;  %15941 = vmatpush3.bf16.msra.mxu0 %v16300_v57  ;;  %v10539_v57 = vpack.c.bf16 %v10522_v36, %v10521_v2  ;;  %v11796_v2 = vld [vmem:[#allocation2 + $0xe0] sm:$0xff] }
 0x889   : > { %15942 = vmatprep.subr.bf16.mxu0 %v16301_v6  ;;  %v12117_v36 = vld [vmem:[#allocation2 + $0xd9] sm:$0xff] }
 0x88b   : > { %15903 = vmatpush3.bf16.msra.mxu1 %v16297_v4  ;;  %v10524_v4 = vld [vmem:[#allocation2 + $0x172] sm:$0xff] }
 0x88c   : > { %15943 = vmatpush3.bf16.msra.mxu0 %v16301_v6  ;;  %15976 = vmatprep.subr.bf16.mxu1 %v21232_v40  ;;  %v10845_v6 = vld [vmem:[#allocation2 + $0x180] sm:$0xff] }
 0x88d   : > { %15833 = vmatmul.mubr.msk.bf16.gmra.mxu1 %vm273_vm0, %v21236_v17  ;;  %16016 = vmatprep.subr.bf16.mxu0 %v21234_v47 }
 0x88e   : > { %15873 = vmatmul.mubr.msk.bf16.gmra.mxu0 %vm273_vm0, %v21122_v62  ;;  %15836 = vmatprep.mubr.msk.bf16.mxu1 %vm273_vm0, %v21238_v23 }
 0x88f   : > { %15876 = vmatprep.mubr.msk.bf16.mxu0 %vm273_vm0, %v21133_v45 }
 0x895   : > { %15837 = vmatmul.mubr.msk.bf16.gmra.mxu1 %vm273_vm0, %v21250_v15 }
 0x896   : > { %15877 = vmatmul.mubr.msk.bf16.gmra.mxu0 %vm273_vm0, %v21139_v5  ;;  %15840 = vmatprep.mubr.msk.bf16.mxu1 %vm273_vm0, %v21252_v14 }
 0x897   : > { %15880 = vmatprep.mubr.msk.bf16.mxu0 %vm273_vm0, %v21149_v3  ;;  %v10515_v3 = vld [vmem:[#allocation2 + $0x10a] sm:$0xff] }
 0x898   : > { %v21274_v55 = vpack.c.bf16 %v10516_v54, %v10515_v3 }
 0x89d   : > { %15841 = vmatmul.mubr.msk.bf16.gmra.mxu1 %vm273_vm0, %v21262_v19 }
 0x89e   : > { %15881 = vmatmul.mubr.msk.bf16.gmra.mxu0 %vm273_vm0, %v21155_v16  ;;  %15844 = vmatprep.mubr.msk.bf16.mxu1 %vm273_vm0, %v21264_v46  ;;  %v10519_v16 = vld [vmem:[#allocation2 + $0x13a] sm:$0xff] }
 0x89f   : > { %15884 = vmatprep.mubr.msk.bf16.mxu0 %vm273_vm0, %v21165_v35  ;;  %v10520_v35 = vld [vmem:[#allocation2 + $0x142] sm:$0xff] }
 0x8a0   : > { %v10538_v31 = vpack.c.bf16 %v10520_v35, %v10519_v16  ;;  %v11795_v35 = vld [vmem:[#allocation2 + $0xd8] sm:$0xff] }
 0x8a5   : > { %15845 = vmatmul.mubr.msk.bf16.gmra.mxu1 %vm273_vm0, %v21274_v55 }
 0x8a6   : > { %15885 = vmatmul.mubr.msk.bf16.gmra.mxu0 %vm273_vm0, %v21171_v38  ;;  %15848 = vmatprep.mubr.msk.bf16.mxu1 %vm273_vm0, %v21276_v30  ;;  %v10523_v38 = vld [vmem:[#allocation2 + $0x16a] sm:$0xff] }
 0x8a7   : > { %15888 = vmatprep.mubr.msk.bf16.mxu0 %vm273_vm0, %v21181_v7  ;;  %v10846_v7 = vld [vmem:[#allocation2 + $0x188] sm:$0xff]  ;;  %v10540_v21 = vpack.c.bf16 %v10524_v4, %v10523_v38  ;;  %v11797_v38 = vld [vmem:[#allocation2 + $0xf0] sm:$0xff]  ;;  %v11798_v4 = vld [vmem:[#allocation2 + $0xf8] sm:$0xff] }
 0x8a8   : > { %v21292_v37 = vpack.c.bf16 %v10846_v7, %v10845_v6  ;;  %v12119_v7 = vld [vmem:[#allocation2 + $0xf1] sm:$0xff] }
 0x8ad   : > { %15849 = vmatmul.mubr.msk.bf16.gmra.mxu1 %vm273_vm0, %v10538_v31 }
 0x8ae   : > { %15889 = vmatmul.mubr.msk.bf16.gmra.mxu0 %vm273_vm0, %v21187_v34  ;;  %15852 = vmatprep.mubr.msk.bf16.mxu1 %vm273_vm0, %v10539_v57  ;;  %v16303_v34 = vld [vmem:[#allocation8 + $0x1f0] sm:$0xff]  }
 0x8af   : > { %15892 = vmatprep.mubr.msk.bf16.mxu0 %vm273_vm0, %v21197_v8  ;;  %v16307_v8 = vld [vmem:[#allocation8 + $0x210] sm:$0xff]  }
 0x8b5   : > { %15853 = vmatmul.mubr.msk.bf16.gmra.mxu1 %vm273_vm0, %v10540_v21 }
 0x8b6   : > { %15893 = vmatmul.mubr.msk.bf16.gmra.mxu0 %vm273_vm0, %v21292_v37  ;;  %15904 = vmatprep.mubr.msk.bf16.mxu1 %vm273_vm0, %v21075_v44  ;;  %v16304_v44 = vld [vmem:[#allocation8 + $0x1e8] sm:$0xff]  }
 0x8b7   : > { %15944 = vmatprep.mubr.msk.bf16.mxu0 %vm273_vm0, %v21206_v59  ;;  %v16308_v59 = vld [vmem:[#allocation8 + $0x208] sm:$0xff]  }
 0x8bd   : > { %15905 = vmatmul.mubr.msk.bf16.vlgmr.msra.gmra.mxu1 %vm273_vm0, %v21079_v22 }
 0x8be   : > { %15945 = vmatmul.mubr.msk.bf16.vlgmr.msra.gmra.mxu0 %vm273_vm0, %v21208_v61  ;;  %15908 = vmatprep.mubr.msk.bf16.mxu1 %vm273_vm0, %v21093_v25  ;;  %v16309_v61 = vld [vmem:[#allocation8 + $0x200] sm:$0xff]  }
 0x8bf   : > { %15948 = vmatprep.mubr.msk.bf16.mxu0 %vm273_vm0, %v21220_v51  ;;  %15977 = vmatpush3.bf16.msra.mxu1 %v21232_v40  ;;  %v16310_v51 = vld [vmem:[#allocation8 + $0x238] sm:$0xff]   ;;  %v16312_v40 = vld [vmem:[#allocation8 + $0x228] sm:$0xff]  }
 0x8c0   : > { %15978 = vmatprep.subr.bf16.mxu1 %v16303_v34  ;;  %16017 = vmatpush3.bf16.msra.mxu0 %v21234_v47 }
 0x8c1   : > { %16018 = vmatprep.subr.bf16.mxu0 %v16307_v8 }
 0x8c3   : > { %15979 = vmatpush3.bf16.msra.mxu1 %v16303_v34 }
 0x8c4   : > { %15980 = vmatprep.subr.bf16.mxu1 %v16304_v44  ;;  %16019 = vmatpush3.bf16.msra.mxu0 %v16307_v8  ;;  %v11820_v8 = vpack.c.bf16 %v11796_v2, %v11795_v35  ;;  %v12126_v2 = vld [vmem:[#allocation2 + $0x141] sm:$0xff] }
 0x8c5   : > { %15909 = vmatmul.mubr.msk.bf16.gmra.mxu1 %vm273_vm0, %v21097_v60  ;;  %16020 = vmatprep.subr.bf16.mxu0 %v16308_v59 }
 0x8c6   : > { %15949 = vmatmul.mubr.msk.bf16.gmra.mxu0 %vm273_vm0, %v21222_v18  ;;  %15912 = vmatprep.mubr.msk.bf16.mxu1 %vm273_vm0, %v21113_v11 }
 0x8c7   : > { %15952 = vmatprep.mubr.msk.bf16.mxu0 %vm273_vm0, %v21236_v17  ;;  %15981 = vmatpush3.bf16.msra.mxu1 %v16304_v44 }
 0x8c8   : > { %15982 = vmatprep.subr.bf16.mxu1 %v16305_v24  ;;  %16021 = vmatpush3.bf16.msra.mxu0 %v16308_v59 }
 0x8c9   : > { %16022 = vmatprep.subr.bf16.mxu0 %v16309_v61 }
 0x8cb   : > { %15983 = vmatpush3.bf16.msra.mxu1 %v16305_v24  ;;  %v11821_v24 = vpack.c.bf16 %v11798_v4, %v11797_v38  ;;  %v12127_v38 = vld [vmem:[#allocation2 + $0x151] sm:$0xff]  ;;  %v12128_v4 = vld [vmem:[#allocation2 + $0x159] sm:$0xff] }
 0x8cc   : > { %16023 = vmatpush3.bf16.msra.mxu0 %v16309_v61  ;;  %16056 = vmatprep.subr.bf16.mxu1 %v16310_v51 }
 0x8cd   : > { %15913 = vmatmul.mubr.msk.bf16.gmra.mxu1 %vm273_vm0, %v21117_v48 }
 0x8ce   : > { %15953 = vmatmul.mubr.msk.bf16.gmra.mxu0 %vm273_vm0, %v21238_v23  ;;  %15916 = vmatprep.mubr.msk.bf16.mxu1 %vm273_vm0, %v21131_v28  ;;  %v11167_v28 = vld [vmem:[#allocation2 + $0x181] sm:$0xff] }
 0x8cf   : > { %15956 = vmatprep.mubr.msk.bf16.mxu0 %vm273_vm0, %v21250_v15 }
 0x8d5   : > { %15917 = vmatmul.mubr.msk.bf16.gmra.mxu1 %vm273_vm0, %v21135_v27  ;;  %v11168_v27 = vld [vmem:[#allocation2 + $0x189] sm:$0xff] }
 0x8d6   : > { %15957 = vmatmul.mubr.msk.bf16.gmra.mxu0 %vm273_vm0, %v21252_v14  ;;  %15920 = vmatprep.mubr.msk.bf16.mxu1 %vm273_vm0, %v21147_v0  ;;  %v11489_v0 = vld [vmem:[#allocation2 + $0x182] sm:$0xff] }
 0x8d7   : > { %15960 = vmatprep.mubr.msk.bf16.mxu0 %vm273_vm0, %v21262_v19 }
 0x8dd   : > { %15921 = vmatmul.mubr.msk.bf16.gmra.mxu1 %vm273_vm0, %v21151_v1  ;;  %v11490_v1 = vld [vmem:[#allocation2 + $0x18a] sm:$0xff] }
 0x8de   : > { %15961 = vmatmul.mubr.msk.bf16.gmra.mxu0 %vm273_vm0, %v21264_v46  ;;  %15924 = vmatprep.mubr.msk.bf16.mxu1 %vm273_vm0, %v21163_v10  ;;  %v21356_v10 = vpack.c.bf16 %v11168_v27, %v11167_v28 }
 0x8df   : > { %15964 = vmatprep.mubr.msk.bf16.mxu0 %vm273_vm0, %v21274_v55 }
 0x8e5   : > { %15925 = vmatmul.mubr.msk.bf16.gmra.mxu1 %vm273_vm0, %v21167_v9  ;;  %v21358_v9 = vpack.c.bf16 %v11490_v1, %v11489_v0 }
 0x8e6   : > { %15965 = vmatmul.mubr.msk.bf16.gmra.mxu0 %vm273_vm0, %v21276_v30  ;;  %15928 = vmatprep.mubr.msk.bf16.mxu1 %vm273_vm0, %v21179_v39  ;;  %v16311_v39 = vld [vmem:[#allocation8 + $0x230] sm:$0xff]  }
 0x8e7   : > { %15968 = vmatprep.mubr.msk.bf16.mxu0 %vm273_vm0, %v10538_v31 }
 0x8ed   : > { %15929 = vmatmul.mubr.msk.bf16.gmra.mxu1 %vm273_vm0, %v21183_v41 }
 0x8ee   : > { %15969 = vmatmul.mubr.msk.bf16.gmra.mxu0 %vm273_vm0, %v10539_v57  ;;  %15932 = vmatprep.mubr.msk.bf16.mxu1 %vm273_vm0, %v21195_v50 }
 0x8ef   : > { %15972 = vmatprep.mubr.msk.bf16.mxu0 %vm273_vm0, %v10540_v21  ;;  %v12120_v21 = vld [vmem:[#allocation2 + $0xf9] sm:$0xff] }
 0x8f0   : > { %v12143_v28 = vpack.c.bf16 %v12120_v21, %v12119_v7 }
 0x8f5   : > { %15933 = vmatmul.mubr.msk.bf16.gmra.mxu1 %vm273_vm0, %v21356_v10 }
 0x8f6   : > { %15973 = vmatmul.mubr.msk.bf16.gmra.mxu0 %vm273_vm0, %v21358_v9  ;;  %15984 = vmatprep.mubr.msk.bf16.mxu1 %vm273_vm0, %v21083_v29 }
 0x8f7   : > { %16024 = vmatprep.mubr.msk.bf16.mxu0 %vm273_vm0, %v21079_v22 }
 0x8fd   : > { %v15746_v41 = vpop.f32.mrf.mxu1  ;;  %15985 = vmatmul.mubr.msk.bf16.vlgmr.msra.gmra.mxu1 %vm273_vm0, %v21095_v52 }
 0x8fe   : > { %v15786_v50 = vpop.f32.mrf.mxu0  ;;  %16025 = vmatmul.mubr.msk.bf16.vlgmr.msra.gmra.mxu0 %vm273_vm0, %v21093_v25  ;;  %15988 = vmatprep.mubr.msk.bf16.mxu1 %vm273_vm0, %v21101_v63  ;;  %v16313_v63 = vld [vmem:[#allocation8 + $0x220] sm:$0xff]  }
 0x8ff   : > { %v21374_v18 = vadd.f32 %v15786_v50, %v15746_v41  ;;  %16028 = vmatprep.mubr.msk.bf16.mxu0 %vm273_vm0, %v21097_v60  ;;  %16057 = vmatpush3.bf16.msra.mxu1 %v16310_v51  ;;  %v10133_v29 = vpop.f32.mrf.mxu1  ;;  %v11799_v41 = vld [vmem:[#allocation2 + $0x108] sm:$0xff]  ;;  %v11800_v50 = vld [vmem:[#allocation2 + $0x110] sm:$0xff] }
 0x900   : > { %v10366_v22 = vpop.f32.mrf.mxu0  ;;  %16058 = vmatprep.subr.bf16.mxu1 %v16311_v39 }
 0x901   : > { %v21378_v58 = vadd.f32 %v10366_v22, %v10133_v29  ;;  %v15747_v52 = vpop.f32.mrf.mxu1  ;;  %v12121_v29 = vld [vmem:[#allocation2 + $0x109] sm:$0xff] }
 0x902   : > { %v15787_v47 = vpop.f32.mrf.mxu0 }
 0x903   : > { %v21380_v17 = vadd.f32 %v15787_v47, %v15747_v52  ;;  %v10136_v25 = vpop.f32.mrf.mxu1  ;;  %16059 = vmatpush3.bf16.msra.mxu1 %v16311_v39  ;;  %v12122_v52 = vld [vmem:[#allocation2 + $0x111] sm:$0xff]  ;;  %v11801_v47 = vld [vmem:[#allocation2 + $0x120] sm:$0xff] }
 0x904   : > { %v10369_v23 = vpop.f32.mrf.mxu0  ;;  %16060 = vmatprep.subr.bf16.mxu1 %v16312_v40 }
 0x905   : > { %v21382_v32 = vadd.f32 %v10369_v23, %v10136_v25  ;;  %v15750_v26 = vpop.f32.mrf.mxu1  ;;  %15989 = vmatmul.mubr.msk.bf16.gmra.mxu1 %vm273_vm0, %v21115_v49  ;;  %v12113_v49 = vld [vmem:[#allocation2 + $0xa9] sm:$0xff] }
 0x906   : > { %v15790_v60 = vpop.f32.mrf.mxu0  ;;  %16029 = vmatmul.mubr.msk.bf16.gmra.mxu0 %vm273_vm0, %v21113_v11  ;;  %15992 = vmatprep.mubr.msk.bf16.mxu1 %vm273_vm0, %v21122_v62  ;;  %v12116_v11 = vld [vmem:[#allocation2 + $0xc9] sm:$0xff]  ;;  %v12140_v3 = vpack.c.bf16 %v12114_v13, %v12113_v49  ;;  %v12144_v49 = vpack.c.bf16 %v12122_v52, %v12121_v29 }
 0x907   : > { %v21390_v56 = vadd.f32 %v15790_v60, %v15750_v26  ;;  %16032 = vmatprep.mubr.msk.bf16.mxu0 %vm273_vm0, %v21117_v48  ;;  %v10149_v53 = vpop.f32.mrf.mxu1  ;;  %16061 = vmatpush3.bf16.msra.mxu1 %v16312_v40  ;;  %v12141_v33 = vpack.c.bf16 %v12116_v11, %v12115_v12  ;;  %v11802_v25 = vld [vmem:[#allocation2 + $0x128] sm:$0xff] }
 0x908   : > { %v10382_v15 = vpop.f32.mrf.mxu0  ;;  %16062 = vmatprep.subr.bf16.mxu1 %v16313_v63  ;;  %v12124_v26 = vld [vmem:[#allocation2 + $0x129] sm:$0xff]  ;;  %v11823_v13 = vpack.c.bf16 %v11802_v25, %v11801_v47  ;;  %v12130_v47 = vld [vmem:[#allocation2 + $0x171] sm:$0xff] }
 0x909   : > { %v21394_v14 = vadd.f32 %v10382_v15, %v10149_v53  ;;  %v15751_v20 = vpop.f32.mrf.mxu1  ;;  %v11822_v15 = vpack.c.bf16 %v11800_v50, %v11799_v41  ;;  %v11807_v41 = vld [vmem:[#allocation2 + $0x168] sm:$0xff]  ;;  %v11808_v50 = vld [vmem:[#allocation2 + $0x170] sm:$0xff] }
 0x90a   : > { %v15791_v42 = vpop.f32.mrf.mxu0  ;;  %v12129_v52 = vld [vmem:[#allocation2 + $0x169] sm:$0xff] }
 0x90b   : > { %v21396_v19 = vadd.f32 %v15791_v42, %v15751_v20  ;;  %v10152_v62 = vpop.f32.mrf.mxu1  ;;  %16063 = vmatpush3.bf16.msra.mxu1 %v16313_v63  ;;  %v12123_v63 = vld [vmem:[#allocation2 + $0x121] sm:$0xff] }
 0x90c   : > { %v10385_v46 = vpop.f32.mrf.mxu0  ;;  %v12145_v11 = vpack.c.bf16 %v12124_v26, %v12123_v63  ;;  %v11826_v26 = vpack.c.bf16 %v11808_v50, %v11807_v41  ;;  %v12429_v50 = vld [vmem:[#allocation2 + $0x62] sm:$0xff] }
 0x90d   : > { %v21398_v54 = vadd.f32 %v10385_v46, %v10152_v62  ;;  %v15754_v48 = vpop.f32.mrf.mxu1  ;;  %15993 = vmatmul.mubr.msk.bf16.gmra.mxu1 %vm273_vm0, %v21133_v45  ;;  %v12118_v45 = vld [vmem:[#allocation2 + $0xe1] sm:$0xff] }
 0x90e   : > { %v15794_v43 = vpop.f32.mrf.mxu0  ;;  %16033 = vmatmul.mubr.msk.bf16.gmra.mxu0 %vm273_vm0, %v12140_v3  ;;  %15996 = vmatprep.mubr.msk.bf16.mxu1 %vm273_vm0, %v21139_v5  ;;  %v12142_v59 = vpack.c.bf16 %v12118_v45, %v12117_v36  ;;  %v11805_v36 = vld [vmem:[#allocation2 + $0x150] sm:$0xff] }
 0x90f   : > { %v21405_v55 = vadd.f32 %v15794_v43, %v15754_v48  ;;  %16036 = vmatprep.mubr.msk.bf16.mxu0 %vm273_vm0, %v12141_v33  ;;  %v10165_v30 = vpop.f32.mrf.mxu1  ;;  %v11803_v33 = vld [vmem:[#allocation2 + $0x138] sm:$0xff]  ;;  %v11804_v43 = vld [vmem:[#allocation2 + $0x140] sm:$0xff] }
 0x910   : > { %v10398_v16 = vpop.f32.mrf.mxu0  ;;  %v11824_v21 = vpack.c.bf16 %v11804_v43, %v11803_v33  ;;  %v12134_v33 = vld [vmem:[#allocation2 + $0x1a1] sm:$0xff] }
 0x911   : > { %v21408_v31 = vadd.f32 %v10398_v16, %v10165_v30  ;;  %v15755_v57 = vpop.f32.mrf.mxu1  ;;  %v12125_v30 = vld [vmem:[#allocation2 + $0x139] sm:$0xff] }
 0x912   : > { %v15795_v6 = vpop.f32.mrf.mxu0 }
 0x913   : > { %v21410_v34 = vadd.f32 %v15795_v6, %v15755_v57  ;;  %v10168_v5 = vpop.f32.mrf.mxu1  ;;  %v11806_v57 = vld [vmem:[#allocation2 + $0x158] sm:$0xff] }
 0x914   : > { %v10401_v44 = vpop.f32.mrf.mxu0 }
 0x915   : > { %v21412_v61 = vadd.f32 %v10401_v44, %v10168_v5  ;;  %v15758_v51 = vpop.f32.mrf.mxu1  ;;  %15997 = vmatmul.mubr.msk.bf16.gmra.mxu1 %vm273_vm0, %v11820_v8  ;;  %v12146_v8 = vpack.c.bf16 %v12126_v2, %v12125_v30  ;;  %v11825_v44 = vpack.c.bf16 %v11806_v57, %v11805_v36  ;;  %v12425_v36 = vld [vmem:[#allocation2 + $0x32] sm:$0xff]  ;;  %v12426_v57 = vld [vmem:[#allocation2 + $0x3a] sm:$0xff] }
 0x916   : > { %v15798_v27 = vpop.f32.mrf.mxu0  ;;  %16037 = vmatmul.mubr.msk.bf16.gmra.mxu0 %vm273_vm0, %v12142_v59  ;;  %16000 = vmatprep.mubr.msk.bf16.mxu1 %vm273_vm0, %v11821_v24 }
 0x917   : > { %v21417_v0 = vadd.f32 %v15798_v27, %v15758_v51  ;;  %16040 = vmatprep.mubr.msk.bf16.mxu0 %vm273_vm0, %v12143_v28  ;;  %v10181_v1 = vpop.f32.mrf.mxu1  ;;  %v12147_v51 = vpack.c.bf16 %v12128_v4, %v12127_v38 }
 0x918   : > { %v10414_v39 = vpop.f32.mrf.mxu0 }
 0x919   : > { %v21420_v22 = vadd.f32 %v10414_v39, %v10181_v1  ;;  %v15759_v40 = vpop.f32.mrf.mxu1 }
 0x91a   : > { %v15799_v23 = vpop.f32.mrf.mxu0 }
 0x91b   : > { %v21422_v60 = vadd.f32 %v15799_v23, %v15759_v40  ;;  %v10184_v53 = vpop.f32.mrf.mxu1 }
 0x91c   : > { %v10417_v20 = vpop.f32.mrf.mxu0 }
 0x91d   : > { %v21424_v42 = vadd.f32 %v10417_v20, %v10184_v53  ;;  %v15762_v12 = vpop.f32.mrf.mxu1  ;;  %16001 = vmatmul.mubr.msk.bf16.gmra.mxu1 %vm273_vm0, %v11822_v15  ;;  %v12148_v15 = vpack.c.bf16 %v12130_v47, %v12129_v52 }
 0x91e   : > { %v15802_v62 = vpop.f32.mrf.mxu0  ;;  %16041 = vmatmul.mubr.msk.bf16.gmra.mxu0 %vm273_vm0, %v12144_v49  ;;  %16004 = vmatprep.mubr.msk.bf16.mxu1 %vm273_vm0, %v11823_v13 }
 0x91f   : > { %v21429_v46 = vadd.f32 %v15802_v62, %v15762_v12  ;;  %16044 = vmatprep.mubr.msk.bf16.mxu0 %vm273_vm0, %v12145_v11  ;;  %v10197_v3 = vpop.f32.mrf.mxu1  ;;  %v11811_v12 = vld [vmem:[#allocation2 + $0x198] sm:$0xff]  ;;  %v11812_v11 = vld [vmem:[#allocation2 + $0x1a0] sm:$0xff] }
 0x920   : > { %v10430_v48 = vpop.f32.mrf.mxu0  ;;  %v11828_v2 = vpack.c.bf16 %v11812_v11, %v11811_v12 }
 0x921   : > { %v21432_v16 = vadd.f32 %v10430_v48, %v10197_v3  ;;  %v15763_v35 = vpop.f32.mrf.mxu1  ;;  %v12133_v48 = vld [vmem:[#allocation2 + $0x199] sm:$0xff] }
 0x922   : > { %v15803_v45 = vpop.f32.mrf.mxu0  ;;  %v12150_v38 = vpack.c.bf16 %v12134_v33, %v12133_v48 }
 0x923   : > { %v21434_v6 = vadd.f32 %v15803_v45, %v15763_v35  ;;  %v10200_v7 = vpop.f32.mrf.mxu1 }
 0x924   : > { %v10433_v5 = vpop.f32.mrf.mxu0 }
 0x925   : > { %v21436_v59 = vadd.f32 %v10433_v5, %v10200_v7  ;;  %v15766_v24 = vpop.f32.mrf.mxu1  ;;  %16005 = vmatmul.mubr.msk.bf16.gmra.mxu1 %vm273_vm0, %v11824_v21  ;;  %v12457_v21 = vpack.c.bf16 %v12426_v57, %v12425_v36  ;;  %v12433_v36 = vld [vmem:[#allocation2 + $0x92] sm:$0xff]  ;;  %v12434_v57 = vld [vmem:[#allocation2 + $0x9a] sm:$0xff] }
 0x926   : > { %v15806_v28 = vpop.f32.mrf.mxu0  ;;  %16045 = vmatmul.mubr.msk.bf16.gmra.mxu0 %vm273_vm0, %v12146_v8  ;;  %16008 = vmatprep.mubr.msk.bf16.mxu1 %vm273_vm0, %v11825_v44 }
 0x927   : > { %v21441_v27 = vadd.f32 %v15806_v28, %v15766_v24  ;;  %16048 = vmatprep.mubr.msk.bf16.mxu0 %vm273_vm0, %v12147_v51  ;;  %v10213_v1 = vpop.f32.mrf.mxu1  ;;  %v12427_v28 = vld [vmem:[#allocation2 + $0x4a] sm:$0xff] }
 0x928   : > { %v10446_v39 = vpop.f32.mrf.mxu0 }
 0x929   : > { %v21444_v29 = vadd.f32 %v10446_v39, %v10213_v1  ;;  %v15767_v40 = vpop.f32.mrf.mxu1  ;;  %v12428_v1 = vld [vmem:[#allocation2 + $0x52] sm:$0xff] }
 0x92a   : > { %v15807_v25 = vpop.f32.mrf.mxu0 }
 0x92b   : > { %v21446_v23 = vadd.f32 %v15807_v25, %v15767_v40  ;;  %v10216_v63 = vpop.f32.mrf.mxu1  ;;  %v12430_v40 = vld [vmem:[#allocation2 + $0x6a] sm:$0xff] }
 0x92c   : > { %v10449_v53 = vpop.f32.mrf.mxu0 }
 0x92d   : > { %v21448_v20 = vadd.f32 %v10449_v53, %v10216_v63  ;;  %v15770_v49 = vpop.f32.mrf.mxu1  ;;  %16009 = vmatmul.mubr.msk.bf16.gmra.mxu1 %vm273_vm0, %v11826_v26  ;;  %v12458_v63 = vpack.c.bf16 %v12428_v1, %v12427_v28  ;;  %v12459_v53 = vpack.c.bf16 %v12430_v40, %v12429_v50 }
 0x92e   : > { %v15810_v13 = vpop.f32.mrf.mxu0  ;;  %16049 = vmatmul.mubr.msk.bf16.gmra.mxu0 %vm273_vm0, %v12148_v15  ;;  %16012 = vmatprep.mubr.msk.bf16.mxu1 %vm273_vm0, %v21292_v37 }
 0x92f   : > { %v21454_v62 = vadd.f32 %v15810_v13, %v15770_v49  ;;  %16052 = vmatprep.mubr.msk.bf16.mxu0 %vm273_vm0, %v21356_v10  ;;  %v10229_v3 = vpop.f32.mrf.mxu1 }
 0x930   : > { %v10462_v43 = vpop.f32.mrf.mxu0 }
 0x931   : > { %v21458_v30 = vadd.f32 %v10462_v43, %v10229_v3  ;;  %v15771_v35 = vpop.f32.mrf.mxu1  ;;  %v12431_v43 = vld [vmem:[#allocation2 + $0x7a] sm:$0xff] }
 0x932   : > { %v15811_v45 = vpop.f32.mrf.mxu0 }
 0x933   : > { %v21460_v37 = vadd.f32 %v15811_v45, %v15771_v35  ;;  %v10232_v4 = vpop.f32.mrf.mxu1  ;;  %v12432_v35 = vld [vmem:[#allocation2 + $0x82] sm:$0xff] }
 0x934   : > { %v10465_v7 = vpop.f32.mrf.mxu0 }
 0x935   : > { %v21462_v5 = vadd.f32 %v10465_v7, %v10232_v4  ;;  %v15774_v10 = vpop.f32.mrf.mxu1  ;;  %16013 = vmatmul.mubr.msk.bf16.gmra.mxu1 %vm273_vm0, %v11828_v2  ;;  %v12460_v7 = vpack.c.bf16 %v12432_v35, %v12431_v43 }
 0x936   : > { %v15814_v8 = vpop.f32.mrf.mxu0  ;;  %16064 = vmatprep.mubr.msk.bf16.mxu1 %vm273_vm0, %v12457_v21  ;;  %16053 = vmatmul.mubr.msk.bf16.gmra.mxu0 %vm273_vm0, %v12150_v38 }
 0x937   : > { %v21467_v44 = vadd.f32 %v15814_v8, %v15774_v10  ;;  %v10245_v24 = vpop.f32.mrf.mxu1 }
 0x938   : > { %v10478_v51 = vpop.f32.mrf.mxu0 }
 0x939   : > { %v21469_v39 = vadd.f32 %v10478_v51, %v10245_v24  ;;  %v15775_v41 = vpop.f32.mrf.mxu1  ;;  %v12461_v24 = vpack.c.bf16 %v12434_v57, %v12433_v36 }
 0x93a   : > { %v15815_v52 = vpop.f32.mrf.mxu0 }
 0x93b   : > { %v21471_v47 = vadd.f32 %v15815_v52, %v15775_v41  ;;  %v10248_v25 = vpop.f32.mrf.mxu1  ;;  %v12435_v52 = vld [vmem:[#allocation2 + $0xaa] sm:$0xff] }
 0x93c   : > { %v10481_v26 = vpop.f32.mrf.mxu0 }
 0x93d   : > { %v21473_v15 = vadd.f32 %v10481_v26, %v10248_v25  ;;  %v15826_v49 = vpop.f32.mrf.mxu1  ;;  %16065 = vmatmul.mubr.msk.bf16.vlgmr.msra.gmra.mxu1 %vm273_vm0, %v12458_v63  ;;  %v12437_v63 = vld [vmem:[#allocation2 + $0xc2] sm:$0xff]  ;;  %v12438_v26 = vld [vmem:[#allocation2 + $0xca] sm:$0xff] }
 0x93e   : > { %v10785_v13 = vadd.f32 %v15826_v49, %v21374_v18  ;;  %v15866_v12 = vpop.f32.mrf.mxu0  ;;  %16068 = vmatprep.mubr.msk.bf16.mxu1 %vm273_vm0, %v12459_v53  ;;  %v12463_v43 = vpack.c.bf16 %v12438_v26, %v12437_v63 }
 0x93f   : > { %v10656_v11 = vpop.f32.mrf.mxu1 }
 0x940   : > { %v21478_v3 = vadd.f32 %v15866_v12, %v10785_v13  ;;  %v10783_v48 = vadd.f32 %v10656_v11, %v21378_v58  ;;  %v10978_v33 = vpop.f32.mrf.mxu0 }
 0x941   : > { %v15827_v2 = vpop.f32.mrf.mxu1 }
 0x942   : > { %v21481_v45 = vadd.f32 %v10978_v33, %v10783_v48  ;;  %v10786_v38 = vadd.f32 %v15827_v2, %v21380_v17  ;;  %v15867_v4 = vpop.f32.mrf.mxu0 }
 0x943   : > { %v10659_v18 = vpop.f32.mrf.mxu1 }
 0x944   : > { %v21484_v21 = vadd.f32 %v15867_v4, %v10786_v38  ;;  %v10784_v10 = vadd.f32 %v10659_v18, %v21382_v32  ;;  %v10981_v8 = vpop.f32.mrf.mxu0  ;;  %v12436_v32 = vld [vmem:[#allocation2 + $0xb2] sm:$0xff]  ;;  %v12439_v18 = vld [vmem:[#allocation2 + $0xda] sm:$0xff] }
 0x945   : > { %v15830_v58 = vpop.f32.mrf.mxu1  ;;  %16069 = vmatmul.mubr.msk.bf16.gmra.mxu1 %vm273_vm0, %v12460_v7  ;;  %v12462_v12 = vpack.c.bf16 %v12436_v32, %v12435_v52 }
 0x946   : > { %v21488_v51 = vadd.f32 %v10981_v8, %v10784_v10  ;;  %v10789_v28 = vadd.f32 %v15830_v58, %v21390_v56  ;;  %v15870_v1 = vpop.f32.mrf.mxu0  ;;  %16072 = vmatprep.mubr.msk.bf16.mxu1 %vm273_vm0, %v12461_v24  ;;  %v12441_v10 = vld [vmem:[#allocation2 + $0xf2] sm:$0xff]  ;;  %v12442_v8 = vld [vmem:[#allocation2 + $0xfa] sm:$0xff] }
 0x947   : > { %v10672_v17 = vpop.f32.mrf.mxu1  ;;  %v12465_v52 = vpack.c.bf16 %v12442_v8, %v12441_v10 }
 0x948   : > { %v21492_v41 = vadd.f32 %v15870_v1, %v10789_v28  ;;  %v10787_v50 = vadd.f32 %v10672_v17, %v21394_v14  ;;  %v10994_v40 = vpop.f32.mrf.mxu0 }
 0x949   : > { %v15831_v25 = vpop.f32.mrf.mxu1 }
 0x94a   : > { %v21495_v53 = vadd.f32 %v10994_v40, %v10787_v50  ;;  %v10790_v49 = vadd.f32 %v15831_v25, %v21396_v19  ;;  %v15871_v13 = vpop.f32.mrf.mxu0 }
 0x94b   : > { %v10675_v56 = vpop.f32.mrf.mxu1 }
 0x94c   : > { %v21498_v11 = vadd.f32 %v15871_v13, %v10790_v49  ;;  %v10788_v48 = vadd.f32 %v10675_v56, %v21398_v54  ;;  %v10997_v33 = vpop.f32.mrf.mxu0  ;;  %v12440_v54 = vld [vmem:[#allocation2 + $0xe2] sm:$0xff]  ;;  %v12443_v56 = vld [vmem:[#allocation2 + $0x10a] sm:$0xff] }
 0x94d   : > { %v15834_v14 = vpop.f32.mrf.mxu1  ;;  %16073 = vmatmul.mubr.msk.bf16.gmra.mxu1 %vm273_vm0, %v12462_v12  ;;  %v12464_v1 = vpack.c.bf16 %v12440_v54, %v12439_v18 }
 0x94e   : > { %v21502_v35 = vadd.f32 %v10997_v33, %v10788_v48  ;;  %v10793_v2 = vadd.f32 %v15834_v14, %v21405_v55  ;;  %v15874_v36 = vpop.f32.mrf.mxu0  ;;  %16076 = vmatprep.mubr.msk.bf16.mxu1 %vm273_vm0, %v12463_v43  ;;  %v12445_v48 = vld [vmem:[#allocation2 + $0x122] sm:$0xff]  ;;  %v12446_v33 = vld [vmem:[#allocation2 + $0x12a] sm:$0xff] }
 0x94f   : > { %v10688_v19 = vpop.f32.mrf.mxu1  ;;  %v12467_v18 = vpack.c.bf16 %v12446_v33, %v12445_v48 }
 0x950   : > { %v21506_v57 = vadd.f32 %v15874_v36, %v10793_v2  ;;  %v10791_v38 = vadd.f32 %v10688_v19, %v21408_v31  ;;  %v11010_v4 = vpop.f32.mrf.mxu0 }
 0x951   : > { %v15835_v7 = vpop.f32.mrf.mxu1 }
 0x952   : > { %v21509_v24 = vadd.f32 %v11010_v4, %v10791_v38  ;;  %v10794_v58 = vadd.f32 %v15835_v7, %v21410_v34  ;;  %v15875_v28 = vpop.f32.mrf.mxu0 }
 0x953   : > { %v10691_v55 = vpop.f32.mrf.mxu1 }
 0x954   : > { %v21512_v17 = vadd.f32 %v15875_v28, %v10794_v58  ;;  %v10792_v50 = vadd.f32 %v10691_v55, %v21412_v61  ;;  %v11013_v40 = vpop.f32.mrf.mxu0  ;;  %v12444_v61 = vld [vmem:[#allocation2 + $0x112] sm:$0xff]  ;;  %v12447_v55 = vld [vmem:[#allocation2 + $0x13a] sm:$0xff] }
 0x955   : > { %v15838_v31 = vpop.f32.mrf.mxu1  ;;  %16077 = vmatmul.mubr.msk.bf16.gmra.mxu1 %vm273_vm0, %v12464_v1  ;;  %v12466_v36 = vpack.c.bf16 %v12444_v61, %v12443_v56 }
 0x956   : > { %v21516_v32 = vadd.f32 %v11013_v40, %v10792_v50  ;;  %v10797_v25 = vadd.f32 %v15838_v31, %v21417_v0  ;;  %v15878_v63 = vpop.f32.mrf.mxu0  ;;  %16080 = vmatprep.mubr.msk.bf16.mxu1 %vm273_vm0, %v12465_v52  ;;  %v12449_v50 = vld [vmem:[#allocation2 + $0x152] sm:$0xff]  ;;  %v12450_v40 = vld [vmem:[#allocation2 + $0x15a] sm:$0xff] }
 0x957   : > { %v10704_v34 = vpop.f32.mrf.mxu1  ;;  %v12469_v56 = vpack.c.bf16 %v12450_v40, %v12449_v50 }
 0x958   : > { %v21520_v26 = vadd.f32 %v15878_v63, %v10797_v25  ;;  %v10795_v49 = vadd.f32 %v10704_v34, %v21420_v22  ;;  %v11026_v13 = vpop.f32.mrf.mxu0 }
 0x959   : > { %v15839_v12 = vpop.f32.mrf.mxu1 }
 0x95a   : > { %v21523_v43 = vadd.f32 %v11026_v13, %v10795_v49  ;;  %v10798_v14 = vadd.f32 %v15839_v12, %v21422_v60  ;;  %v15879_v2 = vpop.f32.mrf.mxu0 }
 0x95b   : > { %v10707_v0 = vpop.f32.mrf.mxu1 }
 0x95c   : > { %v21526_v19 = vadd.f32 %v15879_v2, %v10798_v14  ;;  %v10796_v38 = vadd.f32 %v10707_v0, %v21424_v42  ;;  %v11029_v4 = vpop.f32.mrf.mxu0  ;;  %v12448_v42 = vld [vmem:[#allocation2 + $0x142] sm:$0xff]  ;;  %v12451_v0 = vld [vmem:[#allocation2 + $0x16a] sm:$0xff] }
 0x95d   : > { %v15842_v22 = vpop.f32.mrf.mxu1  ;;  %16081 = vmatmul.mubr.msk.bf16.gmra.mxu1 %vm273_vm0, %v12466_v36  ;;  %v12468_v63 = vpack.c.bf16 %v12448_v42, %v12447_v55  ;;  %v12456_v42 = vld [vmem:[#allocation2 + $0x1a2] sm:$0xff] }
 0x95e   : > { %v21530_v54 = vadd.f32 %v11029_v4, %v10796_v38  ;;  %v10801_v7 = vadd.f32 %v15842_v22, %v21429_v46  ;;  %v15882_v10 = vpop.f32.mrf.mxu0  ;;  %16084 = vmatprep.mubr.msk.bf16.mxu1 %vm273_vm0, %v12467_v18 }
 0x95f   : > { %v10720_v60 = vpop.f32.mrf.mxu1 }
 0x960   : > { %v21534_v8 = vadd.f32 %v15882_v10, %v10801_v7  ;;  %v10799_v58 = vadd.f32 %v10720_v60, %v21432_v16  ;;  %v11042_v28 = vpop.f32.mrf.mxu0 }
 0x961   : > { %v15843_v1 = vpop.f32.mrf.mxu1 }
 0x962   : > { %v21537_v52 = vadd.f32 %v11042_v28, %v10799_v58  ;;  %v10802_v31 = vadd.f32 %v15843_v1, %v21434_v6  ;;  %v15883_v25 = vpop.f32.mrf.mxu0 }
 0x963   : > { %v10723_v46 = vpop.f32.mrf.mxu1 }
 0x964   : > { %v21540_v34 = vadd.f32 %v15883_v25, %v10802_v31  ;;  %v10800_v49 = vadd.f32 %v10723_v46, %v21436_v59  ;;  %v11045_v13 = vpop.f32.mrf.mxu0  ;;  %v12452_v59 = vld [vmem:[#allocation2 + $0x172] sm:$0xff] }
 0x965   : > { %v15846_v16 = vpop.f32.mrf.mxu1  ;;  %16085 = vmatmul.mubr.msk.bf16.gmra.mxu1 %vm273_vm0, %v12468_v63  ;;  %v12470_v7 = vpack.c.bf16 %v12452_v59, %v12451_v0 }
 0x966   : > { %v21544_v61 = vadd.f32 %v11045_v13, %v10800_v49  ;;  %v10805_v12 = vadd.f32 %v15846_v16, %v21441_v27  ;;  %v15886_v48 = vpop.f32.mrf.mxu0  ;;  %16088 = vmatprep.mubr.msk.bf16.mxu1 %vm273_vm0, %v12469_v56 }
 0x967   : > { %v10736_v6 = vpop.f32.mrf.mxu1 }
 0x968   : > { %v21548_v33 = vadd.f32 %v15886_v48, %v10805_v12  ;;  %v10803_v14 = vadd.f32 %v10736_v6, %v21444_v29  ;;  %v11058_v2 = vpop.f32.mrf.mxu0 }
 0x969   : > { %v15847_v36 = vpop.f32.mrf.mxu1 }
 0x96a   : > { %v21551_v38 = vadd.f32 %v11058_v2, %v10803_v14  ;;  %v10806_v4 = vadd.f32 %v15847_v36, %v21446_v23  ;;  %v15887_v18 = vpop.f32.mrf.mxu0  ;;  %v12455_v23 = vld [vmem:[#allocation2 + $0x19a] sm:$0xff] }
 0x96b   : > { %v10739_v22 = vpop.f32.mrf.mxu1  ;;  %v12472_v25 = vpack.c.bf16 %v12456_v42, %v12455_v23 }
 0x96c   : > { %v21554_v27 = vadd.f32 %v15887_v18, %v10806_v4  ;;  %v10804_v10 = vadd.f32 %v10739_v22, %v21448_v20  ;;  %v11061_v60 = vpop.f32.mrf.mxu0 }
 0x96d   : > { %v15850_v58 = vpop.f32.mrf.mxu1  ;;  %16089 = vmatmul.mubr.msk.bf16.gmra.mxu1 %vm273_vm0, %v12470_v7 }
 0x96e   : > { %v21558_v29 = vadd.f32 %v11061_v60, %v10804_v10  ;;  %v10809_v28 = vadd.f32 %v15850_v58, %v21454_v62  ;;  %v15890_v55 = vpop.f32.mrf.mxu0  ;;  %16092 = vmatprep.mubr.msk.bf16.mxu1 %vm273_vm0, %v21358_v9 }
 0x96f   : > { %v10752_v1 = vpop.f32.mrf.mxu1 }
 0x970   : > { %v21563_v50 = vadd.f32 %v15890_v55, %v10809_v28  ;;  %v10807_v40 = vadd.f32 %v10752_v1, %v21458_v30  ;;  %v11074_v20 = vpop.f32.mrf.mxu0 }
 0x971   : > { %v15851_v31 = vpop.f32.mrf.mxu1 }
 0x972   : > { %v21566_v46 = vadd.f32 %v11074_v20, %v10807_v40  ;;  %v10810_v63 = vadd.f32 %v15851_v31, %v21460_v37  ;;  %v15891_v49 = vpop.f32.mrf.mxu0 }
 0x973   : > { %v10755_v62 = vpop.f32.mrf.mxu1 }
 0x974   : > { %v21569_v13 = vadd.f32 %v15891_v49, %v10810_v63  ;;  %v10808_v9 = vadd.f32 %v10755_v62, %v21462_v5  ;;  %v11077_v56 = vpop.f32.mrf.mxu0 }
 0x975   : > { %v15854_v16 = vpop.f32.mrf.mxu1  ;;  %16093 = vmatmul.mubr.msk.bf16.gmra.mxu1 %vm273_vm0, %v12472_v25 }
 0x976   : > { %v21573_v12 = vadd.f32 %v11077_v56, %v10808_v9  ;;  %v10813_v30 = vadd.f32 %v15854_v16, %v21467_v44  ;;  %v15894_v48 = vpop.f32.mrf.mxu0 }
 0x977   : > { %v10768_v6 = vpop.f32.mrf.mxu1 }
 0x978   : > { %v21576_v14 = vadd.f32 %v15894_v48, %v10813_v30  ;;  %v10811_v37 = vadd.f32 %v10768_v6, %v21469_v39  ;;  %v11090_v2 = vpop.f32.mrf.mxu0 }
 0x979   : > { %v15855_v0 = vpop.f32.mrf.mxu1 }
 0x97a   : > { %v21579_v59 = vadd.f32 %v11090_v2, %v10811_v37  ;;  %v10814_v5 = vadd.f32 %v15855_v0, %v21471_v47  ;;  %v15895_v36 = vpop.f32.mrf.mxu0 }
 0x97b   : > { %v10771_v4 = vpop.f32.mrf.mxu1 }
 0x97c   : > { %v21582_v18 = vadd.f32 %v15895_v36, %v10814_v5  ;;  %v10812_v22 = vadd.f32 %v10771_v4, %v21473_v15  ;;  %v11093_v7 = vpop.f32.mrf.mxu0 }
 0x97d   : > { %v15906_v44 = vpop.f32.mrf.mxu1 }
 0x97e   : > { %v21585_v10 = vadd.f32 %v11093_v7, %v10812_v22  ;;  %v11429_v60 = vadd.f32 %v15906_v44, %v21478_v3  ;;  %v15946_v58 = vpop.f32.mrf.mxu0 }
 0x97f   : > { %v11300_v39 = vpop.f32.mrf.mxu1 }
 0x980   : > { %v21588_v28 = vadd.f32 %v15946_v58, %v11429_v60  ;;  %v11427_v55 = vadd.f32 %v11300_v39, %v21481_v45  ;;  %v11622_v23 = vpop.f32.mrf.mxu0 }
 0x981   : > { %v15907_v47 = vpop.f32.mrf.mxu1 }
 0x982   : > { %v21591_v42 = vadd.f32 %v11622_v23, %v11427_v55  ;;  %v11430_v1 = vadd.f32 %v15907_v47, %v21484_v21  ;;  %v15947_v40 = vpop.f32.mrf.mxu0 }
 0x983   : > { %v11303_v15 = vpop.f32.mrf.mxu1 }
 0x984   : > { %v21594_v20 = vadd.f32 %v15947_v40, %v11430_v1  ;;  %v21597_v31 = vadd.f32 %v11303_v15, %v21488_v51  ;;  %v21599_v3 = vpop.f32.mrf.mxu0 }
 0x985   : > { %v15910_v25 = vpop.f32.mrf.mxu1 }
 0x986   : > { %v11433_v63 = vadd.f32 %v15910_v25, %v21492_v41  ;;  %v15950_v49 = vpop.f32.mrf.mxu0 }
 0x987   : > { %v11316_v45 = vpop.f32.mrf.mxu1 }
 0x988   : > { %v21602_v62 = vadd.f32 %v15950_v49, %v11433_v63  ;;  %v21605_v9 = vadd.f32 %v11316_v45, %v21495_v53  ;;  %v21607_v21 = vpop.f32.mrf.mxu0 }
 0x989   : > { %v15911_v56 = vpop.f32.mrf.mxu1 }
 0x98a   : > { %v11434_v16 = vadd.f32 %v15911_v56, %v21498_v11  ;;  %v15951_v30 = vpop.f32.mrf.mxu0 }
 0x98b   : > { %v11319_v51 = vpop.f32.mrf.mxu1 }
 0x98c   : > { %v21610_v48 = vadd.f32 %v15951_v30, %v11434_v16  ;;  %v21613_v6 = vadd.f32 %v11319_v51, %v21502_v35  ;;  %v21615_v41 = vpop.f32.mrf.mxu0 }
 0x98d   : > { %v15914_v37 = vpop.f32.mrf.mxu1 }
 0x98e   : > { %v11437_v2 = vadd.f32 %v15914_v37, %v21506_v57  ;;  %v15954_v0 = vpop.f32.mrf.mxu0 }
 0x98f   : > { %v11332_v53 = vpop.f32.mrf.mxu1 }
 0x990   : > { %v21618_v5 = vadd.f32 %v15954_v0, %v11437_v2  ;;  %v21621_v36 = vadd.f32 %v11332_v53, %v21509_v24  ;;  %v21623_v11 = vpop.f32.mrf.mxu0 }
 0x991   : > { %v15915_v4 = vpop.f32.mrf.mxu1 }
 0x992   : > { %v11438_v22 = vadd.f32 %v15915_v4, %v21512_v17  ;;  %v15955_v7 = vpop.f32.mrf.mxu0 }
 0x993   : > { %v11335_v35 = vpop.f32.mrf.mxu1 }
 0x994   : > { %v21626_v44 = vadd.f32 %v15955_v7, %v11438_v22  ;;  %v21629_v60 = vadd.f32 %v11335_v35, %v21516_v32  ;;  %v21631_v57 = vpop.f32.mrf.mxu0 }
 0x995   : > { %v15918_v58 = vpop.f32.mrf.mxu1 }
 0x996   : > { %v11441_v39 = vadd.f32 %v15918_v58, %v21520_v26  ;;  %v15958_v55 = vpop.f32.mrf.mxu0 }
 0x997   : > { %v11348_v24 = vpop.f32.mrf.mxu1 }
 0x998   : > { %v21634_v23 = vadd.f32 %v15958_v55, %v11441_v39  ;;  %v21637_v47 = vadd.f32 %v11348_v24, %v21523_v43  ;;  %v21639_v17 = vpop.f32.mrf.mxu0 }
 0x999   : > { %v15919_v1 = vpop.f32.mrf.mxu1 }
 0x99a   : > { %v11442_v40 = vadd.f32 %v15919_v1, %v21526_v19  ;;  %v15959_v15 = vpop.f32.mrf.mxu0 }
 0x99b   : > { %v11351_v32 = vpop.f32.mrf.mxu1 }
 0x99c   : > { %v21642_v25 = vadd.f32 %v15959_v15, %v11442_v40  ;;  %v21645_v63 = vadd.f32 %v11351_v32, %v21530_v54  ;;  %v21647_v26 = vpop.f32.mrf.mxu0 }
 0x99d   : > { %v15922_v49 = vpop.f32.mrf.mxu1 }
 0x99e   : > { %v11445_v45 = vadd.f32 %v15922_v49, %v21534_v8  ;;  %v15962_v56 = vpop.f32.mrf.mxu0 }
 0x99f   : > { %v11364_v43 = vpop.f32.mrf.mxu1 }
 0x9a0   : > { %v21650_v16 = vadd.f32 %v15962_v56, %v11445_v45  ;;  %v21653_v30 = vadd.f32 %v11364_v43, %v21537_v52  ;;  %v21655_v19 = vpop.f32.mrf.mxu0 }
 0x9a1   : > { %v15923_v51 = vpop.f32.mrf.mxu1 }
 0x9a2   : > { %v11446_v37 = vadd.f32 %v15923_v51, %v21540_v34  ;;  %v15963_v2 = vpop.f32.mrf.mxu0 }
 0x9a3   : > { %v11367_v54 = vpop.f32.mrf.mxu1 }
 0x9a4   : > { %v21658_v0 = vadd.f32 %v15963_v2, %v11446_v37  ;;  %v21661_v53 = vadd.f32 %v11367_v54, %v21544_v61  ;;  %v21663_v8 = vpop.f32.mrf.mxu0 }
 0x9a5   : > { %v15926_v4 = vpop.f32.mrf.mxu1 }
 0x9a6   : > { %v11449_v22 = vadd.f32 %v15926_v4, %v21548_v33  ;;  %v15966_v7 = vpop.f32.mrf.mxu0 }
 0x9a7   : > { %v11380_v52 = vpop.f32.mrf.mxu1 }
 0x9a8   : > { %v21666_v35 = vadd.f32 %v15966_v7, %v11449_v22  ;;  %v21669_v58 = vadd.f32 %v11380_v52, %v21551_v38  ;;  %v21671_v34 = vpop.f32.mrf.mxu0 }
 0x9a9   : > { %22903 = vst [vmem:[#allocation50_spill] sm:$0xff] %v21671_v34  ;;  %v15927_v39 = vpop.f32.mrf.mxu1 }
 0x9aa   : > { %22902 = vst [vmem:[#allocation28_spill] sm:$0xff] %v21669_v58  ;;  %v11450_v55 = vadd.f32 %v15927_v39, %v21554_v27  ;;  %v15967_v24 = vpop.f32.mrf.mxu0 }
 0x9ab   : > { %v11383_v61 = vpop.f32.mrf.mxu1 }
 0x9ac   : > { %v21674_v1 = vadd.f32 %v15967_v24, %v11450_v55  ;;  %v21677_v40 = vadd.f32 %v11383_v61, %v21558_v29  ;;  %v21679_v33 = vpop.f32.mrf.mxu0 }
 0x9ad   : > { %22905 = vst [vmem:[#allocation30_spill] sm:$0xff] %v21679_v33  ;;  %v15930_v15 = vpop.f32.mrf.mxu1 }
 0x9ae   : > { %22904 = vst [vmem:[#allocation80_spill] sm:$0xff] %v21677_v40  ;;  %v11453_v32 = vadd.f32 %v15930_v15, %v21563_v50  ;;  %v15970_v49 = vpop.f32.mrf.mxu0 }
 0x9af   : > { %v11396_v38 = vpop.f32.mrf.mxu1 }
 0x9b0   : > { %v21682_v45 = vadd.f32 %v15970_v49, %v11453_v32  ;;  %v21685_v56 = vadd.f32 %v11396_v38, %v21566_v46  ;;  %v21687_v27 = vpop.f32.mrf.mxu0 }
 0x9b1   : > { %22907 = vst [vmem:[#allocation57_spill] sm:$0xff] %v21687_v27  ;;  %v15931_v43 = vpop.f32.mrf.mxu1 }
 0x9b2   : > { %22906 = vst [vmem:[#allocation84_spill] sm:$0xff] %v21685_v56  ;;  %v11454_v51 = vadd.f32 %v15931_v43, %v21569_v13  ;;  %v15971_v37 = vpop.f32.mrf.mxu0 }
 0x9b3   : > { %v11399_v29 = vpop.f32.mrf.mxu1 }
 0x9b4   : > { %v21690_v2 = vadd.f32 %v15971_v37, %v11454_v51  ;;  %v21693_v54 = vadd.f32 %v11399_v29, %v21573_v12  ;;  %v21695_v50 = vpop.f32.mrf.mxu0 }
 0x9b5   : > { %22909 = vst [vmem:[#allocation42_spill] sm:$0xff] %v21695_v50  ;;  %v15934_v4 = vpop.f32.mrf.mxu1 }
 0x9b6   : > { %22908 = vst [vmem:[#allocation91_spill] sm:$0xff] %v21693_v54  ;;  %v11457_v22 = vadd.f32 %v15934_v4, %v21576_v14  ;;  %v15974_v7 = vpop.f32.mrf.mxu0 }
 0x9b7   : > { %v11412_v46 = vpop.f32.mrf.mxu1 }
 0x9b8   : > { %v21698_v52 = vadd.f32 %v15974_v7, %v11457_v22  ;;  %v21701_v39 = vadd.f32 %v11412_v46, %v21579_v59  ;;  %v21703_v13 = vpop.f32.mrf.mxu0 }
 0x9b9   : > { %22911 = vst [vmem:[#allocation27_spill] sm:$0xff] %v21703_v13  ;;  %v15935_v55 = vpop.f32.mrf.mxu1 }
 0x9ba   : > { %22910 = vst [vmem:[#allocation13_spill] sm:$0xff] %v21701_v39  ;;  %v11458_v24 = vadd.f32 %v15935_v55, %v21582_v18  ;;  %v15975_v61 = vpop.f32.mrf.mxu0 }
 0x9bb   : > { %v11415_v12 = vpop.f32.mrf.mxu1 }
 0x9bc   : > { %v21706_v15 = vadd.f32 %v15975_v61, %v11458_v24  ;;  %v21709_v32 = vadd.f32 %v11415_v12, %v21585_v10  ;;  %v21711_v14 = vpop.f32.mrf.mxu0 }
 0x9bd   : > { %22913 = vst [vmem:[#allocation29_spill] sm:$0xff] %v21711_v14  ;;  %v15986_v49 = vpop.f32.mrf.mxu1 }
 0x9be   : > { %22912 = vst [vmem:[#allocation74_spill] sm:$0xff] %v21709_v32  ;;  %v21714_v38 = vadd.f32 %v15986_v49, %v21588_v28  ;;  %v21716_v59 = vpop.f32.mrf.mxu0 }
 0x9bf   : > { %v11944_v43 = vpop.f32.mrf.mxu1 }
 0x9c0   : > { %v21719_v51 = vadd.f32 %v11944_v43, %v21591_v42  ;;  %v21721_v18 = vpop.f32.mrf.mxu0 }
 0x9c1   : > { %v15987_v37 = vpop.f32.mrf.mxu1 }
 0x9c2   : > { %v21724_v29 = vadd.f32 %v15987_v37, %v21594_v20  ;;  %v21726_v4 = vpop.f32.mrf.mxu0 }
 0x9c3   : > { %v11947_v10 = vpop.f32.mrf.mxu1 }
 0x9c4   : > { %v21733_v46 = vpop.f32.mrf.mxu0 }
 0x9c5   : > { %v15990_v22 = vpop.f32.mrf.mxu1 }
 0x9c6   : > { %v21729_v7 = vadd.f32 %v15990_v22, %v21602_v62  ;;  %v21740_v61 = vpop.f32.mrf.mxu0 }
 0x9c7   : > { %v21731_v28 = vpop.f32.mrf.mxu1 }
 0x9c8   : > { %v21747_v62 = vpop.f32.mrf.mxu0 }
 0x9c9   : > { %v15991_v55 = vpop.f32.mrf.mxu1 }
 0x9ca   : > { %v21736_v42 = vadd.f32 %v15991_v55, %v21610_v48  ;;  %v21754_v48 = vpop.f32.mrf.mxu0 }
 0x9cb   : > { %v21738_v24 = vpop.f32.mrf.mxu1 }
 0x9cd   : > { %v15994_v20 = vpop.f32.mrf.mxu1 }
 0x9ce   : > { %v21743_v12 = vadd.f32 %v15994_v20, %v21618_v5  ;;  %v21761_v5 = vpop.f32.mrf.mxu0 }
 0x9cf   : > { %v21745_v49 = vpop.f32.mrf.mxu1 }
 0x9d1   : > { %v15995_v43 = vpop.f32.mrf.mxu1 }
 0x9d2   : > { %v21750_v37 = vadd.f32 %v15995_v43, %v21626_v44  ;;  %v21768_v44 = vpop.f32.mrf.mxu0 }
 0x9d3   : > { %v21752_v22 = vpop.f32.mrf.mxu1 }
 0x9d5   : > { %v15998_v55 = vpop.f32.mrf.mxu1 }
 0x9d6   : > { %v21757_v14 = vadd.f32 %v15998_v55, %v21634_v23  ;;  %v21775_v23 = vpop.f32.mrf.mxu0 }
 0x9d7   : > { %v21759_v32 = vpop.f32.mrf.mxu1 }
 0x9d9   : > { %v15999_v20 = vpop.f32.mrf.mxu1 }
 0x9da   : > { %v21764_v13 = vadd.f32 %v15999_v20, %v21642_v25  ;;  %v21782_v25 = vpop.f32.mrf.mxu0 }
 0x9db   : > { %v21766_v39 = vpop.f32.mrf.mxu1 }
 0x9dd   : > { %v16002_v43 = vpop.f32.mrf.mxu1 }
 0x9de   : > { %v21771_v50 = vadd.f32 %v16002_v43, %v21650_v16  ;;  %v21789_v16 = vpop.f32.mrf.mxu0 }
 0x9df   : > { %v21773_v54 = vpop.f32.mrf.mxu1 }
 0x9e0   : > { %22914 = vst [vmem:[#allocation32_spill] sm:$0xff] %v21771_v50 }
 0x9e1   : > { %v16003_v55 = vpop.f32.mrf.mxu1 }
 0x9e2   : > { %v21778_v27 = vadd.f32 %v16003_v55, %v21658_v0  ;;  %v21796_v0 = vpop.f32.mrf.mxu0 }
 0x9e3   : > { %v21780_v56 = vpop.f32.mrf.mxu1 }
 0x9e4   : > { %22915 = vst [vmem:[#allocation14_spill] sm:$0xff] %v21778_v27 }
 0x9e5   : > { %v16006_v20 = vpop.f32.mrf.mxu1 }
 0x9e6   : > { %v21785_v33 = vadd.f32 %v16006_v20, %v21666_v35  ;;  %v21803_v35 = vpop.f32.mrf.mxu0 }
 0x9e7   : > { %v21787_v40 = vpop.f32.mrf.mxu1 }
 0x9e8   : > { %22916 = vst [vmem:[#allocation55_spill] sm:$0xff] %v21785_v33  ;;  %22917 = vst [vmem:[#allocation34_spill] sm:$0xff] %v21787_v40 }
 0x9e9   : > { %v16007_v43 = vpop.f32.mrf.mxu1 }
 0x9ea   : > { %v21792_v50 = vadd.f32 %v16007_v43, %v21674_v1  ;;  %v21810_v1 = vpop.f32.mrf.mxu0 }
 0x9eb   : > { %v21794_v34 = vpop.f32.mrf.mxu1 }
 0x9ec   : > { %22918 = vst [vmem:[#allocation77_spill] sm:$0xff] %v21792_v50  ;;  %22919 = vst [vmem:[#allocation71_spill] sm:$0xff] %v21794_v34 }
 0x9ed   : > { %v16010_v55 = vpop.f32.mrf.mxu1 }
 0x9ee   : > { %v21799_v27 = vadd.f32 %v16010_v55, %v21682_v45  ;;  %v21817_v45 = vpop.f32.mrf.mxu0 }
 0x9ef   : > { %v21801_v58 = vpop.f32.mrf.mxu1 }
 0x9f0   : > { %22920 = vst [vmem:[#allocation15_spill] sm:$0xff] %v21799_v27  ;;  %22921 = vst [vmem:[#allocation16_spill] sm:$0xff] %v21801_v58 }
 0x9f1   : > { %v16011_v20 = vpop.f32.mrf.mxu1 }
 0x9f2   : > { %v21806_v33 = vadd.f32 %v16011_v20, %v21690_v2  ;;  %v11750_v2 = vadd.f32 %v21599_v3, %v21597_v31  ;;  %v21826_v20 = vpop.f32.mrf.mxu0  ;;  %v12396_v31 = vadd.f32 %v21726_v4, %v21724_v29 }
 0x9f3   : > { %v21808_v40 = vpop.f32.mrf.mxu1 }
 0x9f4   : > { %22922 = vst [vmem:[#allocation17_spill] sm:$0xff] %v21806_v33  ;;  %22923 = vst [vmem:[#allocation31_spill] sm:$0xff] %v21808_v40 }
 0x9f5   : > { %v16014_v43 = vpop.f32.mrf.mxu1 }
 0x9f6   : > { %v21813_v50 = vadd.f32 %v16014_v43, %v21698_v52  ;;  %v12393_v52 = vadd.f32 %v21721_v18, %v21719_v51  ;;  %v12072_v43 = vadd.f32 %v11947_v10, %v11750_v2  ;;  %v21843_v18 = vld [vmem:[%s22443_s4 + $0x1] ss:$0 sm:$0xff]  ;;  %v12400_v2 = vadd.f32 %v21754_v48, %v21736_v42 }
 0x9f7   : > { %v21815_v34 = vpop.f32.mrf.mxu1  ;;  %v11758_v42 = vadd.f32 %v21631_v57, %v21629_v60  ;;  %v11761_v57 = vadd.f32 %v21639_v17, %v21637_v47 }
 0x9f8   : > { %22924 = vst [vmem:[#allocation86_spill] sm:$0xff] %v21813_v50  ;;  %22925 = vst [vmem:[#allocation33_spill] sm:$0xff] %v21815_v34  ;;  %v11753_v34 = vadd.f32 %v21607_v21, %v21605_v9  ;;  %v12394_v3 = vadd.f32 %v21733_v46, %v12072_v43  ;;  %v11754_v21 = vadd.f32 %v21615_v41, %v21613_v6 }
 0x9f9   : > { %v16015_v55 = vpop.f32.mrf.mxu1  ;;  %v11757_v6 = vadd.f32 %v21623_v11, %v21621_v36  ;;  %v12399_v41 = vadd.f32 %v21740_v61, %v21729_v7 }
 0x9fa   : > { %v21820_v27 = vadd.f32 %v16015_v55, %v21706_v15  ;;  %v12395_v15 = vadd.f32 %v21716_v59, %v21714_v38  ;;  %v12075_v40 = vadd.f32 %v21731_v28, %v11753_v34 }
 0x9fb   : > { %v21822_v58 = vpop.f32.mrf.mxu1 }
 0x9fc   : > { %22926 = vst [vmem:[#allocation36_spill] sm:$0xff] %v21820_v27  ;;  %22927 = vst [vmem:[#allocation18_spill] sm:$0xff] %v21822_v58  ;;  %v21834_v27 = vpop.f32.mrf.mxu0  ;;  %v12397_v34 = vadd.f32 %v21747_v62, %v12075_v40 }
 0x9fd   : > { %v16066_v33 = vpop.f32.mrf.mxu1 }
 0x9fe   : > { %v12717_v51 = vadd.f32 %v16066_v33, %v12395_v15  ;;  %v21850_v29 = vpop.f32.mrf.mxu0  ;;  %v12076_v33 = vadd.f32 %v21738_v24, %v11754_v21 }
 0x9ff   : > { %v12588_v50 = vpop.f32.mrf.mxu1 }
 0xa00   : > { %v12715_v55 = vadd.f32 %v12588_v50, %v12393_v52  ;;  %v21855_v4 = vadd.f32 %v21843_v18, %v12717_v51  ;;  %v12079_v52 = vadd.f32 %v21745_v49, %v11757_v6  ;;  %v21874_v36 = vpop.f32.mrf.mxu0  ;;  %v12398_v61 = vadd.f32 %v21761_v5, %v12076_v33 }
 0xa01   : > { %v16067_v58 = vpop.f32.mrf.mxu1  ;;  %v12403_v6 = vadd.f32 %v21768_v44, %v21743_v12 }
 0xa02   : > { %v21848_v50 = vadd.f32 %v21843_v18, %v12715_v55  ;;  %v12718_v38 = vadd.f32 %v16067_v58, %v12396_v31  ;;  %v12787_v43 = vsel %vm273_vm0, %v21855_v4, 0.0  ;;  %v21887_v5 = vpop.f32.mrf.mxu0 }
 0xa03   : > { %v12591_v9 = vpop.f32.mrf.mxu1 }
 0xa04   : > { %v12716_v59 = vadd.f32 %v12591_v9, %v12394_v3  ;;  %v12784_v46 = vsel %vm273_vm0, %v21848_v50, 0.0  ;;  %v21867_v40 = vadd.f32 %v21843_v18, %v12718_v38  ;;  %v12401_v9 = vadd.f32 %v21775_v23, %v12079_v52 }
 0xa05   : > { %v16070_v10 = vpop.f32.mrf.mxu1 }
 0xa06   : > { %v21858_v28 = vadd.f32 %v21843_v18, %v12716_v59  ;;  %v12721_v15 = vadd.f32 %v16070_v10, %v12399_v41  ;;  %v12789_v49 = vsel %vm273_vm0, %v21867_v40, 0.0  ;;  %v12080_v59 = vadd.f32 %v21752_v22, %v11758_v42 }
 0xa07   : > { %v12604_v58 = vpop.f32.mrf.mxu1 }
 0xa08   : > { %v12785_v24 = vsel %vm273_vm0, %v21858_v28, 0.0  ;;  %v12719_v62 = vadd.f32 %v12604_v58, %v12397_v34  ;;  %v21891_v10 = vadd.f32 %v21843_v18, %v12721_v15 }
 0xa09   : > { %v12786_v11 = vadd.f32 %v12785_v24, %v12784_v46  ;;  %v16071_v7 = vpop.f32.mrf.mxu1  ;;  %v12404_v46 = vadd.f32 %v21782_v25, %v21750_v37  ;;  %v12083_v24 = vadd.f32 %v21759_v32, %v11761_v57  ;;  %v11762_v37 = vadd.f32 %v21647_v26, %v21645_v63 }
 0xa0a   : > { %v21880_v55 = vadd.f32 %v21843_v18, %v12719_v62  ;;  %v12722_v48 = vadd.f32 %v16071_v7, %v12400_v2  ;;  %v21910_v62 = vpop.f32.mrf.mxu0  ;;  %v12402_v2 = vadd.f32 %v21789_v16, %v12080_v59  ;;  %v12795_v12 = vsel %vm273_vm0, %v21891_v10, 0.0 }
 0xa0b   : > { %v12788_v31 = vadd.f32 %v12787_v43, %v12786_v11  ;;  %v12607_v3 = vpop.f32.mrf.mxu1  ;;  %v12405_v43 = vadd.f32 %v21803_v35, %v12083_v24  ;;  %v11765_v26 = vadd.f32 %v21655_v19, %v21653_v30 }
 0xa0c   : > { %v12720_v51 = vadd.f32 %v12607_v3, %v12398_v61  ;;  %v12791_v34 = vsel %vm273_vm0, %v21880_v55, 0.0  ;;  %v21903_v41 = vadd.f32 %v21843_v18, %v12722_v48  ;;  %v21923_v16 = vpop.f32.mrf.mxu0  ;;  %v12084_v3 = vadd.f32 %v21766_v39, %v11762_v37 }
 0xa0d   : > { %v12790_v21 = vadd.f32 %v12789_v49, %v12788_v31  ;;  %v16074_v38 = vpop.f32.mrf.mxu1  ;;  %v12087_v59 = vadd.f32 %v21773_v54, %v11765_v26 }
 0xa0e   : > { %v21896_v60 = vadd.f32 %v21843_v18, %v12720_v51  ;;  %v12725_v44 = vadd.f32 %v16074_v38, %v12403_v6  ;;  %v12797_v32 = vsel %vm273_vm0, %v21903_v41, 0.0  ;;  %v12407_v51 = vadd.f32 %v21796_v0, %v21757_v14 }
 0xa0f   : > { %v12792_v33 = vadd.f32 %v12791_v34, %v12790_v21  ;;  %v12620_v23 = vpop.f32.mrf.mxu1  ;;  %v12408_v38 = vadd.f32 %v21810_v1, %v21764_v13  ;;  %v21946_v34 = vpop.f32.mrf.mxu0  ;;  %v12406_v57 = vadd.f32 %v21817_v45, %v12084_v3  ;;  %v11766_v13 = vadd.f32 %v21663_v8, %v21661_v53  ;;  %v22928_v8 = vld [vmem:[#allocation28_spill] sm:$0xff] }
 0xa10   : > { %v12793_v22 = vsel %vm273_vm0, %v21896_v60, 0.0  ;;  %v12723_v58 = vadd.f32 %v12620_v23, %v12401_v9  ;;  %v21927_v42 = vadd.f32 %v21843_v18, %v12725_v44 }
 0xa11   : > { %v12794_v47 = vadd.f32 %v12793_v22, %v12792_v33  ;;  %v16075_v17 = vpop.f32.mrf.mxu1  ;;  %v21959_v45 = vpop.f32.mrf.mxu0 }
 0xa12   : > { %v21916_v52 = vadd.f32 %v21843_v18, %v12723_v58  ;;  %v12726_v25 = vadd.f32 %v16075_v17, %v12404_v46  ;;  %v12803_v14 = vsel %vm273_vm0, %v21927_v42, 0.0  ;;  %v12409_v58 = vadd.f32 %v21834_v27, %v12087_v59  ;;  %v22934_v59 = vld [vmem:[#allocation30_spill] sm:$0xff] }
 0xa13   : > { %v12796_v11 = vadd.f32 %v12795_v12, %v12794_v47  ;;  %v12623_v7 = vpop.f32.mrf.mxu1  ;;  %v12088_v47 = vadd.f32 %v21780_v56, %v11766_v13  ;;  %v22929_v12 = vld [vmem:[#allocation50_spill] sm:$0xff]  ;;  %v12362_v3 = vpop.f32.mrf.mxu0 }
 0xa14   : > { %v12724_v61 = vadd.f32 %v12623_v7, %v12402_v2  ;;  %v12799_v49 = vsel %vm273_vm0, %v21916_v52, 0.0  ;;  %v21939_v9 = vadd.f32 %v21843_v18, %v12726_v25  ;;  %v11769_v44 = vadd.f32 %v22929_v12, %v22928_v8  ;;  %v22930_v7 = vld [vmem:[#allocation32_spill] sm:$0xff] }
 0xa15   : > { %v12798_v15 = vadd.f32 %v12797_v32, %v12796_v11  ;;  %v16078_v31 = vpop.f32.mrf.mxu1  ;;  %v12411_v37 = vadd.f32 %v21826_v20, %v22930_v7 }
 0xa16   : > { %v21932_v63 = vadd.f32 %v21843_v18, %v12724_v61  ;;  %v12729_v0 = vadd.f32 %v16078_v31, %v12407_v51  ;;  %v12805_v54 = vsel %vm273_vm0, %v21939_v9, 0.0  ;;  %v22931_v61 = vld [vmem:[#allocation14_spill] sm:$0xff] }
 0xa17   : > { %v12800_v48 = vadd.f32 %v12799_v49, %v12798_v15  ;;  %v12636_v35 = vpop.f32.mrf.mxu1  ;;  %v22932_v15 = vld [vmem:[#allocation34_spill] sm:$0xff] }
 0xa18   : > { %v12801_v39 = vsel %vm273_vm0, %v21932_v63, 0.0  ;;  %v12727_v21 = vadd.f32 %v12636_v35, %v12405_v43  ;;  %v21963_v17 = vadd.f32 %v21843_v18, %v12729_v0  ;;  %v12412_v43 = vadd.f32 %v21850_v29, %v22931_v61 }
 0xa19   : > { %v12802_v30 = vadd.f32 %v12801_v39, %v12800_v48  ;;  %v16079_v19 = vpop.f32.mrf.mxu1  ;;  %v12091_v31 = vadd.f32 %v22932_v15, %v11769_v44  ;;  %v12410_v48 = vadd.f32 %v21874_v36, %v12088_v47  ;;  %v16051_v36 = vpop.f32.mrf.mxu0 }
 0xa1a   : > { %v21952_v33 = vadd.f32 %v21843_v18, %v12727_v21  ;;  %v12730_v1 = vadd.f32 %v16079_v19, %v12408_v38  ;;  %v12811_v20 = vsel %vm273_vm0, %v21963_v17, 0.0  ;;  %v22933_v38 = vld [vmem:[#allocation80_spill] sm:$0xff] }
 0xa1b   : > { %v12804_v23 = vadd.f32 %v12803_v14, %v12802_v30  ;;  %v12639_v6 = vpop.f32.mrf.mxu1  ;;  %v11770_v30 = vadd.f32 %v22934_v59, %v22933_v38  ;;  %v12413_v14 = vadd.f32 %v21910_v62, %v12091_v31  ;;  %v22938_v62 = vld [vmem:[#allocation55_spill] sm:$0xff] }
 0xa1c   : > { %v12728_v22 = vadd.f32 %v12639_v6, %v12406_v57  ;;  %v12807_v2 = vsel %vm273_vm0, %v21952_v33, 0.0  ;;  %v21975_v32 = vadd.f32 %v21843_v18, %v12730_v1  ;;  %v22935_v6 = vld [vmem:[#allocation71_spill] sm:$0xff]  ;;  %v12415_v8 = vadd.f32 %v21887_v5, %v22938_v62 }
 0xa1d   : > { %v12806_v46 = vadd.f32 %v12805_v54, %v12804_v23  ;;  %v16082_v24 = vpop.f32.mrf.mxu1  ;;  %v12092_v13 = vadd.f32 %v22935_v6, %v11770_v30  ;;  %v22944_v6 = vld [vmem:[#allocation13_spill] sm:$0xff] }
 0xa1e   : > { %v21968_v53 = vadd.f32 %v21843_v18, %v12728_v22  ;;  %v12733_v35 = vadd.f32 %v16082_v24, %v12411_v37  ;;  %v12813_v29 = vsel %vm273_vm0, %v21975_v32, 0.0  ;;  %v22940_v37 = vld [vmem:[#allocation16_spill] sm:$0xff] }
 0xa1f   : > { %v12808_v11 = vadd.f32 %v12807_v2, %v12806_v46  ;;  %v12652_v27 = vpop.f32.mrf.mxu1  ;;  %v22937_v46 = vld [vmem:[#allocation57_spill] sm:$0xff]  ;;  %v12414_v15 = vadd.f32 %v21946_v34, %v12092_v13  ;;  %v22945_v13 = vld [vmem:[#allocation27_spill] sm:$0xff] }
 0xa20   : > { %v12809_v56 = vsel %vm273_vm0, %v21968_v53, 0.0  ;;  %v12731_v25 = vadd.f32 %v12652_v27, %v12409_v58  ;;  %v21995_v54 = vadd.f32 %v21843_v18, %v12733_v35  ;;  %v22936_v58 = vld [vmem:[#allocation84_spill] sm:$0xff]  ;;  %v22939_v27 = vld [vmem:[#allocation77_spill] sm:$0xff]  ;;  %v22941_v35 = vld [vmem:[#allocation91_spill] sm:$0xff] }
 0xa21   : > { %v12810_v49 = vadd.f32 %v12809_v56, %v12808_v11  ;;  %v16083_v26 = vpop.f32.mrf.mxu1  ;;  %v11773_v24 = vadd.f32 %v22937_v46, %v22936_v58  ;;  %v12416_v7 = vadd.f32 %v21923_v16, %v22939_v27  ;;  %v22948_v27 = vld [vmem:[#allocation33_spill] sm:$0xff] }
 0xa22   : > { %v21986_v51 = vadd.f32 %v21843_v18, %v12731_v25  ;;  %v12734_v19 = vadd.f32 %v16083_v26, %v12412_v43  ;;  %v12365_v25 = vpop.f32.mrf.mxu0  ;;  %v12819_v5 = vsel %vm273_vm0, %v21995_v54, 0.0 }
 0xa23   : > { %v12812_v39 = vadd.f32 %v12811_v20, %v12810_v49  ;;  %v12655_v21 = vpop.f32.mrf.mxu1  ;;  %v12095_v56 = vadd.f32 %v22940_v37, %v11773_v24 }
 0xa24   : > { %v12732_v57 = vadd.f32 %v12655_v21, %v12410_v48  ;;  %v12815_v1 = vsel %vm273_vm0, %v21986_v51, 0.0  ;;  %v22007_v12 = vadd.f32 %v21843_v18, %v12734_v19  ;;  %v16054_v26 = vpop.f32.mrf.mxu0  ;;  %v22943_v19 = vld [vmem:[#allocation31_spill] sm:$0xff] }
 0xa25   : > { %v12814_v0 = vadd.f32 %v12813_v29, %v12812_v39  ;;  %v16086_v23 = vpop.f32.mrf.mxu1  ;;  %v22942_v39 = vld [vmem:[#allocation42_spill] sm:$0xff]  ;;  %v12417_v30 = vadd.f32 %v12362_v3, %v12095_v56  ;;  %v22946_v3 = vld [vmem:[#allocation15_spill] sm:$0xff] }
 0xa26   : > { %v22000_v22 = vadd.f32 %v21843_v18, %v12732_v57  ;;  %v12737_v31 = vadd.f32 %v16086_v23, %v12415_v8  ;;  %v11774_v16 = vadd.f32 %v22942_v39, %v22941_v35  ;;  %v12821_v21 = vsel %vm273_vm0, %v22007_v12, 0.0  ;;  %v12378_v58 = vpop.f32.mrf.mxu0  ;;  %v22950_v35 = vld [vmem:[#allocation29_spill] sm:$0xff] }
 0xa27   : > { %v12816_v47 = vadd.f32 %v12815_v1, %v12814_v0  ;;  %v12668_v2 = vpop.f32.mrf.mxu1  ;;  %v11777_v1 = vadd.f32 %v22945_v13, %v22944_v6 }
 0xa28   : > { %v12817_v44 = vsel %vm273_vm0, %v22000_v22, 0.0  ;;  %v12735_v11 = vadd.f32 %v12668_v2, %v12413_v14  ;;  %v12096_v57 = vadd.f32 %v22943_v19, %v11774_v16  ;;  %v22026_v14 = vadd.f32 %v21843_v18, %v12737_v31 }
 0xa29   : > { %v12818_v61 = vadd.f32 %v12817_v44, %v12816_v47  ;;  %v16087_v43 = vpop.f32.mrf.mxu1  ;;  %v12419_v47 = vadd.f32 %v21959_v45, %v22946_v3  ;;  %v22947_v44 = vld [vmem:[#allocation17_spill] sm:$0xff] }
 0xa2a   : > { %v22018_v49 = vadd.f32 %v21843_v18, %v12735_v11  ;;  %v12738_v38 = vadd.f32 %v16087_v43, %v12416_v7  ;;  %v12420_v11 = vadd.f32 %v16051_v36, %v22947_v44  ;;  %v12099_v7 = vadd.f32 %v22948_v27, %v11777_v1  ;;  %v22952_v1 = vld [vmem:[#allocation86_spill] sm:$0xff] }
 0xa2b   : > { %v12820_v48 = vadd.f32 %v12819_v5, %v12818_v61  ;;  %v12671_v20 = vpop.f32.mrf.mxu1  ;;  %v12418_v61 = vadd.f32 %v12365_v25, %v12096_v57  ;;  %v12827_v43 = vsel %vm273_vm0, %v22026_v14, 0.0  ;;  %v16055_v5 = vpop.f32.mrf.mxu0 }
 0xa2c   : > { %v12736_v59 = vadd.f32 %v12671_v20, %v12414_v15  ;;  %v12823_v0 = vsel %vm273_vm0, %v22018_v49, 0.0  ;;  %v22038_v2 = vadd.f32 %v21843_v18, %v12738_v38  ;;  %v22949_v20 = vld [vmem:[#allocation74_spill] sm:$0xff]  ;;  %v12421_v38 = vadd.f32 %v12378_v58, %v12099_v7 }
 0xa2d   : > { %v12822_v34 = vadd.f32 %v12821_v21, %v12820_v48  ;;  %v16090_v29 = vpop.f32.mrf.mxu1  ;;  %v11778_v39 = vadd.f32 %v22950_v35, %v22949_v20 }
 0xa2e   : > { %v22031_v23 = vadd.f32 %v21843_v18, %v12736_v59  ;;  %v12741_v15 = vadd.f32 %v16090_v29, %v12419_v47  ;;  %v12829_v36 = vsel %vm273_vm0, %v22038_v2, 0.0  ;;  %v22953_v47 = vld [vmem:[#allocation36_spill] sm:$0xff] }
 0xa2f   : > { %v12824_v46 = vadd.f32 %v12823_v0, %v12822_v34  ;;  %v12684_v24 = vpop.f32.mrf.mxu1  ;;  %v12381_v0 = vpop.f32.mrf.mxu0 }
 0xa30   : > { %v12825_v62 = vsel %vm273_vm0, %v22031_v23, 0.0  ;;  %v12739_v8 = vadd.f32 %v12684_v24, %v12417_v30  ;;  %v22951_v30 = vld [vmem:[#allocation18_spill] sm:$0xff]  ;;  %v12778_v29 = vadd.f32 %v21843_v18, %v12741_v15 }
 0xa31   : > { %v12826_v37 = vadd.f32 %v12825_v62, %v12824_v46  ;;  %v16091_v56 = vpop.f32.mrf.mxu1  ;;  %v12100_v34 = vadd.f32 %v22951_v30, %v11778_v39  ;;  %v12423_v46 = vadd.f32 %v16054_v26, %v22952_v1  ;;  %v12424_v62 = vadd.f32 %v16055_v5, %v22953_v47 }
 0xa32   : > { %v22047_v45 = vadd.f32 %v21843_v18, %v12739_v8  ;;  %v12742_v16 = vadd.f32 %v16091_v56, %v12420_v11  ;;  %v12835_v27 = vsel %vm273_vm0, %v12778_v29, 0.0 }
 0xa33   : > { %v12828_v31 = vadd.f32 %v12827_v43, %v12826_v37  ;;  %v12687_v48 = vpop.f32.mrf.mxu1  ;;  %v12422_v11 = vadd.f32 %v12381_v0, %v12100_v34 }
 0xa34   : > { %v12740_v21 = vadd.f32 %v12687_v48, %v12418_v61  ;;  %v12831_v19 = vsel %vm273_vm0, %v22047_v45, 0.0  ;;  %v12779_v24 = vadd.f32 %v21843_v18, %v12742_v16 }
 0xa35   : > { %v12830_v25 = vadd.f32 %v12829_v36, %v12828_v31  ;;  %v16094_v59 = vpop.f32.mrf.mxu1 }
 0xa36   : > { %v12777_v57 = vadd.f32 %v21843_v18, %v12740_v21  ;;  %v12745_v7 = vadd.f32 %v16094_v59, %v12423_v46  ;;  %v12837_v43 = vsel %vm273_vm0, %v12779_v24, 0.0 }
 0xa37   : > { %v12832_v6 = vadd.f32 %v12831_v19, %v12830_v25  ;;  %v12700_v13 = vpop.f32.mrf.mxu1 }
 0xa38   : > { %v12833_v58 = vsel %vm273_vm0, %v12777_v57, 0.0  ;;  %v12743_v3 = vadd.f32 %v12700_v13, %v12421_v38  ;;  %v12782_v48 = vadd.f32 %v21843_v18, %v12745_v7 }
 0xa39   : > { %v12834_v8 = vadd.f32 %v12833_v58, %v12832_v6  ;;  %v16095_v44 = vpop.f32.mrf.mxu1 }
 0xa3a   : > { %v12780_v37 = vadd.f32 %v21843_v18, %v12743_v3  ;;  %v12746_v26 = vadd.f32 %v16095_v44, %v12424_v62  ;;  %v12843_v21 = vsel %vm273_vm0, %v12782_v48, 0.0 }
 0xa3b   : > { %v12836_v56 = vadd.f32 %v12835_v27, %v12834_v8  ;;  %v12703_v61 = vpop.f32.mrf.mxu1 }
 0xa3c   : > { %v12744_v15 = vadd.f32 %v12703_v61, %v12422_v11  ;;  %v12839_v20 = vsel %vm273_vm0, %v12780_v37, 0.0  ;;  %v12783_v39 = vadd.f32 %v21843_v18, %v12746_v26 }
 0xa3d   : > { %v12838_v31 = vadd.f32 %v12837_v43, %v12836_v56 }
 0xa3e   : > { %v12781_v5 = vadd.f32 %v21843_v18, %v12744_v15  ;;  %v12845_v25 = vsel %vm273_vm0, %v12783_v39, 0.0 }
 0xa3f   : > { %v12840_v35 = vadd.f32 %v12839_v20, %v12838_v31 }
 0xa40   : > { %v12841_v36 = vsel %vm273_vm0, %v12781_v5, 0.0 }
 0xa41   : > { %v12842_v16 = vadd.f32 %v12841_v36, %v12840_v35 }
 0xa43   : > { %v12844_v38 = vadd.f32 %v12843_v21, %v12842_v16 }
 0xa45   : > { %v12846_v59 = vadd.f32 %v12845_v25, %v12844_v38 }
 0xa47   : > { %v12847_v30 = vrot.slane %v12846_v59, 4 }
 0xa49   : > { %v12848_v34 = vadd.f32 %v12847_v30, %v12846_v59 }
 0xa4b   : > { %v12849_v19 = vrot.slane %v12848_v34, 2 }
 0xa4d   : > { %v12850_v0 = vadd.f32 %v12849_v19, %v12848_v34 }
 0xa4f   : > { %v12851_v6 = vrot.slane %v12850_v0, 1 }
 0xa51   : > { %v12852_v13 = vadd.f32 %v12851_v6, %v12850_v0 }
 0xa53   : > { %v12853_v1 = vmul.f32 0.00390625, %v12852_v13 }
 0xa55   : > { %v22073_v46 = vsub.f32 %v21932_v63, %v12853_v1  ;;  %v22076_v18 = vsub.f32 %v21952_v33, %v12853_v1  ;;  %v22079_v58 = vsub.f32 %v21968_v53, %v12853_v1  ;;  %v22082_v3 = vsub.f32 %v21963_v17, %v12853_v1 }
 0xa56   : > { %v22085_v47 = vsub.f32 %v21975_v32, %v12853_v1  ;;  %v22088_v62 = vsub.f32 %v21986_v51, %v12853_v1  ;;  %v22091_v8 = vsub.f32 %v22000_v22, %v12853_v1  ;;  %v22094_v63 = vsub.f32 %v21995_v54, %v12853_v1 }
 0xa57   : > { %v22097_v33 = vsub.f32 %v22007_v12, %v12853_v1  ;;  %v22100_v53 = vsub.f32 %v22018_v49, %v12853_v1  ;;  %v22103_v17 = vsub.f32 %v22031_v23, %v12853_v1  ;;  %v22106_v32 = vsub.f32 %v22026_v14, %v12853_v1 }
 0xa58   : > { %v22109_v51 = vsub.f32 %v22038_v2, %v12853_v1  ;;  %v22112_v22 = vsub.f32 %v22047_v45, %v12853_v1  ;;  %v22114_v54 = vsub.f32 %v12777_v57, %v12853_v1  ;;  %v22116_v44 = vsub.f32 %v12778_v29, %v12853_v1 }
 0xa59   : > { %v22118_v12 = vsub.f32 %v12779_v24, %v12853_v1  ;;  %v22120_v49 = vsub.f32 %v12780_v37, %v12853_v1  ;;  %v22122_v11 = vsub.f32 %v12781_v5, %v12853_v1  ;;  %v22124_v23 = vsub.f32 %v12782_v48, %v12853_v1 }
 0xa5a   : > { %v22126_v14 = vsub.f32 %v12783_v39, %v12853_v1  ;;  %v22129_v2 = vsub.f32 %v21848_v50, %v12853_v1  ;;  %v22132_v45 = vsub.f32 %v21858_v28, %v12853_v1  ;;  %v22135_v57 = vsub.f32 %v21855_v4, %v12853_v1 }
 0xa5b   : > { %v22138_v29 = vsub.f32 %v21867_v40, %v12853_v1  ;;  %v22145_v7 = vsub.f32 %v21880_v55, %v12853_v1  ;;  %v22150_v28 = vsub.f32 %v21896_v60, %v12853_v1  ;;  %v22157_v61 = vsub.f32 %v21891_v10, %v12853_v1 }
 0xa5c   : > { %v12886_v24 = vmul.f32 %v22129_v2, %v22129_v2  ;;  %v12887_v27 = vmul.f32 %v22132_v45, %v22132_v45  ;;  %v12888_v50 = vmul.f32 %v22135_v57, %v22135_v57  ;;  %v22163_v60 = vsub.f32 %v21903_v41, %v12853_v1 }
 0xa5d   : > { %v12889_v4 = vmul.f32 %v22138_v29, %v22138_v29  ;;  %v12890_v55 = vmul.f32 %v22145_v7, %v22145_v7  ;;  %v12891_v15 = vmul.f32 %v22150_v28, %v22150_v28  ;;  %v22169_v20 = vsub.f32 %v21916_v52, %v12853_v1 }
 0xa5e   : > { %v12918_v40 = vsel %vm273_vm0, %v12886_v24, 0.0  ;;  %v12919_v37 = vsel %vm273_vm0, %v12887_v27, 0.0  ;;  %v12921_v43 = vsel %vm273_vm0, %v12888_v50, 0.0  ;;  %v12892_v10 = vmul.f32 %v22157_v61, %v22157_v61 }
 0xa5f   : > { %v12920_v56 = vadd.f32 %v12919_v37, %v12918_v40  ;;  %v12923_v31 = vsel %vm273_vm0, %v12889_v4, 0.0  ;;  %v12925_v5 = vsel %vm273_vm0, %v12890_v55, 0.0  ;;  %v12893_v39 = vmul.f32 %v22163_v60, %v22163_v60 }
 0xa60   : > { %v12927_v41 = vsel %vm273_vm0, %v12891_v15, 0.0  ;;  %v22178_v16 = vsub.f32 %v21927_v42, %v12853_v1  ;;  %v12894_v21 = vmul.f32 %v22169_v20, %v22169_v20  ;;  %v12929_v52 = vsel %vm273_vm0, %v12892_v10, 0.0 }
 0xa61   : > { %v12922_v26 = vadd.f32 %v12921_v43, %v12920_v56  ;;  %v22184_v25 = vsub.f32 %v21939_v9, %v12853_v1  ;;  %v12895_v59 = vmul.f32 %v22073_v46, %v22073_v46  ;;  %v12931_v30 = vsel %vm273_vm0, %v12893_v39, 0.0 }
 0xa62   : > { %v12896_v19 = vmul.f32 %v22178_v16, %v22178_v16  ;;  %v12933_v42 = vsel %vm273_vm0, %v12894_v21, 0.0  ;;  %v12898_v9 = vmul.f32 %v22076_v18, %v22076_v18  ;;  %v12899_v50 = vmul.f32 %v22079_v58, %v22079_v58 }
 0xa63   : > { %v12924_v48 = vadd.f32 %v12923_v31, %v12922_v26  ;;  %v12897_v6 = vmul.f32 %v22184_v25, %v22184_v25  ;;  %v12935_v13 = vsel %vm273_vm0, %v12895_v59, 0.0  ;;  %v12900_v37 = vmul.f32 %v22082_v3, %v22082_v3 }
 0xa64   : > { %v12937_v1 = vsel %vm273_vm0, %v12896_v19, 0.0  ;;  %v12941_v56 = vsel %vm273_vm0, %v12898_v9, 0.0  ;;  %v12901_v43 = vmul.f32 %v22085_v47, %v22085_v47  ;;  %v12943_v26 = vsel %vm273_vm0, %v12899_v50, 0.0 }
 0xa65   : > { %v12926_v35 = vadd.f32 %v12925_v5, %v12924_v48  ;;  %v12939_v4 = vsel %vm273_vm0, %v12897_v6, 0.0  ;;  %v12902_v31 = vmul.f32 %v22088_v62, %v22088_v62  ;;  %v12945_v48 = vsel %vm273_vm0, %v12900_v37, 0.0 }
 0xa66   : > { %v12903_v5 = vmul.f32 %v22091_v8, %v22091_v8 }
 0xa67   : > { %v12928_v36 = vadd.f32 %v12927_v41, %v12926_v35  ;;  %v12947_v35 = vsel %vm273_vm0, %v12901_v43, 0.0  ;;  %v12904_v41 = vmul.f32 %v22094_v63, %v22094_v63 }
 0xa69   : > { %v12930_v38 = vadd.f32 %v12929_v52, %v12928_v36  ;;  %v12949_v36 = vsel %vm273_vm0, %v12902_v31, 0.0  ;;  %v12905_v52 = vmul.f32 %v22097_v33, %v22097_v33 }
 0xa6b   : > { %v12932_v34 = vadd.f32 %v12931_v30, %v12930_v38  ;;  %v12951_v38 = vsel %vm273_vm0, %v12903_v5, 0.0  ;;  %v12906_v30 = vmul.f32 %v22100_v53, %v22100_v53 }
 0xa6d   : > { %v12934_v0 = vadd.f32 %v12933_v42, %v12932_v34  ;;  %v12953_v34 = vsel %vm273_vm0, %v12904_v41, 0.0  ;;  %v12907_v42 = vmul.f32 %v22103_v17, %v22103_v17 }
 0xa6f   : > { %v12936_v24 = vadd.f32 %v12935_v13, %v12934_v0  ;;  %v12955_v0 = vsel %vm273_vm0, %v12905_v52, 0.0  ;;  %v12908_v13 = vmul.f32 %v22106_v32, %v22106_v32 }
 0xa71   : > { %v12938_v27 = vadd.f32 %v12937_v1, %v12936_v24  ;;  %v12957_v24 = vsel %vm273_vm0, %v12906_v30, 0.0  ;;  %v12909_v1 = vmul.f32 %v22109_v51, %v22109_v51 }
 0xa73   : > { %v12940_v40 = vadd.f32 %v12939_v4, %v12938_v27  ;;  %v12959_v27 = vsel %vm273_vm0, %v12907_v42, 0.0  ;;  %v12910_v4 = vmul.f32 %v22112_v22, %v22112_v22 }
 0xa75   : > { %v12942_v55 = vadd.f32 %v12941_v56, %v12940_v40  ;;  %v12961_v40 = vsel %vm273_vm0, %v12908_v13, 0.0  ;;  %v12911_v56 = vmul.f32 %v22114_v54, %v22114_v54 }
 0xa77   : > { %v12944_v15 = vadd.f32 %v12943_v26, %v12942_v55  ;;  %v12963_v55 = vsel %vm273_vm0, %v12909_v1, 0.0  ;;  %v12912_v26 = vmul.f32 %v22116_v44, %v22116_v44 }
 0xa79   : > { %v12946_v10 = vadd.f32 %v12945_v48, %v12944_v15  ;;  %v12965_v15 = vsel %vm273_vm0, %v12910_v4, 0.0  ;;  %v12913_v48 = vmul.f32 %v22118_v12, %v22118_v12 }
 0xa7b   : > { %v12948_v39 = vadd.f32 %v12947_v35, %v12946_v10  ;;  %v12967_v10 = vsel %vm273_vm0, %v12911_v56, 0.0  ;;  %v12914_v35 = vmul.f32 %v22120_v49, %v22120_v49 }
 0xa7d   : > { %v12950_v21 = vadd.f32 %v12949_v36, %v12948_v39  ;;  %v12969_v39 = vsel %vm273_vm0, %v12912_v26, 0.0  ;;  %v12915_v36 = vmul.f32 %v22122_v11, %v22122_v11 }
 0xa7f   : > { %v12952_v59 = vadd.f32 %v12951_v38, %v12950_v21  ;;  %v12971_v21 = vsel %vm273_vm0, %v12913_v48, 0.0  ;;  %v12916_v38 = vmul.f32 %v22124_v23, %v22124_v23 }
 0xa81   : > { %v12954_v19 = vadd.f32 %v12953_v34, %v12952_v59  ;;  %v12973_v59 = vsel %vm273_vm0, %v12914_v35, 0.0  ;;  %v12917_v34 = vmul.f32 %v22126_v14, %v22126_v14 }
 0xa83   : > { %v12956_v6 = vadd.f32 %v12955_v0, %v12954_v19  ;;  %v12975_v19 = vsel %vm273_vm0, %v12915_v36, 0.0  ;;  %v12977_v0 = vsel %vm273_vm0, %v12916_v38, 0.0  ;;  %v12979_v13 = vsel %vm273_vm0, %v12917_v34, 0.0  ;;  %v22961_v34 = vld [vmem:[#allocation82_spill] sm:$0xff] }
 0xa85   : > { %v12958_v9 = vadd.f32 %v12957_v24, %v12956_v6 }
 0xa87   : > { %v12960_v50 = vadd.f32 %v12959_v27, %v12958_v9 }
 0xa89   : > { %v12962_v37 = vadd.f32 %v12961_v40, %v12960_v50 }
 0xa8b   : > { %v12964_v43 = vadd.f32 %v12963_v55, %v12962_v37 }
 0xa8d   : > { %v12966_v31 = vadd.f32 %v12965_v15, %v12964_v43 }
 0xa8f   : > { %v12968_v5 = vadd.f32 %v12967_v10, %v12966_v31 }
 0xa91   : > { %v12970_v41 = vadd.f32 %v12969_v39, %v12968_v5  ;;  %v22954_v39 = vld [vmem:[#allocation68_spill] sm:$0xff] }
 0xa93   : > { %v12972_v52 = vadd.f32 %v12971_v21, %v12970_v41 }
 0xa95   : > { %v12974_v30 = vadd.f32 %v12973_v59, %v12972_v52  ;;  %v22959_v59 = vld [vmem:[#allocation58_spill] sm:$0xff] }
 0xa97   : > { %v12976_v42 = vadd.f32 %v12975_v19, %v12974_v30  ;;  %v22960_v30 = vld [vmem:[#allocation53_spill] sm:$0xff]  ;;  %v22962_v19 = vld [vmem:[#allocation47_spill] sm:$0xff] }
 0xa99   : > { %v12978_v6 = vadd.f32 %v12977_v0, %v12976_v42  ;;  %v22963_v42 = vld [vmem:[#allocation67_spill] sm:$0xff] }
 0xa9b   : > { %v12980_v24 = vadd.f32 %v12979_v13, %v12978_v6  ;;  %v22964_v6 = vld [vmem:[#allocation60_spill] sm:$0xff] }
 0xa9d   : > { %v12981_v9 = vrot.slane %v12980_v24, 4 }
 0xa9f   : > { %v12982_v1 = vadd.f32 %v12981_v9, %v12980_v24  ;;  %v22965_v24 = vld [vmem:[#allocation69_spill] sm:$0xff] }
 0xaa1   : > { %v12983_v27 = vrot.slane %v12982_v1, 2 }
 0xaa3   : > { %v12984_v50 = vadd.f32 %v12983_v27, %v12982_v1  ;;  %v22966_v1 = vld [vmem:[#allocation85_spill] sm:$0xff] }
 0xaa5   : > { %v12985_v4 = vrot.slane %v12984_v50, 1 }
 0xaa7   : > { %v12986_v40 = vadd.f32 %v12985_v4, %v12984_v50  ;;  %v22967_v50 = vld [vmem:[#allocation48_spill] sm:$0xff] }
 0xaa9   : > { %v12987_v37 = vmul.f32 0.00390625, %v12986_v40  ;;  %v22968_v40 = vld [vmem:[#allocation61_spill] sm:$0xff] }
 0xaab   : > { %v12988_v56 = vadd.f32 1e-05, %v12987_v37 }
 0xaad   : > { %16320 = vrsqrt.f32 %v12988_v56  ;;  %v22969_v56 = vld [vmem:[#allocation70_spill] sm:$0xff] }
 0xaba   : > { %v16321_v55 = vpop.eup %16320 }
 0xabb   : > { %v13019_v43 = vmul.f32 %v16321_v55, %v22122_v11  ;;  %v12990_v26 = vmul.f32 %v16321_v55, %v22129_v2  ;;  %v12991_v15 = vmul.f32 %v16321_v55, %v22132_v45  ;;  %v12992_v31 = vmul.f32 %v16321_v55, %v22135_v57 }
 0xabc   : > { %v12993_v48 = vmul.f32 %v16321_v55, %v22138_v29  ;;  %v12994_v10 = vmul.f32 %v16321_v55, %v22145_v7  ;;  %v12995_v5 = vmul.f32 %v16321_v55, %v22150_v28  ;;  %v12996_v35 = vmul.f32 %v16321_v55, %v22157_v61 }
 0xabd   : > { %v13051_v41 = vadd.f32 %v13019_v43, %v22954_v39  ;;  %v12997_v36 = vmul.f32 %v16321_v55, %v22163_v60  ;;  %v12998_v11 = vmul.f32 %v16321_v55, %v22169_v20  ;;  %v12999_v2 = vmul.f32 %v16321_v55, %v22073_v46  ;;  %v22970_v43 = vld [vmem:[#allocation51_spill] sm:$0xff]  ;;  %v22974_v39 = vld [vmem:[#allocation65_spill] sm:$0xff] }
 0xabe   : > { %v13000_v45 = vmul.f32 %v16321_v55, %v22178_v16  ;;  %v13001_v57 = vmul.f32 %v16321_v55, %v22184_v25  ;;  %v13002_v29 = vmul.f32 %v16321_v55, %v22076_v18  ;;  %v13003_v7 = vmul.f32 %v16321_v55, %v22079_v58 }
 0xabf   : > { %13083 = vst.msk [vmem:[%s22275_s7 + $0xe8] sm:$0xff] %vm273_vm0, %v13051_v41  ;;  %v13004_v28 = vmul.f32 %v16321_v55, %v22082_v3  ;;  %v13005_v61 = vmul.f32 %v16321_v55, %v22085_v47  ;;  %v13006_v46 = vmul.f32 %v16321_v55, %v22088_v62  ;;  %v13007_v60 = vmul.f32 %v16321_v55, %v22091_v8 }
 0xac0   : > { %v13008_v20 = vmul.f32 %v16321_v55, %v22094_v63  ;;  %v13009_v18 = vmul.f32 %v16321_v55, %v22097_v33  ;;  %v13010_v58 = vmul.f32 %v16321_v55, %v22100_v53  ;;  %v13011_v16 = vmul.f32 %v16321_v55, %v22103_v17  ;;  %v22955_v17 = vld [vmem:[#allocation62_spill] sm:$0xff] }
 0xac1   : > { %v13012_v25 = vmul.f32 %v16321_v55, %v22106_v32  ;;  %v13013_v21 = vmul.f32 %v16321_v55, %v22109_v51  ;;  %v13014_v3 = vmul.f32 %v16321_v55, %v22112_v22  ;;  %v13015_v47 = vmul.f32 %v16321_v55, %v22114_v54  ;;  %v22956_v51 = vld [vmem:[#allocation59_spill] sm:$0xff]  ;;  %v22958_v54 = vld [vmem:[#allocation76_spill] sm:$0xff] }
 0xac2   : > { %v13016_v62 = vmul.f32 %v16321_v55, %v22116_v44  ;;  %v13017_v8 = vmul.f32 %v16321_v55, %v22118_v12  ;;  %v13018_v63 = vmul.f32 %v16321_v55, %v22120_v49  ;;  %v13020_v33 = vmul.f32 %v16321_v55, %v22124_v23  ;;  %v22957_v22 = vld [vmem:[#allocation83_spill] sm:$0xff] }
 0xac3   : > { %v13021_v53 = vmul.f32 %v16321_v55, %v22126_v14  ;;  %v13022_v32 = vadd.f32 %v12990_v26, %v22955_v17  ;;  %v13023_v52 = vadd.f32 %v12991_v15, %v22956_v51  ;;  %v13024_v38 = vadd.f32 %v12992_v31, %v22957_v22  ;;  %v22971_v15 = vld [vmem:[#allocation78_spill] sm:$0xff]  ;;  %v22985_v17 = vld [vmem:[#allocation81_spill] sm:$0xff] }
 0xac4   : > { %v13025_v44 = vadd.f32 %v12993_v48, %v22958_v54  ;;  %v13026_v12 = vadd.f32 %v12994_v10, %v22959_v59  ;;  %v13027_v49 = vadd.f32 %v12995_v5, %v22960_v30  ;;  %v13028_v23 = vadd.f32 %v12996_v35, %v22961_v34  ;;  %v22972_v48 = vld [vmem:[#allocation63_spill] sm:$0xff]  ;;  %v22973_v5 = vld [vmem:[#allocation64_spill] sm:$0xff] }
 0xac5   : > { %v13029_v14 = vadd.f32 %v12997_v36, %v22962_v19  ;;  %v13030_v0 = vadd.f32 %v12998_v11, %v22963_v42  ;;  %v13031_v13 = vadd.f32 %v12999_v2, %v22964_v6  ;;  %v13032_v9 = vadd.f32 %v13000_v45, %v22965_v24  ;;  %13054 = vst.msk [vmem:[%s22275_s7] sm:$0xff] %vm273_vm0, %v13022_v32  ;;  %v22975_v36 = vld [vmem:[#allocation56_spill] sm:$0xff]  ;;  %v22976_v2 = vld [vmem:[#allocation75_spill] sm:$0xff] }
 0xac6   : > { %13055 = vst.msk [vmem:[%s22275_s7 + $0x8] sm:$0xff] %vm273_vm0, %v13023_v52  ;;  %13056 = vst.msk [vmem:[%s22275_s7 + $0x10] sm:$0xff] %vm273_vm0, %v13024_v38  ;;  %v13033_v27 = vadd.f32 %v13001_v57, %v22966_v1  ;;  %v13034_v4 = vadd.f32 %v13002_v29, %v22967_v50  ;;  %v13035_v37 = vadd.f32 %v13003_v7, %v22968_v40  ;;  %v22977_v57 = vld [vmem:[#allocation88_spill] sm:$0xff]  ;;  %v22978_v7 = vld [vmem:[#allocation90_spill] sm:$0xff] }
 0xac7   : > { %v13036_v55 = vadd.f32 %v13004_v28, %v22969_v56  ;;  %13057 = vst.msk [vmem:[%s22275_s7 + $0x18] sm:$0xff] %vm273_vm0, %v13025_v44  ;;  %13058 = vst.msk [vmem:[%s22275_s7 + $0x20] sm:$0xff] %vm273_vm0, %v13026_v12  ;;  %v13037_v26 = vadd.f32 %v13005_v61, %v22970_v43  ;;  %v13038_v31 = vadd.f32 %v13006_v46, %v22971_v15  ;;  %v22979_v61 = vld [vmem:[#allocation79_spill] sm:$0xff] }
 0xac8   : > { %13059 = vst.msk [vmem:[%s22275_s7 + $0x28] sm:$0xff] %vm273_vm0, %v13027_v49  ;;  %13060 = vst.msk [vmem:[%s22275_s7 + $0x30] sm:$0xff] %vm273_vm0, %v13028_v23  ;;  %v13039_v10 = vadd.f32 %v13007_v60, %v22972_v48  ;;  %v13040_v35 = vadd.f32 %v13008_v20, %v22973_v5  ;;  %v13041_v41 = vadd.f32 %v13009_v18, %v22974_v39  ;;  %v22980_v60 = vld [vmem:[#allocation52_spill] sm:$0xff] }
 0xac9   : > { %13061 = vst.msk [vmem:[%s22275_s7 + $0x38] sm:$0xff] %vm273_vm0, %v13029_v14  ;;  %13062 = vst.msk [vmem:[%s22275_s7 + $0x40] sm:$0xff] %vm273_vm0, %v13030_v0  ;;  %v13042_v11 = vadd.f32 %v13010_v58, %v22975_v36  ;;  %v13043_v45 = vadd.f32 %v13011_v16, %v22976_v2  ;;  %v13044_v29 = vadd.f32 %v13012_v25, %v22977_v57  ;;  %v22981_v18 = vld [vmem:[#allocation72_spill] sm:$0xff]  ;;  %v22982_v16 = vld [vmem:[#allocation45_spill] sm:$0xff] }
 0xaca   : > { %13063 = vst.msk [vmem:[%s22275_s7 + $0x48] sm:$0xff] %vm273_vm0, %v13031_v13  ;;  %13064 = vst.msk [vmem:[%s22275_s7 + $0x50] sm:$0xff] %vm273_vm0, %v13032_v9  ;;  %v13045_v28 = vadd.f32 %v13013_v21, %v22978_v7  ;;  %v13046_v46 = vadd.f32 %v13014_v3, %v22979_v61  ;;  %v13047_v20 = vadd.f32 %v13015_v47, %v22980_v60  ;;  %v22983_v21 = vld [vmem:[#allocation46_spill] sm:$0xff] }
 0xacb   : > { %13065 = vst.msk [vmem:[%s22275_s7 + $0x58] sm:$0xff] %vm273_vm0, %v13033_v27  ;;  %13066 = vst.msk [vmem:[%s22275_s7 + $0x60] sm:$0xff] %vm273_vm0, %v13034_v4  ;;  %v13048_v58 = vadd.f32 %v13016_v62, %v22981_v18  ;;  %v13049_v25 = vadd.f32 %v13017_v8, %v22982_v16  ;;  %v13050_v3 = vadd.f32 %v13018_v63, %v22983_v21  ;;  %v22984_v47 = vld [vmem:[#allocation54_spill] sm:$0xff] }
 0xacc   : > { %13067 = vst.msk [vmem:[%s22275_s7 + $0x68] sm:$0xff] %vm273_vm0, %v13035_v37  ;;  %13068 = vst.msk [vmem:[%s22275_s7 + $0x70] sm:$0xff] %vm273_vm0, %v13036_v55  ;;  %v13052_v62 = vadd.f32 %v13020_v33, %v22984_v47  ;;  %v13053_v32 = vadd.f32 %v13021_v53, %v22985_v17 }
 0xacd   : > { %13069 = vst.msk [vmem:[%s22275_s7 + $0x78] sm:$0xff] %vm273_vm0, %v13037_v26  ;;  %13070 = vst.msk [vmem:[%s22275_s7 + $0x80] sm:$0xff] %vm273_vm0, %v13038_v31 }
 0xace   : > { %13071 = vst.msk [vmem:[%s22275_s7 + $0x88] sm:$0xff] %vm273_vm0, %v13039_v10  ;;  %13072 = vst.msk [vmem:[%s22275_s7 + $0x90] sm:$0xff] %vm273_vm0, %v13040_v35 }
 0xacf   : > { %13073 = vst.msk [vmem:[%s22275_s7 + $0x98] sm:$0xff] %vm273_vm0, %v13041_v41  ;;  %13074 = vst.msk [vmem:[%s22275_s7 + $0xa0] sm:$0xff] %vm273_vm0, %v13042_v11 }
 0xad0   : > { %13075 = vst.msk [vmem:[%s22275_s7 + $0xa8] sm:$0xff] %vm273_vm0, %v13043_v45  ;;  %13076 = vst.msk [vmem:[%s22275_s7 + $0xb0] sm:$0xff] %vm273_vm0, %v13044_v29 }
 0xad1   : > { %13077 = vst.msk [vmem:[%s22275_s7 + $0xb8] sm:$0xff] %vm273_vm0, %v13045_v28  ;;  %13078 = vst.msk [vmem:[%s22275_s7 + $0xc0] sm:$0xff] %vm273_vm0, %v13046_v46 }
 0xad2   : > { %13079 = vst.msk [vmem:[%s22275_s7 + $0xc8] sm:$0xff] %vm273_vm0, %v13047_v20  ;;  %13080 = vst.msk [vmem:[%s22275_s7 + $0xd0] sm:$0xff] %vm273_vm0, %v13048_v58 }
 0xad3   : > { %13081 = vst.msk [vmem:[%s22275_s7 + $0xd8] sm:$0xff] %vm273_vm0, %v13049_v25  ;;  %13082 = vst.msk [vmem:[%s22275_s7 + $0xe0] sm:$0xff] %vm273_vm0, %v13050_v3 }
 0xad4   : > { %13084 = vst.msk [vmem:[%s22275_s7 + $0xf0] sm:$0xff] %vm273_vm0, %v13052_v62  ;;  %13085 = vst.msk [vmem:[%s22275_s7 + $0xf8] sm:$0xff] %vm273_vm0, %v13053_v32 }
 0xad5   : > { %16415 = shalt.err (!%p16412_p9)
}
 0xad6   : > { %s16416_s10 = scalar_lea.hbm %s22366_s17, 4096  ;;  %s16420_s28 = scalar_lea.hbm %s22444_s5, 8192 }
 0xad7   : > { %p16417_p13 = scmp.ne.s32.totalorder %s22366_s17, %s16416_s10  ;;  %p16421_p4 = scmp.lt.s32.totalorder %s22366_s17, %s22444_s5 }
 0xad8   : > { %p16422_p8 = scmp.lt.s32.totalorder %s16420_s28, %s16416_s10 }
 0xad9   : > { %p16418_p5 = pnand %p16417_p13, %p22986_p10 }
 0xada   : > { %p16423_p3 = por %p16422_p8, %p16421_p4 }
 0xadb   : > { %p16419_p0 = pneg %p16418_p5 }
 0xadd   : > { %p16424_p11 = pnand %p16423_p3, %p16419_p0 }
 0xadf   : > { %16427 = shalt.err (!%p16424_p11)
}
 0xae0   : > { %s16481_s9 = smov 128   ;;  %s16482_s22 = smov 8  }
 0xae1   : > { %16106 = dma.vmem_to_hbm [thread:$0]  (%p22986_p10), %s22368_s13, 4096, %s22366_s17, %s13087_s29, %s16481_s9, %s16481_s9, %s16482_s22  }
 0xae2 PF: > { %s13115_s14 = sand.u32 1, %s16458_s18   ;;  %p22987_p1 = scmp.ne.s32.totalorder %s22514_s25, 0 }
 0xae3   : > { %p22988_p2 = scmp.ge.s32.totalorder %s16470_s21, 2  ;;  %s13116_s30 = scalar_lea.sflag [#allocation5], %s13115_s14 }
 0xae5   : > { %p16120_p6 = pnand %p22988_p2, %p22987_p1 }
 0xae7   : > { %p16121_p12 = pneg %p16120_p6 }
 0xae9   : > { %16453 = dma.done.wait (%p16121_p12), %s13116_s30, 4096  }
 0xaea   : > { %16455 = vsyncadd (%p16121_p12), %s13116_s30, 4294963200  ;;  %p19_p7 = scmp.ge.s32.totalorder %s16585_s15, 4   ;;  %s22989_s18 = smov %s16462_s19 }
 0xaeb   : > { %s22990_s19 = smov %s16466_s20  ;;  %s22991_s20 = smov %s16601_s27 }
 0xaec   : > { %s22992_s21 = smov %s16585_s15  ;;  %21 = sbr.rel (!%p19_p7) target bundleno = 6 (0x6), region = 129 }
 0xaf1   :  { %13121 = vsyncpa [#allocation4], 1 }
 0xaf2   :  { %13123 = vsyncpa [#allocation4 + $0x1], 1 }
 0xaf3   :  { %13124 = vsyncpa [#allocation7], 1 }
 0xaf4   :  { %13125 = vsyncpa [#allocation5], 1 }
 0xaf5   :  { %13127 = vsyncpa [#allocation5 + $0x1], 1 }

</bundles_post_ra>
